<compile_context>
chip_gen: v6e
topology: v6e:2x2x1
jax: 0.10.0
libtpu: 0.0.40
codegen_flags: <defaults>
</compile_context>

<pallas_src>
import jax
import jax.numpy as jnp
import numpy as np
from jax.experimental import pallas as pl
from jax.experimental.pallas import tpu as pltpu

# Stand-ins for `constant.nz`, `constant.n_class`, `constant.ngf` (small synthetic sizes).
NZ = 16
N_CLASS = 4
NGF = 8
BATCH = 2
BN_EPS = 1e-5
LRELU_SLOPE = 0.2


# ------------------------- fused Pallas kernels -------------------------

def _make_gemm_bn_lrelu_kernel(inv_cnt):
    """GEMM + train-mode BatchNorm + LeakyReLU(0.2), fully VMEM-resident.

    p_ref : (M, K)        im2col patches (or the latent vector for layer 1)
    w_ref : (K, P)        GEMM-ready ConvTranspose weight, P = 4*Cout (16*Cout for L1)
    r_ref : (P, Cout)     0/1 matrix grouping columns that share an output channel
    rt_ref: (Cout, P)     its transpose (broadcast per-channel stats back to columns)
    g_ref, b_ref : (1, P) BN gamma / beta pre-tiled to the column order
    o_ref : (M, P)
    """
    def kernel(p_ref, w_ref, r_ref, rt_ref, g_ref, b_ref, o_ref):
        acc = jnp.dot(p_ref[...], w_ref[...], preferred_element_type=jnp.float32)
        # Per-output-channel batch statistics: column sums, grouped / re-broadcast
        # across the sub-pixel columns with the tiny constant R / R^T matmuls (MXU).
        s = jnp.sum(acc, axis=0, keepdims=True)                             # (1, P)
        mean = jnp.dot(jnp.dot(s, r_ref[...], preferred_element_type=jnp.float32),
                       rt_ref[...], preferred_element_type=jnp.float32) * inv_cnt
        d = acc - mean
        q = jnp.sum(d * d, axis=0, keepdims=True)                           # (1, P)
        var = jnp.dot(jnp.dot(q, r_ref[...], preferred_element_type=jnp.float32),
                      rt_ref[...], preferred_element_type=jnp.float32) * inv_cnt
        y = d * jax.lax.rsqrt(var + BN_EPS) * g_ref[...] + b_ref[...]
        o_ref[...] = jnp.where(y > 0, y, LRELU_SLOPE * y)                   # LeakyReLU
    return kernel


def fused_gemm_bn_lrelu(p, w, r, rt, g, b, cnt):
    M = p.shape[0]
    P = w.shape[1]
    return pl.pallas_call(
        _make_gemm_bn_lrelu_kernel(1.0 / float(cnt)),
        out_shape=jax.ShapeDtypeStruct((M, P), jnp.float32),
    )(p, w, r, rt, g, b)


def _gemm_tanh_kernel(wt_ref, pt_ref, o_ref):
    # Transposed GEMM: (4, K) @ (K, Mblk) -> lane-dense (4, Mblk) store, tanh fused (EUP).
    o_ref[...] = jnp.tanh(
        jnp.dot(wt_ref[...], pt_ref[...], preferred_element_type=jnp.float32))


def fused_gemm_tanh_T(pt, wt, n_batch, m_per_batch):
    K = pt.shape[0]
    Mtot = pt.shape[1]
    P4 = wt.shape[0]
    return pl.pallas_call(
        _gemm_tanh_kernel,
        out_shape=jax.ShapeDtypeStruct((P4, Mtot), jnp.float32),
        grid=(n_batch,),
        in_specs=[pl.BlockSpec((P4, K), lambda i: (0, 0)),
                  pl.BlockSpec((K, m_per_batch), lambda i: (0, i))],
        out_specs=pl.BlockSpec((P4, m_per_batch), lambda i: (0, i)),
        compiler_params=pltpu.CompilerParams(
            dimension_semantics=("parallel",)),      # batch-parallel -> 2 TCs on v7x
    )(wt, pt)


# ------------------------- XLA glue (pure data movement, tiny tensors) ------------

def _im2col_3x3(x_nhwc):
    """3x3 windows of x zero-padded by 1 -> (N*H*W, 9*C), tap order (dy, dx, c)."""
    N, H, W, C = x_nhwc.shape
    xp = jnp.pad(x_nhwc, ((0, 0), (1, 1), (1, 1), (0, 0)))
    taps = [xp[:, dy:dy + H, dx:dx + W, :] for dy in range(3) for dx in range(3)]
    p = jnp.stack(taps, axis=3)                        # (N, H, W, 9, C)
    return p.reshape(N * H * W, 9 * C)


def _im2col_3x3_T(x_nhwc):
    """Same patches, transposed: (9*C, N*H*W) for the lane-dense last-layer GEMM."""
    N, H, W, C = x_nhwc.shape
    xp = jnp.pad(x_nhwc, ((0, 0), (1, 1), (1, 1), (0, 0)))
    taps = [xp[:, dy:dy + H, dx:dx + W, :] for dy in range(3) for dx in range(3)]
    p = jnp.stack(taps, axis=0)                        # (9, N, H, W, C)
    return jnp.transpose(p, (0, 4, 1, 2, 3)).reshape(9 * C, N * H * W)


def _pixel_shuffle(y, N, H, W, Cout):
    """(N*H*W, 4*Cout) with columns (r, s, oc) -> (N, 2H, 2W, Cout)."""
    y = y.reshape(N, H, W, 2, 2, Cout)
    y = jnp.transpose(y, (0, 1, 3, 2, 4, 5))
    return y.reshape(N, 2 * H, 2 * W, Cout)


# ------------------------- parameters -------------------------

def init_params(key):
    """PyTorch-format parameters (ConvTranspose2d weights are (Cin, Cout, 4, 4))."""
    ks = jax.random.split(key, 9)
    concat = NZ + N_CLASS

    def w(k, cin, cout):
        return 0.02 * jax.random.normal(k, (cin, cout, 4, 4), jnp.float32)

    def g(k, c):
        return 1.0 + 0.02 * jax.random.normal(k, (c,), jnp.float32)

    return {
        "w1": w(ks[0], concat, NGF * 8),
        "w2": w(ks[1], NGF * 8, NGF * 4),
        "w3": w(ks[2], NGF * 4, NGF * 2),
        "w4": w(ks[3], NGF * 2, NGF),
        "w5": w(ks[4], NGF, 1),
        "g1": g(ks[5], NGF * 8), "b1": jnp.zeros((NGF * 8,), jnp.float32),
        "g2": g(ks[6], NGF * 4), "b2": jnp.zeros((NGF * 4,), jnp.float32),
        "g3": g(ks[7], NGF * 2), "b3": jnp.zeros((NGF * 2,), jnp.float32),
        "g4": g(ks[8], NGF),     "b4": jnp.zeros((NGF,), jnp.float32),
    }


def _rearrange_convT_weight_np(W):
    """torch ConvTranspose2d weight (Cin, Cout, 4, 4) with stride 2, pad 1
       -> (9*Cin, 4*Cout) GEMM matrix: rows (dy, dx, ic) match the 3x3 patch order,
       columns (r, s, oc) are the 4 output sub-pixels."""
    Cin, Cout = W.shape[0], W.shape[1]
    Wf = np.zeros((3, 3, Cin, 2, 2, Cout), np.float32)
    for r in range(2):
        for s in range(2):
            for dy in range(3):
                ky = r + 3 - 2 * dy
                if not (0 <= ky < 4):
                    continue
                for dx in range(3):
                    kx = s + 3 - 2 * dx
                    if not (0 <= kx < 4):
                        continue
                    Wf[dy, dx, :, r, s, :] = W[:, :, ky, kx]
    return Wf.reshape(9 * Cin, 4 * Cout)


def prepare_params(params):
    """One-time, host-side (numpy) conversion into GEMM-ready tensors (hoisted out of
    the per-forward path)."""
    concat = NZ + N_CLASS
    prep = {}
    # Layer 1: ConvT(k=4, s=1, p=0) on a 1x1 input == linear; columns (ky, kx, oc).
    w1 = np.asarray(params["w1"])
    prep["w1"] = jnp.asarray(
        np.ascontiguousarray(w1.transpose(0, 2, 3, 1).reshape(concat, 16 * NGF * 8)))
    for tag, wkey, cout, reps in (("1", None, NGF * 8, 16),
                                  ("2", "w2", NGF * 4, 4),
                                  ("3", "w3", NGF * 2, 4),
                                  ("4", "w4", NGF, 4)):
        if wkey is not None:
            prep["w" + tag] = jnp.asarray(
                _rearrange_convT_weight_np(np.asarray(params[wkey])))
        r = np.tile(np.eye(cout, dtype=np.float32), (reps, 1))    # (reps*cout, cout)
        prep["r" + tag] = jnp.asarray(r)
        prep["rt" + tag] = jnp.asarray(np.ascontiguousarray(r.T))
        prep["g" + tag] = jnp.asarray(
            np.tile(np.asarray(params["g" + tag]), reps)[None, :])
        prep["b" + tag] = jnp.asarray(
            np.tile(np.asarray(params["b" + tag]), reps)[None, :])
    prep["w5t"] = jnp.asarray(np.ascontiguousarray(
        _rearrange_convT_weight_np(np.asarray(params["w5"])).T))  # (4, 9*ngf)
    return prep


# ------------------------- model forward -------------------------

def dcgan_g_forward(noise, labels, prep):
    """noise: (N, nz, 1, 1) NCHW, labels: (N, n_class) -> (N, 1, 64, 64) NCHW."""
    N = noise.shape[0]
    x = jnp.concatenate([noise.reshape(N, -1), labels], axis=1)        # (N, nz+n_class)

    # Layer 1: ConvT(4,1,0) == GEMM; BN + LReLU fused in the kernel.
    h = fused_gemm_bn_lrelu(x, prep["w1"], prep["r1"], prep["rt1"],
                            prep["g1"], prep["b1"], cnt=16 * N)        # (N, 16*8ngf)
    h = h.reshape(N, 4, 4, NGF * 8)                                    # NHWC

    # Layers 2-4: im2col (XLA glue) -> fused GEMM+BN+LReLU -> pixel shuffle (XLA glue).
    for tag, (H, W, Cout) in (("2", (4, 4, NGF * 4)),
                              ("3", (8, 8, NGF * 2)),
                              ("4", (16, 16, NGF))):
        p = _im2col_3x3(h)                                             # (N*H*W, 9*Cin)
        y = fused_gemm_bn_lrelu(p, prep["w" + tag], prep["r" + tag],
                                prep["rt" + tag], prep["g" + tag],
                                prep["b" + tag], cnt=4 * N * H * W)    # (M, 4*Cout)
        h = _pixel_shuffle(y, N, H, W, Cout)                           # (N, 2H, 2W, Cout)

    # Layer 5: transposed GEMM (lane-dense (4, N*1024) store) + fused tanh,
    # batch-parallel grid so both TensorCores get work on v7x.
    H = W = 32
    pt = _im2col_3x3_T(h)                                              # (9*ngf, N*1024)
    yt = fused_gemm_tanh_T(pt, prep["w5t"], n_batch=N, m_per_batch=H * W)  # (4, N*1024)

    # Sub-pixel interleave + NCHW: yt[(r,s), (n,y,x)] -> (N, 1, 64, 64).
    img = yt.reshape(2, 2, N, H, W)
    img = jnp.transpose(img, (2, 3, 0, 4, 1)).reshape(N, 1, 2 * H, 2 * W)
    return img


# ------------------------- pure-JAX reference (self-check) -------------------------

def _ref_convT(x, W, s, p):
    k = W.shape[2]
    Wp = jnp.transpose(jnp.flip(W, axis=(2, 3)), (1, 0, 2, 3))         # (Cout, Cin, k, k)
    return jax.lax.conv_general_dilated(
        x, Wp, window_strides=(1, 1),
        padding=[(k - 1 - p, k - 1 - p)] * 2,
        lhs_dilation=(s, s),
        dimension_numbers=("NCHW", "OIHW", "NCHW"),
        precision=jax.lax.Precision.HIGHEST)


def _ref_bn_lrelu(x, g, b):
    mean = x.mean(axis=(0, 2, 3), keepdims=True)
    var = ((x - mean) ** 2).mean(axis=(0, 2, 3), keepdims=True)        # biased (train)
    y = (x - mean) * jax.lax.rsqrt(var + BN_EPS) * g[None, :, None, None] \
        + b[None, :, None, None]
    return jnp.where(y > 0, y, LRELU_SLOPE * y)


def ref_forward(noise, labels, params):
    x = jnp.concatenate([noise, labels[:, :, None, None]], axis=1)
    h = _ref_bn_lrelu(_ref_convT(x, params["w1"], 1, 0), params["g1"], params["b1"])
    h = _ref_bn_lrelu(_ref_convT(h, params["w2"], 2, 1), params["g2"], params["b2"])
    h = _ref_bn_lrelu(_ref_convT(h, params["w3"], 2, 1), params["g3"], params["b3"])
    h = _ref_bn_lrelu(_ref_convT(h, params["w4"], 2, 1), params["g4"], params["b4"])
    return jnp.tanh(_ref_convT(h, params["w5"], 2, 1))


# ------------------------- main -------------------------

if __name__ == "__main__":
    key = jax.random.PRNGKey(0)
    kp, kn, kl = jax.random.split(key, 3)
    params = init_params(kp)
    prep = prepare_params(params)       # one-time host-side weight prep, not per-forward

    noise = jax.random.normal(kn, (BATCH, NZ, 1, 1), jnp.float32)
    labels = jax.nn.one_hot(
        jax.random.randint(kl, (BATCH,), 0, N_CLASS), N_CLASS, dtype=jnp.float32)

    fwd = jax.jit(dcgan_g_forward)
    out = jax.block_until_ready(fwd(noise, labels, prep))

    assert out.shape == (BATCH, 1, 64, 64)
    ref = ref_forward(noise, labels, params)
    err = float(jnp.max(jnp.abs(out - ref)))
    assert err < 5e-3, f"max |err| = {err}"
    print("KERNEL_OK")
</pallas_src>

<mosaic_0001>
module attributes {stable_mosaic.version = 11 : i64} {
  func.func @kernel(%arg0: memref<32x576xf32, #tpu.memory_space<vmem>>, %arg1: memref<576x128xf32, #tpu.memory_space<vmem>>, %arg2: memref<128x32xf32, #tpu.memory_space<vmem>>, %arg3: memref<32x128xf32, #tpu.memory_space<vmem>>, %arg4: memref<1x128xf32, #tpu.memory_space<vmem>>, %arg5: memref<1x128xf32, #tpu.memory_space<vmem>>, %arg6: memref<32x128xf32, #tpu.memory_space<vmem>>) attributes {dimension_semantics = [], scalar_prefetch = 0 : i64, scratch_operands = 0 : i64, tpu.core_type = #tpu.core_type<tc>} {
    %c0 = arith.constant 0 : index
    %c0_0 = arith.constant 0 : index
    %0 = vector.load %arg0[%c0, %c0_0] : memref<32x576xf32, #tpu.memory_space<vmem>>, vector<32x576xf32>
    %c0_1 = arith.constant 0 : index
    %c0_2 = arith.constant 0 : index
    %1 = vector.load %arg1[%c0_1, %c0_2] : memref<576x128xf32, #tpu.memory_space<vmem>>, vector<576x128xf32>
    %cst = arith.constant dense<0.000000e+00> : vector<32x128xf32>
    %2 = tpu.matmul %0, %1, %cst {dimension_numbers = #tpu.dot_dimension_numbers<[1], [0], [0], [1], [0, 0, 1, 1], [], []>} : vector<32x576xf32>, vector<576x128xf32>, vector<32x128xf32> -> vector<32x128xf32>
    %cst_3 = arith.constant dense<0.000000e+00> : vector<128xf32>
    %3 = vector.multi_reduction <add>, %2, %cst_3 [0] : vector<32x128xf32> to vector<128xf32>
    %4 = vector.shape_cast %3 : vector<128xf32> to vector<1x128xf32>
    %c0_4 = arith.constant 0 : index
    %c0_5 = arith.constant 0 : index
    %5 = vector.load %arg2[%c0_4, %c0_5] : memref<128x32xf32, #tpu.memory_space<vmem>>, vector<128x32xf32>
    %cst_6 = arith.constant dense<0.000000e+00> : vector<1x32xf32>
    %6 = tpu.matmul %4, %5, %cst_6 {dimension_numbers = #tpu.dot_dimension_numbers<[1], [0], [0], [1], [0, 0, 1, 1], [], []>} : vector<1x128xf32>, vector<128x32xf32>, vector<1x32xf32> -> vector<1x32xf32>
    %c0_7 = arith.constant 0 : index
    %c0_8 = arith.constant 0 : index
    %7 = vector.load %arg3[%c0_7, %c0_8] : memref<32x128xf32, #tpu.memory_space<vmem>>, vector<32x128xf32>
    %cst_9 = arith.constant dense<0.000000e+00> : vector<1x128xf32>
    %8 = tpu.matmul %6, %7, %cst_9 {dimension_numbers = #tpu.dot_dimension_numbers<[1], [0], [0], [1], [0, 0, 1, 1], [], []>} : vector<1x32xf32>, vector<32x128xf32>, vector<1x128xf32> -> vector<1x128xf32>
    %cst_10 = arith.constant 7.812500e-03 : f32
    %9 = vector.broadcast %cst_10 : f32 to vector<1x128xf32>
    %10 = arith.mulf %8, %9 : vector<1x128xf32>
    %11 = vector.broadcast %10 : vector<1x128xf32> to vector<32x128xf32>
    %12 = arith.subf %2, %11 : vector<32x128xf32>
    %13 = arith.mulf %12, %12 : vector<32x128xf32>
    %cst_11 = arith.constant dense<0.000000e+00> : vector<128xf32>
    %14 = vector.multi_reduction <add>, %13, %cst_11 [0] : vector<32x128xf32> to vector<128xf32>
    %15 = vector.shape_cast %14 : vector<128xf32> to vector<1x128xf32>
    %c0_12 = arith.constant 0 : index
    %c0_13 = arith.constant 0 : index
    %16 = vector.load %arg2[%c0_12, %c0_13] : memref<128x32xf32, #tpu.memory_space<vmem>>, vector<128x32xf32>
    %cst_14 = arith.constant dense<0.000000e+00> : vector<1x32xf32>
    %17 = tpu.matmul %15, %16, %cst_14 {dimension_numbers = #tpu.dot_dimension_numbers<[1], [0], [0], [1], [0, 0, 1, 1], [], []>} : vector<1x128xf32>, vector<128x32xf32>, vector<1x32xf32> -> vector<1x32xf32>
    %c0_15 = arith.constant 0 : index
    %c0_16 = arith.constant 0 : index
    %18 = vector.load %arg3[%c0_15, %c0_16] : memref<32x128xf32, #tpu.memory_space<vmem>>, vector<32x128xf32>
    %cst_17 = arith.constant dense<0.000000e+00> : vector<1x128xf32>
    %19 = tpu.matmul %17, %18, %cst_17 {dimension_numbers = #tpu.dot_dimension_numbers<[1], [0], [0], [1], [0, 0, 1, 1], [], []>} : vector<1x32xf32>, vector<32x128xf32>, vector<1x128xf32> -> vector<1x128xf32>
    %cst_18 = arith.constant 7.812500e-03 : f32
    %20 = vector.broadcast %cst_18 : f32 to vector<1x128xf32>
    %21 = arith.mulf %19, %20 : vector<1x128xf32>
    %cst_19 = arith.constant 9.99999974E-6 : f32
    %22 = vector.broadcast %cst_19 : f32 to vector<1x128xf32>
    %23 = arith.addf %21, %22 : vector<1x128xf32>
    %24 = math.rsqrt %23 : vector<1x128xf32>
    %25 = vector.broadcast %24 : vector<1x128xf32> to vector<32x128xf32>
    %26 = arith.mulf %12, %25 : vector<32x128xf32>
    %c0_20 = arith.constant 0 : index
    %c0_21 = arith.constant 0 : index
    %27 = vector.load %arg4[%c0_20, %c0_21] : memref<1x128xf32, #tpu.memory_space<vmem>>, vector<1x128xf32>
    %28 = vector.broadcast %27 : vector<1x128xf32> to vector<32x128xf32>
    %29 = arith.mulf %26, %28 : vector<32x128xf32>
    %c0_22 = arith.constant 0 : index
    %c0_23 = arith.constant 0 : index
    %30 = vector.load %arg5[%c0_22, %c0_23] : memref<1x128xf32, #tpu.memory_space<vmem>>, vector<1x128xf32>
    %31 = vector.broadcast %30 : vector<1x128xf32> to vector<32x128xf32>
    %32 = arith.addf %29, %31 : vector<32x128xf32>
    %cst_24 = arith.constant 0.000000e+00 : f32
    %33 = vector.broadcast %cst_24 : f32 to vector<32x128xf32>
    %34 = arith.cmpf ogt, %32, %33 : vector<32x128xf32>
    %cst_25 = arith.constant 2.000000e-01 : f32
    %35 = vector.broadcast %cst_25 : f32 to vector<32x128xf32>
    %36 = arith.mulf %35, %32 : vector<32x128xf32>
    %37 = arith.select %34, %32, %36 : vector<32x128xi1>, vector<32x128xf32>
    %c0_26 = arith.constant 0 : index
    %c0_27 = arith.constant 0 : index
    %38 = vector.load %arg6[%c0_26, %c0_27] : memref<32x128xf32, #tpu.memory_space<vmem>>, vector<32x128xf32>
    tpu.vector_store %arg6[%c0_26, %c0_27], %37 {strides = array<i32>} : memref<32x128xf32, #tpu.memory_space<vmem>>, vector<32x128xf32>,
    return
  }
}

module attributes {stable_mosaic.version = 11 : i64} {
  func.func @kernel(%arg0: memref<2x20xf32, #tpu.memory_space<vmem>>, %arg1: memref<20x1024xf32, #tpu.memory_space<vmem>>, %arg2: memref<1024x64xf32, #tpu.memory_space<vmem>>, %arg3: memref<64x1024xf32, #tpu.memory_space<vmem>>, %arg4: memref<1x1024xf32, #tpu.memory_space<vmem>>, %arg5: memref<1x1024xf32, #tpu.memory_space<vmem>>, %arg6: memref<2x1024xf32, #tpu.memory_space<vmem>>) attributes {dimension_semantics = [], scalar_prefetch = 0 : i64, scratch_operands = 0 : i64, tpu.core_type = #tpu.core_type<tc>} {
    %c0 = arith.constant 0 : index
    %c0_0 = arith.constant 0 : index
    %0 = vector.load %arg0[%c0, %c0_0] : memref<2x20xf32, #tpu.memory_space<vmem>>, vector<2x20xf32>
    %c0_1 = arith.constant 0 : index
    %c0_2 = arith.constant 0 : index
    %1 = vector.load %arg1[%c0_1, %c0_2] : memref<20x1024xf32, #tpu.memory_space<vmem>>, vector<20x1024xf32>
    %cst = arith.constant dense<0.000000e+00> : vector<2x1024xf32>
    %2 = tpu.matmul %0, %1, %cst {dimension_numbers = #tpu.dot_dimension_numbers<[1], [0], [0], [1], [0, 0, 1, 1], [], []>} : vector<2x20xf32>, vector<20x1024xf32>, vector<2x1024xf32> -> vector<2x1024xf32>
    %cst_3 = arith.constant dense<0.000000e+00> : vector<1024xf32>
    %3 = vector.multi_reduction <add>, %2, %cst_3 [0] : vector<2x1024xf32> to vector<1024xf32>
    %4 = vector.shape_cast %3 : vector<1024xf32> to vector<1x1024xf32>
    %c0_4 = arith.constant 0 : index
    %c0_5 = arith.constant 0 : index
    %5 = vector.load %arg2[%c0_4, %c0_5] : memref<1024x64xf32, #tpu.memory_space<vmem>>, vector<1024x64xf32>
    %cst_6 = arith.constant dense<0.000000e+00> : vector<1x64xf32>
    %6 = tpu.matmul %4, %5, %cst_6 {dimension_numbers = #tpu.dot_dimension_numbers<[1], [0], [0], [1], [0, 0, 1, 1], [], []>} : vector<1x1024xf32>, vector<1024x64xf32>, vector<1x64xf32> -> vector<1x64xf32>
    %c0_7 = arith.constant 0 : index
    %c0_8 = arith.constant 0 : index
    %7 = vector.load %arg3[%c0_7, %c0_8] : memref<64x1024xf32, #tpu.memory_space<vmem>>, vector<64x1024xf32>
    %cst_9 = arith.constant dense<0.000000e+00> : vector<1x1024xf32>
    %8 = tpu.matmul %6, %7, %cst_9 {dimension_numbers = #tpu.dot_dimension_numbers<[1], [0], [0], [1], [0, 0, 1, 1], [], []>} : vector<1x64xf32>, vector<64x1024xf32>, vector<1x1024xf32> -> vector<1x1024xf32>
    %cst_10 = arith.constant 3.125000e-02 : f32
    %9 = vector.broadcast %cst_10 : f32 to vector<1x1024xf32>
    %10 = arith.mulf %8, %9 : vector<1x1024xf32>
    %11 = vector.broadcast %10 : vector<1x1024xf32> to vector<2x1024xf32>
    %12 = arith.subf %2, %11 : vector<2x1024xf32>
    %13 = arith.mulf %12, %12 : vector<2x1024xf32>
    %cst_11 = arith.constant dense<0.000000e+00> : vector<1024xf32>
    %14 = vector.multi_reduction <add>, %13, %cst_11 [0] : vector<2x1024xf32> to vector<1024xf32>
    %15 = vector.shape_cast %14 : vector<1024xf32> to vector<1x1024xf32>
    %c0_12 = arith.constant 0 : index
    %c0_13 = arith.constant 0 : index
    %16 = vector.load %arg2[%c0_12, %c0_13] : memref<1024x64xf32, #tpu.memory_space<vmem>>, vector<1024x64xf32>
    %cst_14 = arith.constant dense<0.000000e+00> : vector<1x64xf32>
    %17 = tpu.matmul %15, %16, %cst_14 {dimension_numbers = #tpu.dot_dimension_numbers<[1], [0], [0], [1], [0, 0, 1, 1], [], []>} : vector<1x1024xf32>, vector<1024x64xf32>, vector<1x64xf32> -> vector<1x64xf32>
    %c0_15 = arith.constant 0 : index
    %c0_16 = arith.constant 0 : index
    %18 = vector.load %arg3[%c0_15, %c0_16] : memref<64x1024xf32, #tpu.memory_space<vmem>>, vector<64x1024xf32>
    %cst_17 = arith.constant dense<0.000000e+00> : vector<1x1024xf32>
    %19 = tpu.matmul %17, %18, %cst_17 {dimension_numbers = #tpu.dot_dimension_numbers<[1], [0], [0], [1], [0, 0, 1, 1], [], []>} : vector<1x64xf32>, vector<64x1024xf32>, vector<1x1024xf32> -> vector<1x1024xf32>
    %cst_18 = arith.constant 3.125000e-02 : f32
    %20 = vector.broadcast %cst_18 : f32 to vector<1x1024xf32>
    %21 = arith.mulf %19, %20 : vector<1x1024xf32>
    %cst_19 = arith.constant 9.99999974E-6 : f32
    %22 = vector.broadcast %cst_19 : f32 to vector<1x1024xf32>
    %23 = arith.addf %21, %22 : vector<1x1024xf32>
    %24 = math.rsqrt %23 : vector<1x1024xf32>
    %25 = vector.broadcast %24 : vector<1x1024xf32> to vector<2x1024xf32>
    %26 = arith.mulf %12, %25 : vector<2x1024xf32>
    %c0_20 = arith.constant 0 : index
    %c0_21 = arith.constant 0 : index
    %27 = vector.load %arg4[%c0_20, %c0_21] : memref<1x1024xf32, #tpu.memory_space<vmem>>, vector<1x1024xf32>
    %28 = vector.broadcast %27 : vector<1x1024xf32> to vector<2x1024xf32>
    %29 = arith.mulf %26, %28 : vector<2x1024xf32>
    %c0_22 = arith.constant 0 : index
    %c0_23 = arith.constant 0 : index
    %30 = vector.load %arg5[%c0_22, %c0_23] : memref<1x1024xf32, #tpu.memory_space<vmem>>, vector<1x1024xf32>
    %31 = vector.broadcast %30 : vector<1x1024xf32> to vector<2x1024xf32>
    %32 = arith.addf %29, %31 : vector<2x1024xf32>
    %cst_24 = arith.constant 0.000000e+00 : f32
    %33 = vector.broadcast %cst_24 : f32 to vector<2x1024xf32>
    %34 = arith.cmpf ogt, %32, %33 : vector<2x1024xf32>
    %cst_25 = arith.constant 2.000000e-01 : f32
    %35 = vector.broadcast %cst_25 : f32 to vector<2x1024xf32>
    %36 = arith.mulf %35, %32 : vector<2x1024xf32>
    %37 = arith.select %34, %32, %36 : vector<2x1024xi1>, vector<2x1024xf32>
    %c0_26 = arith.constant 0 : index
    %c0_27 = arith.constant 0 : index
    %38 = vector.load %arg6[%c0_26, %c0_27] : memref<2x1024xf32, #tpu.memory_space<vmem>>, vector<2x1024xf32>
    tpu.vector_store %arg6[%c0_26, %c0_27], %37 {strides = array<i32>} : memref<2x1024xf32, #tpu.memory_space<vmem>>, vector<2x1024xf32>,
    return
  }
}

module attributes {stable_mosaic.version = 11 : i64} {
  func.func @kernel(%arg0: memref<128x288xf32, #tpu.memory_space<vmem>>, %arg1: memref<288x64xf32, #tpu.memory_space<vmem>>, %arg2: memref<64x16xf32, #tpu.memory_space<vmem>>, %arg3: memref<16x64xf32, #tpu.memory_space<vmem>>, %arg4: memref<1x64xf32, #tpu.memory_space<vmem>>, %arg5: memref<1x64xf32, #tpu.memory_space<vmem>>, %arg6: memref<128x64xf32, #tpu.memory_space<vmem>>) attributes {dimension_semantics = [], scalar_prefetch = 0 : i64, scratch_operands = 0 : i64, tpu.core_type = #tpu.core_type<tc>} {
    %c0 = arith.constant 0 : index
    %c0_0 = arith.constant 0 : index
    %0 = vector.load %arg0[%c0, %c0_0] : memref<128x288xf32, #tpu.memory_space<vmem>>, vector<128x288xf32>
    %c0_1 = arith.constant 0 : index
    %c0_2 = arith.constant 0 : index
    %1 = vector.load %arg1[%c0_1, %c0_2] : memref<288x64xf32, #tpu.memory_space<vmem>>, vector<288x64xf32>
    %cst = arith.constant dense<0.000000e+00> : vector<128x64xf32>
    %2 = tpu.matmul %0, %1, %cst {dimension_numbers = #tpu.dot_dimension_numbers<[1], [0], [0], [1], [0, 0, 1, 1], [], []>} : vector<128x288xf32>, vector<288x64xf32>, vector<128x64xf32> -> vector<128x64xf32>
    %cst_3 = arith.constant dense<0.000000e+00> : vector<64xf32>
    %3 = vector.multi_reduction <add>, %2, %cst_3 [0] : vector<128x64xf32> to vector<64xf32>
    %4 = vector.shape_cast %3 : vector<64xf32> to vector<1x64xf32>
    %c0_4 = arith.constant 0 : index
    %c0_5 = arith.constant 0 : index
    %5 = vector.load %arg2[%c0_4, %c0_5] : memref<64x16xf32, #tpu.memory_space<vmem>>, vector<64x16xf32>
    %cst_6 = arith.constant dense<0.000000e+00> : vector<1x16xf32>
    %6 = tpu.matmul %4, %5, %cst_6 {dimension_numbers = #tpu.dot_dimension_numbers<[1], [0], [0], [1], [0, 0, 1, 1], [], []>} : vector<1x64xf32>, vector<64x16xf32>, vector<1x16xf32> -> vector<1x16xf32>
    %c0_7 = arith.constant 0 : index
    %c0_8 = arith.constant 0 : index
    %7 = vector.load %arg3[%c0_7, %c0_8] : memref<16x64xf32, #tpu.memory_space<vmem>>, vector<16x64xf32>
    %cst_9 = arith.constant dense<0.000000e+00> : vector<1x64xf32>
    %8 = tpu.matmul %6, %7, %cst_9 {dimension_numbers = #tpu.dot_dimension_numbers<[1], [0], [0], [1], [0, 0, 1, 1], [], []>} : vector<1x16xf32>, vector<16x64xf32>, vector<1x64xf32> -> vector<1x64xf32>
    %cst_10 = arith.constant 0.001953125 : f32
    %9 = vector.broadcast %cst_10 : f32 to vector<1x64xf32>
    %10 = arith.mulf %8, %9 : vector<1x64xf32>
    %11 = vector.broadcast %10 : vector<1x64xf32> to vector<128x64xf32>
    %12 = arith.subf %2, %11 : vector<128x64xf32>
    %13 = arith.mulf %12, %12 : vector<128x64xf32>
    %cst_11 = arith.constant dense<0.000000e+00> : vector<64xf32>
    %14 = vector.multi_reduction <add>, %13, %cst_11 [0] : vector<128x64xf32> to vector<64xf32>
    %15 = vector.shape_cast %14 : vector<64xf32> to vector<1x64xf32>
    %c0_12 = arith.constant 0 : index
    %c0_13 = arith.constant 0 : index
    %16 = vector.load %arg2[%c0_12, %c0_13] : memref<64x16xf32, #tpu.memory_space<vmem>>, vector<64x16xf32>
    %cst_14 = arith.constant dense<0.000000e+00> : vector<1x16xf32>
    %17 = tpu.matmul %15, %16, %cst_14 {dimension_numbers = #tpu.dot_dimension_numbers<[1], [0], [0], [1], [0, 0, 1, 1], [], []>} : vector<1x64xf32>, vector<64x16xf32>, vector<1x16xf32> -> vector<1x16xf32>
    %c0_15 = arith.constant 0 : index
    %c0_16 = arith.constant 0 : index
    %18 = vector.load %arg3[%c0_15, %c0_16] : memref<16x64xf32, #tpu.memory_space<vmem>>, vector<16x64xf32>
    %cst_17 = arith.constant dense<0.000000e+00> : vector<1x64xf32>
    %19 = tpu.matmul %17, %18, %cst_17 {dimension_numbers = #tpu.dot_dimension_numbers<[1], [0], [0], [1], [0, 0, 1, 1], [], []>} : vector<1x16xf32>, vector<16x64xf32>, vector<1x64xf32> -> vector<1x64xf32>
    %cst_18 = arith.constant 0.001953125 : f32
    %20 = vector.broadcast %cst_18 : f32 to vector<1x64xf32>
    %21 = arith.mulf %19, %20 : vector<1x64xf32>
    %cst_19 = arith.constant 9.99999974E-6 : f32
    %22 = vector.broadcast %cst_19 : f32 to vector<1x64xf32>
    %23 = arith.addf %21, %22 : vector<1x64xf32>
    %24 = math.rsqrt %23 : vector<1x64xf32>
    %25 = vector.broadcast %24 : vector<1x64xf32> to vector<128x64xf32>
    %26 = arith.mulf %12, %25 : vector<128x64xf32>
    %c0_20 = arith.constant 0 : index
    %c0_21 = arith.constant 0 : index
    %27 = vector.load %arg4[%c0_20, %c0_21] : memref<1x64xf32, #tpu.memory_space<vmem>>, vector<1x64xf32>
    %28 = vector.broadcast %27 : vector<1x64xf32> to vector<128x64xf32>
    %29 = arith.mulf %26, %28 : vector<128x64xf32>
    %c0_22 = arith.constant 0 : index
    %c0_23 = arith.constant 0 : index
    %30 = vector.load %arg5[%c0_22, %c0_23] : memref<1x64xf32, #tpu.memory_space<vmem>>, vector<1x64xf32>
    %31 = vector.broadcast %30 : vector<1x64xf32> to vector<128x64xf32>
    %32 = arith.addf %29, %31 : vector<128x64xf32>
    %cst_24 = arith.constant 0.000000e+00 : f32
    %33 = vector.broadcast %cst_24 : f32 to vector<128x64xf32>
    %34 = arith.cmpf ogt, %32, %33 : vector<128x64xf32>
    %cst_25 = arith.constant 2.000000e-01 : f32
    %35 = vector.broadcast %cst_25 : f32 to vector<128x64xf32>
    %36 = arith.mulf %35, %32 : vector<128x64xf32>
    %37 = arith.select %34, %32, %36 : vector<128x64xi1>, vector<128x64xf32>
    %c0_26 = arith.constant 0 : index
    %c0_27 = arith.constant 0 : index
    %38 = vector.load %arg6[%c0_26, %c0_27] : memref<128x64xf32, #tpu.memory_space<vmem>>, vector<128x64xf32>
    tpu.vector_store %arg6[%c0_26, %c0_27], %37 {strides = array<i32>} : memref<128x64xf32, #tpu.memory_space<vmem>>, vector<128x64xf32>,
    return
  }
}

module attributes {stable_mosaic.version = 11 : i64} {
  func.func @kernel(%arg0: memref<512x144xf32, #tpu.memory_space<vmem>>, %arg1: memref<144x32xf32, #tpu.memory_space<vmem>>, %arg2: memref<32x8xf32, #tpu.memory_space<vmem>>, %arg3: memref<8x32xf32, #tpu.memory_space<vmem>>, %arg4: memref<1x32xf32, #tpu.memory_space<vmem>>, %arg5: memref<1x32xf32, #tpu.memory_space<vmem>>, %arg6: memref<512x32xf32, #tpu.memory_space<vmem>>) attributes {dimension_semantics = [], scalar_prefetch = 0 : i64, scratch_operands = 0 : i64, tpu.core_type = #tpu.core_type<tc>} {
    %c0 = arith.constant 0 : index
    %c0_0 = arith.constant 0 : index
    %0 = vector.load %arg0[%c0, %c0_0] : memref<512x144xf32, #tpu.memory_space<vmem>>, vector<512x144xf32>
    %c0_1 = arith.constant 0 : index
    %c0_2 = arith.constant 0 : index
    %1 = vector.load %arg1[%c0_1, %c0_2] : memref<144x32xf32, #tpu.memory_space<vmem>>, vector<144x32xf32>
    %cst = arith.constant dense<0.000000e+00> : vector<512x32xf32>
    %2 = tpu.matmul %0, %1, %cst {dimension_numbers = #tpu.dot_dimension_numbers<[1], [0], [0], [1], [0, 0, 1, 1], [], []>} : vector<512x144xf32>, vector<144x32xf32>, vector<512x32xf32> -> vector<512x32xf32>
    %cst_3 = arith.constant dense<0.000000e+00> : vector<32xf32>
    %3 = vector.multi_reduction <add>, %2, %cst_3 [0] : vector<512x32xf32> to vector<32xf32>
    %4 = vector.shape_cast %3 : vector<32xf32> to vector<1x32xf32>
    %c0_4 = arith.constant 0 : index
    %c0_5 = arith.constant 0 : index
    %5 = vector.load %arg2[%c0_4, %c0_5] : memref<32x8xf32, #tpu.memory_space<vmem>>, vector<32x8xf32>
    %cst_6 = arith.constant dense<0.000000e+00> : vector<1x8xf32>
    %6 = tpu.matmul %4, %5, %cst_6 {dimension_numbers = #tpu.dot_dimension_numbers<[1], [0], [0], [1], [0, 0, 1, 1], [], []>} : vector<1x32xf32>, vector<32x8xf32>, vector<1x8xf32> -> vector<1x8xf32>
    %c0_7 = arith.constant 0 : index
    %c0_8 = arith.constant 0 : index
    %7 = vector.load %arg3[%c0_7, %c0_8] : memref<8x32xf32, #tpu.memory_space<vmem>>, vector<8x32xf32>
    %cst_9 = arith.constant dense<0.000000e+00> : vector<1x32xf32>
    %8 = tpu.matmul %6, %7, %cst_9 {dimension_numbers = #tpu.dot_dimension_numbers<[1], [0], [0], [1], [0, 0, 1, 1], [], []>} : vector<1x8xf32>, vector<8x32xf32>, vector<1x32xf32> -> vector<1x32xf32>
    %cst_10 = arith.constant 4.8828125E-4 : f32
    %9 = vector.broadcast %cst_10 : f32 to vector<1x32xf32>
    %10 = arith.mulf %8, %9 : vector<1x32xf32>
    %11 = vector.broadcast %10 : vector<1x32xf32> to vector<512x32xf32>
    %12 = arith.subf %2, %11 : vector<512x32xf32>
    %13 = arith.mulf %12, %12 : vector<512x32xf32>
    %cst_11 = arith.constant dense<0.000000e+00> : vector<32xf32>
    %14 = vector.multi_reduction <add>, %13, %cst_11 [0] : vector<512x32xf32> to vector<32xf32>
    %15 = vector.shape_cast %14 : vector<32xf32> to vector<1x32xf32>
    %c0_12 = arith.constant 0 : index
    %c0_13 = arith.constant 0 : index
    %16 = vector.load %arg2[%c0_12, %c0_13] : memref<32x8xf32, #tpu.memory_space<vmem>>, vector<32x8xf32>
    %cst_14 = arith.constant dense<0.000000e+00> : vector<1x8xf32>
    %17 = tpu.matmul %15, %16, %cst_14 {dimension_numbers = #tpu.dot_dimension_numbers<[1], [0], [0], [1], [0, 0, 1, 1], [], []>} : vector<1x32xf32>, vector<32x8xf32>, vector<1x8xf32> -> vector<1x8xf32>
    %c0_15 = arith.constant 0 : index
    %c0_16 = arith.constant 0 : index
    %18 = vector.load %arg3[%c0_15, %c0_16] : memref<8x32xf32, #tpu.memory_space<vmem>>, vector<8x32xf32>
    %cst_17 = arith.constant dense<0.000000e+00> : vector<1x32xf32>
    %19 = tpu.matmul %17, %18, %cst_17 {dimension_numbers = #tpu.dot_dimension_numbers<[1], [0], [0], [1], [0, 0, 1, 1], [], []>} : vector<1x8xf32>, vector<8x32xf32>, vector<1x32xf32> -> vector<1x32xf32>
    %cst_18 = arith.constant 4.8828125E-4 : f32
    %20 = vector.broadcast %cst_18 : f32 to vector<1x32xf32>
    %21 = arith.mulf %19, %20 : vector<1x32xf32>
    %cst_19 = arith.constant 9.99999974E-6 : f32
    %22 = vector.broadcast %cst_19 : f32 to vector<1x32xf32>
    %23 = arith.addf %21, %22 : vector<1x32xf32>
    %24 = math.rsqrt %23 : vector<1x32xf32>
    %25 = vector.broadcast %24 : vector<1x32xf32> to vector<512x32xf32>
    %26 = arith.mulf %12, %25 : vector<512x32xf32>
    %c0_20 = arith.constant 0 : index
    %c0_21 = arith.constant 0 : index
    %27 = vector.load %arg4[%c0_20, %c0_21] : memref<1x32xf32, #tpu.memory_space<vmem>>, vector<1x32xf32>
    %28 = vector.broadcast %27 : vector<1x32xf32> to vector<512x32xf32>
    %29 = arith.mulf %26, %28 : vector<512x32xf32>
    %c0_22 = arith.constant 0 : index
    %c0_23 = arith.constant 0 : index
    %30 = vector.load %arg5[%c0_22, %c0_23] : memref<1x32xf32, #tpu.memory_space<vmem>>, vector<1x32xf32>
    %31 = vector.broadcast %30 : vector<1x32xf32> to vector<512x32xf32>
    %32 = arith.addf %29, %31 : vector<512x32xf32>
    %cst_24 = arith.constant 0.000000e+00 : f32
    %33 = vector.broadcast %cst_24 : f32 to vector<512x32xf32>
    %34 = arith.cmpf ogt, %32, %33 : vector<512x32xf32>
    %cst_25 = arith.constant 2.000000e-01 : f32
    %35 = vector.broadcast %cst_25 : f32 to vector<512x32xf32>
    %36 = arith.mulf %35, %32 : vector<512x32xf32>
    %37 = arith.select %34, %32, %36 : vector<512x32xi1>, vector<512x32xf32>
    %c0_26 = arith.constant 0 : index
    %c0_27 = arith.constant 0 : index
    %38 = vector.load %arg6[%c0_26, %c0_27] : memref<512x32xf32, #tpu.memory_space<vmem>>, vector<512x32xf32>
    tpu.vector_store %arg6[%c0_26, %c0_27], %37 {strides = array<i32>} : memref<512x32xf32, #tpu.memory_space<vmem>>, vector<512x32xf32>,
    return
  }
}

module attributes {stable_mosaic.version = 11 : i64} {
  func.func @_gemm_tanh_kernel(%arg0: i32, %arg1: memref<4x72xf32, #tpu.memory_space<vmem>>, %arg2: memref<72x1024xf32, #tpu.memory_space<vmem>>, %arg3: memref<4x1024xf32, #tpu.memory_space<vmem>>) attributes {dimension_semantics = [#tpu.dimension_semantics<parallel>], iteration_bounds = array<i64: 2>, scalar_prefetch = 0 : i64, scratch_operands = 0 : i64, tpu.core_type = #tpu.core_type<tc>, window_params = [{pipeline_mode = #tpu.pipeline_mode<synchronous>, transform_indices = @transform_0, window_bounds = array<i64: 4, 72>}, {transform_indices = @transform_1, window_bounds = array<i64: 72, 1024>}, {transform_indices = @transform_2, window_bounds = array<i64: 4, 1024>}]} {
    %c0 = arith.constant 0 : index
    %c0_0 = arith.constant 0 : index
    %0 = vector.load %arg1[%c0, %c0_0] : memref<4x72xf32, #tpu.memory_space<vmem>>, vector<4x72xf32>
    %c0_1 = arith.constant 0 : index
    %c0_2 = arith.constant 0 : index
    %1 = vector.load %arg2[%c0_1, %c0_2] : memref<72x1024xf32, #tpu.memory_space<vmem>>, vector<72x1024xf32>
    %cst = arith.constant dense<0.000000e+00> : vector<4x1024xf32>
    %2 = tpu.matmul %0, %1, %cst {dimension_numbers = #tpu.dot_dimension_numbers<[1], [0], [0], [1], [0, 0, 1, 1], [], []>} : vector<4x72xf32>, vector<72x1024xf32>, vector<4x1024xf32> -> vector<4x1024xf32>
    %3 = math.tanh %2 : vector<4x1024xf32>
    %c0_3 = arith.constant 0 : index
    %c0_4 = arith.constant 0 : index
    %4 = vector.load %arg3[%c0_3, %c0_4] : memref<4x1024xf32, #tpu.memory_space<vmem>>, vector<4x1024xf32>
    tpu.vector_store %arg3[%c0_3, %c0_4], %3 {strides = array<i32>} : memref<4x1024xf32, #tpu.memory_space<vmem>>, vector<4x1024xf32>,
    return
  }
  func.func @transform_0(%arg0: i32) -> (i32, i32) {
    %c0_i32 = arith.constant 0 : i32
    %c0_i32_0 = arith.constant 0 : i32
    %c0_i32_1 = arith.constant 0 : i32
    return %c0_i32, %c0_i32_0 : i32, i32
  }
  func.func @transform_1(%arg0: i32) -> (i32, i32) {
    %c0_i32 = arith.constant 0 : i32
    %c0_i32_0 = arith.constant 0 : i32
    return %c0_i32, %arg0 : i32, i32
  }
  func.func @transform_2(%arg0: i32) -> (i32, i32) {
    %c0_i32 = arith.constant 0 : i32
    %c0_i32_0 = arith.constant 0 : i32
    return %c0_i32, %arg0 : i32, i32
  }
}

</mosaic_0001>

<bundles_post_ra>
// kernel: dcgan_g_forward.6
= control target key start
LH: loop header
LB: loop body
LE: loop exit
PB: predicated region body
PF: predicated region fallthrough
CT: control target
= control target key end

     0   :  { %vm115_vm0 = vcmask 523264   ;;  %vm1045_vm1 = vmmov 0   ;;  %vm482_vm2 = vcmask 261120   ;;  %s1485_s1 = inlined_call_operand.vmem [shape: f32[576,128], index: 1, kind: input, shape index: {}]   ;;  %s1486_s0 = inlined_call_operand.vmem [shape: f32[32,576], index: 0, kind: input, shape index: {}]   ;;  %s1487_s2 = inlined_call_operand.vmem [shape: f32[128,32], index: 2, kind: input, shape index: {}]   ;;  %s1488_s3 = inlined_call_operand.vmem [shape: f32[32,128], index: 3, kind: input, shape index: {}]   ;;  %s1489_s4 = inlined_call_operand.vmem [shape: f32[1,128], index: 4, kind: input, shape index: {}]   ;;  %s1490_s5 = inlined_call_operand.vmem [shape: f32[1,128], index: 5, kind: input, shape index: {}]   ;;  %s1491_s6 = inlined_call_operand.vmem [shape: f32[32,128], index: 6, kind: output, shape index: {}]  }
   0x1   :  { %v74_v0 = vld [vmem:[%s1485_s1 + $0xf8] sm:$0xff]  ;;  %v73_v4 = vld [vmem:[%s1485_s1 + $0xf0] sm:$0xff]  ;;  %v72_v8 = vld [vmem:[%s1485_s1 + $0xe8] sm:$0xff] }
   0x2   :  { %v106_v1 = vld [vmem:[%s1485_s1 + $0x1f8] sm:$0xff]  ;;  %782 = vmatprep.subr.mxu0 %v74_v0  ;;  %v105_v5 = vld [vmem:[%s1485_s1 + $0x1f0] sm:$0xff]  ;;  %v104_v9 = vld [vmem:[%s1485_s1 + $0x1e8] sm:$0xff] }
   0x3   :  { %v58_v2 = vld [vmem:[%s1485_s1 + $0x78] sm:$0xff]  ;;  %826 = vmatprep.subr.mxu1 %v106_v1  ;;  %v57_v6 = vld [vmem:[%s1485_s1 + $0x70] sm:$0xff]  ;;  %v56_v10 = vld [vmem:[%s1485_s1 + $0x68] sm:$0xff] }
   0x4   :  { %v90_v3 = vld [vmem:[%s1485_s1 + $0x178] sm:$0xff]  ;;  %783 = vmatpush3.msra.mxu0 %v58_v2  ;;  %v89_v7 = vld [vmem:[%s1485_s1 + $0x170] sm:$0xff]  ;;  %v88_v11 = vld [vmem:[%s1485_s1 + $0x168] sm:$0xff] }
   0x5   :  { %827 = vmatpush3.msra.mxu1 %v90_v3  ;;  %784 = vmatprep.subr.mxu0 %v73_v4  ;;  %v71_v12 = vld [vmem:[%s1485_s1 + $0xe0] sm:$0xff]  ;;  %v70_v16 = vld [vmem:[%s1485_s1 + $0xd8] sm:$0xff]  ;;  %v69_v20 = vld [vmem:[%s1485_s1 + $0xd0] sm:$0xff] }
   0x6   :  { %828 = vmatprep.subr.mxu1 %v105_v5  ;;  %785 = vmatpush3.msra.mxu0 %v57_v6  ;;  %v103_v13 = vld [vmem:[%s1485_s1 + $0x1e0] sm:$0xff]  ;;  %v102_v17 = vld [vmem:[%s1485_s1 + $0x1d8] sm:$0xff]  ;;  %v101_v21 = vld [vmem:[%s1485_s1 + $0x1d0] sm:$0xff] }
   0x7   :  { %829 = vmatpush3.msra.mxu1 %v89_v7  ;;  %786 = vmatprep.subr.mxu0 %v72_v8  ;;  %v55_v14 = vld [vmem:[%s1485_s1 + $0x60] sm:$0xff]  ;;  %v54_v18 = vld [vmem:[%s1485_s1 + $0x58] sm:$0xff]  ;;  %v53_v22 = vld [vmem:[%s1485_s1 + $0x50] sm:$0xff] }
   0x8   :  { %830 = vmatprep.subr.mxu1 %v104_v9  ;;  %v87_v15 = vld [vmem:[%s1485_s1 + $0x160] sm:$0xff]  ;;  %787 = vmatpush3.msra.mxu0 %v56_v10  ;;  %v86_v19 = vld [vmem:[%s1485_s1 + $0x158] sm:$0xff]  ;;  %v85_v23 = vld [vmem:[%s1485_s1 + $0x150] sm:$0xff] }
   0x9   :  { %831 = vmatpush3.msra.mxu1 %v88_v11  ;;  %788 = vmatprep.subr.mxu0 %v71_v12  ;;  %v68_v24 = vld [vmem:[%s1485_s1 + $0xc8] sm:$0xff]  ;;  %v67_v28 = vld [vmem:[%s1485_s1 + $0xc0] sm:$0xff]  ;;  %v66_v32 = vld [vmem:[%s1485_s1 + $0xb8] sm:$0xff] }
   0xa   :  { %832 = vmatprep.subr.mxu1 %v103_v13  ;;  %789 = vmatpush3.msra.mxu0 %v55_v14  ;;  %v100_v25 = vld [vmem:[%s1485_s1 + $0x1c8] sm:$0xff]  ;;  %v99_v29 = vld [vmem:[%s1485_s1 + $0x1c0] sm:$0xff]  ;;  %v98_v33 = vld [vmem:[%s1485_s1 + $0x1b8] sm:$0xff] }
   0xb   :  { %833 = vmatpush3.msra.mxu1 %v87_v15  ;;  %790 = vmatprep.subr.mxu0 %v70_v16  ;;  %v52_v26 = vld [vmem:[%s1485_s1 + $0x48] sm:$0xff]  ;;  %v51_v30 = vld [vmem:[%s1485_s1 + $0x40] sm:$0xff]  ;;  %v50_v34 = vld [vmem:[%s1485_s1 + $0x38] sm:$0xff] }
   0xc   :  { %834 = vmatprep.subr.mxu1 %v102_v17  ;;  %791 = vmatpush3.msra.mxu0 %v54_v18  ;;  %v84_v27 = vld [vmem:[%s1485_s1 + $0x148] sm:$0xff]  ;;  %v83_v31 = vld [vmem:[%s1485_s1 + $0x140] sm:$0xff]  ;;  %v82_v35 = vld [vmem:[%s1485_s1 + $0x138] sm:$0xff] }
   0xd   :  { %835 = vmatpush3.msra.mxu1 %v86_v19  ;;  %792 = vmatprep.subr.mxu0 %v69_v20  ;;  %v65_v36 = vld [vmem:[%s1485_s1 + $0xb0] sm:$0xff]  ;;  %v64_v40 = vld [vmem:[%s1485_s1 + $0xa8] sm:$0xff]  ;;  %v63_v44 = vld [vmem:[%s1485_s1 + $0xa0] sm:$0xff] }
   0xe   :  { %836 = vmatprep.subr.mxu1 %v101_v21  ;;  %793 = vmatpush3.msra.mxu0 %v53_v22  ;;  %v97_v37 = vld [vmem:[%s1485_s1 + $0x1b0] sm:$0xff]  ;;  %v96_v41 = vld [vmem:[%s1485_s1 + $0x1a8] sm:$0xff]  ;;  %v95_v45 = vld [vmem:[%s1485_s1 + $0x1a0] sm:$0xff] }
   0xf   :  { %837 = vmatpush3.msra.mxu1 %v85_v23  ;;  %794 = vmatprep.subr.mxu0 %v68_v24  ;;  %v49_v38 = vld [vmem:[%s1485_s1 + $0x30] sm:$0xff]  ;;  %v48_v42 = vld [vmem:[%s1485_s1 + $0x28] sm:$0xff]  ;;  %v47_v46 = vld [vmem:[%s1485_s1 + $0x20] sm:$0xff] }
  0x10   :  { %838 = vmatprep.subr.mxu1 %v100_v25  ;;  %795 = vmatpush3.msra.mxu0 %v52_v26  ;;  %v81_v39 = vld [vmem:[%s1485_s1 + $0x130] sm:$0xff]  ;;  %v80_v43 = vld [vmem:[%s1485_s1 + $0x128] sm:$0xff]  ;;  %v79_v47 = vld [vmem:[%s1485_s1 + $0x120] sm:$0xff] }
  0x11   :  { %839 = vmatpush3.msra.mxu1 %v84_v27  ;;  %796 = vmatprep.subr.mxu0 %v67_v28  ;;  %v62_v48 = vld [vmem:[%s1485_s1 + $0x98] sm:$0xff]  ;;  %v61_v52 = vld [vmem:[%s1485_s1 + $0x90] sm:$0xff]  ;;  %v60_v56 = vld [vmem:[%s1485_s1 + $0x88] sm:$0xff]  ;;  %v1044_v28 = vmov 0.0  }
  0x12   :  { %840 = vmatprep.subr.mxu1 %v99_v29  ;;  %797 = vmatpush3.msra.mxu0 %v51_v30  ;;  %v94_v49 = vld [vmem:[%s1485_s1 + $0x198] sm:$0xff]  ;;  %v93_v53 = vld [vmem:[%s1485_s1 + $0x190] sm:$0xff]  ;;  %v92_v57 = vld [vmem:[%s1485_s1 + $0x188] sm:$0xff] }
  0x13   :  { %841 = vmatpush3.msra.mxu1 %v83_v31  ;;  %798 = vmatprep.subr.mxu0 %v66_v32  ;;  %v46_v50 = vld [vmem:[%s1485_s1 + $0x18] sm:$0xff]  ;;  %v45_v54 = vld [vmem:[%s1485_s1 + $0x10] sm:$0xff]  ;;  %v44_v58 = vld [vmem:[%s1485_s1 + $0x8] sm:$0xff] }
  0x14   :  { %842 = vmatprep.subr.mxu1 %v98_v33  ;;  %799 = vmatpush3.msra.mxu0 %v50_v34  ;;  %v78_v51 = vld [vmem:[%s1485_s1 + $0x118] sm:$0xff]  ;;  %v77_v55 = vld [vmem:[%s1485_s1 + $0x110] sm:$0xff]  ;;  %v76_v59 = vld [vmem:[%s1485_s1 + $0x108] sm:$0xff] }
  0x15   :  { %843 = vmatpush3.msra.mxu1 %v82_v35  ;;  %800 = vmatprep.subr.mxu0 %v65_v36  ;;  %v59_v60 = vld [vmem:[%s1485_s1 + $0x80] sm:$0xff]  ;;  %v24_v63 = vld [vmem:[%s1486_s0 + $0x8] sm:$0xff]  ;;  %v26_v1 = vld [vmem:[%s1486_s0 + $0x18] sm:$0xff] }
  0x16   :  { %844 = vmatprep.subr.mxu1 %v97_v37  ;;  %801 = vmatpush3.msra.mxu0 %v49_v38  ;;  %v91_v61 = vld [vmem:[%s1485_s1 + $0x180] sm:$0xff]  ;;  %v25_v3 = vld [vmem:[%s1486_s0 + $0x10] sm:$0xff]  ;;  %v114_v4 = vld [vmem:[%s1485_s1 + $0x238] sm:$0xff] }
  0x17   :  { %845 = vmatpush3.msra.mxu1 %v81_v39  ;;  %802 = vmatprep.subr.mxu0 %v64_v40  ;;  %v43_v62 = vld [vmem:[%s1485_s1] sm:$0xff]  ;;  %v29_v5 = vld [vmem:[%s1486_s0 + $0x30] sm:$0xff]  ;;  %v30_v8 = vld [vmem:[%s1486_s0 + $0x38] sm:$0xff] }
  0x18   :  { %846 = vmatprep.subr.mxu1 %v96_v41  ;;  %803 = vmatpush3.msra.mxu0 %v48_v42  ;;  %v75_v0 = vld [vmem:[%s1485_s1 + $0x100] sm:$0xff]  ;;  %v113_v7 = vld [vmem:[%s1485_s1 + $0x230] sm:$0xff]  ;;  %v28_v9 = vld [vmem:[%s1486_s0 + $0x28] sm:$0xff] }
  0x19   :  { %847 = vmatpush3.msra.mxu1 %v80_v43  ;;  %804 = vmatprep.subr.mxu0 %v63_v44  ;;  %v23_v2 = vld [vmem:[%s1486_s0] sm:$0xff]  ;;  %v112_v10 = vld [vmem:[%s1485_s1 + $0x228] sm:$0xff]  ;;  %v34_v11 = vld [vmem:[%s1486_s0 + $0x58] sm:$0xff] }
  0x1a   :  { %848 = vmatprep.subr.mxu1 %v95_v45  ;;  %805 = vmatpush3.msra.mxu0 %v47_v46  ;;  %v31_v6 = vld [vmem:[%s1486_s0 + $0x40] sm:$0xff]  ;;  %v36_v13 = vld [vmem:[%s1486_s0 + $0x68] sm:$0xff]  ;;  %v33_v15 = vld [vmem:[%s1486_s0 + $0x50] sm:$0xff] }
  0x1b   :  { %849 = vmatpush3.msra.mxu1 %v79_v47  ;;  %806 = vmatprep.subr.mxu0 %v62_v48  ;;  %v111_v12 = vld [vmem:[%s1485_s1 + $0x220] sm:$0xff]  ;;  %v110_v16 = vld [vmem:[%s1485_s1 + $0x218] sm:$0xff]  ;;  %v109_v18 = vld [vmem:[%s1485_s1 + $0x210] sm:$0xff] }
  0x1c   :  { %850 = vmatprep.subr.mxu1 %v94_v49  ;;  %807 = vmatpush3.msra.mxu0 %v46_v50  ;;  %v35_v14 = vld [vmem:[%s1486_s0 + $0x60] sm:$0xff]  ;;  %v41_v19 = vld [vmem:[%s1486_s0 + $0x90] sm:$0xff]  ;;  %v40_v20 = vld [vmem:[%s1486_s0 + $0x88] sm:$0xff] }
  0x1d   :  { %851 = vmatpush3.msra.mxu1 %v78_v51  ;;  %808 = vmatprep.subr.mxu0 %v61_v52  ;;  %v39_v17 = vld [vmem:[%s1486_s0 + $0x80] sm:$0xff]  ;;  %v38_v21 = vld [vmem:[%s1486_s0 + $0x78] sm:$0xff]  ;;  %v108_v22 = vld [vmem:[%s1485_s1 + $0x208] sm:$0xff] }
  0x1e   :  { %852 = vmatprep.subr.mxu1 %v93_v53  ;;  %809 = vmatpush3.msra.mxu0 %v45_v54  ;;  %v27_v23 = vld [vmem:[%s1486_s0 + $0x20] sm:$0xff]  ;;  %v32_v25 = vld [vmem:[%s1486_s0 + $0x48] sm:$0xff]  ;;  %v37_v26 = vld [vmem:[%s1486_s0 + $0x70] sm:$0xff] }
  0x1f   :  { %853 = vmatpush3.msra.mxu1 %v77_v55  ;;  %810 = vmatprep.subr.mxu0 %v60_v56  ;;  %v107_v24 = vld [vmem:[%s1485_s1 + $0x200] sm:$0xff]  ;;  %v42_v27 = vld [vmem:[%s1486_s0 + $0x98] sm:$0xff]  ;;  %v406_v30 = vld [vmem:[%s1487_s2 + $0x70] sm:$0xff] }
  0x20   :  { %854 = vmatprep.subr.mxu1 %v92_v57  ;;  %811 = vmatpush3.msra.mxu0 %v44_v58  ;;  %v407_v29 = vld [vmem:[%s1487_s2 + $0x78] sm:$0xff]  ;;  %v405_v31 = vld [vmem:[%s1487_s2 + $0x68] sm:$0xff]  ;;  %v404_v32 = vld [vmem:[%s1487_s2 + $0x60] sm:$0xff] }
  0x21   :  { %855 = vmatpush3.msra.mxu1 %v76_v59  ;;  %812 = vmatprep.subr.mxu0 %v59_v60  ;;  %v403_v33 = vld [vmem:[%s1487_s2 + $0x58] sm:$0xff]  ;;  %v402_v34 = vld [vmem:[%s1487_s2 + $0x50] sm:$0xff]  ;;  %v401_v35 = vld [vmem:[%s1487_s2 + $0x48] sm:$0xff] }
  0x22   :  { %856 = vmatprep.subr.mxu1 %v91_v61  ;;  %813 = vmatpush3.msra.mxu0 %v43_v62  ;;  %v400_v36 = vld [vmem:[%s1487_s2 + $0x40] sm:$0xff]  ;;  %v399_v37 = vld [vmem:[%s1487_s2 + $0x38] sm:$0xff]  ;;  %v398_v38 = vld [vmem:[%s1487_s2 + $0x30] sm:$0xff] }
  0x23   :  { %192 = vmatprep.mubr.f32.mxu0 %v24_v63  ;;  %857 = vmatpush3.msra.mxu1 %v75_v0  ;;  %v397_v39 = vld [vmem:[%s1487_s2 + $0x28] sm:$0xff]  ;;  %v396_v40 = vld [vmem:[%s1487_s2 + $0x20] sm:$0xff]  ;;  %v395_v41 = vld [vmem:[%s1487_s2 + $0x18] sm:$0xff] }
  0x24   :  { %277 = vmatprep.mubr.f32.mxu1 %v26_v1  ;;  %193 = vmatmul.mubr.f32.vlgmr.msra.gmra.mxu0 %v23_v2  ;;  %v394_v42 = vld [vmem:[%s1487_s2 + $0x10] sm:$0xff]  ;;  %v393_v43 = vld [vmem:[%s1487_s2 + $0x8] sm:$0xff]  ;;  %v392_v44 = vld [vmem:[%s1487_s2] sm:$0xff] }
  0x25   :  { %278 = vmatmul.mubr.f32.vlgmr.msra.gmra.mxu1 %v25_v3  ;;  %926 = vmatprep.subr.mxu0 %v114_v4 }
  0x26   :  { %197 = vmatprep.mubr.f32.mxu0 %v29_v5  ;;  %927 = vmatpush3.msra.mxu0 %v114_v4 }
  0x27   :  { %282 = vmatprep.mubr.f32.mxu1 %v31_v6  ;;  %928 = vmatprep.subr.mxu0 %v113_v7 }
  0x28   :  { %929 = vmatpush3.msra.mxu0 %v113_v7  ;;  %948 = vmatprep.subr.mxu1 %v1044_v28 }
  0x29   :  { %283 = vmatmul.mubr.f32.gmra.mxu1 %v30_v8  ;;  %198 = vmatmul.mubr.f32.gmra.mxu0 %v28_v9 }
  0x2a   :  { %930 = vmatprep.subr.mxu0 %v112_v10  ;;  %202 = vmatprep.mubr.f32.mxu0 %v34_v11 }
  0x2b   :  { %931 = vmatpush3.msra.mxu0 %v112_v10  ;;  %287 = vmatprep.mubr.f32.mxu1 %v36_v13 }
  0x2c   :  { %932 = vmatprep.subr.mxu0 %v111_v12  ;;  %949 = vmatpush3.msra.mxu1 %v407_v29 }
  0x2d   :  { %933 = vmatpush3.msra.mxu0 %v111_v12  ;;  %288 = vmatmul.mubr.f32.gmra.mxu1 %v35_v14 }
  0x2e   :  { %203 = vmatmul.mubr.f32.gmra.mxu0 %v33_v15  ;;  %934 = vmatprep.subr.mxu0 %v110_v16 }
  0x2f   :  { %935 = vmatpush3.msra.mxu0 %v110_v16  ;;  %207 = vmatprep.mubr.f32.mxu0 %v39_v17 }
  0x30   :  { %936 = vmatprep.subr.mxu0 %v109_v18  ;;  %292 = vmatprep.mubr.f32.mxu1 %v41_v19 }
  0x31   :  { %937 = vmatpush3.msra.mxu0 %v109_v18  ;;  %293 = vmatmul.mubr.f32.gmra.mxu1 %v40_v20 }
  0x32   :  { %208 = vmatmul.mubr.f32.gmra.mxu0 %v38_v21  ;;  %938 = vmatprep.subr.mxu0 %v108_v22 }
  0x33   :  { %939 = vmatpush3.msra.mxu0 %v108_v22  ;;  %942 = vmatprep.mubr.msk.f32.mxu0 %vm115_vm0, %v27_v23 }
  0x34   :  { %940 = vmatprep.subr.mxu0 %v107_v24  ;;  %950 = vmatprep.subr.mxu1 %v1044_v28 }
  0x35   :  { %941 = vmatpush3.msra.mxu0 %v107_v24  ;;  %951 = vmatpush3.msra.mxu1 %v406_v30 }
  0x36   :  { %943 = vmatmul.mubr.msk.f32.vlgmr.msra.gmra.mxu0 %vm115_vm0, %v32_v25  ;;  %994 = vmatprep.subr.mxu0 %v1044_v28 }
  0x37   :  { %945 = vmatprep.mubr.msk.f32.mxu0 %vm115_vm0, %v37_v26  ;;  %995 = vmatpush3.msra.mxu0 %v407_v29  ;;  %v481_v26 = vld [vmem:[%s1488_s3 + $0x18] sm:$0xff]  ;;  %v479_v29 = vld [vmem:[%s1488_s3 + $0x8] sm:$0xff] }
  0x38   :  { %996 = vmatprep.subr.mxu0 %v1044_v28  ;;  %952 = vmatprep.subr.mxu1 %v1044_v28 }
  0x39   :  { %997 = vmatpush3.msra.mxu0 %v406_v30  ;;  %953 = vmatpush3.msra.mxu1 %v405_v31  ;;  %v478_v30 = vld [vmem:[%s1488_s3] sm:$0xff] }
  0x3a   :  { %946 = vmatmul.mubr.msk.f32.gmra.mxu0 %vm115_vm0, %v42_v27  ;;  %998 = vmatprep.subr.mxu0 %v1044_v28  ;;  %v480_v27 = vld [vmem:[%s1488_s3 + $0x10] sm:$0xff] }
  0x3b   :  { %999 = vmatpush3.msra.mxu0 %v405_v31  ;;  %954 = vmatprep.subr.mxu1 %v1044_v28 }
  0x3c   :  { %1000 = vmatprep.subr.mxu0 %v1044_v28  ;;  %955 = vmatpush3.msra.mxu1 %v404_v32 }
  0x3d   :  { %1001 = vmatpush3.msra.mxu0 %v404_v32  ;;  %956 = vmatprep.subr.mxu1 %v1044_v28 }
  0x3e   :  { %1002 = vmatprep.subr.mxu0 %v1044_v28  ;;  %957 = vmatpush3.msra.mxu1 %v403_v33 }
  0x3f   :  { %1003 = vmatpush3.msra.mxu0 %v403_v33  ;;  %958 = vmatprep.subr.mxu1 %v1044_v28  ;;  %v557_v33 = vlaneseq }
  0x40   :  { %1004 = vmatprep.subr.mxu0 %v1044_v28  ;;  %959 = vmatpush3.msra.mxu1 %v402_v34 }
  0x41   :  { %1005 = vmatpush3.msra.mxu0 %v402_v34  ;;  %960 = vmatprep.subr.mxu1 %v1044_v28  ;;  %v558_v34 = vshrl.u32 %v557_v33, 7 }
  0x42   :  { %1006 = vmatprep.subr.mxu0 %v1044_v28  ;;  %961 = vmatpush3.msra.mxu1 %v401_v35 }
  0x43   :  { %1007 = vmatpush3.msra.mxu0 %v401_v35  ;;  %962 = vmatprep.subr.mxu1 %v1044_v28  ;;  %v559_v35 = vsub.s32 0, %v558_v34 }
  0x44   :  { %1008 = vmatprep.subr.mxu0 %v1044_v28  ;;  %963 = vmatpush3.msra.mxu1 %v400_v36 }
  0x45   :  { %1009 = vmatpush3.msra.mxu0 %v400_v36  ;;  %964 = vmatprep.subr.mxu1 %v1044_v28 }
  0x46   :  { %1010 = vmatprep.subr.mxu0 %v1044_v28  ;;  %965 = vmatpush3.msra.mxu1 %v399_v37 }
  0x47   :  { %1011 = vmatpush3.msra.mxu0 %v399_v37  ;;  %966 = vmatprep.subr.mxu1 %v1044_v28 }
  0x48   :  { %1012 = vmatprep.subr.mxu0 %v1044_v28  ;;  %967 = vmatpush3.msra.mxu1 %v398_v38 }
  0x49   :  { %1013 = vmatpush3.msra.mxu0 %v398_v38  ;;  %968 = vmatprep.subr.mxu1 %v1044_v28 }
  0x4a   :  { %1014 = vmatprep.subr.mxu0 %v1044_v28  ;;  %969 = vmatpush3.msra.mxu1 %v397_v39 }
  0x4b   :  { %1015 = vmatpush3.msra.mxu0 %v397_v39  ;;  %970 = vmatprep.subr.mxu1 %v1044_v28 }
  0x4c   :  { %1016 = vmatprep.subr.mxu0 %v1044_v28  ;;  %971 = vmatpush3.msra.mxu1 %v396_v40 }
  0x4d   :  { %1017 = vmatpush3.msra.mxu0 %v396_v40  ;;  %972 = vmatprep.subr.mxu1 %v1044_v28 }
  0x4e   :  { %1018 = vmatprep.subr.mxu0 %v1044_v28  ;;  %973 = vmatpush3.msra.mxu1 %v395_v41 }
  0x4f   :  { %1019 = vmatpush3.msra.mxu0 %v395_v41  ;;  %974 = vmatprep.subr.mxu1 %v1044_v28 }
  0x50   :  { %1020 = vmatprep.subr.mxu0 %v1044_v28  ;;  %975 = vmatpush3.msra.mxu1 %v394_v42 }
  0x51   :  { %1021 = vmatpush3.msra.mxu0 %v394_v42  ;;  %976 = vmatprep.subr.mxu1 %v1044_v28 }
  0x52   :  { %1022 = vmatprep.subr.mxu0 %v1044_v28  ;;  %977 = vmatpush3.msra.mxu1 %v393_v43 }
  0x53   :  { %1023 = vmatpush3.msra.mxu0 %v393_v43  ;;  %978 = vmatprep.subr.mxu1 %v1044_v28 }
  0x54   :  { %1024 = vmatprep.subr.mxu0 %v1044_v28  ;;  %979 = vmatpush3.msra.mxu1 %v392_v44 }
  0x55   :  { %980 = vmatprep.mubr.msk.f32.mxu1 %vm1045_vm1, %v1044_v28  ;;  %983 = vmatprep.subr.mxu1 %v1044_v28 }
  0x56   :  { %1025 = vmatpush3.msra.mxu0 %v392_v44  ;;  %1026 = vmatprep.mubr.msk.f32.mxu0 %vm1045_vm1, %v1044_v28 }
  0xe4   :  { %v814_v45 = vpop.f32.mrf.mxu0 }
  0xe5   :  { %v858_v46 = vpop.f32.mrf.mxu1 }
  0xe6   :  { %v815_v47 = vpop.f32.mrf.mxu0 }
  0xe7   :  { %v859_v48 = vpop.f32.mrf.mxu1  ;;  %v816_v59 = vadd.f32 %v815_v47, %v814_v45 }
  0xe8   :  { %v860_v60 = vadd.f32 %v859_v48, %v858_v46 }
  0xe9   :  { %v861_v49 = vpop.f32.mrf.mxu1  ;;  %v817_v50 = vpop.f32.mrf.mxu0 }
  0xea   :  { %v280_v4 = vadd.f32 %v860_v60, %v816_v59 }
  0xeb   :  { %v862_v51 = vpop.f32.mrf.mxu1  ;;  %v818_v52 = vpop.f32.mrf.mxu0 }
  0xec   :  { %v819_v62 = vadd.f32 %v818_v52, %v817_v50  ;;  %v863_v63 = vadd.f32 %v862_v51, %v861_v49 }
  0xed   :  { %v864_v53 = vpop.f32.mrf.mxu1 }
  0xee   :  { %v820_v54 = vpop.f32.mrf.mxu0  ;;  %v285_v8 = vadd.f32 %v863_v63, %v819_v62 }
  0xef   :  { %v865_v55 = vpop.f32.mrf.mxu1 }
  0xf0   :  { %v821_v56 = vpop.f32.mrf.mxu0  ;;  %v866_v3 = vadd.f32 %v865_v55, %v864_v53 }
  0xf1   :  { %v867_v58 = vpop.f32.mrf.mxu1  ;;  %v822_v2 = vadd.f32 %v821_v56, %v820_v54 }
  0xf2   :  { %v823_v57 = vpop.f32.mrf.mxu0 }
  0xf3   :  { %v868_v0 = vpop.f32.mrf.mxu1  ;;  %v290_v12 = vadd.f32 %v866_v3, %v822_v2 }
  0xf4   :  { %v824_v61 = vpop.f32.mrf.mxu0  ;;  %v869_v7 = vadd.f32 %v868_v0, %v867_v58  ;;  %v780_v0 = vld [vmem:[%s1489_s4] ss:$0 sm:$0xff] }
  0xf5   :  { %v825_v6 = vadd.f32 %v824_v61, %v823_v57 }
  0xf6   :  { %v944_v1 = vpop.f32.mrf.mxu0 }
  0xf7   :  { %v370_v11 = vadd.f32 %v944_v1, %v285_v8  ;;  %v295_v15 = vadd.f32 %v869_v7, %v825_v6 }
  0xf8   :  { %v364_v5 = vpop.f32.mrf.mxu0 }
  0xf9   :  { %v365_v9 = vadd.f32 %v364_v5, %v280_v4  ;;  %v781_v5 = vld [vmem:[%s1490_s5] ss:$0 sm:$0xff] }
  0xfa   :  { %v947_v10 = vpop.f32.mrf.mxu0 }
  0xfb   :  { %v383_v14 = vadd.f32 %v370_v11, %v365_v9  ;;  %v380_v17 = vadd.f32 %v947_v10, %v295_v15 }
  0xfc   :  { %v374_v13 = vpop.f32.mrf.mxu0 }
  0xfd   :  { %v375_v16 = vadd.f32 %v374_v13, %v290_v12 }
  0xff   :  { %v384_v18 = vadd.f32 %v383_v14, %v375_v16 }
 0x101   :  { %v385_v19 = vadd.f32 %v384_v18, %v380_v17 }
 0x103   :  { %v386_v20 = vrot.slane %v385_v19, 4 }
 0x105   :  { %v387_v21 = vadd.f32 %v386_v20, %v385_v19 }
 0x107   :  { %v388_v22 = vrot.slane %v387_v21, 2 }
 0x109   :  { %v389_v23 = vadd.f32 %v388_v22, %v387_v21 }
 0x10b   :  { %v390_v24 = vrot.slane %v389_v23, 1 }
 0x10d   :  { %v391_v25 = vadd.f32 %v390_v24, %v389_v23 }
 0x10f   :  { %981 = vmatmul.mubr.f32.vlgmr.msra.gmra.mxu1 %v391_v25 }
 0x110   :  { %984 = vmatpush3.msra.mxu1 %v481_v26  ;;  %991 = vmatprep.mubr.msk.f32.mxu1 %vm1045_vm1, %v1044_v28 }
 0x111   :  { %985 = vmatprep.subr.mxu1 %v1044_v28 }
 0x112   :  { %986 = vmatpush3.msra.mxu1 %v480_v27 }
 0x113   :  { %987 = vmatprep.subr.mxu1 %v1044_v28 }
 0x114   :  { %988 = vmatpush3.msra.mxu1 %v479_v29 }
 0x115   :  { %989 = vmatprep.subr.mxu1 %v1044_v28 }
 0x116   :  { %990 = vmatpush3.msra.mxu1 %v478_v30 }
 0x117   :  { %1029 = vmatprep.subr.mxu1 %v1044_v28 }
 0x1cf   :  { %v474_v31 = vpop.f32.mrf.mxu1 }
 0x1d0   :  { %992 = vmatmul.mubr.msk.f32.vlgmr.msra.gmra.mxu1 %vm482_vm2, %v474_v31 }
 0x1d1   :  { %v982_v32 = vpop.f32.mrf.mxu1  ;;  %1030 = vmatpush3.msra.mxu1 %v481_v26  ;;  %1037 = vmatprep.mubr.msk.f32.mxu1 %vm1045_vm1, %v1044_v28 }
 0x1d2   :  { %1031 = vmatprep.subr.mxu1 %v1044_v28 }
 0x1d3   :  { %1032 = vmatpush3.msra.mxu1 %v480_v27 }
 0x1d4   :  { %1033 = vmatprep.subr.mxu1 %v1044_v28 }
 0x1d5   :  { %1034 = vmatpush3.msra.mxu1 %v479_v29 }
 0x1d6   :  { %1035 = vmatprep.subr.mxu1 %v1044_v28 }
 0x1d7   :  { %1036 = vmatpush3.msra.mxu1 %v478_v30 }
 0x290   :  { %v552_v36 = vpop.f32.mrf.mxu1 }
 0x291   :  { %v556_v37 = vmul.f32 0.0078125, %v552_v36 }
 0x292   :  { %v993_v38 = vpop.f32.mrf.mxu1 }
 0x293   :  { %v560_v39 = vrot.slane %v556_v37, %v559_v35 }
 0x295   :  { %v561_v40 = vsub.f32 %v365_v9, %v560_v39  ;;  %v562_v41 = vsub.f32 %v370_v11, %v560_v39  ;;  %v563_v42 = vsub.f32 %v375_v16, %v560_v39  ;;  %v564_v43 = vsub.f32 %v380_v17, %v560_v39 }
 0x297   :  { %v565_v44 = vmul.f32 %v561_v40, %v561_v40  ;;  %v566_v45 = vmul.f32 %v562_v41, %v562_v41  ;;  %v567_v46 = vmul.f32 %v563_v42, %v563_v42  ;;  %v568_v48 = vmul.f32 %v564_v43, %v564_v43 }
 0x299   :  { %v569_v47 = vadd.f32 %v566_v45, %v565_v44 }
 0x29b   :  { %v570_v49 = vadd.f32 %v569_v47, %v567_v46 }
 0x29d   :  { %v571_v50 = vadd.f32 %v570_v49, %v568_v48 }
 0x29f   :  { %v572_v28 = vrot.slane %v571_v50, 4 }
 0x2a1   :  { %v573_v51 = vadd.f32 %v572_v28, %v571_v50 }
 0x2a3   :  { %v574_v52 = vrot.slane %v573_v51, 2 }
 0x2a5   :  { %v575_v53 = vadd.f32 %v574_v52, %v573_v51 }
 0x2a7   :  { %v576_v54 = vrot.slane %v575_v53, 1 }
 0x2a9   :  { %v577_v55 = vadd.f32 %v576_v54, %v575_v53 }
 0x2ab   :  { %1027 = vmatmul.mubr.f32.vlgmr.msra.gmra.mxu0 %v577_v55 }
 0x36b   :  { %v644_v56 = vpop.f32.mrf.mxu0 }
 0x36c   :  { %1038 = vmatmul.mubr.msk.f32.vlgmr.msra.gmra.mxu1 %vm482_vm2, %v644_v56 }
 0x36d   :  { %v1028_v57 = vpop.f32.mrf.mxu0 }
 0x42c   :  { %v717_v58 = vpop.f32.mrf.mxu1 }
 0x42d   :  { %v721_v59 = vmul.f32 0.0078125, %v717_v58 }
 0x42e   :  { %v1039_v60 = vpop.f32.mrf.mxu1 }
 0x42f   :  { %v722_v61 = vadd.f32 1e-05, %v721_v59 }
 0x431   :  { %1042 = vrsqrt.f32 %v722_v61 }
 0x43e   :  { %v1043_v62 = vpop.eup %1042 }
 0x43f   :  { %v727_v63 = vrot.slane %v1043_v62, %v559_v35 }
 0x441   :  { %v728_v1 = vmul.f32 %v727_v63, %v561_v40  ;;  %v729_v2 = vmul.f32 %v727_v63, %v562_v41  ;;  %v730_v3 = vmul.f32 %v727_v63, %v563_v42  ;;  %v731_v4 = vmul.f32 %v727_v63, %v564_v43 }
 0x443   :  { %v739_v6 = vmul.f32 %v780_v0, %v728_v1  ;;  %v740_v7 = vmul.f32 %v780_v0, %v729_v2  ;;  %v741_v8 = vmul.f32 %v780_v0, %v730_v3  ;;  %v742_v9 = vmul.f32 %v780_v0, %v731_v4 }
 0x445   :  { %v750_v10 = vadd.f32 %v781_v5, %v739_v6  ;;  %v751_v11 = vadd.f32 %v781_v5, %v740_v7  ;;  %v752_v12 = vadd.f32 %v781_v5, %v741_v8  ;;  %v753_v13 = vadd.f32 %v781_v5, %v742_v9 }
 0x447   :  { %vm754_vm3 = vcmp.gt.f32.partialorder %v750_v10, 0.0  ;;  %vm755_vm4 = vcmp.gt.f32.partialorder %v751_v11, 0.0  ;;  %vm756_vm5 = vcmp.gt.f32.partialorder %v752_v12, 0.0  ;;  %vm757_vm6 = vcmp.gt.f32.partialorder %v753_v13, 0.0 }
 0x448   :  { %v758_v14 = vmul.f32 0.2, %v750_v10  ;;  %v759_v15 = vmul.f32 0.2, %v751_v11  ;;  %v760_v16 = vmul.f32 0.2, %v752_v12 }
 0x449   :  { %v761_v17 = vmul.f32 0.2, %v753_v13 }
 0x44a   :  { %v762_v18 = vsel %vm754_vm3, %v750_v10, %v758_v14  ;;  %v763_v19 = vsel %vm755_vm4, %v751_v11, %v759_v15  ;;  %v764_v20 = vsel %vm756_vm5, %v752_v12, %v760_v16 }
 0x44b   :  { %v765_v21 = vsel %vm757_vm6, %v753_v13, %v761_v17  ;;  %766 = vst [vmem:[%s1491_s6] sm:$0xff] %v762_v18  ;;  %767 = vst [vmem:[%s1491_s6 + $0x8] sm:$0xff] %v763_v19 }
 0x44c   :  { %768 = vst [vmem:[%s1491_s6 + $0x10] sm:$0xff] %v764_v20  ;;  %769 = vst [vmem:[%s1491_s6 + $0x18] sm:$0xff] %v765_v21 }

// kernel: dcgan_g_forward.5
= control target key start
LH: loop header
LB: loop body
LE: loop exit
PB: predicated region body
PF: predicated region fallthrough
CT: control target
= control target key end

     0   :  { %11 = vsyncpa [#allocation3], 0  ;;  %s3952_s0 = inlined_call_operand.vmem [shape: f32[2,20], index: 0, kind: input, shape index: {}]   ;;  %s3953_s1 = inlined_call_operand.hbm [shape: f32[20,1024], index: 1, kind: input, shape index: {}]   ;;  %s3954_s2 = inlined_call_operand.vmem [shape: f32[1024,64], index: 2, kind: input, shape index: {}]   ;;  %s3955_s3 = inlined_call_operand.hbm [shape: f32[64,1024], index: 3, kind: input, shape index: {}]   ;;  %s3956_s4 = inlined_call_operand.hbm [shape: f32[1,1024], index: 4, kind: input, shape index: {}]   ;;  %s3957_s5 = inlined_call_operand.hbm [shape: f32[1,1024], index: 5, kind: input, shape index: {}]   ;;  %s3958_s6 = inlined_call_operand.vmem [shape: f32[2,1024], index: 6, kind: output, shape index: {}]  }
   0x1   :  { %12 = vsyncpa [#allocation5], 0 }
   0x2   :  { %13 = vsyncpa [#allocation8], 0  ;;  %s2559_s21 = smov [#allocation4]   ;;  %s2560_s23 = smov [#allocation2]  }
   0x3   :  { %s35_s22 = sshll.u32 %s2559_s21, 4  ;;  %s21_s24 = sshll.u32 %s2560_s23, 4  ;;  %s36_s22 = int_to_ptr.vmem [resolvable:$true] %s35_s22  ;;  %s22_s24 = int_to_ptr.vmem [resolvable:$true] %s21_s24 }
   0x4   :  { %s2481_s25 = scalar_lea.vmem %s36_s22, 8192  ;;  %p2486_p1 = scmp.lt.s32.totalorder %s36_s22, %s36_s22 }
   0x5   :  { %p2482_p0 = scmp.ne.s32.totalorder %s36_s22, %s2481_s25  ;;  %p2487_p2 = scmp.lt.s32.totalorder %s2481_s25, %s2481_s25 }
   0x7   :  { %p2488_p3 = por %p2487_p2, %p2486_p1 }
   0x9   :  { %p2489_p4 = pnand %p2488_p3, %p2482_p0 }
   0xb   :  { %2492 = shalt.err (!%p2489_p4)
}
   0xc   :  { %s2561_s26 = smov 1024   ;;  %s2562_s27 = smov 64  }
   0xd   :  { %41 = dma.hbm_to_vmem [thread:$0]  %s3955_s3, 8192, %s36_s22, [#allocation5], %s2561_s26, %s2561_s26, %s2562_s27  }
   0xe   :  { %s2501_s30 = scalar_lea.vmem %s22_s24, 3072  ;;  %p2506_p6 = scmp.lt.s32.totalorder %s22_s24, %s22_s24 }
   0xf   :  { %p2502_p5 = scmp.ne.s32.totalorder %s22_s24, %s2501_s30  ;;  %p2507_p7 = scmp.lt.s32.totalorder %s2501_s30, %s2501_s30 }
  0x11   :  { %p2508_p8 = por %p2507_p7, %p2506_p6 }
  0x13   :  { %p2509_p9 = pnand %p2508_p8, %p2502_p5 }
  0x15   :  { %2512 = shalt.err (!%p2509_p9)
}
  0x16   :  { %27 = dma.hbm_to_vmem [thread:$0]  %s3953_s1, 3072, %s22_s24, [#allocation3], %s2561_s26, %s2561_s26, %s2562_s27  }
  0x17   :  { %s2563_s9 = smov [#allocation6]   ;;  %s2564_s11 = smov [#allocation7]  }
  0x18   :  { %s48_s10 = sshll.u32 %s2563_s9, 4  ;;  %s58_s12 = sshll.u32 %s2564_s11, 4  ;;  %s49_s10 = int_to_ptr.vmem [resolvable:$true] %s48_s10  ;;  %s59_s12 = int_to_ptr.vmem [resolvable:$true] %s58_s12 }
  0x19   :  { %s2521_s13 = scalar_lea.vmem %s49_s10, 128  ;;  %p2526_p11 = scmp.lt.s32.totalorder %s49_s10, %s49_s10 }
  0x1a   :  { %p2522_p10 = scmp.ne.s32.totalorder %s49_s10, %s2521_s13  ;;  %p2527_p12 = scmp.lt.s32.totalorder %s2521_s13, %s2521_s13 }
  0x1c   :  { %p2528_p13 = por %p2527_p12, %p2526_p11 }
  0x1e   :  { %p2529_p0 = pnand %p2528_p13, %p2522_p10 }
  0x20   :  { %2532 = shalt.err (!%p2529_p0)
}
  0x21   :  { %51 = dma.hbm_to_vmem [thread:$0]  %s3956_s4, 128, %s49_s10, [#allocation5]  }
  0x22   :  { %s2541_s15 = scalar_lea.vmem %s59_s12, 128  ;;  %p2546_p2 = scmp.lt.s32.totalorder %s59_s12, %s59_s12 }
  0x23   :  { %p2542_p1 = scmp.ne.s32.totalorder %s59_s12, %s2541_s15  ;;  %p2547_p3 = scmp.lt.s32.totalorder %s2541_s15, %s2541_s15 }
  0x25   :  { %p2548_p4 = por %p2547_p3, %p2546_p2 }
  0x27   :  { %p2549_p5 = pnand %p2548_p4, %p2542_p1 }
  0x29   :  { %2552 = shalt.err (!%p2549_p5)
}
  0x2a   :  { %61 = dma.hbm_to_vmem [thread:$0]  %s3957_s5, 128, %s59_s12, [#allocation8]  }
  0x2b   :  { %2553 = dma.done.wait [#allocation3], 3072  }
  0x2c   :  { %2554 = vsyncadd [#allocation3], 4294964224 }
  0x2d   :  { %2555 = dma.done.wait [#allocation5], 8320  }
  0x2e   :  { %2556 = vsyncadd [#allocation5], 4294958976 }
  0x2f   :  { %2557 = dma.done.wait [#allocation8], 128  }
  0x30   :  { %2558 = vsyncadd [#allocation8], 4294967168  ;;  %v3959_v0 = vmov 0.0   ;;  %vm103_vm0 = vcmask 1043456   ;;  %v92_v1 = vld [vmem:[#allocation2 + $0x88] sm:$0xf] }
  0x31   :  { %192 = vmatprep.mubr.f32.mxu0 %v3959_v0  ;;  %263 = vmatprep.mubr.f32.mxu1 %v3959_v0  ;;  %v94_v2 = vld [vmem:[#allocation2 + $0x98] sm:$0xf]  ;;  %v91_v3 = vld [vmem:[#allocation2 + $0x80] sm:$0xf]  ;;  %v93_v4 = vld [vmem:[#allocation2 + $0x90] sm:$0xf] }
  0x32   :  { %2149 = vmatprep.subr.msk.mxu0 %vm103_vm0, %v92_v1  ;;  %2152 = vmatprep.subr.msk.mxu1 %vm103_vm0, %v94_v2  ;;  %v84_v5 = vld [vmem:[#allocation2 + $0x48] sm:$0xff]  ;;  %v86_v6 = vld [vmem:[#allocation2 + $0x58] sm:$0xff]  ;;  %v83_v7 = vld [vmem:[#allocation2 + $0x40] sm:$0xff]  ;;  %vm99_vm1 = vcmask 162816   ;;  %vm412_vm2 = vcmask 1041408   ;;  %vm941_vm3 = vcmask 523264  }
  0x33   :  { %2150 = vmatpush1.msk.msra.mxu0 %vm103_vm0, %v91_v3  ;;  %2153 = vmatpush1.msk.msra.mxu1 %vm103_vm0, %v93_v4  ;;  %v85_v8 = vld [vmem:[#allocation2 + $0x50] sm:$0xff]  ;;  %v76_v9 = vld [vmem:[#allocation2 + $0x8] sm:$0xff]  ;;  %v78_v10 = vld [vmem:[#allocation2 + $0x18] sm:$0xff] }
  0x34   :  { %156 = vmatprep.subr.mxu0 %v84_v5  ;;  %227 = vmatprep.subr.mxu1 %v86_v6  ;;  %v75_v11 = vld [vmem:[#allocation2] sm:$0xff]  ;;  %v77_v12 = vld [vmem:[#allocation2 + $0x10] sm:$0xff]  ;;  %v96_v14 = vld [vmem:[#allocation2 + $0xa8] sm:$0xf] }
  0x35   :  { %157 = vmatpush1.msra.mxu0 %v83_v7  ;;  %228 = vmatpush1.msra.mxu1 %v85_v8  ;;  %v74_v13 = vld [vmem:[%s3952_s0] sm:$0x3]  ;;  %v98_v15 = vld [vmem:[#allocation2 + $0xb8] sm:$0xf]  ;;  %v97_v17 = vld [vmem:[#allocation2 + $0xb0] sm:$0xf] }
  0x36   :  { %158 = vmatprep.subr.mxu0 %v76_v9  ;;  %229 = vmatprep.subr.mxu1 %v78_v10  ;;  %v95_v16 = vld [vmem:[#allocation2 + $0xa0] sm:$0xf]  ;;  %v88_v18 = vld [vmem:[#allocation2 + $0x68] sm:$0xff]  ;;  %v90_v19 = vld [vmem:[#allocation2 + $0x78] sm:$0xff] }
  0x37   :  { %159 = vmatpush1.msra.mxu0 %v75_v11  ;;  %230 = vmatpush1.msra.mxu1 %v77_v12  ;;  %v87_v20 = vld [vmem:[#allocation2 + $0x60] sm:$0xff]  ;;  %v80_v21 = vld [vmem:[#allocation2 + $0x28] sm:$0xff]  ;;  %v89_v22 = vld [vmem:[#allocation2 + $0x70] sm:$0xff] }
  0x38   :  { %2151 = vmatmul.mubr.msk.f32.vlgmr.msra.gmra.mxu0 %vm99_vm1, %v74_v13  ;;  %2154 = vmatmul.mubr.msk.f32.vlgmr.msra.gmra.mxu1 %vm99_vm1, %v74_v13  ;;  %v79_v23 = vld [vmem:[#allocation2 + $0x20] sm:$0xff]  ;;  %v82_v24 = vld [vmem:[#allocation2 + $0x38] sm:$0xff]  ;;  %v81_v25 = vld [vmem:[#allocation2 + $0x30] sm:$0xff] }
  0x39   :  { %2155 = vmatprep.subr.msk.mxu0 %vm103_vm0, %v96_v14  ;;  %2158 = vmatprep.subr.msk.mxu1 %vm103_vm0, %v98_v15  ;;  %v2633_v26 = vld [vmem:[%s3954_s2 + $0xf8] sm:$0xff]  ;;  %v2656_v30 = vld [vmem:[%s3954_s2 + $0xf0] sm:$0xff]  ;;  %v2680_v34 = vld [vmem:[%s3954_s2 + $0xe8] sm:$0xff] }
  0x3a   :  { %2156 = vmatpush1.msk.msra.mxu0 %vm103_vm0, %v95_v16  ;;  %2159 = vmatpush1.msk.msra.mxu1 %vm103_vm0, %v97_v17  ;;  %v2638_v27 = vld [vmem:[%s3954_s2 + $0x1f8] sm:$0xff]  ;;  %v2661_v31 = vld [vmem:[%s3954_s2 + $0x1f0] sm:$0xff]  ;;  %v2685_v35 = vld [vmem:[%s3954_s2 + $0x1e8] sm:$0xff] }
  0x3b   :  { %298 = vmatprep.subr.mxu0 %v88_v18  ;;  %369 = vmatprep.subr.mxu1 %v90_v19  ;;  %v2644_v28 = vld [vmem:[%s3954_s2 + $0x78] sm:$0xff]  ;;  %v2668_v32 = vld [vmem:[%s3954_s2 + $0x70] sm:$0xff]  ;;  %v2692_v36 = vld [vmem:[%s3954_s2 + $0x68] sm:$0xff] }
  0x3c   :  { %299 = vmatpush1.msra.mxu0 %v87_v20  ;;  %334 = vmatprep.mubr.f32.mxu0 %v3959_v0  ;;  %v2649_v29 = vld [vmem:[%s3954_s2 + $0x178] sm:$0xff]  ;;  %v2673_v33 = vld [vmem:[%s3954_s2 + $0x170] sm:$0xff]  ;;  %v2697_v37 = vld [vmem:[%s3954_s2 + $0x168] sm:$0xff] }
  0x3d   :  { %300 = vmatprep.subr.mxu0 %v80_v21  ;;  %370 = vmatpush1.msra.mxu1 %v89_v22  ;;  %v2704_v38 = vld [vmem:[%s3954_s2 + $0xe0] sm:$0xff]  ;;  %v2728_v42 = vld [vmem:[%s3954_s2 + $0xd8] sm:$0xff]  ;;  %v2752_v46 = vld [vmem:[%s3954_s2 + $0xd0] sm:$0xff] }
  0x3e   :  { %301 = vmatpush1.msra.mxu0 %v79_v23  ;;  %371 = vmatprep.subr.mxu1 %v82_v24  ;;  %v2709_v39 = vld [vmem:[%s3954_s2 + $0x1e0] sm:$0xff]  ;;  %v2733_v43 = vld [vmem:[%s3954_s2 + $0x1d8] sm:$0xff]  ;;  %v2757_v47 = vld [vmem:[%s3954_s2 + $0x1d0] sm:$0xff] }
  0x3f   :  { %2157 = vmatmul.mubr.msk.f32.vlgmr.msra.gmra.mxu0 %vm99_vm1, %v74_v13  ;;  %372 = vmatpush1.msra.mxu1 %v81_v25  ;;  %v2716_v40 = vld [vmem:[%s3954_s2 + $0x60] sm:$0xff]  ;;  %v2740_v44 = vld [vmem:[%s3954_s2 + $0x58] sm:$0xff]  ;;  %v2764_v48 = vld [vmem:[%s3954_s2 + $0x50] sm:$0xff] }
  0x40   :  { %405 = vmatprep.mubr.f32.mxu1 %v3959_v0  ;;  %2169 = vmatprep.subr.mxu0 %v2633_v26  ;;  %v2721_v41 = vld [vmem:[%s3954_s2 + $0x160] sm:$0xff]  ;;  %v2745_v45 = vld [vmem:[%s3954_s2 + $0x158] sm:$0xff]  ;;  %v2769_v49 = vld [vmem:[%s3954_s2 + $0x150] sm:$0xff] }
  0x41   :  { %2160 = vmatmul.mubr.msk.f32.vlgmr.msra.gmra.mxu1 %vm99_vm1, %v74_v13  ;;  %2204 = vmatprep.subr.mxu1 %v2638_v27  ;;  %v2776_v50 = vld [vmem:[%s3954_s2 + $0xc8] sm:$0xff]  ;;  %v2800_v54 = vld [vmem:[%s3954_s2 + $0xc0] sm:$0xff]  ;;  %v2828_v58 = vld [vmem:[%s3954_s2 + $0xb8] sm:$0xff] }
  0x42   :  { %2170 = vmatpush3.msra.mxu0 %v2644_v28  ;;  %2205 = vmatpush3.msra.mxu1 %v2649_v29  ;;  %v2781_v51 = vld [vmem:[%s3954_s2 + $0x1c8] sm:$0xff]  ;;  %v2805_v55 = vld [vmem:[%s3954_s2 + $0x1c0] sm:$0xff]  ;;  %v2833_v59 = vld [vmem:[%s3954_s2 + $0x1b8] sm:$0xff] }
  0x43   :  { %2171 = vmatprep.subr.mxu0 %v2656_v30  ;;  %2206 = vmatprep.subr.mxu1 %v2661_v31  ;;  %v2788_v52 = vld [vmem:[%s3954_s2 + $0x48] sm:$0xff]  ;;  %v2812_v56 = vld [vmem:[%s3954_s2 + $0x40] sm:$0xff]  ;;  %v2840_v60 = vld [vmem:[%s3954_s2 + $0x38] sm:$0xff] }
  0x44   :  { %2172 = vmatpush3.msra.mxu0 %v2668_v32  ;;  %2207 = vmatpush3.msra.mxu1 %v2673_v33  ;;  %v2793_v53 = vld [vmem:[%s3954_s2 + $0x148] sm:$0xff]  ;;  %v2817_v57 = vld [vmem:[%s3954_s2 + $0x140] sm:$0xff]  ;;  %v2845_v61 = vld [vmem:[%s3954_s2 + $0x138] sm:$0xff] }
  0x45   :  { %2173 = vmatprep.subr.mxu0 %v2680_v34  ;;  %2208 = vmatprep.subr.mxu1 %v2685_v35  ;;  %v2852_v62 = vld [vmem:[%s3954_s2 + $0xb0] sm:$0xff]  ;;  %v2876_v3 = vld [vmem:[%s3954_s2 + $0xa8] sm:$0xff]  ;;  %v2900_v7 = vld [vmem:[%s3954_s2 + $0xa0] sm:$0xff] }
  0x46   :  { %2174 = vmatpush3.msra.mxu0 %v2692_v36  ;;  %2209 = vmatpush3.msra.mxu1 %v2697_v37  ;;  %v2857_v63 = vld [vmem:[%s3954_s2 + $0x1b0] sm:$0xff]  ;;  %4099 = vst [vmem:[#allocation12_spill] sm:$0xff] %v2876_v3  ;;  %v2881_v4 = vld [vmem:[%s3954_s2 + $0x1a8] sm:$0xff]  ;;  %4103 = vst [vmem:[#allocation16_spill] sm:$0xff] %v2900_v7 }
  0x47   :  { %2175 = vmatprep.subr.mxu0 %v2704_v38  ;;  %2210 = vmatprep.subr.mxu1 %v2709_v39  ;;  %v2864_v1 = vld [vmem:[%s3954_s2 + $0x30] sm:$0xff]  ;;  %4100 = vst [vmem:[#allocation13_spill] sm:$0xff] %v2881_v4  ;;  %v2888_v5 = vld [vmem:[%s3954_s2 + $0x28] sm:$0xff]  ;;  %v2905_v8 = vld [vmem:[%s3954_s2 + $0x1a0] sm:$0xff] }
  0x48   :  { %2176 = vmatpush3.msra.mxu0 %v2716_v40  ;;  %2211 = vmatpush3.msra.mxu1 %v2721_v41  ;;  %v2869_v2 = vld [vmem:[%s3954_s2 + $0x130] sm:$0xff]  ;;  %4101 = vst [vmem:[#allocation14_spill] sm:$0xff] %v2888_v5  ;;  %v2893_v6 = vld [vmem:[%s3954_s2 + $0x128] sm:$0xff]  ;;  %4104 = vst [vmem:[#allocation17_spill] sm:$0xff] %v2905_v8 }
  0x49   :  { %2177 = vmatprep.subr.mxu0 %v2728_v42  ;;  %2212 = vmatprep.subr.mxu1 %v2733_v43  ;;  %4102 = vst [vmem:[#allocation15_spill] sm:$0xff] %v2893_v6  ;;  %v2912_v9 = vld [vmem:[%s3954_s2 + $0x20] sm:$0xff]  ;;  %v2924_v11 = vld [vmem:[%s3954_s2 + $0x98] sm:$0xff]  ;;  %v2948_v15 = vld [vmem:[%s3954_s2 + $0x90] sm:$0xff] }
  0x4a   :  { %2178 = vmatpush3.msra.mxu0 %v2740_v44  ;;  %2213 = vmatpush3.msra.mxu1 %v2745_v45  ;;  %4105 = vst [vmem:[#allocation18_spill] sm:$0xff] %v2912_v9  ;;  %v2917_v10 = vld [vmem:[%s3954_s2 + $0x120] sm:$0xff]  ;;  %4107 = vst [vmem:[#allocation20_spill] sm:$0xff] %v2924_v11  ;;  %v2929_v12 = vld [vmem:[%s3954_s2 + $0x198] sm:$0xff] }
  0x4b   :  { %2179 = vmatprep.subr.mxu0 %v2752_v46  ;;  %2214 = vmatprep.subr.mxu1 %v2757_v47  ;;  %4106 = vst [vmem:[#allocation19_spill] sm:$0xff] %v2917_v10  ;;  %4108 = vst [vmem:[#allocation21_spill] sm:$0xff] %v2929_v12  ;;  %v2936_v13 = vld [vmem:[%s3954_s2 + $0x18] sm:$0xff]  ;;  %v2953_v16 = vld [vmem:[%s3954_s2 + $0x190] sm:$0xff] }
  0x4c   :  { %2180 = vmatpush3.msra.mxu0 %v2764_v48  ;;  %2215 = vmatpush3.msra.mxu1 %v2769_v49  ;;  %4109 = vst [vmem:[#allocation22_spill] sm:$0xff] %v2936_v13  ;;  %v2941_v14 = vld [vmem:[%s3954_s2 + $0x118] sm:$0xff]  ;;  %4111 = vst [vmem:[#allocation24_spill] sm:$0xff] %v2948_v15  ;;  %v2960_v17 = vld [vmem:[%s3954_s2 + $0x10] sm:$0xff] }
  0x4d   :  { %2181 = vmatprep.subr.mxu0 %v2776_v50  ;;  %2216 = vmatprep.subr.mxu1 %v2781_v51  ;;  %4110 = vst [vmem:[#allocation23_spill] sm:$0xff] %v2941_v14  ;;  %4112 = vst [vmem:[#allocation25_spill] sm:$0xff] %v2953_v16  ;;  %v2965_v18 = vld [vmem:[%s3954_s2 + $0x110] sm:$0xff]  ;;  %v2972_v19 = vld [vmem:[%s3954_s2 + $0x88] sm:$0xff] }
  0x4e   :  { %2182 = vmatpush3.msra.mxu0 %v2788_v52  ;;  %2217 = vmatpush3.msra.mxu1 %v2793_v53  ;;  %4113 = vst [vmem:[#allocation26_spill] sm:$0xff] %v2960_v17  ;;  %4114 = vst [vmem:[#allocation27_spill] sm:$0xff] %v2965_v18  ;;  %v2977_v20 = vld [vmem:[%s3954_s2 + $0x188] sm:$0xff]  ;;  %v2994_v23 = vld [vmem:[%s3954_s2 + $0x80] sm:$0xff] }
  0x4f   :  { %2183 = vmatprep.subr.mxu0 %v2800_v54  ;;  %2218 = vmatprep.subr.mxu1 %v2805_v55  ;;  %4115 = vst [vmem:[#allocation28_spill] sm:$0xff] %v2972_v19  ;;  %4116 = vst [vmem:[#allocation29_spill] sm:$0xff] %v2977_v20  ;;  %v2984_v21 = vld [vmem:[%s3954_s2 + $0x8] sm:$0xff]  ;;  %v3001_v24 = vld [vmem:[%s3954_s2 + $0x180] sm:$0xff] }
  0x50   :  { %2184 = vmatpush3.msra.mxu0 %v2812_v56  ;;  %2219 = vmatpush3.msra.mxu1 %v2817_v57  ;;  %4117 = vst [vmem:[#allocation30_spill] sm:$0xff] %v2984_v21  ;;  %v2989_v22 = vld [vmem:[%s3954_s2 + $0x108] sm:$0xff]  ;;  %4119 = vst [vmem:[#allocation32_spill] sm:$0xff] %v2994_v23  ;;  %v3006_v25 = vld [vmem:[%s3954_s2] sm:$0xff] }
  0x51   :  { %2185 = vmatprep.subr.mxu0 %v2828_v58  ;;  %2220 = vmatprep.subr.mxu1 %v2833_v59  ;;  %4118 = vst [vmem:[#allocation31_spill] sm:$0xff] %v2989_v22  ;;  %4120 = vst [vmem:[#allocation33_spill] sm:$0xff] %v3001_v24  ;;  %v3011_v0 = vld [vmem:[%s3954_s2 + $0x100] sm:$0xff] }
  0x52   :  { %2186 = vmatpush3.msra.mxu0 %v2840_v60  ;;  %2221 = vmatpush3.msra.mxu1 %v2845_v61  ;;  %4121 = vst [vmem:[#allocation34_spill] sm:$0xff] %v3006_v25  ;;  %4122 = vst [vmem:[#allocation35_spill] sm:$0xff] %v3011_v0 }
  0x53   :  { %2187 = vmatprep.subr.mxu0 %v2852_v62  ;;  %2222 = vmatprep.subr.mxu1 %v2857_v63 }
  0x54   :  { %2188 = vmatpush3.msra.mxu0 %v2864_v1  ;;  %2223 = vmatpush3.msra.mxu1 %v2869_v2 }
  0x55   :  { %2189 = vmatprep.subr.mxu0 %v2876_v3  ;;  %2224 = vmatprep.subr.mxu1 %v2881_v4 }
  0x56   :  { %2190 = vmatpush3.msra.mxu0 %v2888_v5  ;;  %2225 = vmatpush3.msra.mxu1 %v2893_v6 }
  0x57   :  { %2191 = vmatprep.subr.mxu0 %v2900_v7  ;;  %2226 = vmatprep.subr.mxu1 %v2905_v8 }
  0x58   :  { %2192 = vmatpush3.msra.mxu0 %v2912_v9  ;;  %2227 = vmatpush3.msra.mxu1 %v2917_v10 }
  0x59   :  { %2193 = vmatprep.subr.mxu0 %v2924_v11  ;;  %2228 = vmatprep.subr.mxu1 %v2929_v12 }
  0x5a   :  { %2194 = vmatpush3.msra.mxu0 %v2936_v13  ;;  %2229 = vmatpush3.msra.mxu1 %v2941_v14 }
  0x5b   :  { %2195 = vmatprep.subr.mxu0 %v2948_v15  ;;  %2230 = vmatprep.subr.mxu1 %v2953_v16 }
  0x5c   :  { %2196 = vmatpush3.msra.mxu0 %v2960_v17  ;;  %2231 = vmatpush3.msra.mxu1 %v2965_v18 }
  0x5d   :  { %2197 = vmatprep.subr.mxu0 %v2972_v19  ;;  %2232 = vmatprep.subr.mxu1 %v2977_v20 }
  0x5e   :  { %2198 = vmatpush3.msra.mxu0 %v2984_v21  ;;  %2233 = vmatpush3.msra.mxu1 %v2989_v22  ;;  %v3020_v22 = vld [vmem:[%s3954_s2 + $0x2f8] sm:$0xff] }
  0x5f   :  { %2199 = vmatprep.subr.mxu0 %v2994_v23  ;;  %2234 = vmatprep.subr.mxu1 %v3001_v24  ;;  %4123 = vst [vmem:[#allocation36_spill] sm:$0xff] %v3020_v22  ;;  %v3025_v21 = vld [vmem:[%s3954_s2 + $0x3f8] sm:$0xff] }
  0x60   :  { %2200 = vmatpush3.msra.mxu0 %v3006_v25  ;;  %2235 = vmatpush3.msra.mxu1 %v3011_v0  ;;  %4124 = vst [vmem:[#allocation37_spill] sm:$0xff] %v3025_v21 }
  0x61   :  { %2239 = vmatprep.subr.mxu0 %v3020_v22  ;;  %2274 = vmatprep.subr.mxu1 %v3025_v21 }
  0xf8   :  { %v3029_v24 = vpop.f32.mrf.mxu0  ;;  %v3031_v25 = vpop.f32.mrf.mxu1 }
  0xf9   :  { %4125 = vst [vmem:[#allocation38_spill] sm:$0xff] %v3029_v24  ;;  %4126 = vst [vmem:[#allocation39_spill] sm:$0xff] %v3031_v25  ;;  %v413_v0 = vsel %vm412_vm2, %v3029_v24, 0.0  ;;  %v427_v23 = vsel %vm412_vm2, %v3031_v25, 0.0 }
  0xfa   :  { %v414_v20 = vrot.slane %v413_v0, 4  ;;  %v428_v19 = vrot.slane %v427_v23, 4  ;;  %v3037_v18 = vpop.f32.mrf.mxu0  ;;  %v3039_v17 = vpop.f32.mrf.mxu1 }
  0xfb   :  { %4127 = vst [vmem:[#allocation40_spill] sm:$0xff] %v3037_v18  ;;  %v420_v21 = vsel %vm412_vm2, %v3037_v18, 0.0  ;;  %v434_v22 = vsel %vm412_vm2, %v3039_v17, 0.0 }
  0xfc   :  { %v415_v16 = vadd.f32 %v414_v20, %v413_v0  ;;  %v429_v15 = vadd.f32 %v428_v19, %v427_v23  ;;  %v421_v14 = vrot.slane %v420_v21, 4  ;;  %v435_v13 = vrot.slane %v434_v22, 4 }
  0xfe   :  { %v416_v24 = vrot.slane %v415_v16, 2  ;;  %v430_v12 = vrot.slane %v429_v15, 2  ;;  %v422_v11 = vadd.f32 %v421_v14, %v420_v21  ;;  %v436_v25 = vadd.f32 %v435_v13, %v434_v22  ;;  %v3085_v22 = vld [vmem:[%s3954_s2 + $0x370] sm:$0xff] }
  0xff   :  { %v3045_v10 = vpop.f32.mrf.mxu0  ;;  %4134 = vst [vmem:[#allocation47_spill] sm:$0xff] %v3085_v22 }
 0x100   :  { %v417_v9 = vadd.f32 %v416_v24, %v415_v16  ;;  %v431_v8 = vadd.f32 %v430_v12, %v429_v15  ;;  %v423_v7 = vrot.slane %v422_v11, 2  ;;  %v437_v6 = vrot.slane %v436_v25, 2  ;;  %v3092_v24 = vld [vmem:[%s3954_s2 + $0x2e8] sm:$0xff] }
 0x101   :  { %v3047_v5 = vpop.f32.mrf.mxu1  ;;  %v3049_v3 = vpop.f32.mrf.mxu0  ;;  %4135 = vst [vmem:[#allocation48_spill] sm:$0xff] %v3092_v24 }
 0x102   :  { %4128 = vst [vmem:[#allocation41_spill] sm:$0xff] %v3047_v5  ;;  %v424_v18 = vadd.f32 %v423_v7, %v422_v11  ;;  %v438_v4 = vadd.f32 %v437_v6, %v436_v25  ;;  %v418_v0 = vrot.slane %v417_v9, 1  ;;  %v432_v19 = vrot.slane %v431_v8, 1  ;;  %v3058_v7 = vld [vmem:[%s3954_s2 + $0x278] sm:$0xff]  ;;  %v3068_v11 = vld [vmem:[%s3954_s2 + $0x2f0] sm:$0xff]  ;;  %v3097_v25 = vld [vmem:[%s3954_s2 + $0x3e8] sm:$0xff] }
 0x103   :  { %v448_v14 = vsel %vm412_vm2, %v3049_v3, 0.0  ;;  %v3053_v13 = vpop.f32.mrf.mxu1  ;;  %4129 = vst [vmem:[#allocation42_spill] sm:$0xff] %v3058_v7  ;;  %v3063_v6 = vld [vmem:[%s3954_s2 + $0x378] sm:$0xff]  ;;  %4131 = vst [vmem:[#allocation44_spill] sm:$0xff] %v3068_v11 }
 0x104   :  { %v425_v20 = vrot.slane %v424_v18, 1  ;;  %v439_v23 = vrot.slane %v438_v4, 1  ;;  %v419_v12 = vadd.f32 %v418_v0, %v417_v9  ;;  %v433_v15 = vadd.f32 %v432_v19, %v431_v8  ;;  %4130 = vst [vmem:[#allocation43_spill] sm:$0xff] %v3063_v6  ;;  %4136 = vst [vmem:[#allocation49_spill] sm:$0xff] %v3097_v25  ;;  %v3104_v0 = vld [vmem:[%s3954_s2 + $0x268] sm:$0xff] }
 0x105   :  { %v449_v8 = vrot.slane %v448_v14, 4  ;;  %v462_v9 = vsel %vm412_vm2, %v3053_v13, 0.0  ;;  %4137 = vst [vmem:[#allocation50_spill] sm:$0xff] %v3104_v0  ;;  %v3109_v19 = vld [vmem:[%s3954_s2 + $0x368] sm:$0xff] }
 0x106   :  { %v426_v21 = vadd.f32 %v425_v20, %v424_v18  ;;  %v440_v16 = vadd.f32 %v439_v23, %v438_v4  ;;  %v3073_v4 = vld [vmem:[%s3954_s2 + $0x3f0] sm:$0xff]  ;;  %4138 = vst [vmem:[#allocation51_spill] sm:$0xff] %v3109_v19  ;;  %v463_v20 = vrot.slane %v462_v9, 4  ;;  %v3116_v23 = vld [vmem:[%s3954_s2 + $0x2e0] sm:$0xff] }
 0x107   :  { %4132 = vst [vmem:[#allocation45_spill] sm:$0xff] %v3073_v4  ;;  %v3080_v18 = vld [vmem:[%s3954_s2 + $0x270] sm:$0xff]  ;;  %4139 = vst [vmem:[#allocation52_spill] sm:$0xff] %v3116_v23 }
 0x108   :  { %661 = vmatprep.mubr.f32.mxu0 %v426_v21  ;;  %731 = vmatprep.mubr.f32.mxu1 %v440_v16  ;;  %4133 = vst [vmem:[#allocation46_spill] sm:$0xff] %v3080_v18  ;;  %v3121_v21 = vld [vmem:[%s3954_s2 + $0x3e0] sm:$0xff]  ;;  %v450_v16 = vadd.f32 %v449_v8, %v448_v14  ;;  %v3140_v14 = vld [vmem:[%s3954_s2 + $0x2d8] sm:$0xff] }
 0x109   :  { %662 = vmatmul.mubr.f32.vlgmr.msra.gmra.mxu0 %v419_v12  ;;  %732 = vmatmul.mubr.f32.vlgmr.msra.gmra.mxu1 %v433_v15  ;;  %4140 = vst [vmem:[#allocation53_spill] sm:$0xff] %v3121_v21  ;;  %v3128_v12 = vld [vmem:[%s3954_s2 + $0x260] sm:$0xff]  ;;  %4143 = vst [vmem:[#allocation56_spill] sm:$0xff] %v3140_v14  ;;  %v3145_v8 = vld [vmem:[%s3954_s2 + $0x3d8] sm:$0xff] }
 0x10a   :  { %2240 = vmatpush3.msra.mxu0 %v3058_v7  ;;  %2275 = vmatpush3.msra.mxu1 %v3063_v6  ;;  %4141 = vst [vmem:[#allocation54_spill] sm:$0xff] %v3128_v12  ;;  %v3133_v15 = vld [vmem:[%s3954_s2 + $0x360] sm:$0xff]  ;;  %4144 = vst [vmem:[#allocation57_spill] sm:$0xff] %v3145_v8  ;;  %v3543_v7 = vld [vmem:[#allocation4 + $0x1a8] sm:$0xff] }
 0x10b   :  { %2241 = vmatprep.subr.mxu0 %v3068_v11  ;;  %2276 = vmatprep.subr.mxu1 %v3073_v4  ;;  %4142 = vst [vmem:[#allocation55_spill] sm:$0xff] %v3133_v15 }
 0x10c   :  { %2242 = vmatpush3.msra.mxu0 %v3080_v18  ;;  %2277 = vmatpush3.msra.mxu1 %v3085_v22  ;;  %v441_v22 = vsel %vm412_vm2, %v3045_v10, 0.0 }
 0x10d   :  { %2243 = vmatprep.subr.mxu0 %v3092_v24  ;;  %2278 = vmatprep.subr.mxu1 %v3097_v25  ;;  %v464_v25 = vadd.f32 %v463_v20, %v462_v9  ;;  %v451_v24 = vrot.slane %v450_v16, 2  ;;  %v455_v9 = vsel %vm412_vm2, %v3047_v5, 0.0  ;;  %v3180_v20 = vld [vmem:[%s3954_s2 + $0x250] sm:$0xff]  ;;  %v442_v18 = vrot.slane %v441_v22, 4  ;;  %v3545_v5 = vld [vmem:[#allocation4 + $0x1b8] sm:$0xff] }
 0x10e   :  { %2244 = vmatpush3.msra.mxu0 %v3104_v0  ;;  %2279 = vmatpush3.msra.mxu1 %v3109_v19  ;;  %v3152_v0 = vld [vmem:[%s3954_s2 + $0x258] sm:$0xff]  ;;  %4149 = vst [vmem:[#allocation62_spill] sm:$0xff] %v3180_v20  ;;  %v456_v11 = vrot.slane %v455_v9, 4 }
 0x10f   :  { %2245 = vmatprep.subr.mxu0 %v3116_v23  ;;  %2280 = vmatprep.subr.mxu1 %v3121_v21  ;;  %4145 = vst [vmem:[#allocation58_spill] sm:$0xff] %v3152_v0  ;;  %v3157_v19 = vld [vmem:[%s3954_s2 + $0x358] sm:$0xff]  ;;  %v3164_v21 = vld [vmem:[%s3954_s2 + $0x2d0] sm:$0xff]  ;;  %v452_v4 = vadd.f32 %v451_v24, %v450_v16  ;;  %v3228_v24 = vld [vmem:[%s3954_s2 + $0x240] sm:$0xff] }
 0x110   :  { %4146 = vst [vmem:[#allocation59_spill] sm:$0xff] %v3157_v19  ;;  %2246 = vmatpush3.msra.mxu0 %v3128_v12  ;;  %2281 = vmatpush3.msra.mxu1 %v3133_v15  ;;  %4147 = vst [vmem:[#allocation60_spill] sm:$0xff] %v3164_v21  ;;  %v3169_v23 = vld [vmem:[%s3954_s2 + $0x3d0] sm:$0xff]  ;;  %v465_v12 = vrot.slane %v464_v25, 2  ;;  %v3233_v16 = vld [vmem:[%s3954_s2 + $0x340] sm:$0xff]  ;;  %v457_v6 = vadd.f32 %v456_v11, %v455_v9 }
 0x111   :  { %4148 = vst [vmem:[#allocation61_spill] sm:$0xff] %v3169_v23  ;;  %2247 = vmatprep.subr.mxu0 %v3140_v14  ;;  %2282 = vmatprep.subr.mxu1 %v3145_v8  ;;  %v3185_v15 = vld [vmem:[%s3954_s2 + $0x350] sm:$0xff]  ;;  %v3192_v8 = vld [vmem:[%s3954_s2 + $0x2c8] sm:$0xff]  ;;  %4157 = vst [vmem:[#allocation70_spill] sm:$0xff] %v3228_v24 }
 0x112   :  { %4150 = vst [vmem:[#allocation63_spill] sm:$0xff] %v3185_v15  ;;  %2248 = vmatpush3.msra.mxu0 %v3152_v0  ;;  %2283 = vmatpush3.msra.mxu1 %v3157_v19  ;;  %4151 = vst [vmem:[#allocation64_spill] sm:$0xff] %v3192_v8  ;;  %v3197_v14 = vld [vmem:[%s3954_s2 + $0x3c8] sm:$0xff]  ;;  %v3276_v11 = vld [vmem:[%s3954_s2 + $0x230] sm:$0xff] }
 0x113   :  { %4152 = vst [vmem:[#allocation65_spill] sm:$0xff] %v3197_v14  ;;  %2249 = vmatprep.subr.mxu0 %v3164_v21  ;;  %2284 = vmatprep.subr.mxu1 %v3169_v23  ;;  %v3204_v0 = vld [vmem:[%s3954_s2 + $0x248] sm:$0xff]  ;;  %v3216_v23 = vld [vmem:[%s3954_s2 + $0x2c0] sm:$0xff]  ;;  %4158 = vst [vmem:[#allocation71_spill] sm:$0xff] %v3233_v16 }
 0x114   :  { %4153 = vst [vmem:[#allocation66_spill] sm:$0xff] %v3204_v0  ;;  %v3209_v19 = vld [vmem:[%s3954_s2 + $0x348] sm:$0xff]  ;;  %2250 = vmatpush3.msra.mxu0 %v3180_v20  ;;  %2285 = vmatpush3.msra.mxu1 %v3185_v15  ;;  %4155 = vst [vmem:[#allocation68_spill] sm:$0xff] %v3216_v23  ;;  %v3221_v21 = vld [vmem:[%s3954_s2 + $0x3c0] sm:$0xff]  ;;  %v466_v15 = vadd.f32 %v465_v12, %v464_v25  ;;  %v443_v20 = vadd.f32 %v442_v18, %v441_v22 }
 0x115   :  { %4154 = vst [vmem:[#allocation67_spill] sm:$0xff] %v3209_v19  ;;  %4156 = vst [vmem:[#allocation69_spill] sm:$0xff] %v3221_v21  ;;  %2251 = vmatprep.subr.mxu0 %v3192_v8  ;;  %2286 = vmatprep.subr.mxu1 %v3197_v14  ;;  %v3240_v8 = vld [vmem:[%s3954_s2 + $0x2b8] sm:$0xff]  ;;  %v3264_v25 = vld [vmem:[%s3954_s2 + $0x2b0] sm:$0xff] }
 0x116   :  { %2252 = vmatpush3.msra.mxu0 %v3204_v0  ;;  %2287 = vmatpush3.msra.mxu1 %v3209_v19  ;;  %4159 = vst [vmem:[#allocation72_spill] sm:$0xff] %v3240_v8  ;;  %v3245_v14 = vld [vmem:[%s3954_s2 + $0x3b8] sm:$0xff]  ;;  %4163 = vst [vmem:[#allocation76_spill] sm:$0xff] %v3264_v25  ;;  %v3269_v12 = vld [vmem:[%s3954_s2 + $0x3b0] sm:$0xff] }
 0x117   :  { %4160 = vst [vmem:[#allocation73_spill] sm:$0xff] %v3245_v14  ;;  %2253 = vmatprep.subr.mxu0 %v3216_v23  ;;  %2288 = vmatprep.subr.mxu1 %v3221_v21  ;;  %v3252_v0 = vld [vmem:[%s3954_s2 + $0x238] sm:$0xff]  ;;  %4164 = vst [vmem:[#allocation77_spill] sm:$0xff] %v3269_v12  ;;  %v453_v21 = vrot.slane %v452_v4, 1  ;;  %v3281_v18 = vld [vmem:[%s3954_s2 + $0x330] sm:$0xff] }
 0x118   :  { %4161 = vst [vmem:[#allocation74_spill] sm:$0xff] %v3252_v0  ;;  %v3257_v19 = vld [vmem:[%s3954_s2 + $0x338] sm:$0xff]  ;;  %2254 = vmatpush3.msra.mxu0 %v3228_v24  ;;  %2289 = vmatpush3.msra.mxu1 %v3233_v16  ;;  %4165 = vst [vmem:[#allocation78_spill] sm:$0xff] %v3276_v11  ;;  %v3288_v22 = vld [vmem:[%s3954_s2 + $0x2a8] sm:$0xff]  ;;  %v458_v16 = vrot.slane %v457_v6, 2 }
 0x119   :  { %4162 = vst [vmem:[#allocation75_spill] sm:$0xff] %v3257_v19  ;;  %2255 = vmatprep.subr.mxu0 %v3240_v8  ;;  %2290 = vmatprep.subr.mxu1 %v3245_v14  ;;  %4166 = vst [vmem:[#allocation79_spill] sm:$0xff] %v3281_v18  ;;  %v3293_v9 = vld [vmem:[%s3954_s2 + $0x3a8] sm:$0xff]  ;;  %v467_v14 = vrot.slane %v466_v15, 1  ;;  %v444_v8 = vrot.slane %v443_v20, 2  ;;  %v454_v24 = vadd.f32 %v453_v21, %v452_v4  ;;  %v3336_v4 = vld [vmem:[%s3954_s2 + $0x298] sm:$0xff] }
 0x11a   :  { %2256 = vmatpush3.msra.mxu0 %v3252_v0  ;;  %2291 = vmatpush3.msra.mxu1 %v3257_v19  ;;  %4167 = vst [vmem:[#allocation80_spill] sm:$0xff] %v3288_v22  ;;  %4168 = vst [vmem:[#allocation81_spill] sm:$0xff] %v3293_v9  ;;  %v3300_v0 = vld [vmem:[%s3954_s2 + $0x228] sm:$0xff]  ;;  %v3343_v21 = vld [vmem:[%s3954_s2 + $0x398] sm:$0xff] }
 0x11b   :  { %2257 = vmatprep.subr.mxu0 %v3264_v25  ;;  %2292 = vmatprep.subr.mxu1 %v3269_v12  ;;  %4169 = vst [vmem:[#allocation82_spill] sm:$0xff] %v3300_v0  ;;  %v3305_v19 = vld [vmem:[%s3954_s2 + $0x328] sm:$0xff]  ;;  %v3312_v12 = vld [vmem:[%s3954_s2 + $0x2a0] sm:$0xff]  ;;  %4175 = vst [vmem:[#allocation88_spill] sm:$0xff] %v3336_v4 }
 0x11c   :  { %4170 = vst [vmem:[#allocation83_spill] sm:$0xff] %v3305_v19  ;;  %2258 = vmatpush3.msra.mxu0 %v3276_v11  ;;  %2293 = vmatpush3.msra.mxu1 %v3281_v18  ;;  %4171 = vst [vmem:[#allocation84_spill] sm:$0xff] %v3312_v12  ;;  %v3317_v25 = vld [vmem:[%s3954_s2 + $0x3a0] sm:$0xff] }
 0x11d   :  { %4172 = vst [vmem:[#allocation85_spill] sm:$0xff] %v3317_v25  ;;  %2259 = vmatprep.subr.mxu0 %v3288_v22  ;;  %2294 = vmatprep.subr.mxu1 %v3293_v9  ;;  %v3324_v11 = vld [vmem:[%s3954_s2 + $0x220] sm:$0xff]  ;;  %4176 = vst [vmem:[#allocation89_spill] sm:$0xff] %v3343_v21  ;;  %v445_v9 = vadd.f32 %v444_v8, %v443_v20  ;;  %v459_v22 = vadd.f32 %v458_v16, %v457_v6  ;;  %v3366_v6 = vld [vmem:[%s3954_s2 + $0x390] sm:$0xff] }
 0x11e   :  { %4173 = vst [vmem:[#allocation86_spill] sm:$0xff] %v3324_v11  ;;  %2260 = vmatpush3.msra.mxu0 %v3300_v0  ;;  %2295 = vmatpush3.msra.mxu1 %v3305_v19  ;;  %v3331_v18 = vld [vmem:[%s3954_s2 + $0x320] sm:$0xff]  ;;  %v3348_v19 = vld [vmem:[%s3954_s2 + $0x218] sm:$0xff]  ;;  %v468_v0 = vadd.f32 %v467_v14, %v466_v15  ;;  %4180 = vst [vmem:[#allocation93_spill] sm:$0xff] %v3366_v6 }
 0x11f   :  { %4174 = vst [vmem:[#allocation87_spill] sm:$0xff] %v3331_v18  ;;  %2261 = vmatprep.subr.mxu0 %v3312_v12  ;;  %2296 = vmatprep.subr.mxu1 %v3317_v25  ;;  %4177 = vst [vmem:[#allocation90_spill] sm:$0xff] %v3348_v19  ;;  %v3354_v25 = vld [vmem:[%s3954_s2 + $0x318] sm:$0xff]  ;;  %v3361_v12 = vld [vmem:[%s3954_s2 + $0x290] sm:$0xff]  ;;  %v460_v16 = vrot.slane %v459_v22, 1 }
 0x120   :  { %2262 = vmatpush3.msra.mxu0 %v3324_v11  ;;  %801 = vmatprep.mubr.f32.mxu0 %v454_v24  ;;  %4178 = vst [vmem:[#allocation91_spill] sm:$0xff] %v3354_v25  ;;  %4179 = vst [vmem:[#allocation92_spill] sm:$0xff] %v3361_v12  ;;  %v3373_v15 = vld [vmem:[%s3954_s2 + $0x210] sm:$0xff]  ;;  %v3384_v8 = vld [vmem:[%s3954_s2 + $0x288] sm:$0xff]  ;;  %v446_v24 = vrot.slane %v445_v9, 1 }
 0x121   :  { %2297 = vmatpush3.msra.mxu1 %v3331_v18  ;;  %2263 = vmatprep.subr.mxu0 %v3336_v4  ;;  %4181 = vst [vmem:[#allocation94_spill] sm:$0xff] %v3373_v15  ;;  %v3378_v14 = vld [vmem:[%s3954_s2 + $0x310] sm:$0xff]  ;;  %4183 = vst [vmem:[#allocation96_spill] sm:$0xff] %v3384_v8  ;;  %v3389_v20 = vld [vmem:[%s3954_s2 + $0x388] sm:$0xff] }
 0x122   :  { %2298 = vmatprep.subr.mxu1 %v3343_v21  ;;  %2264 = vmatpush3.msra.mxu0 %v3348_v19  ;;  %4182 = vst [vmem:[#allocation95_spill] sm:$0xff] %v3378_v14  ;;  %4184 = vst [vmem:[#allocation97_spill] sm:$0xff] %v3389_v20  ;;  %v447_v19 = vadd.f32 %v446_v24, %v445_v9  ;;  %v461_v21 = vadd.f32 %v460_v16, %v459_v22  ;;  %v3439_v9 = vld [vmem:[#allocation4 + $0x1c0] sm:$0xff]  ;;  %v3443_v22 = vld [vmem:[#allocation4 + $0x1d0] sm:$0xff] }
 0x123   :  { %2299 = vmatpush3.msra.mxu1 %v3354_v25  ;;  %871 = vmatprep.mubr.f32.mxu1 %v468_v0  ;;  %v3396_v0 = vld [vmem:[%s3954_s2 + $0x208] sm:$0xff]  ;;  %4194 = vst [vmem:[#allocation106_spill] sm:$0xff] %v3439_v9  ;;  %4195 = vst [vmem:[#allocation107_spill] sm:$0xff] %v3443_v22  ;;  %v3453_v16 = vld [vmem:[#allocation4 + $0x190] sm:$0xff] }
 0x124   :  { %2265 = vmatprep.subr.mxu0 %v3361_v12  ;;  %2300 = vmatprep.subr.mxu1 %v3366_v6  ;;  %4185 = vst [vmem:[#allocation98_spill] sm:$0xff] %v3396_v0  ;;  %v3401_v25 = vld [vmem:[%s3954_s2 + $0x308] sm:$0xff]  ;;  %v3408_v12 = vld [vmem:[%s3954_s2 + $0x280] sm:$0xff]  ;;  %4199 = vst [vmem:[#allocation111_spill] sm:$0xff] %v3453_v16 }
 0x125   :  { %4186 = vst [vmem:[#allocation99_spill] sm:$0xff] %v3401_v25  ;;  %2266 = vmatpush3.msra.mxu0 %v3373_v15  ;;  %2301 = vmatpush3.msra.mxu1 %v3378_v14  ;;  %4187 = vst [vmem:[#allocation100_spill] sm:$0xff] %v3408_v12  ;;  %v3413_v6 = vld [vmem:[%s3954_s2 + $0x380] sm:$0xff]  ;;  %v3445_v24 = vld [vmem:[#allocation4 + $0x188] sm:$0xff] }
 0x126   :  { %4188 = vst [vmem:[#allocation101_spill] sm:$0xff] %v3413_v6  ;;  %2267 = vmatprep.subr.mxu0 %v3384_v8  ;;  %2302 = vmatprep.subr.mxu1 %v3389_v20  ;;  %v3420_v15 = vld [vmem:[%s3954_s2 + $0x200] sm:$0xff]  ;;  %v4191_v20 = vmov 0.0   ;;  %v3435_v8 = vld [vmem:[#allocation4 + $0x1c8] sm:$0xff]  ;;  %4196 = vst [vmem:[#allocation108_spill] sm:$0xff] %v3445_v24 }
 0x127   :  { %4189 = vst [vmem:[#allocation102_spill] sm:$0xff] %v3420_v15  ;;  %v3425_v14 = vld [vmem:[%s3954_s2 + $0x300] sm:$0xff]  ;;  %2268 = vmatpush3.msra.mxu0 %v3396_v0  ;;  %2303 = vmatpush3.msra.mxu1 %v3401_v25  ;;  %4192 = vst [vmem:[#allocation104_spill] sm:$0xff] %v3435_v8  ;;  %v3437_v0 = vld [vmem:[#allocation4 + $0x1d8] sm:$0xff] }
 0x128   :  { %4190 = vst [vmem:[#allocation103_spill] sm:$0xff] %v3425_v14  ;;  %2269 = vmatprep.subr.mxu0 %v3408_v12  ;;  %2304 = vmatprep.subr.mxu1 %v3413_v6  ;;  %4193 = vst [vmem:[#allocation105_spill] sm:$0xff] %v3437_v0 }
 0x129   :  { %2270 = vmatpush3.msra.mxu0 %v3420_v15  ;;  %2305 = vmatpush3.msra.mxu1 %v3425_v14  ;;  %v3455_v14 = vld [vmem:[#allocation4 + $0x148] sm:$0xff]  ;;  %v3463_v15 = vld [vmem:[#allocation4 + $0x150] sm:$0xff] }
 0x12a   :  { %802 = vmatmul.mubr.f32.vlgmr.msra.gmra.mxu0 %v447_v19  ;;  %872 = vmatmul.mubr.f32.vlgmr.msra.gmra.mxu1 %v461_v21  ;;  %v3447_v19 = vld [vmem:[#allocation4 + $0x198] sm:$0xff]  ;;  %v3451_v21 = vld [vmem:[#allocation4 + $0x180] sm:$0xff]  ;;  %4200 = vst [vmem:[#allocation112_spill] sm:$0xff] %v3455_v14  ;;  %4203 = vst [vmem:[#allocation115_spill] sm:$0xff] %v3463_v15 }
 0x12b   :  { %1009 = vmatprep.mubr.f32.mxu0 %v4191_v20  ;;  %1080 = vmatprep.mubr.f32.mxu1 %v4191_v20  ;;  %4197 = vst [vmem:[#allocation109_spill] sm:$0xff] %v3447_v19  ;;  %4198 = vst [vmem:[#allocation110_spill] sm:$0xff] %v3451_v21 }
 0x12c   :  { %961 = vmatprep.subr.mxu0 %v3435_v8  ;;  %1032 = vmatprep.subr.mxu1 %v3437_v0  ;;  %v3459_v0 = vld [vmem:[#allocation4 + $0x158] sm:$0xff]  ;;  %v3461_v8 = vld [vmem:[#allocation4 + $0x140] sm:$0xff] }
 0x12d   :  { %962 = vmatpush1.msra.mxu0 %v3439_v9  ;;  %1033 = vmatpush1.msra.mxu1 %v3443_v22  ;;  %4201 = vst [vmem:[#allocation113_spill] sm:$0xff] %v3459_v0  ;;  %4202 = vst [vmem:[#allocation114_spill] sm:$0xff] %v3461_v8  ;;  %v3467_v22 = vld [vmem:[#allocation4 + $0x108] sm:$0xff]  ;;  %v3469_v9 = vld [vmem:[#allocation4 + $0x118] sm:$0xff] }
 0x12e   :  { %963 = vmatprep.subr.mxu0 %v3445_v24  ;;  %1034 = vmatprep.subr.mxu1 %v3447_v19  ;;  %4204 = vst [vmem:[#allocation116_spill] sm:$0xff] %v3467_v22  ;;  %4205 = vst [vmem:[#allocation117_spill] sm:$0xff] %v3469_v9  ;;  %v3473_v24 = vld [vmem:[#allocation4 + $0x100] sm:$0xff]  ;;  %v3475_v19 = vld [vmem:[#allocation4 + $0x110] sm:$0xff] }
 0x12f   :  { %964 = vmatpush1.msra.mxu0 %v3451_v21  ;;  %1035 = vmatpush1.msra.mxu1 %v3453_v16  ;;  %4206 = vst [vmem:[#allocation118_spill] sm:$0xff] %v3473_v24  ;;  %4207 = vst [vmem:[#allocation119_spill] sm:$0xff] %v3475_v19  ;;  %v3483_v16 = vld [vmem:[#allocation4 + $0xc8] sm:$0xff] }
 0x130   :  { %965 = vmatprep.subr.mxu0 %v3455_v14  ;;  %1036 = vmatprep.subr.mxu1 %v3459_v0  ;;  %4208 = vst [vmem:[#allocation120_spill] sm:$0xff] %v3483_v16  ;;  %v3485_v14 = vld [vmem:[#allocation4 + $0xd8] sm:$0xff]  ;;  %v3489_v0 = vld [vmem:[#allocation4 + $0xc0] sm:$0xff] }
 0x131   :  { %966 = vmatpush1.msra.mxu0 %v3461_v8  ;;  %1037 = vmatpush1.msra.mxu1 %v3463_v15  ;;  %4209 = vst [vmem:[#allocation121_spill] sm:$0xff] %v3485_v14  ;;  %4210 = vst [vmem:[#allocation122_spill] sm:$0xff] %v3489_v0  ;;  %v3491_v8 = vld [vmem:[#allocation4 + $0xd0] sm:$0xff] }
 0x132   :  { %967 = vmatprep.subr.mxu0 %v3467_v22  ;;  %1038 = vmatprep.subr.mxu1 %v3469_v9  ;;  %4211 = vst [vmem:[#allocation123_spill] sm:$0xff] %v3491_v8  ;;  %v3495_v9 = vld [vmem:[#allocation4 + $0x88] sm:$0xff] }
 0x133   :  { %968 = vmatpush1.msra.mxu0 %v3473_v24  ;;  %1039 = vmatpush1.msra.mxu1 %v3475_v19  ;;  %4212 = vst [vmem:[#allocation124_spill] sm:$0xff] %v3495_v9  ;;  %v3497_v24 = vld [vmem:[#allocation4 + $0x98] sm:$0xff]  ;;  %v3501_v19 = vld [vmem:[#allocation4 + $0x80] sm:$0xff] }
 0x134   :  { %969 = vmatprep.subr.mxu0 %v3483_v16  ;;  %1040 = vmatprep.subr.mxu1 %v3485_v14  ;;  %4213 = vst [vmem:[#allocation125_spill] sm:$0xff] %v3497_v24  ;;  %4214 = vst [vmem:[#allocation126_spill] sm:$0xff] %v3501_v19  ;;  %v3503_v16 = vld [vmem:[#allocation4 + $0x90] sm:$0xff]  ;;  %v3507_v14 = vld [vmem:[#allocation4 + $0x48] sm:$0xff] }
 0x135   :  { %970 = vmatpush1.msra.mxu0 %v3489_v0  ;;  %1041 = vmatpush1.msra.mxu1 %v3491_v8  ;;  %4215 = vst [vmem:[#allocation127_spill] sm:$0xff] %v3503_v16  ;;  %4216 = vst [vmem:[#allocation128_spill] sm:$0xff] %v3507_v14  ;;  %v3509_v0 = vld [vmem:[#allocation4 + $0x58] sm:$0xff]  ;;  %v3513_v8 = vld [vmem:[#allocation4 + $0x40] sm:$0xff] }
 0x136   :  { %971 = vmatprep.subr.mxu0 %v3495_v9  ;;  %1042 = vmatprep.subr.mxu1 %v3497_v24  ;;  %4217 = vst [vmem:[#allocation129_spill] sm:$0xff] %v3509_v0  ;;  %4218 = vst [vmem:[#allocation130_spill] sm:$0xff] %v3513_v8  ;;  %v3515_v9 = vld [vmem:[#allocation4 + $0x50] sm:$0xff]  ;;  %v3519_v24 = vld [vmem:[#allocation4 + $0x8] sm:$0xff] }
 0x137   :  { %972 = vmatpush1.msra.mxu0 %v3501_v19  ;;  %1043 = vmatpush1.msra.mxu1 %v3503_v16  ;;  %4219 = vst [vmem:[#allocation131_spill] sm:$0xff] %v3515_v9  ;;  %4220 = vst [vmem:[#allocation132_spill] sm:$0xff] %v3519_v24  ;;  %v3521_v19 = vld [vmem:[#allocation4 + $0x18] sm:$0xff]  ;;  %v3525_v16 = vld [vmem:[#allocation4] sm:$0xff] }
 0x138   :  { %973 = vmatprep.subr.mxu0 %v3507_v14  ;;  %1044 = vmatprep.subr.mxu1 %v3509_v0  ;;  %4221 = vst [vmem:[#allocation133_spill] sm:$0xff] %v3521_v19  ;;  %4222 = vst [vmem:[#allocation134_spill] sm:$0xff] %v3525_v16  ;;  %v3527_v14 = vld [vmem:[#allocation4 + $0x10] sm:$0xff]  ;;  %v3531_v0 = vld [vmem:[#allocation4 + $0x1e8] sm:$0xff] }
 0x139   :  { %974 = vmatpush1.msra.mxu0 %v3513_v8  ;;  %1045 = vmatpush1.msra.mxu1 %v3515_v9  ;;  %4223 = vst [vmem:[#allocation135_spill] sm:$0xff] %v3527_v14  ;;  %4224 = vst [vmem:[#allocation136_spill] sm:$0xff] %v3531_v0  ;;  %v3533_v8 = vld [vmem:[#allocation4 + $0x1f8] sm:$0xff] }
 0x13a   :  { %975 = vmatprep.subr.mxu0 %v3519_v24  ;;  %1046 = vmatprep.subr.mxu1 %v3521_v19  ;;  %4225 = vst [vmem:[#allocation137_spill] sm:$0xff] %v3533_v8 }
 0x13b   :  { %976 = vmatpush1.msra.mxu0 %v3525_v16  ;;  %1047 = vmatpush1.msra.mxu1 %v3527_v14 }
 0x13c   :  { %1103 = vmatprep.subr.mxu0 %v3531_v0  ;;  %1174 = vmatprep.subr.mxu1 %v3533_v8  ;;  %v3539_v0 = vld [vmem:[#allocation4 + $0x1e0] sm:$0xff]  ;;  %v3541_v8 = vld [vmem:[#allocation4 + $0x1f0] sm:$0xff] }
 0x1c9   :  { %v2201_v9 = vpop.f32.mrf.mxu0  ;;  %v2236_v24 = vpop.f32.mrf.mxu1 }
 0x1cb   :  { %v2202_v22 = vpop.f32.mrf.mxu0  ;;  %v2237_v19 = vpop.f32.mrf.mxu1 }
 0x1cc   :  { %v2203_v15 = vadd.f32 %v2202_v22, %v2201_v9  ;;  %v2238_v21 = vadd.f32 %v2237_v19, %v2236_v24  ;;  %v3575_v9 = vld [vmem:[#allocation4 + $0x120] sm:$0xff]  ;;  %v3577_v22 = vld [vmem:[#allocation4 + $0x130] sm:$0xff]  ;;  %v3581_v24 = vld [vmem:[#allocation4 + $0xe8] sm:$0xff] }
 0x1cd   :  { %4231 = vst [vmem:[#allocation143_spill] sm:$0xff] %v3575_v9  ;;  %4232 = vst [vmem:[#allocation144_spill] sm:$0xff] %v3577_v22  ;;  %v3583_v19 = vld [vmem:[#allocation4 + $0xf8] sm:$0xff] }
 0x1ce   :  { %v734_v4 = vadd.f32 %v2238_v21, %v2203_v15  ;;  %v3569_v15 = vld [vmem:[#allocation4 + $0x128] sm:$0xff]  ;;  %4233 = vst [vmem:[#allocation145_spill] sm:$0xff] %v3581_v24  ;;  %4234 = vst [vmem:[#allocation146_spill] sm:$0xff] %v3583_v19  ;;  %v3587_v21 = vld [vmem:[#allocation4 + $0xe0] sm:$0xff] }
 0x1cf   :  { %4229 = vst [vmem:[#allocation141_spill] sm:$0xff] %v3569_v15  ;;  %4235 = vst [vmem:[#allocation147_spill] sm:$0xff] %v3587_v21 }
 0x1ea   :  { %v2271_v6 = vpop.f32.mrf.mxu0  ;;  %v2306_v12 = vpop.f32.mrf.mxu1 }
 0x1ec   :  { %v2272_v25 = vpop.f32.mrf.mxu0  ;;  %v2307_v16 = vpop.f32.mrf.mxu1 }
 0x1ed   :  { %v2273_v14 = vadd.f32 %v2272_v25, %v2271_v6  ;;  %v2308_v11 = vadd.f32 %v2307_v16, %v2306_v12  ;;  %v3551_v25 = vld [vmem:[#allocation4 + $0x1a0] sm:$0xff]  ;;  %v3553_v12 = vld [vmem:[#allocation4 + $0x1b0] sm:$0xff] }
 0x1ee   :  { %v3565_v6 = vld [vmem:[#allocation4 + $0x170] sm:$0xff] }
 0x1ef   :  { %v804_v18 = vadd.f32 %v2273_v14, %v734_v4  ;;  %v3563_v4 = vld [vmem:[#allocation4 + $0x160] sm:$0xff]  ;;  %4228 = vst [vmem:[#allocation140_spill] sm:$0xff] %v3565_v6  ;;  %v3571_v14 = vld [vmem:[#allocation4 + $0x138] sm:$0xff]  ;;  %v3589_v16 = vld [vmem:[#allocation4 + $0xf0] sm:$0xff] }
 0x1f0   :  { %4227 = vst [vmem:[#allocation139_spill] sm:$0xff] %v3563_v4  ;;  %4230 = vst [vmem:[#allocation142_spill] sm:$0xff] %v3571_v14 }
 0x1f1   :  { %v3537_v23 = vadd.f32 %v2308_v11, %v804_v18  ;;  %v3557_v11 = vld [vmem:[#allocation4 + $0x168] sm:$0xff]  ;;  %v3559_v18 = vld [vmem:[#allocation4 + $0x178] sm:$0xff]  ;;  %4236 = vst [vmem:[#allocation148_spill] sm:$0xff] %v3589_v16 }
 0x1f2   :  { %4226 = vst [vmem:[#allocation138_spill] sm:$0xff] %v3559_v18 }
 0x1f3   :  { %2161 = vmatmul.mubr.msk.f32.vlgmr.msra.gmra.mxu0 %vm941_vm3, %v3537_v23  ;;  %2162 = vmatmul.mubr.msk.f32.vlgmr.msra.gmra.mxu1 %vm941_vm3, %v3537_v23 }
 0x1f4   :  { %1104 = vmatpush1.msra.mxu0 %v3539_v0  ;;  %1175 = vmatpush1.msra.mxu1 %v3541_v8 }
 0x1f5   :  { %1105 = vmatprep.subr.mxu0 %v3543_v7  ;;  %1176 = vmatprep.subr.mxu1 %v3545_v5 }
 0x1f6   :  { %1106 = vmatpush1.msra.mxu0 %v3551_v25  ;;  %1177 = vmatpush1.msra.mxu1 %v3553_v12 }
 0x1f7   :  { %1107 = vmatprep.subr.mxu0 %v3557_v11  ;;  %1178 = vmatprep.subr.mxu1 %v3559_v18  ;;  %v3593_v18 = vld [vmem:[#allocation4 + $0xa8] sm:$0xff] }
 0x1f8   :  { %1108 = vmatpush1.msra.mxu0 %v3563_v4  ;;  %1179 = vmatpush1.msra.mxu1 %v3565_v6  ;;  %v3595_v4 = vld [vmem:[#allocation4 + $0xb8] sm:$0xff]  ;;  %v3599_v6 = vld [vmem:[#allocation4 + $0xa0] sm:$0xff] }
 0x1f9   :  { %1109 = vmatprep.subr.mxu0 %v3569_v15  ;;  %1180 = vmatprep.subr.mxu1 %v3571_v14  ;;  %4237 = vst [vmem:[#allocation149_spill] sm:$0xff] %v3595_v4  ;;  %v3601_v15 = vld [vmem:[#allocation4 + $0xb0] sm:$0xff]  ;;  %v3605_v14 = vld [vmem:[#allocation4 + $0x68] sm:$0xff] }
 0x1fa   :  { %1110 = vmatpush1.msra.mxu0 %v3575_v9  ;;  %1181 = vmatpush1.msra.mxu1 %v3577_v22  ;;  %v3607_v9 = vld [vmem:[#allocation4 + $0x78] sm:$0xff]  ;;  %v3611_v22 = vld [vmem:[#allocation4 + $0x60] sm:$0xff] }
 0x1fb   :  { %1111 = vmatprep.subr.mxu0 %v3581_v24  ;;  %1182 = vmatprep.subr.mxu1 %v3583_v19  ;;  %v3613_v24 = vld [vmem:[#allocation4 + $0x70] sm:$0xff]  ;;  %v3617_v19 = vld [vmem:[#allocation4 + $0x28] sm:$0xff] }
 0x1fc   :  { %1112 = vmatpush1.msra.mxu0 %v3587_v21  ;;  %1183 = vmatpush1.msra.mxu1 %v3589_v16  ;;  %v3619_v21 = vld [vmem:[#allocation4 + $0x38] sm:$0xff]  ;;  %v3623_v16 = vld [vmem:[#allocation4 + $0x20] sm:$0xff] }
 0x1fd   :  { %1113 = vmatprep.subr.mxu0 %v3593_v18  ;;  %1184 = vmatprep.subr.mxu1 %v3595_v4  ;;  %v3627_v4 = vld [vmem:[#allocation4 + $0x30] sm:$0xff] }
 0x1fe   :  { %1114 = vmatpush1.msra.mxu0 %v3599_v6  ;;  %1185 = vmatpush1.msra.mxu1 %v3601_v15 }
 0x1ff   :  { %1115 = vmatprep.subr.mxu0 %v3605_v14  ;;  %1186 = vmatprep.subr.mxu1 %v3607_v9 }
 0x200   :  { %1116 = vmatpush1.msra.mxu0 %v3611_v22  ;;  %1187 = vmatpush1.msra.mxu1 %v3613_v24 }
 0x201   :  { %1117 = vmatprep.subr.mxu0 %v3617_v19  ;;  %1188 = vmatprep.subr.mxu1 %v3619_v21 }
 0x202   :  { %1118 = vmatpush1.msra.mxu0 %v3623_v16  ;;  %1151 = vmatprep.mubr.f32.mxu0 %v4191_v20 }
 0x203   :  { %1189 = vmatpush1.msra.mxu1 %v3627_v4  ;;  %1222 = vmatprep.mubr.f32.mxu1 %v4191_v20 }
 0x204   :  { %2163 = vmatmul.mubr.msk.f32.vlgmr.msra.gmra.mxu0 %vm941_vm3, %v3537_v23  ;;  %2164 = vmatmul.mubr.msk.f32.vlgmr.msra.gmra.mxu1 %vm941_vm3, %v3537_v23 }
 0x205   :  { %2309 = vmatprep.subr.mxu0 %v2633_v26  ;;  %2344 = vmatprep.subr.mxu1 %v2638_v27  ;;  %v4238_v26 = vld [vmem:[#allocation12_spill] sm:$0xff]  ;;  %v4239_v27 = vld [vmem:[#allocation13_spill] sm:$0xff] }
 0x206   :  { %2310 = vmatpush3.msra.mxu0 %v2644_v28  ;;  %2345 = vmatpush3.msra.mxu1 %v2649_v29  ;;  %v4240_v28 = vld [vmem:[#allocation14_spill] sm:$0xff]  ;;  %v4241_v29 = vld [vmem:[#allocation15_spill] sm:$0xff] }
 0x207   :  { %2311 = vmatprep.subr.mxu0 %v2656_v30  ;;  %2346 = vmatprep.subr.mxu1 %v2661_v31  ;;  %v4242_v30 = vld [vmem:[#allocation16_spill] sm:$0xff]  ;;  %v4243_v31 = vld [vmem:[#allocation17_spill] sm:$0xff] }
 0x208   :  { %2312 = vmatpush3.msra.mxu0 %v2668_v32  ;;  %2347 = vmatpush3.msra.mxu1 %v2673_v33  ;;  %v4244_v32 = vld [vmem:[#allocation18_spill] sm:$0xff]  ;;  %v4245_v33 = vld [vmem:[#allocation19_spill] sm:$0xff] }
 0x209   :  { %2313 = vmatprep.subr.mxu0 %v2680_v34  ;;  %2348 = vmatprep.subr.mxu1 %v2685_v35  ;;  %v4246_v34 = vld [vmem:[#allocation20_spill] sm:$0xff]  ;;  %v4247_v35 = vld [vmem:[#allocation21_spill] sm:$0xff] }
 0x20a   :  { %2314 = vmatpush3.msra.mxu0 %v2692_v36  ;;  %2349 = vmatpush3.msra.mxu1 %v2697_v37  ;;  %v4248_v36 = vld [vmem:[#allocation22_spill] sm:$0xff]  ;;  %v4249_v37 = vld [vmem:[#allocation23_spill] sm:$0xff] }
 0x20b   :  { %2315 = vmatprep.subr.mxu0 %v2704_v38  ;;  %2350 = vmatprep.subr.mxu1 %v2709_v39  ;;  %v4250_v38 = vld [vmem:[#allocation24_spill] sm:$0xff]  ;;  %v4251_v39 = vld [vmem:[#allocation25_spill] sm:$0xff] }
 0x20c   :  { %2316 = vmatpush3.msra.mxu0 %v2716_v40  ;;  %2351 = vmatpush3.msra.mxu1 %v2721_v41  ;;  %v4252_v40 = vld [vmem:[#allocation26_spill] sm:$0xff]  ;;  %v4253_v41 = vld [vmem:[#allocation27_spill] sm:$0xff] }
 0x20d   :  { %2317 = vmatprep.subr.mxu0 %v2728_v42  ;;  %2352 = vmatprep.subr.mxu1 %v2733_v43  ;;  %v4254_v42 = vld [vmem:[#allocation28_spill] sm:$0xff]  ;;  %v4255_v43 = vld [vmem:[#allocation29_spill] sm:$0xff] }
 0x20e   :  { %2318 = vmatpush3.msra.mxu0 %v2740_v44  ;;  %2353 = vmatpush3.msra.mxu1 %v2745_v45  ;;  %v4256_v44 = vld [vmem:[#allocation30_spill] sm:$0xff]  ;;  %v4257_v45 = vld [vmem:[#allocation31_spill] sm:$0xff] }
 0x20f   :  { %2319 = vmatprep.subr.mxu0 %v2752_v46  ;;  %2354 = vmatprep.subr.mxu1 %v2757_v47  ;;  %v4258_v46 = vld [vmem:[#allocation32_spill] sm:$0xff]  ;;  %v4259_v47 = vld [vmem:[#allocation33_spill] sm:$0xff] }
 0x210   :  { %2320 = vmatpush3.msra.mxu0 %v2764_v48  ;;  %2355 = vmatpush3.msra.mxu1 %v2769_v49  ;;  %v4260_v48 = vld [vmem:[#allocation34_spill] sm:$0xff]  ;;  %v4261_v49 = vld [vmem:[#allocation35_spill] sm:$0xff] }
 0x211   :  { %2321 = vmatprep.subr.mxu0 %v2776_v50  ;;  %2356 = vmatprep.subr.mxu1 %v2781_v51  ;;  %v4262_v50 = vld [vmem:[#allocation36_spill] sm:$0xff]  ;;  %v4263_v51 = vld [vmem:[#allocation37_spill] sm:$0xff] }
 0x212   :  { %2322 = vmatpush3.msra.mxu0 %v2788_v52  ;;  %2357 = vmatpush3.msra.mxu1 %v2793_v53  ;;  %v1237_v52 = vlaneseq }
 0x213   :  { %2323 = vmatprep.subr.mxu0 %v2800_v54  ;;  %2358 = vmatprep.subr.mxu1 %v2805_v55 }
 0x214   :  { %2324 = vmatpush3.msra.mxu0 %v2812_v56  ;;  %2359 = vmatpush3.msra.mxu1 %v2817_v57  ;;  %v3705_v53 = vshrl.u32 %v1237_v52, 7 }
 0x215   :  { %2325 = vmatprep.subr.mxu0 %v2828_v58  ;;  %2360 = vmatprep.subr.mxu1 %v2833_v59 }
 0x216   :  { %2326 = vmatpush3.msra.mxu0 %v2840_v60  ;;  %2361 = vmatpush3.msra.mxu1 %v2845_v61  ;;  %v3708_v54 = vsub.s32 0, %v3705_v53 }
 0x217   :  { %2327 = vmatprep.subr.mxu0 %v2852_v62  ;;  %2362 = vmatprep.subr.mxu1 %v2857_v63 }
 0x218   :  { %2328 = vmatpush3.msra.mxu0 %v2864_v1  ;;  %2363 = vmatpush3.msra.mxu1 %v2869_v2  ;;  %v4264_v2 = vld [vmem:[#allocation38_spill] sm:$0xff] }
 0x219   :  { %2329 = vmatprep.subr.mxu0 %v4238_v26  ;;  %2364 = vmatprep.subr.mxu1 %v4239_v27  ;;  %v4265_v26 = vld [vmem:[#allocation39_spill] sm:$0xff] }
 0x21a   :  { %2330 = vmatpush3.msra.mxu0 %v4240_v28  ;;  %2365 = vmatpush3.msra.mxu1 %v4241_v29 }
 0x21b   :  { %2331 = vmatprep.subr.mxu0 %v4242_v30  ;;  %2366 = vmatprep.subr.mxu1 %v4243_v31 }
 0x21c   :  { %2332 = vmatpush3.msra.mxu0 %v4244_v32  ;;  %2367 = vmatpush3.msra.mxu1 %v4245_v33  ;;  %v4266_v32 = vld [vmem:[#allocation40_spill] sm:$0xff] }
 0x21d   :  { %2333 = vmatprep.subr.mxu0 %v4246_v34  ;;  %2368 = vmatprep.subr.mxu1 %v4247_v35 }
 0x21e   :  { %2334 = vmatpush3.msra.mxu0 %v4248_v36  ;;  %2369 = vmatpush3.msra.mxu1 %v4249_v37 }
 0x21f   :  { %2335 = vmatprep.subr.mxu0 %v4250_v38  ;;  %2370 = vmatprep.subr.mxu1 %v4251_v39 }
 0x220   :  { %2336 = vmatpush3.msra.mxu0 %v4252_v40  ;;  %2371 = vmatpush3.msra.mxu1 %v4253_v41 }
 0x221   :  { %2337 = vmatprep.subr.mxu0 %v4254_v42  ;;  %2372 = vmatprep.subr.mxu1 %v4255_v43 }
 0x222   :  { %2338 = vmatpush3.msra.mxu0 %v4256_v44  ;;  %2373 = vmatpush3.msra.mxu1 %v4257_v45 }
 0x223   :  { %2339 = vmatprep.subr.mxu0 %v4258_v46  ;;  %2374 = vmatprep.subr.mxu1 %v4259_v47 }
 0x224   :  { %2340 = vmatpush3.msra.mxu0 %v4260_v48  ;;  %2375 = vmatpush3.msra.mxu1 %v4261_v49 }
 0x225   :  { %2379 = vmatprep.subr.mxu0 %v4262_v50  ;;  %2414 = vmatprep.subr.mxu1 %v4263_v51 }
 0x2b3   :  { %v1011_v55 = vpop.f32.mrf.mxu0  ;;  %v1082_v56 = vpop.f32.mrf.mxu1 }
 0x2b4   :  { %v1229_v57 = vmul.f32 0.03125, %v1011_v55  ;;  %v1231_v58 = vmul.f32 0.03125, %v1082_v56 }
 0x2b5   :  { %v1013_v59 = vpop.f32.mrf.mxu0  ;;  %v1084_v60 = vpop.f32.mrf.mxu1 }
 0x2b6   :  { %v1240_v61 = vrot.slane %v1229_v57, %v3708_v54  ;;  %v1248_v62 = vrot.slane %v1231_v58, %v3708_v54  ;;  %v1230_v63 = vmul.f32 0.03125, %v1013_v59  ;;  %v1232_v1 = vmul.f32 0.03125, %v1084_v60 }
 0x2b8   :  { %v3713_v23 = vsub.f32 %v4264_v2, %v1240_v61  ;;  %v3716_v27 = vsub.f32 %v4265_v26, %v1248_v62  ;;  %v1244_v28 = vrot.slane %v1230_v63, %v3708_v54  ;;  %v1252_v29 = vrot.slane %v1232_v1, %v3708_v54 }
 0x2ba   :  { %v1277_v30 = vmul.f32 %v3713_v23, %v3713_v23  ;;  %v1279_v31 = vmul.f32 %v3716_v27, %v3716_v27  ;;  %v3725_v33 = vsub.f32 %v4266_v32, %v1244_v28  ;;  %v3728_v34 = vsub.f32 %v3039_v17, %v1252_v29 }
 0x2bc   :  { %v1285_v35 = vsel %vm412_vm2, %v1277_v30, 0.0  ;;  %v1299_v36 = vsel %vm412_vm2, %v1279_v31, 0.0  ;;  %v1278_v37 = vmul.f32 %v3725_v33, %v3725_v33  ;;  %v1280_v38 = vmul.f32 %v3728_v34, %v3728_v34 }
 0x2bd   :  { %v1286_v39 = vrot.slane %v1285_v35, 4  ;;  %v1300_v40 = vrot.slane %v1299_v36, 4 }
 0x2be   :  { %v1292_v41 = vsel %vm412_vm2, %v1278_v37, 0.0  ;;  %v1306_v42 = vsel %vm412_vm2, %v1280_v38, 0.0 }
 0x2bf   :  { %v1287_v43 = vadd.f32 %v1286_v39, %v1285_v35  ;;  %v1301_v44 = vadd.f32 %v1300_v40, %v1299_v36  ;;  %v1293_v17 = vrot.slane %v1292_v41, 4  ;;  %v1307_v45 = vrot.slane %v1306_v42, 4 }
 0x2c1   :  { %v1294_v46 = vadd.f32 %v1293_v17, %v1292_v41  ;;  %v1308_v47 = vadd.f32 %v1307_v45, %v1306_v42  ;;  %v1288_v48 = vrot.slane %v1287_v43, 2  ;;  %v1302_v49 = vrot.slane %v1301_v44, 2 }
 0x2c3   :  { %v1295_v50 = vrot.slane %v1294_v46, 2  ;;  %v1309_v51 = vrot.slane %v1308_v47, 2  ;;  %v1289_v52 = vadd.f32 %v1288_v48, %v1287_v43  ;;  %v1303_v55 = vadd.f32 %v1302_v49, %v1301_v44  ;;  %v4267_v44 = vld [vmem:[#allocation41_spill] sm:$0xff]  ;;  %v4270_v48 = vld [vmem:[#allocation44_spill] sm:$0xff] }
 0x2c4   :  { %v1153_v56 = vpop.f32.mrf.mxu0  ;;  %v1224_v57 = vpop.f32.mrf.mxu1  ;;  %v4271_v49 = vld [vmem:[#allocation45_spill] sm:$0xff] }
 0x2c5   :  { %v1233_v58 = vmul.f32 0.03125, %v1153_v56  ;;  %v1235_v59 = vmul.f32 0.03125, %v1224_v57  ;;  %v1296_v60 = vadd.f32 %v1295_v50, %v1294_v46  ;;  %v1310_v61 = vadd.f32 %v1309_v51, %v1308_v47  ;;  %v4269_v46 = vld [vmem:[#allocation43_spill] sm:$0xff] }
 0x2c6   :  { %v1155_v62 = vpop.f32.mrf.mxu0  ;;  %v1226_v63 = vpop.f32.mrf.mxu1  ;;  %v1290_v26 = vrot.slane %v1289_v52, 1  ;;  %v1304_v28 = vrot.slane %v1303_v55, 1 }
 0x2c7   :  { %v1234_v1 = vmul.f32 0.03125, %v1155_v62  ;;  %v1236_v2 = vmul.f32 0.03125, %v1226_v63  ;;  %v1256_v29 = vrot.slane %v1233_v58, %v3708_v54  ;;  %v1297_v30 = vrot.slane %v1296_v60, 1  ;;  %v4274_v58 = vld [vmem:[#allocation48_spill] sm:$0xff] }
 0x2c8   :  { %v1311_v31 = vrot.slane %v1310_v61, 1  ;;  %v1264_v32 = vrot.slane %v1235_v59, %v3708_v54  ;;  %v1291_v41 = vadd.f32 %v1290_v26, %v1289_v52  ;;  %v1305_v42 = vadd.f32 %v1304_v28, %v1303_v55  ;;  %v4272_v52 = vld [vmem:[#allocation46_spill] sm:$0xff]  ;;  %v4273_v55 = vld [vmem:[#allocation47_spill] sm:$0xff]  ;;  %v4275_v59 = vld [vmem:[#allocation49_spill] sm:$0xff] }
 0x2c9   :  { %v1260_v35 = vrot.slane %v1234_v1, %v3708_v54  ;;  %v1268_v36 = vrot.slane %v1236_v2, %v3708_v54  ;;  %v1298_v37 = vadd.f32 %v1297_v30, %v1296_v60  ;;  %v3749_v43 = vsub.f32 %v3045_v10, %v1256_v29  ;;  %v4276_v60 = vld [vmem:[#allocation50_spill] sm:$0xff]  ;;  %v4278_v1 = vld [vmem:[#allocation52_spill] sm:$0xff]  ;;  %v4279_v2 = vld [vmem:[#allocation53_spill] sm:$0xff] }
 0x2ca   :  { %v1312_v38 = vadd.f32 %v1311_v31, %v1310_v61  ;;  %v3752_v17 = vsub.f32 %v4267_v44, %v1264_v32  ;;  %v4277_v61 = vld [vmem:[#allocation51_spill] sm:$0xff]  ;;  %v4280_v26 = vld [vmem:[#allocation54_spill] sm:$0xff]  ;;  %v4286_v44 = vld [vmem:[#allocation60_spill] sm:$0xff] }
 0x2cb   :  { %v3743_v39 = vsub.f32 %v3049_v3, %v1260_v35  ;;  %v3746_v40 = vsub.f32 %v3053_v13, %v1268_v36  ;;  %1405 = vmatprep.mubr.f32.mxu0 %v1298_v37  ;;  %v4268_v13 = vld [vmem:[#allocation42_spill] sm:$0xff]  ;;  %v1281_v56 = vmul.f32 %v3749_v43, %v3749_v43  ;;  %v4281_v28 = vld [vmem:[#allocation55_spill] sm:$0xff]  ;;  %v4282_v35 = vld [vmem:[#allocation56_spill] sm:$0xff] }
 0x2cc   :  { %1475 = vmatprep.mubr.f32.mxu1 %v1312_v38  ;;  %1406 = vmatmul.mubr.f32.vlgmr.msra.gmra.mxu0 %v1291_v41  ;;  %v1283_v57 = vmul.f32 %v3752_v17, %v3752_v17  ;;  %v4283_v36 = vld [vmem:[#allocation57_spill] sm:$0xff]  ;;  %v4284_v37 = vld [vmem:[#allocation58_spill] sm:$0xff]  ;;  %v4285_v38 = vld [vmem:[#allocation59_spill] sm:$0xff] }
 0x2cd   :  { %v1282_v45 = vmul.f32 %v3743_v39, %v3743_v39  ;;  %v1284_v3 = vmul.f32 %v3746_v40, %v3746_v40  ;;  %1476 = vmatmul.mubr.f32.vlgmr.msra.gmra.mxu1 %v1305_v42  ;;  %2380 = vmatpush3.msra.mxu0 %v4268_v13  ;;  %v1313_v31 = vsel %vm412_vm2, %v1281_v56, 0.0 }
 0x2ce   :  { %2415 = vmatpush3.msra.mxu1 %v4269_v46  ;;  %2381 = vmatprep.subr.mxu0 %v4270_v48  ;;  %v1327_v32 = vsel %vm412_vm2, %v1283_v57, 0.0  ;;  %v4288_v46 = vld [vmem:[#allocation62_spill] sm:$0xff]  ;;  %v4294_v57 = vld [vmem:[#allocation68_spill] sm:$0xff] }
 0x2cf   :  { %v1320_v10 = vsel %vm412_vm2, %v1282_v45, 0.0  ;;  %v1334_v47 = vsel %vm412_vm2, %v1284_v3, 0.0  ;;  %2416 = vmatprep.subr.mxu1 %v4271_v49  ;;  %2382 = vmatpush3.msra.mxu0 %v4272_v52  ;;  %v4287_v45 = vld [vmem:[#allocation61_spill] sm:$0xff]  ;;  %v1314_v3 = vrot.slane %v1313_v31, 4  ;;  %v1328_v13 = vrot.slane %v1327_v32, 4  ;;  %v4290_v49 = vld [vmem:[#allocation64_spill] sm:$0xff] }
 0x2d0   :  { %v1321_v50 = vrot.slane %v1320_v10, 4  ;;  %v1335_v51 = vrot.slane %v1334_v47, 4  ;;  %2417 = vmatpush3.msra.mxu1 %v4273_v55  ;;  %2383 = vmatprep.subr.mxu0 %v4274_v58  ;;  %v4293_v52 = vld [vmem:[#allocation67_spill] sm:$0xff]  ;;  %v4295_v58 = vld [vmem:[#allocation69_spill] sm:$0xff] }
 0x2d1   :  { %2418 = vmatprep.subr.mxu1 %v4275_v59  ;;  %2384 = vmatpush3.msra.mxu0 %v4276_v60  ;;  %v1315_v59 = vadd.f32 %v1314_v3, %v1313_v31  ;;  %v1329_v60 = vadd.f32 %v1328_v13, %v1327_v32  ;;  %v4304_v32 = vld [vmem:[#allocation78_spill] sm:$0xff] }
 0x2d2   :  { %2419 = vmatpush3.msra.mxu1 %v4277_v61  ;;  %v1322_v62 = vadd.f32 %v1321_v50, %v1320_v10  ;;  %v1336_v63 = vadd.f32 %v1335_v51, %v1334_v47  ;;  %2385 = vmatprep.subr.mxu0 %v4278_v1  ;;  %v4289_v10 = vld [vmem:[#allocation63_spill] sm:$0xff]  ;;  %v4291_v50 = vld [vmem:[#allocation65_spill] sm:$0xff]  ;;  %v4292_v51 = vld [vmem:[#allocation66_spill] sm:$0xff] }
 0x2d3   :  { %2420 = vmatprep.subr.mxu1 %v4279_v2  ;;  %2386 = vmatpush3.msra.mxu0 %v4280_v26  ;;  %v4296_v61 = vld [vmem:[#allocation70_spill] sm:$0xff]  ;;  %v4299_v1 = vld [vmem:[#allocation73_spill] sm:$0xff]  ;;  %v4301_v26 = vld [vmem:[#allocation75_spill] sm:$0xff]  ;;  %v1330_v31 = vrot.slane %v1329_v60, 2 }
 0x2d4   :  { %2421 = vmatpush3.msra.mxu1 %v4281_v28  ;;  %v1323_v29 = vrot.slane %v1322_v62, 2  ;;  %v1337_v30 = vrot.slane %v1336_v63, 2  ;;  %2387 = vmatprep.subr.mxu0 %v4282_v35  ;;  %v4300_v2 = vld [vmem:[#allocation74_spill] sm:$0xff]  ;;  %v4302_v28 = vld [vmem:[#allocation76_spill] sm:$0xff]  ;;  %v4305_v35 = vld [vmem:[#allocation79_spill] sm:$0xff] }
 0x2d5   :  { %2422 = vmatprep.subr.mxu1 %v4283_v36  ;;  %2388 = vmatpush3.msra.mxu0 %v4284_v37  ;;  %v4306_v36 = vld [vmem:[#allocation80_spill] sm:$0xff]  ;;  %v4307_v37 = vld [vmem:[#allocation81_spill] sm:$0xff]  ;;  %v1331_v3 = vadd.f32 %v1330_v31, %v1329_v60  ;;  %v4312_v13 = vld [vmem:[#allocation86_spill] sm:$0xff] }
 0x2d6   :  { %2423 = vmatpush3.msra.mxu1 %v4285_v38  ;;  %v1324_v41 = vadd.f32 %v1323_v29, %v1322_v62  ;;  %v1338_v42 = vadd.f32 %v1337_v30, %v1336_v63  ;;  %2389 = vmatprep.subr.mxu0 %v4286_v44  ;;  %v4297_v62 = vld [vmem:[#allocation71_spill] sm:$0xff]  ;;  %v4298_v63 = vld [vmem:[#allocation72_spill] sm:$0xff]  ;;  %v4303_v29 = vld [vmem:[#allocation77_spill] sm:$0xff]  ;;  %v1316_v30 = vrot.slane %v1315_v59, 2 }
 0x2d7   :  { %2424 = vmatprep.subr.mxu1 %v4287_v45  ;;  %2390 = vmatpush3.msra.mxu0 %v4288_v46  ;;  %v4308_v38 = vld [vmem:[#allocation82_spill] sm:$0xff]  ;;  %v4311_v44 = vld [vmem:[#allocation85_spill] sm:$0xff]  ;;  %v4313_v46 = vld [vmem:[#allocation87_spill] sm:$0xff] }
 0x2d8   :  { %2425 = vmatpush3.msra.mxu1 %v4289_v10  ;;  %v1325_v47 = vrot.slane %v1324_v41, 1  ;;  %v1339_v48 = vrot.slane %v1338_v42, 1  ;;  %2391 = vmatprep.subr.mxu0 %v4290_v49  ;;  %v1317_v45 = vadd.f32 %v1316_v30, %v1315_v59  ;;  %v4314_v10 = vld [vmem:[#allocation88_spill] sm:$0xff]  ;;  %v4317_v49 = vld [vmem:[#allocation91_spill] sm:$0xff]  ;;  %v4323_v59 = vld [vmem:[#allocation97_spill] sm:$0xff] }
 0x2d9   :  { %2426 = vmatprep.subr.mxu1 %v4291_v50  ;;  %2392 = vmatpush3.msra.mxu0 %v4292_v51  ;;  %v4318_v50 = vld [vmem:[#allocation92_spill] sm:$0xff]  ;;  %v4319_v51 = vld [vmem:[#allocation93_spill] sm:$0xff]  ;;  %v4324_v60 = vld [vmem:[#allocation98_spill] sm:$0xff] }
 0x2da   :  { %2427 = vmatpush3.msra.mxu1 %v4293_v52  ;;  %v1326_v55 = vadd.f32 %v1325_v47, %v1324_v41  ;;  %v1340_v56 = vadd.f32 %v1339_v48, %v1338_v42  ;;  %2393 = vmatprep.subr.mxu0 %v4294_v57  ;;  %v4309_v41 = vld [vmem:[#allocation83_spill] sm:$0xff]  ;;  %v4310_v42 = vld [vmem:[#allocation84_spill] sm:$0xff]  ;;  %v4315_v47 = vld [vmem:[#allocation89_spill] sm:$0xff]  ;;  %v1318_v52 = vrot.slane %v1317_v45, 1 }
 0x2db   :  { %2428 = vmatprep.subr.mxu1 %v4295_v58  ;;  %2394 = vmatpush3.msra.mxu0 %v4296_v61  ;;  %v4316_v48 = vld [vmem:[#allocation90_spill] sm:$0xff]  ;;  %v4321_v57 = vld [vmem:[#allocation95_spill] sm:$0xff]  ;;  %v4322_v58 = vld [vmem:[#allocation96_spill] sm:$0xff] }
 0x2dc   :  { %1545 = vmatprep.mubr.f32.mxu0 %v1326_v55  ;;  %2429 = vmatpush3.msra.mxu1 %v4297_v62  ;;  %v1332_v55 = vrot.slane %v1331_v3, 1  ;;  %v4325_v61 = vld [vmem:[#allocation99_spill] sm:$0xff]  ;;  %v4326_v62 = vld [vmem:[#allocation100_spill] sm:$0xff]  ;;  %v4331_v30 = vld [vmem:[#allocation105_spill] sm:$0xff] }
 0x2dd   :  { %1615 = vmatprep.mubr.f32.mxu1 %v1340_v56  ;;  %2395 = vmatprep.subr.mxu0 %v4298_v63  ;;  %v4320_v56 = vld [vmem:[#allocation94_spill] sm:$0xff]  ;;  %v4327_v63 = vld [vmem:[#allocation101_spill] sm:$0xff] }
 0x2de   :  { %2430 = vmatprep.subr.mxu1 %v4299_v1  ;;  %2396 = vmatpush3.msra.mxu0 %v4300_v2  ;;  %v1319_v1 = vadd.f32 %v1318_v52, %v1317_v45  ;;  %v1333_v2 = vadd.f32 %v1332_v55, %v1331_v3  ;;  %v4332_v31 = vld [vmem:[#allocation106_spill] sm:$0xff]  ;;  %v4341_v45 = vld [vmem:[#allocation115_spill] sm:$0xff]  ;;  %v4342_v3 = vld [vmem:[#allocation116_spill] sm:$0xff] }
 0x2df   :  { %2431 = vmatpush3.msra.mxu1 %v4301_v26  ;;  %2397 = vmatprep.subr.mxu0 %v4302_v28  ;;  %v4328_v26 = vld [vmem:[#allocation102_spill] sm:$0xff]  ;;  %v4329_v28 = vld [vmem:[#allocation103_spill] sm:$0xff]  ;;  %v4351_v52 = vld [vmem:[#allocation125_spill] sm:$0xff] }
 0x2e0   :  { %2432 = vmatprep.subr.mxu1 %v4303_v29  ;;  %2398 = vmatpush3.msra.mxu0 %v4304_v32  ;;  %v4330_v29 = vld [vmem:[#allocation104_spill] sm:$0xff]  ;;  %v4333_v32 = vld [vmem:[#allocation107_spill] sm:$0xff]  ;;  %v4352_v55 = vld [vmem:[#allocation126_spill] sm:$0xff] }
 0x2e1   :  { %2433 = vmatpush3.msra.mxu1 %v4305_v35  ;;  %2399 = vmatprep.subr.mxu0 %v4306_v36  ;;  %v4334_v35 = vld [vmem:[#allocation108_spill] sm:$0xff]  ;;  %v4335_v36 = vld [vmem:[#allocation109_spill] sm:$0xff] }
 0x2e2   :  { %2434 = vmatprep.subr.mxu1 %v4307_v37  ;;  %2400 = vmatpush3.msra.mxu0 %v4308_v38  ;;  %v4336_v37 = vld [vmem:[#allocation110_spill] sm:$0xff]  ;;  %v4337_v38 = vld [vmem:[#allocation111_spill] sm:$0xff] }
 0x2e3   :  { %2435 = vmatpush3.msra.mxu1 %v4309_v41  ;;  %2401 = vmatprep.subr.mxu0 %v4310_v42  ;;  %v4338_v41 = vld [vmem:[#allocation112_spill] sm:$0xff]  ;;  %v4339_v42 = vld [vmem:[#allocation113_spill] sm:$0xff] }
 0x2e4   :  { %2436 = vmatprep.subr.mxu1 %v4311_v44  ;;  %2402 = vmatpush3.msra.mxu0 %v4312_v13  ;;  %v4340_v44 = vld [vmem:[#allocation114_spill] sm:$0xff]  ;;  %v4343_v13 = vld [vmem:[#allocation117_spill] sm:$0xff] }
 0x2e5   :  { %2437 = vmatpush3.msra.mxu1 %v4313_v46  ;;  %2403 = vmatprep.subr.mxu0 %v4314_v10  ;;  %v4344_v46 = vld [vmem:[#allocation118_spill] sm:$0xff]  ;;  %v4345_v10 = vld [vmem:[#allocation119_spill] sm:$0xff] }
 0x2e6   :  { %2438 = vmatprep.subr.mxu1 %v4315_v47  ;;  %2404 = vmatpush3.msra.mxu0 %v4316_v48  ;;  %v4346_v47 = vld [vmem:[#allocation120_spill] sm:$0xff]  ;;  %v4347_v48 = vld [vmem:[#allocation121_spill] sm:$0xff] }
 0x2e7   :  { %2439 = vmatpush3.msra.mxu1 %v4317_v49  ;;  %2405 = vmatprep.subr.mxu0 %v4318_v50  ;;  %v4348_v49 = vld [vmem:[#allocation122_spill] sm:$0xff]  ;;  %v4349_v50 = vld [vmem:[#allocation123_spill] sm:$0xff] }
 0x2e8   :  { %2440 = vmatprep.subr.mxu1 %v4319_v51  ;;  %2406 = vmatpush3.msra.mxu0 %v4320_v56  ;;  %v4350_v51 = vld [vmem:[#allocation124_spill] sm:$0xff]  ;;  %v4353_v56 = vld [vmem:[#allocation127_spill] sm:$0xff] }
 0x2e9   :  { %2441 = vmatpush3.msra.mxu1 %v4321_v57  ;;  %2407 = vmatprep.subr.mxu0 %v4322_v58  ;;  %v4354_v57 = vld [vmem:[#allocation128_spill] sm:$0xff]  ;;  %v4355_v58 = vld [vmem:[#allocation129_spill] sm:$0xff] }
 0x2ea   :  { %2442 = vmatprep.subr.mxu1 %v4323_v59  ;;  %2408 = vmatpush3.msra.mxu0 %v4324_v60  ;;  %v4356_v59 = vld [vmem:[#allocation130_spill] sm:$0xff]  ;;  %v4357_v60 = vld [vmem:[#allocation131_spill] sm:$0xff] }
 0x2eb   :  { %2443 = vmatpush3.msra.mxu1 %v4325_v61  ;;  %2409 = vmatprep.subr.mxu0 %v4326_v62  ;;  %v4358_v61 = vld [vmem:[#allocation132_spill] sm:$0xff]  ;;  %v4359_v62 = vld [vmem:[#allocation133_spill] sm:$0xff] }
 0x2ec   :  { %2444 = vmatprep.subr.mxu1 %v4327_v63  ;;  %2410 = vmatpush3.msra.mxu0 %v4328_v26  ;;  %v4360_v63 = vld [vmem:[#allocation134_spill] sm:$0xff]  ;;  %v4363_v26 = vld [vmem:[#allocation137_spill] sm:$0xff] }
 0x2ed   :  { %2445 = vmatpush3.msra.mxu1 %v4329_v28  ;;  %1546 = vmatmul.mubr.f32.vlgmr.msra.gmra.mxu0 %v1319_v1  ;;  %v4361_v1 = vld [vmem:[#allocation135_spill] sm:$0xff] }
 0x2ee   :  { %1616 = vmatmul.mubr.f32.vlgmr.msra.gmra.mxu1 %v1333_v2  ;;  %1640 = vmatprep.subr.mxu0 %v4330_v29  ;;  %v4362_v2 = vld [vmem:[#allocation136_spill] sm:$0xff] }
 0x2ef   :  { %1711 = vmatprep.subr.mxu1 %v4331_v30  ;;  %1641 = vmatpush1.msra.mxu0 %v4332_v31 }
 0x2f0   :  { %1712 = vmatpush1.msra.mxu1 %v4333_v32  ;;  %1642 = vmatprep.subr.mxu0 %v4334_v35 }
 0x2f1   :  { %1713 = vmatprep.subr.mxu1 %v4335_v36  ;;  %1643 = vmatpush1.msra.mxu0 %v4336_v37 }
 0x2f2   :  { %1714 = vmatpush1.msra.mxu1 %v4337_v38  ;;  %1644 = vmatprep.subr.mxu0 %v4338_v41 }
 0x2f3   :  { %1715 = vmatprep.subr.mxu1 %v4339_v42  ;;  %1645 = vmatpush1.msra.mxu0 %v4340_v44 }
 0x2f4   :  { %1716 = vmatpush1.msra.mxu1 %v4341_v45  ;;  %1646 = vmatprep.subr.mxu0 %v4342_v3 }
 0x2f5   :  { %1717 = vmatprep.subr.mxu1 %v4343_v13  ;;  %1647 = vmatpush1.msra.mxu0 %v4344_v46  ;;  %v4364_v46 = vld [vmem:[#allocation138_spill] sm:$0xff] }
 0x2f6   :  { %1718 = vmatpush1.msra.mxu1 %v4345_v10  ;;  %1648 = vmatprep.subr.mxu0 %v4346_v47  ;;  %v4365_v10 = vld [vmem:[#allocation139_spill] sm:$0xff]  ;;  %v4366_v47 = vld [vmem:[#allocation140_spill] sm:$0xff] }
 0x2f7   :  { %1719 = vmatprep.subr.mxu1 %v4347_v48  ;;  %1649 = vmatpush1.msra.mxu0 %v4348_v49  ;;  %v4367_v48 = vld [vmem:[#allocation141_spill] sm:$0xff] }
 0x2f8   :  { %1720 = vmatpush1.msra.mxu1 %v4349_v50  ;;  %1650 = vmatprep.subr.mxu0 %v4350_v51  ;;  %v4375_v49 = vld [vmem:[#allocation149_spill] sm:$0xff] }
 0x2f9   :  { %1721 = vmatprep.subr.mxu1 %v4351_v52  ;;  %1651 = vmatpush1.msra.mxu0 %v4352_v55  ;;  %v3903_v52 = vld [vmem:[#allocation7] sm:$0xff]  ;;  %v1980_v55 = vsub.s32 1, %v3705_v53 }
 0x2fa   :  { %1722 = vmatpush1.msra.mxu1 %v4353_v56  ;;  %1652 = vmatprep.subr.mxu0 %v4354_v57  ;;  %v1988_v56 = vsub.s32 3, %v3705_v53 }
 0x2fb   :  { %1723 = vmatprep.subr.mxu1 %v4355_v58  ;;  %1653 = vmatpush1.msra.mxu0 %v4356_v59  ;;  %v2027_v58 = vrot.slane %v3903_v52, %v3708_v54 }
 0x2fc   :  { %1724 = vmatpush1.msra.mxu1 %v4357_v60  ;;  %1654 = vmatprep.subr.mxu0 %v4358_v61 }
 0x2fd   :  { %1725 = vmatprep.subr.mxu1 %v4359_v62  ;;  %1655 = vmatpush1.msra.mxu0 %v4360_v63 }
 0x2fe   :  { %1726 = vmatpush1.msra.mxu1 %v4361_v1  ;;  %1688 = vmatprep.mubr.f32.mxu0 %v4191_v20 }
 0x2ff   :  { %1759 = vmatprep.mubr.f32.mxu1 %v4191_v20  ;;  %1782 = vmatprep.subr.mxu0 %v4362_v2 }
 0x300   :  { %1853 = vmatprep.subr.mxu1 %v4363_v26 }
 0x38c   :  { %v2341_v28 = vpop.f32.mrf.mxu0 }
 0x38d   :  { %v2376_v29 = vpop.f32.mrf.mxu1 }
 0x38e   :  { %v2342_v30 = vpop.f32.mrf.mxu0 }
 0x38f   :  { %v2377_v31 = vpop.f32.mrf.mxu1  ;;  %v2343_v32 = vadd.f32 %v2342_v30, %v2341_v28  ;;  %v2031_v30 = vrot.slane %v3903_v52, %v1980_v55 }
 0x390   :  { %v2378_v35 = vadd.f32 %v2377_v31, %v2376_v29 }
 0x392   :  { %v1478_v42 = vadd.f32 %v2378_v35, %v2343_v32 }
 0x3ad   :  { %v2411_v36 = vpop.f32.mrf.mxu0 }
 0x3ae   :  { %v2446_v37 = vpop.f32.mrf.mxu1 }
 0x3af   :  { %v2412_v38 = vpop.f32.mrf.mxu0 }
 0x3b0   :  { %v2447_v41 = vpop.f32.mrf.mxu1  ;;  %v2413_v44 = vadd.f32 %v2412_v38, %v2411_v36 }
 0x3b1   :  { %v2448_v3 = vadd.f32 %v2447_v41, %v2446_v37 }
 0x3b2   :  { %v1548_v45 = vadd.f32 %v2413_v44, %v1478_v42 }
 0x3b4   :  { %v1618_v13 = vadd.f32 %v2448_v3, %v1548_v45 }
 0x3b6   :  { %2165 = vmatmul.mubr.msk.f32.vlgmr.msra.gmra.mxu0 %vm941_vm3, %v1618_v13  ;;  %2166 = vmatmul.mubr.msk.f32.vlgmr.msra.gmra.mxu1 %vm941_vm3, %v1618_v13 }
 0x3b7   :  { %1783 = vmatpush1.msra.mxu0 %v3539_v0  ;;  %1854 = vmatpush1.msra.mxu1 %v3541_v8  ;;  %v4368_v0 = vld [vmem:[#allocation142_spill] sm:$0xff]  ;;  %v4369_v8 = vld [vmem:[#allocation143_spill] sm:$0xff] }
 0x3b8   :  { %1784 = vmatprep.subr.mxu0 %v3543_v7  ;;  %1855 = vmatprep.subr.mxu1 %v3545_v5  ;;  %v4370_v7 = vld [vmem:[#allocation144_spill] sm:$0xff]  ;;  %v4371_v5 = vld [vmem:[#allocation145_spill] sm:$0xff] }
 0x3b9   :  { %1785 = vmatpush1.msra.mxu0 %v3551_v25  ;;  %1856 = vmatpush1.msra.mxu1 %v3553_v12  ;;  %v4372_v25 = vld [vmem:[#allocation146_spill] sm:$0xff]  ;;  %v4373_v12 = vld [vmem:[#allocation147_spill] sm:$0xff] }
 0x3ba   :  { %1786 = vmatprep.subr.mxu0 %v3557_v11  ;;  %1857 = vmatprep.subr.mxu1 %v4364_v46  ;;  %v4374_v11 = vld [vmem:[#allocation148_spill] sm:$0xff] }
 0x3bb   :  { %1787 = vmatpush1.msra.mxu0 %v4365_v10  ;;  %1858 = vmatpush1.msra.mxu1 %v4366_v47 }
 0x3bc   :  { %1788 = vmatprep.subr.mxu0 %v4367_v48  ;;  %1859 = vmatprep.subr.mxu1 %v4368_v0 }
 0x3bd   :  { %1789 = vmatpush1.msra.mxu0 %v4369_v8  ;;  %1860 = vmatpush1.msra.mxu1 %v4370_v7 }
 0x3be   :  { %1790 = vmatprep.subr.mxu0 %v4371_v5  ;;  %1861 = vmatprep.subr.mxu1 %v4372_v25 }
 0x3bf   :  { %1791 = vmatpush1.msra.mxu0 %v4373_v12  ;;  %1862 = vmatpush1.msra.mxu1 %v4374_v11 }
 0x3c0   :  { %1792 = vmatprep.subr.mxu0 %v3593_v18  ;;  %1863 = vmatprep.subr.mxu1 %v4375_v49 }
 0x3c1   :  { %1793 = vmatpush1.msra.mxu0 %v3599_v6  ;;  %1864 = vmatpush1.msra.mxu1 %v3601_v15 }
 0x3c2   :  { %1794 = vmatprep.subr.mxu0 %v3605_v14  ;;  %1865 = vmatprep.subr.mxu1 %v3607_v9 }
 0x3c3   :  { %1795 = vmatpush1.msra.mxu0 %v3611_v22  ;;  %1866 = vmatpush1.msra.mxu1 %v3613_v24 }
 0x3c4   :  { %1796 = vmatprep.subr.mxu0 %v3617_v19  ;;  %1867 = vmatprep.subr.mxu1 %v3619_v21 }
 0x3c5   :  { %1797 = vmatpush1.msra.mxu0 %v3623_v16  ;;  %1830 = vmatprep.mubr.f32.mxu0 %v4191_v20 }
 0x3c6   :  { %1868 = vmatpush1.msra.mxu1 %v3627_v4  ;;  %1901 = vmatprep.mubr.f32.mxu1 %v4191_v20  ;;  %v1984_v20 = vsub.s32 2, %v3705_v53  ;;  %v3901_v4 = vld [vmem:[#allocation6] sm:$0xff] }
 0x3c7   :  { %2167 = vmatmul.mubr.msk.f32.vlgmr.msra.gmra.mxu0 %vm941_vm3, %v1618_v13  ;;  %2168 = vmatmul.mubr.msk.f32.vlgmr.msra.gmra.mxu1 %vm941_vm3, %v1618_v13  ;;  %v1977_v57 = vrot.slane %v3901_v4, %v3708_v54  ;;  %v1981_v29 = vrot.slane %v3901_v4, %v1980_v55  ;;  %v1989_v31 = vrot.slane %v3901_v4, %v1988_v56  ;;  %v2566_v13 = vmov 1983009808  }
 0x3c8   :  { %v1985_v59 = vrot.slane %v3901_v4, %v1984_v20  ;;  %v2035_v63 = vrot.slane %v3903_v52, %v1984_v20  ;;  %v2107_v46 = vunpack.c.l.s4 %v2566_v13  ;;  %v1992_v20 = vsub.s32 4, %v3705_v53 }
 0x476   :  { %v1690_v18 = vpop.f32.mrf.mxu0  ;;  %v1761_v6 = vpop.f32.mrf.mxu1 }
 0x477   :  { %v1908_v15 = vmul.f32 0.03125, %v1690_v18  ;;  %v1910_v14 = vmul.f32 0.03125, %v1761_v6 }
 0x478   :  { %v1692_v9 = vpop.f32.mrf.mxu0  ;;  %v1763_v22 = vpop.f32.mrf.mxu1 }
 0x479   :  { %v1916_v24 = vadd.f32 1e-05, %v1908_v15  ;;  %v1918_v19 = vadd.f32 1e-05, %v1910_v14  ;;  %v1909_v21 = vmul.f32 0.03125, %v1692_v9  ;;  %v1911_v16 = vmul.f32 0.03125, %v1763_v22 }
 0x47b   :  { %2457 = vrsqrt.f32 %v1916_v24  ;;  %v1917_v50 = vadd.f32 1e-05, %v1909_v21  ;;  %v1919_v51 = vadd.f32 1e-05, %v1911_v16 }
 0x47c   :  { %2459 = vrsqrt.f32 %v1918_v19 }
 0x47d   :  { %2461 = vrsqrt.f32 %v1917_v50 }
 0x47e   :  { %2463 = vrsqrt.f32 %v1919_v51 }
 0x487   :  { %v1832_v60 = vpop.f32.mrf.mxu0  ;;  %v1903_v61 = vpop.f32.mrf.mxu1 }
 0x488   :  { %v2458_v62 = vpop.eup %2457  ;;  %v1912_v1 = vmul.f32 0.03125, %v1832_v60  ;;  %v1914_v2 = vmul.f32 0.03125, %v1903_v61  ;;  %v2004_v61 = vsub.s32 7, %v3705_v53 }
 0x489   :  { %v2460_v26 = vpop.eup %2459  ;;  %v1935_v28 = vrot.slane %v2458_v62, %v3708_v54  ;;  %v1834_v32 = vpop.f32.mrf.mxu0 }
 0x48a   :  { %v1905_v35 = vpop.f32.mrf.mxu1  ;;  %v2462_v36 = vpop.eup %2461  ;;  %v1943_v37 = vrot.slane %v2460_v26, %v3708_v54  ;;  %v1920_v38 = vadd.f32 1e-05, %v1912_v1  ;;  %v1922_v41 = vadd.f32 1e-05, %v1914_v2  ;;  %v1913_v42 = vmul.f32 0.03125, %v1834_v32 }
 0x48b   :  { %v2464_v44 = vpop.eup %2463  ;;  %v1964_v45 = vmul.f32 %v1935_v28, %v3713_v23  ;;  %v1939_v3 = vrot.slane %v2462_v36, %v3708_v54  ;;  %v1915_v10 = vmul.f32 0.03125, %v1905_v35  ;;  %v2039_v23 = vrot.slane %v3903_v52, %v1988_v56 }
 0x48c   :  { %v1966_v47 = vmul.f32 %v1943_v37, %v3716_v27  ;;  %v1947_v48 = vrot.slane %v2464_v44, %v3708_v54  ;;  %2465 = vrsqrt.f32 %v1920_v38  ;;  %v1921_v0 = vadd.f32 1e-05, %v1913_v42 }
 0x48d   :  { %v2014_v8 = vmul.f32 %v1977_v57, %v1964_v45  ;;  %v1965_v7 = vmul.f32 %v1939_v3, %v3725_v33  ;;  %2467 = vrsqrt.f32 %v1922_v41  ;;  %v1923_v5 = vadd.f32 1e-05, %v1915_v10 }
 0x48e   :  { %v2016_v25 = vmul.f32 %v1985_v59, %v1966_v47  ;;  %v1967_v12 = vmul.f32 %v1947_v48, %v3728_v34  ;;  %2469 = vrsqrt.f32 %v1921_v0  ;;  %v2108_v27 = vunpack.c.0.s8 %v2107_v46 }
 0x48f   :  { %v2064_v11 = vadd.f32 %v2027_v58, %v2014_v8  ;;  %v2015_v49 = vmul.f32 %v1981_v29, %v1965_v7  ;;  %2471 = vrsqrt.f32 %v1923_v5  ;;  %v2000_v56 = vsub.s32 6, %v3705_v53 }
 0x490   :  { %v2066_v18 = vadd.f32 %v2035_v63, %v2016_v25  ;;  %v2017_v6 = vmul.f32 %v1989_v31, %v1967_v12  ;;  %v2111_v24 = vsub.s32 %v2108_v27, %v3705_v53  ;;  %v1996_v58 = vsub.s32 5, %v3705_v53 }
 0x491   :  { %v2080_v15 = vmul.f32 0.2, %v2064_v11  ;;  %v2065_v14 = vadd.f32 %v2031_v30, %v2015_v49  ;;  %vm2072_vm4 = vcmp.gt.f32.partialorder %v2064_v11, 0.0  ;;  %v1993_v1 = vrot.slane %v3901_v4, %v1992_v20 }
 0x492   :  { %v2082_v9 = vmul.f32 0.2, %v2066_v18  ;;  %v2067_v22 = vadd.f32 %v2039_v23, %v2017_v6  ;;  %vm2074_vm5 = vcmp.gt.f32.partialorder %v2066_v18, 0.0  ;;  %v2001_v29 = vrot.slane %v3901_v4, %v2000_v56 }
 0x493   :  { %vm2073_vm6 = vcmp.gt.f32.partialorder %v2065_v14, 0.0  ;;  %v2081_v33 = vmul.f32 0.2, %v2065_v14  ;;  %v2088_v19 = vsel %vm2072_vm4, %v2064_v11, %v2080_v15  ;;  %v2043_v32 = vrot.slane %v3903_v52, %v1992_v20 }
 0x494   :  { %vm2075_vm7 = vcmp.gt.f32.partialorder %v2067_v22, 0.0  ;;  %v2083_v34 = vmul.f32 0.2, %v2067_v22  ;;  %v2090_v16 = vsel %vm2074_vm5, %v2066_v18, %v2082_v9  ;;  %v1997_v53 = vrot.slane %v3901_v4, %v1996_v58 }
 0x495   :  { %v2089_v21 = vsel %vm2073_vm6, %v2065_v14, %v2081_v33  ;;  %v2051_v37 = vrot.slane %v3903_v52, %v2000_v56  ;;  %v2005_v41 = vrot.slane %v3901_v4, %v2004_v61  ;;  %v2047_v44 = vrot.slane %v3903_v52, %v1996_v58 }
 0x496   :  { %v2104_v50 = vcombine.low %v2088_v19, %v2089_v21  ;;  %v2091_v51 = vsel %vm2075_vm7, %v2067_v22, %v2083_v34  ;;  %v2055_v13 = vrot.slane %v3903_v52, %v2004_v61 }
 0x497   :  { %v2105_v55 = vcombine.low %v2090_v16, %v2091_v51 }
 0x498   :  { %v2112_v57 = vrot.slane %v2104_v50, %v2111_v24 }
 0x499   :  { %v2466_v59 = vpop.eup %2465  ;;  %v2119_v60 = vrot.slane %v2105_v55, %v2111_v24 }
 0x49a   :  { %v2468_v62 = vpop.eup %2467  ;;  %v1951_v63 = vrot.slane %v2466_v59, %v3708_v54 }
 0x49b   :  { %v2470_v2 = vpop.eup %2469  ;;  %v2120_v26 = vcombine.low %v2112_v57, %v2119_v60  ;;  %v1959_v28 = vrot.slane %v2468_v62, %v3708_v54 }
 0x49c   :  { %v2472_v30 = vpop.eup %2471  ;;  %v1968_v31 = vmul.f32 %v1951_v63, %v3749_v43  ;;  %v1955_v35 = vrot.slane %v2470_v2, %v3708_v54 }
 0x49d   :  { %2140 = vst [vmem:[%s3958_s6] sm:$0xff] %v2120_v26  ;;  %v1970_v36 = vmul.f32 %v1959_v28, %v3752_v17  ;;  %v1963_v38 = vrot.slane %v2472_v30, %v3708_v54 }
 0x49e   :  { %v2018_v42 = vmul.f32 %v1993_v1, %v1968_v31  ;;  %v1969_v43 = vmul.f32 %v1955_v35, %v3743_v39 }
 0x49f   :  { %v2020_v45 = vmul.f32 %v2001_v29, %v1970_v36  ;;  %v1971_v3 = vmul.f32 %v1963_v38, %v3746_v40 }
 0x4a0   :  { %v2068_v46 = vadd.f32 %v2043_v32, %v2018_v42  ;;  %v2019_v10 = vmul.f32 %v1997_v53, %v1969_v43 }
 0x4a1   :  { %v2070_v47 = vadd.f32 %v2051_v37, %v2020_v45  ;;  %v2021_v17 = vmul.f32 %v2005_v41, %v1971_v3 }
 0x4a2   :  { %v2084_v48 = vmul.f32 0.2, %v2068_v46  ;;  %v2069_v0 = vadd.f32 %v2047_v44, %v2019_v10  ;;  %vm2076_vm8 = vcmp.gt.f32.partialorder %v2068_v46, 0.0 }
 0x4a3   :  { %v2086_v54 = vmul.f32 0.2, %v2070_v47  ;;  %v2071_v8 = vadd.f32 %v2055_v13, %v2021_v17  ;;  %vm2078_vm9 = vcmp.gt.f32.partialorder %v2070_v47, 0.0 }
 0x4a4   :  { %vm2077_vm10 = vcmp.gt.f32.partialorder %v2069_v0, 0.0  ;;  %v2085_v4 = vmul.f32 0.2, %v2069_v0  ;;  %v2092_v7 = vsel %vm2076_vm8, %v2068_v46, %v2084_v48 }
 0x4a5   :  { %vm2079_vm11 = vcmp.gt.f32.partialorder %v2071_v8, 0.0  ;;  %v2087_v39 = vmul.f32 0.2, %v2071_v8  ;;  %v2094_v25 = vsel %vm2078_vm9, %v2070_v47, %v2086_v54 }
 0x4a6   :  { %v2093_v5 = vsel %vm2077_vm10, %v2069_v0, %v2085_v4 }
 0x4a7   :  { %v2121_v40 = vcombine.low %v2092_v7, %v2093_v5  ;;  %v2095_v12 = vsel %vm2079_vm11, %v2071_v8, %v2087_v39 }
 0x4a8   :  { %v2122_v52 = vcombine.low %v2094_v25, %v2095_v12 }
 0x4a9   :  { %v2129_v23 = vrot.slane %v2121_v40, %v2111_v24 }
 0x4aa   :  { %v2136_v11 = vrot.slane %v2122_v52, %v2111_v24 }
 0x4ac   :  { %v2137_v49 = vcombine.low %v2129_v23, %v2136_v11 }
 0x4ae   :  { %2141 = vst [vmem:[%s3958_s6 + $0x8] sm:$0xff] %v2137_v49 }
 0x4af   :  { %2146 = vsyncpa [#allocation3], 1 }
 0x4b0   :  { %2147 = vsyncpa [#allocation5], 1 }
 0x4b1   :  { %2148 = vsyncpa [#allocation8], 1 }

// kernel: dcgan_g_forward.7
= control target key start
LH: loop header
LB: loop body
LE: loop exit
PB: predicated region body
PF: predicated region fallthrough
CT: control target
= control target key end

     0   :  { %vm107_vm0 = vcmask 261120   ;;  %vm1233_vm1 = vmmov 0   ;;  %vm1895_vm2 = vcmask 523264   ;;  %vm567_vm3 = vcmask 130048   ;;  %s1888_s1 = inlined_call_operand.vmem [shape: f32[288,64], index: 1, kind: input, shape index: {}]   ;;  %s1889_s0 = inlined_call_operand.vmem [shape: f32[128,288], index: 0, kind: input, shape index: {}]   ;;  %s1890_s2 = inlined_call_operand.vmem [shape: f32[64,16], index: 2, kind: input, shape index: {}]   ;;  %s1891_s3 = inlined_call_operand.vmem [shape: f32[16,64], index: 3, kind: input, shape index: {}]   ;;  %s1892_s4 = inlined_call_operand.vmem [shape: f32[1,64], index: 4, kind: input, shape index: {}]   ;;  %s1893_s5 = inlined_call_operand.vmem [shape: f32[1,64], index: 5, kind: input, shape index: {}]   ;;  %s1894_s6 = inlined_call_operand.vmem [shape: f32[128,64], index: 6, kind: output, shape index: {}]  }
   0x1   :  { %v102_v0 = vld [vmem:[%s1888_s1 + $0xf8] sm:$0xff]  ;;  %v101_v2 = vld [vmem:[%s1888_s1 + $0xf0] sm:$0xff]  ;;  %v100_v4 = vld [vmem:[%s1888_s1 + $0xe8] sm:$0xff] }
   0x2   :  { %v86_v1 = vld [vmem:[%s1888_s1 + $0x78] sm:$0xff]  ;;  %1020 = vmatprep.subr.mxu0 %v102_v0  ;;  %v85_v3 = vld [vmem:[%s1888_s1 + $0x70] sm:$0xff]  ;;  %v84_v5 = vld [vmem:[%s1888_s1 + $0x68] sm:$0xff] }
   0x3   :  { %1021 = vmatpush3.msra.mxu0 %v86_v1  ;;  %v99_v6 = vld [vmem:[%s1888_s1 + $0xe0] sm:$0xff]  ;;  %v98_v8 = vld [vmem:[%s1888_s1 + $0xd8] sm:$0xff]  ;;  %v97_v10 = vld [vmem:[%s1888_s1 + $0xd0] sm:$0xff] }
   0x4   :  { %1022 = vmatprep.subr.mxu0 %v101_v2  ;;  %v83_v7 = vld [vmem:[%s1888_s1 + $0x60] sm:$0xff]  ;;  %v82_v9 = vld [vmem:[%s1888_s1 + $0x58] sm:$0xff]  ;;  %v81_v11 = vld [vmem:[%s1888_s1 + $0x50] sm:$0xff] }
   0x5   :  { %1023 = vmatpush3.msra.mxu0 %v85_v3  ;;  %v106_v12 = vld [vmem:[%s1888_s1 + $0x118] sm:$0xff]  ;;  %v96_v13 = vld [vmem:[%s1888_s1 + $0xc8] sm:$0xff]  ;;  %v105_v14 = vld [vmem:[%s1888_s1 + $0x110] sm:$0xff] }
   0x6   :  { %1024 = vmatprep.subr.mxu0 %v100_v4  ;;  %1144 = vmatprep.subr.mxu1 %v106_v12  ;;  %v80_v15 = vld [vmem:[%s1888_s1 + $0x48] sm:$0xff]  ;;  %v95_v17 = vld [vmem:[%s1888_s1 + $0xc0] sm:$0xff]  ;;  %v94_v20 = vld [vmem:[%s1888_s1 + $0xb8] sm:$0xff] }
   0x7   :  { %1025 = vmatpush3.msra.mxu0 %v84_v5  ;;  %1145 = vmatpush3.msra.mxu1 %v106_v12  ;;  %v104_v16 = vld [vmem:[%s1888_s1 + $0x108] sm:$0xff]  ;;  %v79_v19 = vld [vmem:[%s1888_s1 + $0x40] sm:$0xff]  ;;  %v78_v22 = vld [vmem:[%s1888_s1 + $0x38] sm:$0xff] }
   0x8   :  { %1026 = vmatprep.subr.mxu0 %v99_v6  ;;  %1146 = vmatprep.subr.mxu1 %v105_v14  ;;  %v24_v18 = vld [vmem:[%s1889_s0 + $0x8] sm:$0xff]  ;;  %v103_v21 = vld [vmem:[%s1888_s1 + $0x100] sm:$0xff]  ;;  %v93_v23 = vld [vmem:[%s1888_s1 + $0xb0] sm:$0xff] }
   0x9   :  { %1027 = vmatpush3.msra.mxu0 %v83_v7  ;;  %1147 = vmatpush3.msra.mxu1 %v105_v14  ;;  %v25_v24 = vld [vmem:[%s1889_s0 + $0x10] sm:$0xff]  ;;  %v28_v26 = vld [vmem:[%s1889_s0 + $0x28] sm:$0xff]  ;;  %v31_v28 = vld [vmem:[%s1889_s0 + $0x40] sm:$0xff] }
   0xa   :  { %1028 = vmatprep.subr.mxu0 %v98_v8  ;;  %1148 = vmatprep.subr.mxu1 %v104_v16  ;;  %v77_v25 = vld [vmem:[%s1888_s1 + $0x30] sm:$0xff]  ;;  %v92_v27 = vld [vmem:[%s1888_s1 + $0xa8] sm:$0xff]  ;;  %v91_v30 = vld [vmem:[%s1888_s1 + $0xa0] sm:$0xff] }
   0xb   :  { %1029 = vmatpush3.msra.mxu0 %v82_v9  ;;  %220 = vmatprep.mubr.f32.mxu0 %v24_v18  ;;  %v76_v29 = vld [vmem:[%s1888_s1 + $0x28] sm:$0xff]  ;;  %v75_v31 = vld [vmem:[%s1888_s1 + $0x20] sm:$0xff]  ;;  %v34_v32 = vld [vmem:[%s1889_s0 + $0x58] sm:$0xff] }
   0xc   :  { %1030 = vmatprep.subr.mxu0 %v97_v10  ;;  %1149 = vmatpush3.msra.mxu1 %v104_v16  ;;  %v90_v33 = vld [vmem:[%s1888_s1 + $0x98] sm:$0xff]  ;;  %v37_v34 = vld [vmem:[%s1889_s0 + $0x70] sm:$0xff]  ;;  %v40_v38 = vld [vmem:[%s1889_s0 + $0x88] sm:$0xff] }
   0xd   :  { %1031 = vmatpush3.msra.mxu0 %v81_v11  ;;  %1150 = vmatprep.subr.mxu1 %v103_v21  ;;  %v74_v35 = vld [vmem:[%s1888_s1 + $0x18] sm:$0xff]  ;;  %v89_v36 = vld [vmem:[%s1888_s1 + $0x90] sm:$0xff]  ;;  %v88_v39 = vld [vmem:[%s1888_s1 + $0x88] sm:$0xff] }
   0xe   :  { %1032 = vmatprep.subr.mxu0 %v96_v13  ;;  %1151 = vmatpush3.msra.mxu1 %v103_v21  ;;  %v73_v37 = vld [vmem:[%s1888_s1 + $0x10] sm:$0xff]  ;;  %v43_v40 = vld [vmem:[%s1889_s0 + $0xa0] sm:$0xff]  ;;  %v72_v41 = vld [vmem:[%s1888_s1 + $0x8] sm:$0xff] }
   0xf   :  { %1033 = vmatpush3.msra.mxu0 %v80_v15  ;;  %1152 = vmatprep.mubr.msk.f32.mxu1 %vm107_vm0, %v25_v24  ;;  %v87_v42 = vld [vmem:[%s1888_s1 + $0x80] sm:$0xff]  ;;  %v46_v44 = vld [vmem:[%s1889_s0 + $0xb8] sm:$0xff]  ;;  %v49_v46 = vld [vmem:[%s1889_s0 + $0xd0] sm:$0xff] }
  0x10   :  { %1034 = vmatprep.subr.mxu0 %v95_v17  ;;  %1153 = vmatmul.mubr.msk.f32.vlgmr.msra.gmra.mxu1 %vm107_vm0, %v28_v26  ;;  %v71_v43 = vld [vmem:[%s1888_s1] sm:$0xff]  ;;  %v52_v48 = vld [vmem:[%s1889_s0 + $0xe8] sm:$0xff]  ;;  %v26_v49 = vld [vmem:[%s1889_s0 + $0x18] sm:$0xff] }
  0x11   :  { %1035 = vmatpush3.msra.mxu0 %v79_v19  ;;  %1155 = vmatprep.mubr.msk.f32.mxu1 %vm107_vm0, %v31_v28  ;;  %v23_v45 = vld [vmem:[%s1889_s0] sm:$0xff]  ;;  %v30_v51 = vld [vmem:[%s1889_s0 + $0x38] sm:$0xff]  ;;  %v29_v53 = vld [vmem:[%s1889_s0 + $0x30] sm:$0xff] }
  0x12   :  { %1036 = vmatprep.subr.mxu0 %v94_v20  ;;  %v27_v47 = vld [vmem:[%s1889_s0 + $0x20] sm:$0xff]  ;;  %v58_v52 = vld [vmem:[%s1889_s0 + $0x118] sm:$0xff]  ;;  %v61_v54 = vld [vmem:[%s1889_s0 + $0x130] sm:$0xff]  ;;  %v1232_v20 = vmov 0.0  }
  0x13   :  { %1037 = vmatpush3.msra.mxu0 %v78_v22  ;;  %v55_v50 = vld [vmem:[%s1889_s0 + $0x100] sm:$0xff]  ;;  %v33_v55 = vld [vmem:[%s1889_s0 + $0x50] sm:$0xff]  ;;  %v64_v56 = vld [vmem:[%s1889_s0 + $0x148] sm:$0xff]  ;;  %1176 = vmatprep.subr.mxu1 %v1232_v20 }
  0x14   :  { %1038 = vmatprep.subr.mxu0 %v93_v23  ;;  %1156 = vmatmul.mubr.msk.f32.gmra.mxu1 %vm107_vm0, %v34_v32  ;;  %v32_v57 = vld [vmem:[%s1889_s0 + $0x48] sm:$0xff]  ;;  %v67_v58 = vld [vmem:[%s1889_s0 + $0x160] sm:$0xff]  ;;  %v70_v60 = vld [vmem:[%s1889_s0 + $0x178] sm:$0xff] }
  0x15   :  { %1039 = vmatpush3.msra.mxu0 %v77_v25  ;;  %1158 = vmatprep.mubr.msk.f32.mxu1 %vm107_vm0, %v37_v34  ;;  %v36_v59 = vld [vmem:[%s1889_s0 + $0x68] sm:$0xff]  ;;  %v35_v61 = vld [vmem:[%s1889_s0 + $0x60] sm:$0xff]  ;;  %v38_v63 = vld [vmem:[%s1889_s0 + $0x78] sm:$0xff] }
  0x16   :  { %1040 = vmatprep.subr.mxu0 %v92_v27  ;;  %v39_v62 = vld [vmem:[%s1889_s0 + $0x80] sm:$0xff]  ;;  %v42_v0 = vld [vmem:[%s1889_s0 + $0x98] sm:$0xff]  ;;  %v41_v1 = vld [vmem:[%s1889_s0 + $0x90] sm:$0xff] }
  0x17   :  { %1041 = vmatpush3.msra.mxu0 %v76_v29  ;;  %v45_v2 = vld [vmem:[%s1889_s0 + $0xb0] sm:$0xff]  ;;  %v44_v3 = vld [vmem:[%s1889_s0 + $0xa8] sm:$0xff]  ;;  %v47_v5 = vld [vmem:[%s1889_s0 + $0xc0] sm:$0xff] }
  0x18   :  { %1042 = vmatprep.subr.mxu0 %v91_v30  ;;  %1159 = vmatmul.mubr.msk.f32.gmra.mxu1 %vm107_vm0, %v40_v38  ;;  %v48_v4 = vld [vmem:[%s1889_s0 + $0xc8] sm:$0xff]  ;;  %v51_v6 = vld [vmem:[%s1889_s0 + $0xe0] sm:$0xff]  ;;  %v50_v7 = vld [vmem:[%s1889_s0 + $0xd8] sm:$0xff] }
  0x19   :  { %1043 = vmatpush3.msra.mxu0 %v75_v31  ;;  %1161 = vmatprep.mubr.msk.f32.mxu1 %vm107_vm0, %v43_v40  ;;  %v54_v8 = vld [vmem:[%s1889_s0 + $0xf8] sm:$0xff]  ;;  %v53_v9 = vld [vmem:[%s1889_s0 + $0xf0] sm:$0xff]  ;;  %v56_v11 = vld [vmem:[%s1889_s0 + $0x108] sm:$0xff] }
  0x1a   :  { %1044 = vmatprep.subr.mxu0 %v90_v33  ;;  %v57_v10 = vld [vmem:[%s1889_s0 + $0x110] sm:$0xff]  ;;  %v60_v12 = vld [vmem:[%s1889_s0 + $0x128] sm:$0xff]  ;;  %v59_v13 = vld [vmem:[%s1889_s0 + $0x120] sm:$0xff] }
  0x1b   :  { %1045 = vmatpush3.msra.mxu0 %v74_v35  ;;  %v63_v14 = vld [vmem:[%s1889_s0 + $0x140] sm:$0xff]  ;;  %v62_v15 = vld [vmem:[%s1889_s0 + $0x138] sm:$0xff]  ;;  %v65_v17 = vld [vmem:[%s1889_s0 + $0x150] sm:$0xff] }
  0x1c   :  { %1046 = vmatprep.subr.mxu0 %v89_v36  ;;  %1162 = vmatmul.mubr.msk.f32.gmra.mxu1 %vm107_vm0, %v46_v44  ;;  %v66_v16 = vld [vmem:[%s1889_s0 + $0x158] sm:$0xff]  ;;  %v69_v18 = vld [vmem:[%s1889_s0 + $0x170] sm:$0xff]  ;;  %v68_v19 = vld [vmem:[%s1889_s0 + $0x168] sm:$0xff] }
  0x1d   :  { %1047 = vmatpush3.msra.mxu0 %v73_v37  ;;  %1164 = vmatprep.mubr.msk.f32.mxu1 %vm107_vm0, %v49_v46  ;;  %v1541_v21 = vld [vmem:[%s1890_s2 + $0x38] sm:$0xff]  ;;  %v1548_v22 = vld [vmem:[%s1890_s2 + $0x30] sm:$0xff]  ;;  %v1553_v23 = vld [vmem:[%s1890_s2 + $0x28] sm:$0xff] }
  0x1e   :  { %1048 = vmatprep.subr.mxu0 %v88_v39  ;;  %1177 = vmatpush3.msra.mxu1 %v1541_v21  ;;  %v1562_v24 = vld [vmem:[%s1890_s2 + $0x20] sm:$0xff]  ;;  %v1569_v25 = vld [vmem:[%s1890_s2 + $0x18] sm:$0xff]  ;;  %v1576_v26 = vld [vmem:[%s1890_s2 + $0x10] sm:$0xff] }
  0x1f   :  { %1049 = vmatpush3.msra.mxu0 %v72_v41  ;;  %1178 = vmatprep.subr.mxu1 %v1232_v20  ;;  %v1583_v27 = vld [vmem:[%s1890_s2 + $0x8] sm:$0xff]  ;;  %v1590_v28 = vld [vmem:[%s1890_s2] sm:$0xff] }
  0x20   :  { %1050 = vmatprep.subr.mxu0 %v87_v42  ;;  %1165 = vmatmul.mubr.msk.f32.gmra.mxu1 %vm107_vm0, %v52_v48 }
  0x21   :  { %1051 = vmatpush3.msra.mxu0 %v71_v43  ;;  %1167 = vmatprep.mubr.msk.f32.mxu1 %vm107_vm0, %v55_v50 }
  0x22   :  { %221 = vmatmul.mubr.f32.vlgmr.msra.gmra.mxu0 %v23_v45  ;;  %1179 = vmatpush3.msra.mxu1 %v1548_v22 }
  0x23   :  { %225 = vmatprep.mubr.f32.mxu0 %v27_v47  ;;  %1180 = vmatprep.subr.mxu1 %v1232_v20 }
  0x24   :  { %1168 = vmatmul.mubr.msk.f32.gmra.mxu1 %vm107_vm0, %v58_v52 }
  0x25   :  { %1170 = vmatprep.mubr.msk.f32.mxu1 %vm107_vm0, %v61_v54  ;;  %1181 = vmatpush3.msra.mxu1 %v1553_v23 }
  0x26   :  { %226 = vmatmul.mubr.f32.gmra.mxu0 %v26_v49  ;;  %1182 = vmatprep.subr.mxu1 %v1232_v20 }
  0x27   :  { %230 = vmatprep.mubr.f32.mxu0 %v30_v51  ;;  %1183 = vmatpush3.msra.mxu1 %v1562_v24 }
  0x28   :  { %1171 = vmatmul.mubr.msk.f32.gmra.mxu1 %vm107_vm0, %v64_v56  ;;  %1184 = vmatprep.subr.mxu1 %v1232_v20 }
  0x29   :  { %1173 = vmatprep.mubr.msk.f32.mxu1 %vm107_vm0, %v67_v58  ;;  %1185 = vmatpush3.msra.mxu1 %v1569_v25 }
  0x2a   :  { %231 = vmatmul.mubr.f32.gmra.mxu0 %v29_v53  ;;  %1186 = vmatprep.subr.mxu1 %v1232_v20 }
  0x2b   :  { %235 = vmatprep.mubr.f32.mxu0 %v33_v55  ;;  %1187 = vmatpush3.msra.mxu1 %v1576_v26 }
  0x2c   :  { %1174 = vmatmul.mubr.msk.f32.gmra.mxu1 %vm107_vm0, %v70_v60  ;;  %1188 = vmatprep.subr.mxu1 %v1232_v20  ;;  %vm1896_vm0 = vcmask 523264  }
  0x2d   :  { %1189 = vmatpush3.msra.mxu1 %v1583_v27  ;;  %1192 = vmatprep.mubr.msk.f32.mxu1 %vm1233_vm1, %v1232_v20 }
  0x2e   :  { %236 = vmatmul.mubr.f32.gmra.mxu0 %v32_v57  ;;  %1190 = vmatprep.subr.mxu1 %v1232_v20 }
  0x2f   :  { %240 = vmatprep.mubr.f32.mxu0 %v36_v59  ;;  %1191 = vmatpush3.msra.mxu1 %v1590_v28 }
  0x30   :  { %1195 = vmatprep.subr.mxu1 %v1232_v20 }
  0x32   :  { %241 = vmatmul.mubr.f32.gmra.mxu0 %v35_v61 }
  0x33   :  { %245 = vmatprep.mubr.f32.mxu0 %v39_v62 }
  0x36   :  { %246 = vmatmul.mubr.f32.gmra.mxu0 %v38_v63 }
  0x37   :  { %250 = vmatprep.mubr.f32.mxu0 %v42_v0 }
  0x3a   :  { %251 = vmatmul.mubr.f32.gmra.mxu0 %v41_v1 }
  0x3b   :  { %255 = vmatprep.mubr.f32.mxu0 %v45_v2 }
  0x3e   :  { %256 = vmatmul.mubr.f32.gmra.mxu0 %v44_v3 }
  0x3f   :  { %260 = vmatprep.mubr.f32.mxu0 %v48_v4 }
  0x42   :  { %261 = vmatmul.mubr.f32.gmra.mxu0 %v47_v5 }
  0x43   :  { %265 = vmatprep.mubr.f32.mxu0 %v51_v6 }
  0x46   :  { %266 = vmatmul.mubr.f32.gmra.mxu0 %v50_v7 }
  0x47   :  { %270 = vmatprep.mubr.f32.mxu0 %v54_v8 }
  0x4a   :  { %271 = vmatmul.mubr.f32.gmra.mxu0 %v53_v9 }
  0x4b   :  { %275 = vmatprep.mubr.f32.mxu0 %v57_v10 }
  0x4e   :  { %276 = vmatmul.mubr.f32.gmra.mxu0 %v56_v11 }
  0x4f   :  { %280 = vmatprep.mubr.f32.mxu0 %v60_v12 }
  0x52   :  { %281 = vmatmul.mubr.f32.gmra.mxu0 %v59_v13 }
  0x53   :  { %285 = vmatprep.mubr.f32.mxu0 %v63_v14 }
  0x56   :  { %286 = vmatmul.mubr.f32.gmra.mxu0 %v62_v15 }
  0x57   :  { %290 = vmatprep.mubr.f32.mxu0 %v66_v16 }
  0x5a   :  { %291 = vmatmul.mubr.f32.gmra.mxu0 %v65_v17 }
  0x5b   :  { %295 = vmatprep.mubr.f32.mxu0 %v69_v18 }
  0x5e   :  { %296 = vmatmul.mubr.f32.gmra.mxu0 %v68_v19 }
  0xd0   :  { %v1154_v35 = vpop.f32.mrf.mxu1 }
  0xd2   :  { %v367_v38 = vpop.f32.mrf.mxu1 }
  0xd4   :  { %v1157_v40 = vpop.f32.mrf.mxu1 }
  0xd6   :  { %v377_v43 = vpop.f32.mrf.mxu1 }
  0xd8   :  { %v1160_v45 = vpop.f32.mrf.mxu1 }
  0xda   :  { %v387_v48 = vpop.f32.mrf.mxu1 }
  0xdc   :  { %v1163_v51 = vpop.f32.mrf.mxu1 }
  0xde   :  { %v397_v58 = vpop.f32.mrf.mxu1 }
  0xe0   :  { %v1166_v63 = vpop.f32.mrf.mxu1 }
  0xe2   :  { %v1052_v29 = vpop.f32.mrf.mxu0  ;;  %v407_v10 = vpop.f32.mrf.mxu1 }
  0xe4   :  { %v1053_v30 = vpop.f32.mrf.mxu0  ;;  %v1169_v17 = vpop.f32.mrf.mxu1 }
  0xe5   :  { %v1054_v53 = vadd.f32 %v1053_v30, %v1052_v29 }
  0xe6   :  { %v1055_v31 = vpop.f32.mrf.mxu0 }
  0xe7   :  { %v1598_v60 = vadd.f32 %v1054_v53, %v367_v38 }
  0xe8   :  { %v1056_v32 = vpop.f32.mrf.mxu0 }
  0xe9   :  { %v1057_v50 = vadd.f32 %v1056_v32, %v1055_v31  ;;  %v447_v5 = vsel %vm1895_vm2, %v1598_v60, 0.0 }
  0xea   :  { %v1058_v33 = vpop.f32.mrf.mxu0 }
  0xeb   :  { %v1596_v56 = vadd.f32 %v1154_v35, %v1057_v50 }
  0xec   :  { %v1059_v34 = vpop.f32.mrf.mxu0 }
  0xed   :  { %v1060_v54 = vadd.f32 %v1059_v34, %v1058_v33  ;;  %v448_v1 = vsel %vm1895_vm2, %v1596_v56, 0.0 }
  0xee   :  { %v1061_v36 = vpop.f32.mrf.mxu0  ;;  %v449_v9 = vadd.f32 %v448_v1, %v447_v5 }
  0xef   :  { %v1600_v61 = vadd.f32 %v1060_v54, %v377_v43 }
  0xf0   :  { %v1062_v37 = vpop.f32.mrf.mxu0 }
  0xf1   :  { %v1063_v57 = vadd.f32 %v1062_v37, %v1061_v36  ;;  %v450_v6 = vsel %vm1895_vm2, %v1600_v61, 0.0  ;;  %v417_v36 = vpop.f32.mrf.mxu1 }
  0xf2   :  { %v1064_v39 = vpop.f32.mrf.mxu0  ;;  %v451_v15 = vadd.f32 %v450_v6, %v449_v9 }
  0xf3   :  { %v1604_v2 = vadd.f32 %v1157_v40, %v1063_v57  ;;  %v1172_v43 = vpop.f32.mrf.mxu1 }
  0xf4   :  { %v1065_v41 = vpop.f32.mrf.mxu0 }
  0xf5   :  { %v1066_v62 = vadd.f32 %v1065_v41, %v1064_v39  ;;  %v452_v12 = vsel %vm1895_vm2, %v1604_v2, 0.0  ;;  %v427_v54 = vpop.f32.mrf.mxu1 }
  0xf6   :  { %v1067_v42 = vpop.f32.mrf.mxu0  ;;  %v453_v30 = vadd.f32 %v452_v12, %v451_v15 }
  0xf7   :  { %v1610_v7 = vadd.f32 %v1066_v62, %v387_v48  ;;  %v1175_v62 = vpop.f32.mrf.mxu1 }
  0xf8   :  { %v1068_v44 = vpop.f32.mrf.mxu0 }
  0xf9   :  { %v1069_v3 = vadd.f32 %v1068_v44, %v1067_v42  ;;  %v454_v18 = vsel %vm1895_vm2, %v1610_v7, 0.0 }
  0xfa   :  { %v1070_v46 = vpop.f32.mrf.mxu0  ;;  %v455_v35 = vadd.f32 %v454_v18, %v453_v30 }
  0xfb   :  { %v1614_v13 = vadd.f32 %v1160_v45, %v1069_v3 }
  0xfc   :  { %v1071_v47 = vpop.f32.mrf.mxu0 }
  0xfd   :  { %v1072_v8 = vadd.f32 %v1071_v47, %v1070_v46  ;;  %v456_v32 = vsel %vm1895_vm2, %v1614_v13, 0.0 }
  0xfe   :  { %v1073_v49 = vpop.f32.mrf.mxu0  ;;  %v457_v41 = vadd.f32 %v456_v32, %v455_v35 }
  0xff   :  { %v1618_v19 = vadd.f32 %v1072_v8, %v397_v58 }
 0x100   :  { %v1074_v52 = vpop.f32.mrf.mxu0 }
 0x101   :  { %v1075_v14 = vadd.f32 %v1074_v52, %v1073_v49  ;;  %v458_v38 = vsel %vm1895_vm2, %v1618_v19, 0.0 }
 0x102   :  { %v1076_v55 = vpop.f32.mrf.mxu0  ;;  %v459_v47 = vadd.f32 %v458_v38, %v457_v41 }
 0x103   :  { %v1622_v33 = vadd.f32 %v1163_v51, %v1075_v14 }
 0x104   :  { %v1077_v59 = vpop.f32.mrf.mxu0 }
 0x105   :  { %v1078_v29 = vadd.f32 %v1077_v59, %v1076_v55  ;;  %v460_v44 = vsel %vm1895_vm2, %v1622_v33, 0.0 }
 0x106   :  { %v1079_v0 = vpop.f32.mrf.mxu0  ;;  %v461_v52 = vadd.f32 %v460_v44, %v459_v47  ;;  %v1669_v47 = vld [vmem:[%s1891_s3] sm:$0xff] }
 0x107   :  { %v1626_v39 = vadd.f32 %v1078_v29, %v407_v10  ;;  %v437_v10 = vpop.f32.mrf.mxu1 }
 0x108   :  { %v1080_v4 = vpop.f32.mrf.mxu0 }
 0x109   :  { %v1081_v34 = vadd.f32 %v1080_v4, %v1079_v0  ;;  %v462_v49 = vsel %vm1895_vm2, %v1626_v39, 0.0 }
 0x10a   :  { %v1082_v11 = vpop.f32.mrf.mxu0  ;;  %v463_v58 = vadd.f32 %v462_v49, %v461_v52 }
 0x10b   :  { %v1630_v45 = vadd.f32 %v1166_v63, %v1081_v34 }
 0x10c   :  { %v1083_v16 = vpop.f32.mrf.mxu0 }
 0x10d   :  { %v1084_v40 = vadd.f32 %v1083_v16, %v1082_v11  ;;  %v464_v55 = vsel %vm1895_vm2, %v1630_v45, 0.0 }
 0x10e   :  { %v1085_v31 = vpop.f32.mrf.mxu0  ;;  %v465_v3 = vadd.f32 %v464_v55, %v463_v58 }
 0x10f   :  { %v1634_v50 = vadd.f32 %v1084_v40, %v417_v36 }
 0x110   :  { %v1086_v37 = vpop.f32.mrf.mxu0 }
 0x111   :  { %v1087_v46 = vadd.f32 %v1086_v37, %v1085_v31  ;;  %v466_v63 = vsel %vm1895_vm2, %v1634_v50, 0.0 }
 0x112   :  { %v1088_v42 = vpop.f32.mrf.mxu0  ;;  %v467_v8 = vadd.f32 %v466_v63, %v465_v3 }
 0x113   :  { %v1638_v57 = vadd.f32 %v1169_v17, %v1087_v46  ;;  %v1663_v46 = vld [vmem:[%s1891_s3 + $0x8] sm:$0xff] }
 0x114   :  { %v1089_v48 = vpop.f32.mrf.mxu0 }
 0x115   :  { %v1090_v51 = vadd.f32 %v1089_v48, %v1088_v42  ;;  %v468_v5 = vsel %vm1895_vm2, %v1638_v57, 0.0 }
 0x116   :  { %v1091_v53 = vpop.f32.mrf.mxu0  ;;  %v469_v14 = vadd.f32 %v468_v5, %v467_v8 }
 0x117   :  { %v1642_v0 = vadd.f32 %v1090_v51, %v427_v54 }
 0x118   :  { %v1092_v59 = vpop.f32.mrf.mxu0 }
 0x119   :  { %v1093_v1 = vadd.f32 %v1092_v59, %v1091_v53  ;;  %v470_v11 = vsel %vm1895_vm2, %v1642_v0, 0.0 }
 0x11a   :  { %v1094_v4 = vpop.f32.mrf.mxu0  ;;  %v471_v18 = vadd.f32 %v470_v11, %v469_v14 }
 0x11b   :  { %v1646_v6 = vadd.f32 %v1172_v43, %v1093_v1 }
 0x11c   :  { %v1095_v9 = vpop.f32.mrf.mxu0 }
 0x11d   :  { %v1096_v12 = vadd.f32 %v1095_v9, %v1094_v4  ;;  %v472_v16 = vsel %vm1895_vm2, %v1646_v6, 0.0 }
 0x11e   :  { %v1097_v15 = vpop.f32.mrf.mxu0  ;;  %v473_v32 = vadd.f32 %v472_v16, %v471_v18 }
 0x11f   :  { %v1652_v17 = vadd.f32 %v1096_v12, %v437_v10 }
 0x120   :  { %v1098_v29 = vpop.f32.mrf.mxu0 }
 0x121   :  { %v474_v30 = vsel %vm1895_vm2, %v1652_v17, 0.0  ;;  %v1099_v31 = vadd.f32 %v1098_v29, %v1097_v15 }
 0x122   :  { %v475_v35 = vadd.f32 %v474_v30, %v473_v32 }
 0x123   :  { %v1656_v34 = vadd.f32 %v1175_v62, %v1099_v31 }
 0x125   :  { %v476_v36 = vsel %vm1895_vm2, %v1656_v34, 0.0 }
 0x126   :  { %v477_v37 = vadd.f32 %v476_v36, %v475_v35 }
 0x128   :  { %v478_v38 = vrot.slane %v477_v37, 4 }
 0x12a   :  { %v479_v40 = vadd.f32 %v478_v38, %v477_v37 }
 0x12c   :  { %v480_v41 = vrot.slane %v479_v40, 2 }
 0x12e   :  { %v481_v42 = vadd.f32 %v480_v41, %v479_v40 }
 0x130   :  { %v482_v43 = vrot.slane %v481_v42, 1 }
 0x132   :  { %v483_v44 = vadd.f32 %v482_v43, %v481_v42 }
 0x134   :  { %1193 = vmatmul.mubr.msk.f32.vlgmr.msra.gmra.mxu1 %vm1895_vm2, %v483_v44 }
 0x135   :  { %1196 = vmatpush3.msra.mxu1 %v1663_v46  ;;  %1199 = vmatprep.mubr.msk.f32.mxu1 %vm1233_vm1, %v1232_v20 }
 0x136   :  { %1197 = vmatprep.subr.mxu1 %v1232_v20 }
 0x137   :  { %1198 = vmatpush3.msra.mxu1 %v1669_v47 }
 0x138   :  { %1202 = vmatprep.subr.mxu1 %v1232_v20 }
 0x1f4   :  { %v561_v48 = vpop.f32.mrf.mxu1 }
 0x1f5   :  { %1200 = vmatmul.mubr.msk.f32.vlgmr.msra.gmra.mxu1 %vm567_vm3, %v561_v48 }
 0x1f6   :  { %v1194_v49 = vpop.f32.mrf.mxu1  ;;  %1203 = vmatpush3.msra.mxu1 %v1541_v21  ;;  %1218 = vmatprep.mubr.msk.f32.mxu1 %vm1233_vm1, %v1232_v20  ;;  %v642_v21 = vlaneseq }
 0x1f7   :  { %1204 = vmatprep.subr.mxu1 %v1232_v20 }
 0x1f8   :  { %1205 = vmatpush3.msra.mxu1 %v1548_v22  ;;  %v1696_v22 = vshrl.u32 %v642_v21, 7 }
 0x1f9   :  { %1206 = vmatprep.subr.mxu1 %v1232_v20 }
 0x1fa   :  { %1207 = vmatpush3.msra.mxu1 %v1553_v23  ;;  %v644_v23 = vsub.s32 0, %v1696_v22  ;;  %v1018_v22 = vld [vmem:[%s1892_s4] ss:$0 sm:$0xff] }
 0x1fb   :  { %1208 = vmatprep.subr.mxu1 %v1232_v20 }
 0x1fc   :  { %1209 = vmatpush3.msra.mxu1 %v1562_v24 }
 0x1fd   :  { %1210 = vmatprep.subr.mxu1 %v1232_v20 }
 0x1fe   :  { %1211 = vmatpush3.msra.mxu1 %v1569_v25 }
 0x1ff   :  { %1212 = vmatprep.subr.mxu1 %v1232_v20 }
 0x200   :  { %1213 = vmatpush3.msra.mxu1 %v1576_v26 }
 0x201   :  { %1214 = vmatprep.subr.mxu1 %v1232_v20 }
 0x202   :  { %1215 = vmatpush3.msra.mxu1 %v1583_v27 }
 0x203   :  { %1216 = vmatprep.subr.mxu1 %v1232_v20 }
 0x204   :  { %1217 = vmatpush3.msra.mxu1 %v1590_v28 }
 0x205   :  { %1221 = vmatprep.subr.mxu1 %v1232_v20 }
 0x2b5   :  { %v637_v24 = vpop.f32.mrf.mxu1 }
 0x2b6   :  { %v641_v25 = vmul.f32 0.001953125, %v637_v24 }
 0x2b7   :  { %v1201_v51 = vpop.f32.mrf.mxu1 }
 0x2b8   :  { %v645_v26 = vrot.slane %v641_v25, %v644_v23 }
 0x2ba   :  { %v1702_v52 = vsub.f32 %v1598_v60, %v645_v26  ;;  %v1705_v27 = vsub.f32 %v1596_v56, %v645_v26  ;;  %v1708_v28 = vsub.f32 %v1600_v61, %v645_v26  ;;  %v1711_v53 = vsub.f32 %v1604_v2, %v645_v26 }
 0x2bb   :  { %v1718_v58 = vsub.f32 %v1610_v7, %v645_v26  ;;  %v1723_v56 = vsub.f32 %v1614_v13, %v645_v26  ;;  %v1730_v63 = vsub.f32 %v1618_v19, %v645_v26  ;;  %v1736_v13 = vsub.f32 %v1622_v33, %v645_v26 }
 0x2bc   :  { %v662_v54 = vmul.f32 %v1702_v52, %v1702_v52  ;;  %v663_v55 = vmul.f32 %v1705_v27, %v1705_v27  ;;  %v664_v60 = vmul.f32 %v1708_v28, %v1708_v28  ;;  %v665_v61 = vmul.f32 %v1711_v53, %v1711_v53 }
 0x2bd   :  { %v666_v7 = vmul.f32 %v1718_v58, %v1718_v58  ;;  %v667_v4 = vmul.f32 %v1723_v56, %v1723_v56  ;;  %v1742_v9 = vsub.f32 %v1626_v39, %v645_v26  ;;  %v668_v19 = vmul.f32 %v1730_v63, %v1730_v63 }
 0x2be   :  { %v678_v2 = vsel %vm1895_vm2, %v662_v54, 0.0  ;;  %v679_v59 = vsel %vm1895_vm2, %v663_v55, 0.0  ;;  %v681_v1 = vsel %vm1895_vm2, %v664_v60, 0.0  ;;  %v683_v5 = vsel %vm1895_vm2, %v665_v61, 0.0 }
 0x2bf   :  { %v680_v62 = vadd.f32 %v679_v59, %v678_v2  ;;  %v685_v10 = vsel %vm1895_vm2, %v666_v7, 0.0  ;;  %v1748_v12 = vsub.f32 %v1630_v45, %v645_v26  ;;  %v669_v33 = vmul.f32 %v1736_v13, %v1736_v13 }
 0x2c0   :  { %v687_v14 = vsel %vm1895_vm2, %v667_v4, 0.0  ;;  %v1754_v16 = vsub.f32 %v1634_v50, %v645_v26  ;;  %v670_v39 = vmul.f32 %v1742_v9, %v1742_v9  ;;  %v689_v18 = vsel %vm1895_vm2, %v668_v19, 0.0 }
 0x2c1   :  { %v682_v3 = vadd.f32 %v681_v1, %v680_v62  ;;  %v1760_v30 = vsub.f32 %v1638_v57, %v645_v26  ;;  %v671_v45 = vmul.f32 %v1748_v12, %v1748_v12  ;;  %v691_v31 = vsel %vm1895_vm2, %v669_v33, 0.0 }
 0x2c2   :  { %v658_v35 = vsub.f32 %v1642_v0, %v645_v26  ;;  %v672_v50 = vmul.f32 %v1754_v16, %v1754_v16  ;;  %v693_v36 = vsel %vm1895_vm2, %v670_v39, 0.0  ;;  %v659_v38 = vsub.f32 %v1646_v6, %v645_v26 }
 0x2c3   :  { %v684_v8 = vadd.f32 %v683_v5, %v682_v3  ;;  %v673_v57 = vmul.f32 %v1760_v30, %v1760_v30  ;;  %v695_v40 = vsel %vm1895_vm2, %v671_v45, 0.0  ;;  %v660_v42 = vsub.f32 %v1652_v17, %v645_v26 }
 0x2c4   :  { %v674_v43 = vmul.f32 %v658_v35, %v658_v35  ;;  %v697_v44 = vsel %vm1895_vm2, %v672_v50, 0.0  ;;  %v661_v48 = vsub.f32 %v1656_v34, %v645_v26  ;;  %v675_v49 = vmul.f32 %v659_v38, %v659_v38 }
 0x2c5   :  { %v686_v11 = vadd.f32 %v685_v10, %v684_v8  ;;  %v699_v21 = vsel %vm1895_vm2, %v673_v57, 0.0  ;;  %v676_v25 = vmul.f32 %v660_v42, %v660_v42 }
 0x2c6   :  { %v701_v6 = vsel %vm1895_vm2, %v674_v43, 0.0  ;;  %v677_v54 = vmul.f32 %v661_v48, %v661_v48  ;;  %v703_v55 = vsel %vm1895_vm2, %v675_v49, 0.0 }
 0x2c7   :  { %v688_v15 = vadd.f32 %v687_v14, %v686_v11  ;;  %v705_v17 = vsel %vm1895_vm2, %v676_v25, 0.0 }
 0x2c8   :  { %v707_v2 = vsel %vm1895_vm2, %v677_v54, 0.0 }
 0x2c9   :  { %v690_v29 = vadd.f32 %v689_v18, %v688_v15 }
 0x2cb   :  { %v692_v32 = vadd.f32 %v691_v31, %v690_v29 }
 0x2cd   :  { %v694_v37 = vadd.f32 %v693_v36, %v692_v32 }
 0x2cf   :  { %v696_v41 = vadd.f32 %v695_v40, %v694_v37 }
 0x2d1   :  { %v698_v0 = vadd.f32 %v697_v44, %v696_v41 }
 0x2d3   :  { %v700_v24 = vadd.f32 %v699_v21, %v698_v0 }
 0x2d5   :  { %v702_v51 = vadd.f32 %v701_v6, %v700_v24 }
 0x2d7   :  { %v704_v60 = vadd.f32 %v703_v55, %v702_v51 }
 0x2d9   :  { %v706_v61 = vadd.f32 %v705_v17, %v704_v60 }
 0x2db   :  { %v708_v59 = vadd.f32 %v707_v2, %v706_v61 }
 0x2dd   :  { %v709_v62 = vrot.slane %v708_v59, 4 }
 0x2df   :  { %v710_v34 = vadd.f32 %v709_v62, %v708_v59 }
 0x2e1   :  { %v711_v26 = vrot.slane %v710_v34, 2 }
 0x2e3   :  { %v712_v7 = vadd.f32 %v711_v26, %v710_v34 }
 0x2e5   :  { %v713_v1 = vrot.slane %v712_v7, 1 }
 0x2e7   :  { %v714_v3 = vadd.f32 %v713_v1, %v712_v7 }
 0x2e9   :  { %1219 = vmatmul.mubr.msk.f32.vlgmr.msra.gmra.mxu1 %vm1895_vm2, %v714_v3  ;;  %vm1897_vm2 = vmmov %vm1896_vm0 }
 0x2ea   :  { %1222 = vmatpush3.msra.mxu1 %v1663_v46  ;;  %1225 = vmatprep.mubr.msk.f32.mxu1 %vm1233_vm1, %v1232_v20 }
 0x2eb   :  { %1223 = vmatprep.subr.mxu1 %v1232_v20 }
 0x2ec   :  { %1224 = vmatpush3.msra.mxu1 %v1669_v47 }
 0x3a9   :  { %v784_v4 = vpop.f32.mrf.mxu1 }
 0x3aa   :  { %1226 = vmatmul.mubr.msk.f32.vlgmr.msra.gmra.mxu1 %vm567_vm3, %v784_v4 }
 0x3ab   :  { %v1220_v5 = vpop.f32.mrf.mxu1 }
 0x46a   :  { %v857_v8 = vpop.f32.mrf.mxu1 }
 0x46b   :  { %v861_v19 = vmul.f32 0.001953125, %v857_v8 }
 0x46c   :  { %v1227_v10 = vpop.f32.mrf.mxu1 }
 0x46d   :  { %v862_v11 = vadd.f32 1e-05, %v861_v19 }
 0x46f   :  { %1230 = vrsqrt.f32 %v862_v11 }
 0x47c   :  { %v1231_v33 = vpop.eup %1230 }
 0x47d   :  { %v867_v46 = vrot.slane %v1231_v33, %v644_v23 }
 0x47f   :  { %v868_v14 = vmul.f32 %v867_v46, %v1702_v52  ;;  %v869_v15 = vmul.f32 %v867_v46, %v1705_v27  ;;  %v870_v20 = vmul.f32 %v867_v46, %v1708_v28  ;;  %v871_v47 = vmul.f32 %v867_v46, %v1711_v53 }
 0x480   :  { %v872_v39 = vmul.f32 %v867_v46, %v1718_v58  ;;  %v873_v18 = vmul.f32 %v867_v46, %v1723_v56  ;;  %v874_v29 = vmul.f32 %v867_v46, %v1730_v63  ;;  %v875_v45 = vmul.f32 %v867_v46, %v1736_v13 }
 0x481   :  { %v876_v23 = vmul.f32 %v867_v46, %v1742_v9  ;;  %v877_v52 = vmul.f32 %v867_v46, %v1748_v12  ;;  %v878_v27 = vmul.f32 %v867_v46, %v1754_v16  ;;  %v879_v28 = vmul.f32 %v867_v46, %v1760_v30  ;;  %v1019_v9 = vld [vmem:[%s1893_s5] ss:$0 sm:$0xff] }
 0x482   :  { %v880_v53 = vmul.f32 %v867_v46, %v658_v35  ;;  %v881_v58 = vmul.f32 %v867_v46, %v659_v38  ;;  %v882_v31 = vmul.f32 %v867_v46, %v660_v42  ;;  %v883_v56 = vmul.f32 %v867_v46, %v661_v48 }
 0x483   :  { %v891_v32 = vmul.f32 %v1018_v22, %v868_v14  ;;  %v892_v63 = vmul.f32 %v1018_v22, %v869_v15  ;;  %v893_v50 = vmul.f32 %v1018_v22, %v870_v20  ;;  %v894_v13 = vmul.f32 %v1018_v22, %v871_v47 }
 0x484   :  { %v895_v36 = vmul.f32 %v1018_v22, %v872_v39  ;;  %v896_v37 = vmul.f32 %v1018_v22, %v873_v18  ;;  %v897_v57 = vmul.f32 %v1018_v22, %v874_v29  ;;  %v898_v40 = vmul.f32 %v1018_v22, %v875_v45 }
 0x485   :  { %v899_v12 = vmul.f32 %v1018_v22, %v876_v23  ;;  %v900_v16 = vmul.f32 %v1018_v22, %v877_v52  ;;  %v901_v41 = vmul.f32 %v1018_v22, %v878_v27  ;;  %v902_v30 = vmul.f32 %v1018_v22, %v879_v28 }
 0x486   :  { %v903_v35 = vmul.f32 %v1018_v22, %v880_v53  ;;  %v904_v38 = vmul.f32 %v1018_v22, %v881_v58  ;;  %v905_v42 = vmul.f32 %v1018_v22, %v882_v31  ;;  %v906_v43 = vmul.f32 %v1018_v22, %v883_v56 }
 0x487   :  { %v914_v44 = vadd.f32 %v1019_v9, %v891_v32  ;;  %v915_v0 = vadd.f32 %v1019_v9, %v892_v63  ;;  %v916_v48 = vadd.f32 %v1019_v9, %v893_v50  ;;  %v917_v49 = vadd.f32 %v1019_v9, %v894_v13 }
 0x488   :  { %v918_v21 = vadd.f32 %v1019_v9, %v895_v36  ;;  %v919_v24 = vadd.f32 %v1019_v9, %v896_v37  ;;  %v920_v25 = vadd.f32 %v1019_v9, %v897_v57  ;;  %v921_v6 = vadd.f32 %v1019_v9, %v898_v40 }
 0x489   :  { %v922_v51 = vadd.f32 %v1019_v9, %v899_v12  ;;  %v923_v54 = vadd.f32 %v1019_v9, %v900_v16  ;;  %v924_v55 = vadd.f32 %v1019_v9, %v901_v41  ;;  %v925_v60 = vadd.f32 %v1019_v9, %v902_v30 }
 0x48a   :  { %v926_v17 = vadd.f32 %v1019_v9, %v903_v35  ;;  %v927_v61 = vadd.f32 %v1019_v9, %v904_v38  ;;  %v928_v2 = vadd.f32 %v1019_v9, %v905_v42  ;;  %v929_v59 = vadd.f32 %v1019_v9, %v906_v43 }
 0x48b   :  { %vm930_vm4 = vcmp.gt.f32.partialorder %v914_v44, 0.0  ;;  %vm931_vm5 = vcmp.gt.f32.partialorder %v915_v0, 0.0  ;;  %vm932_vm6 = vcmp.gt.f32.partialorder %v916_v48, 0.0  ;;  %vm933_vm7 = vcmp.gt.f32.partialorder %v917_v49, 0.0 }
 0x48c   :  { %vm934_vm8 = vcmp.gt.f32.partialorder %v918_v21, 0.0  ;;  %vm935_vm9 = vcmp.gt.f32.partialorder %v919_v24, 0.0  ;;  %vm936_vm10 = vcmp.gt.f32.partialorder %v920_v25, 0.0  ;;  %vm937_vm11 = vcmp.gt.f32.partialorder %v921_v6, 0.0 }
 0x48d   :  { %vm938_vm12 = vcmp.gt.f32.partialorder %v922_v51, 0.0  ;;  %vm939_vm13 = vcmp.gt.f32.partialorder %v923_v54, 0.0  ;;  %vm940_vm14 = vcmp.gt.f32.partialorder %v924_v55, 0.0  ;;  %vm941_vm15 = vcmp.gt.f32.partialorder %v925_v60, 0.0 }
 0x48e   :  { %vm943_vm1 = vcmp.gt.f32.partialorder %v927_v61, 0.0  ;;  %vm944_vm3 = vcmp.gt.f32.partialorder %v928_v2, 0.0  ;;  %v946_v62 = vmul.f32 0.2, %v914_v44  ;;  %v947_v34 = vmul.f32 0.2, %v915_v0 }
 0x48f   :  { %v948_v26 = vmul.f32 0.2, %v916_v48  ;;  %v949_v7 = vmul.f32 0.2, %v917_v49  ;;  %v950_v1 = vmul.f32 0.2, %v918_v21 }
 0x490   :  { %v951_v3 = vmul.f32 0.2, %v919_v24  ;;  %v952_v4 = vmul.f32 0.2, %v920_v25  ;;  %v953_v5 = vmul.f32 0.2, %v921_v6  ;;  %v962_v19 = vsel %vm930_vm4, %v914_v44, %v946_v62  ;;  %vm1898_vm4 = vmmov %vm1896_vm0 }
 0x491   :  { %v954_v8 = vmul.f32 0.2, %v922_v51  ;;  %v955_v10 = vmul.f32 0.2, %v923_v54  ;;  %v956_v11 = vmul.f32 0.2, %v924_v55  ;;  %v963_v46 = vsel %vm931_vm5, %v915_v0, %v947_v34  ;;  %vm1900_vm5 = vmmov %vm1896_vm0 }
 0x492   :  { %v957_v33 = vmul.f32 0.2, %v925_v60  ;;  %978 = vst.msk [vmem:[%s1894_s6] sm:$0xff] %vm1896_vm0, %v962_v19  ;;  %v958_v14 = vmul.f32 0.2, %v926_v17  ;;  %v964_v47 = vsel %vm932_vm6, %v916_v48, %v948_v26  ;;  %v965_v18 = vsel %vm933_vm7, %v917_v49, %v949_v7  ;;  %vm1901_vm6 = vmmov %vm1896_vm0 }
 0x493   :  { %v959_v15 = vmul.f32 0.2, %v927_v61  ;;  %v960_v20 = vmul.f32 0.2, %v928_v2  ;;  %979 = vst.msk [vmem:[%s1894_s6 + $0x8] sm:$0xff] %vm1897_vm2, %v963_v46  ;;  %v966_v29 = vsel %vm934_vm8, %v918_v21, %v950_v1  ;;  %v967_v45 = vsel %vm935_vm9, %v919_v24, %v951_v3  ;;  %vm1899_vm2 = vmmov %vm1896_vm0 }
 0x494   :  { %v961_v39 = vmul.f32 0.2, %v929_v59  ;;  %980 = vst.msk [vmem:[%s1894_s6 + $0x10] sm:$0xff] %vm1898_vm4, %v964_v47  ;;  %v968_v22 = vsel %vm936_vm10, %v920_v25, %v952_v4  ;;  %v969_v23 = vsel %vm937_vm11, %v921_v6, %v953_v5  ;;  %v970_v52 = vsel %vm938_vm12, %v922_v51, %v954_v8  ;;  %vm1903_vm8 = vmmov %vm1896_vm0 }
 0x495   :  { %v971_v27 = vsel %vm939_vm13, %v923_v54, %v955_v10  ;;  %981 = vst.msk [vmem:[%s1894_s6 + $0x18] sm:$0xff] %vm1899_vm2, %v965_v18  ;;  %v972_v28 = vsel %vm940_vm14, %v924_v55, %v956_v11  ;;  %v973_v53 = vsel %vm941_vm15, %v925_v60, %v957_v33  ;;  %vm1902_vm7 = vcmp.gt.f32.partialorder %v926_v17, 0.0  ;;  %vm1904_vm9 = vmmov %vm1896_vm0 }
 0x496   :  { %982 = vst.msk [vmem:[%s1894_s6 + $0x20] sm:$0xff] %vm1900_vm5, %v966_v29  ;;  %v974_v58 = vsel %vm1902_vm7, %v926_v17, %v958_v14  ;;  %v975_v31 = vsel %vm943_vm1, %v927_v61, %v959_v15  ;;  %vm1905_vm10 = vmmov %vm1896_vm0  ;;  %v976_v56 = vsel %vm944_vm3, %v928_v2, %v960_v20  ;;  %vm1907_vm12 = vcmp.gt.f32.partialorder %v929_v59, 0.0 }
 0x497   :  { %983 = vst.msk [vmem:[%s1894_s6 + $0x28] sm:$0xff] %vm1901_vm6, %v967_v45  ;;  %vm1906_vm11 = vmmov %vm1896_vm0  ;;  %v977_v32 = vsel %vm1907_vm12, %v929_v59, %v961_v39 }
 0x498   :  { %984 = vst.msk [vmem:[%s1894_s6 + $0x30] sm:$0xff] %vm1903_vm8, %v968_v22  ;;  %vm1908_vm13 = vmmov %vm1896_vm0 }
 0x499   :  { %985 = vst.msk [vmem:[%s1894_s6 + $0x38] sm:$0xff] %vm1904_vm9, %v969_v23  ;;  %vm1909_vm14 = vmmov %vm1896_vm0 }
 0x49a   :  { %986 = vst.msk [vmem:[%s1894_s6 + $0x40] sm:$0xff] %vm1905_vm10, %v970_v52  ;;  %vm1910_vm15 = vmmov %vm1896_vm0 }
 0x49b   :  { %987 = vst.msk [vmem:[%s1894_s6 + $0x48] sm:$0xff] %vm1906_vm11, %v971_v27  ;;  %vm1911_vm1 = vmmov %vm1896_vm0 }
 0x49c   :  { %988 = vst.msk [vmem:[%s1894_s6 + $0x50] sm:$0xff] %vm1908_vm13, %v972_v28  ;;  %vm1912_vm3 = vmmov %vm1896_vm0 }
 0x49d   :  { %989 = vst.msk [vmem:[%s1894_s6 + $0x58] sm:$0xff] %vm1909_vm14, %v973_v53 }
 0x49e   :  { %990 = vst.msk [vmem:[%s1894_s6 + $0x60] sm:$0xff] %vm1910_vm15, %v974_v58 }
 0x49f   :  { %991 = vst.msk [vmem:[%s1894_s6 + $0x68] sm:$0xff] %vm1896_vm0, %v975_v31 }
 0x4a0   :  { %992 = vst.msk [vmem:[%s1894_s6 + $0x70] sm:$0xff] %vm1911_vm1, %v976_v56 }
 0x4a1   :  { %993 = vst.msk [vmem:[%s1894_s6 + $0x78] sm:$0xff] %vm1912_vm3, %v977_v32 }

// kernel: dcgan_g_forward.8
= control target key start
LH: loop header
LB: loop body
LE: loop exit
PB: predicated region body
PF: predicated region fallthrough
CT: control target
= control target key end

     0   :  { %v4944_v0 = vmov 0.0   ;;  %vm169_vm0 = vcmask 130048   ;;  %vm747_vm1 = vcmask 261120   ;;  %vm2075_vm2 = vmmov 0   ;;  %s4937_s1 = inlined_call_operand.vmem [shape: f32[144,32], index: 1, kind: input, shape index: {}]   ;;  %s4938_s0 = inlined_call_operand.vmem [shape: f32[512,144], index: 0, kind: input, shape index: {}]   ;;  %s4939_s2 = inlined_call_operand.vmem [shape: f32[32,8], index: 2, kind: input, shape index: {}]   ;;  %s4940_s3 = inlined_call_operand.vmem [shape: f32[8,32], index: 3, kind: input, shape index: {}]   ;;  %s4941_s4 = inlined_call_operand.vmem [shape: f32[1,32], index: 4, kind: input, shape index: {}]   ;;  %s4942_s5 = inlined_call_operand.vmem [shape: f32[1,32], index: 5, kind: input, shape index: {}]   ;;  %s4943_s6 = inlined_call_operand.vmem [shape: f32[512,32], index: 6, kind: output, shape index: {}]  }
   0x1   :  { %362 = vmatprep.subr.mxu0 %v4944_v0  ;;  %v166_v1 = vld [vmem:[%s4937_s1 + $0x78] sm:$0xff]  ;;  %v165_v2 = vld [vmem:[%s4937_s1 + $0x70] sm:$0xff]  ;;  %2034 = vmatprep.subr.mxu1 %v4944_v0  ;;  %v164_v3 = vld [vmem:[%s4937_s1 + $0x68] sm:$0xff]  ;;  %vm959_vm3 = vcmask 64512  }
   0x2   :  { %363 = vmatpush1.msra.mxu0 %v166_v1  ;;  %2052 = vmatpush1.msra.mxu1 %v166_v1  ;;  %v163_v4 = vld [vmem:[%s4937_s1 + $0x60] sm:$0xff]  ;;  %v162_v5 = vld [vmem:[%s4937_s1 + $0x58] sm:$0xff]  ;;  %v24_v6 = vld [vmem:[%s4938_s0 + $0x8] sm:$0xff] }
   0x3   :  { %364 = vmatprep.subr.mxu0 %v4944_v0  ;;  %2035 = vmatprep.subr.mxu1 %v4944_v0  ;;  %v161_v7 = vld [vmem:[%s4937_s1 + $0x50] sm:$0xff]  ;;  %v160_v8 = vld [vmem:[%s4937_s1 + $0x48] sm:$0xff]  ;;  %v159_v9 = vld [vmem:[%s4937_s1 + $0x40] sm:$0xff] }
   0x4   :  { %365 = vmatpush1.msra.mxu0 %v165_v2  ;;  %2053 = vmatpush1.msra.mxu1 %v165_v2  ;;  %v158_v10 = vld [vmem:[%s4937_s1 + $0x38] sm:$0xff]  ;;  %v157_v11 = vld [vmem:[%s4937_s1 + $0x30] sm:$0xff]  ;;  %v156_v12 = vld [vmem:[%s4937_s1 + $0x28] sm:$0xff] }
   0x5   :  { %366 = vmatprep.subr.mxu0 %v4944_v0  ;;  %2036 = vmatprep.subr.mxu1 %v4944_v0  ;;  %v155_v13 = vld [vmem:[%s4937_s1 + $0x20] sm:$0xff]  ;;  %v154_v14 = vld [vmem:[%s4937_s1 + $0x18] sm:$0xff]  ;;  %v153_v15 = vld [vmem:[%s4937_s1 + $0x10] sm:$0xff] }
   0x6   :  { %367 = vmatpush1.msra.mxu0 %v164_v3  ;;  %2054 = vmatpush1.msra.mxu1 %v164_v3  ;;  %v152_v16 = vld [vmem:[%s4937_s1 + $0x8] sm:$0xff]  ;;  %v151_v17 = vld [vmem:[%s4937_s1] sm:$0xff]  ;;  %v26_v21 = vld [vmem:[%s4938_s0 + $0x18] sm:$0xff] }
   0x7   :  { %368 = vmatprep.subr.mxu0 %v4944_v0  ;;  %2037 = vmatprep.subr.mxu1 %v4944_v0  ;;  %v168_v18 = vld [vmem:[%s4937_s1 + $0x88] sm:$0xff]  ;;  %v167_v19 = vld [vmem:[%s4937_s1 + $0x80] sm:$0xff]  ;;  %v94_v22 = vld [vmem:[%s4938_s0 + $0x238] sm:$0xff] }
   0x8   :  { %369 = vmatpush1.msra.mxu0 %v163_v4  ;;  %1918 = vmatprep.mubr.msk.f32.mxu0 %vm169_vm0, %v24_v6  ;;  %v23_v20 = vld [vmem:[%s4938_s0] sm:$0xff]  ;;  %v93_v23 = vld [vmem:[%s4938_s0 + $0x230] sm:$0xff]  ;;  %v96_v24 = vld [vmem:[%s4938_s0 + $0x248] sm:$0xff] }
   0x9   :  { %370 = vmatprep.subr.mxu0 %v4944_v0  ;;  %2055 = vmatpush1.msra.mxu1 %v163_v4  ;;  %v25_v25 = vld [vmem:[%s4938_s0 + $0x10] sm:$0xff]  ;;  %v28_v26 = vld [vmem:[%s4938_s0 + $0x28] sm:$0xff]  ;;  %v95_v27 = vld [vmem:[%s4938_s0 + $0x240] sm:$0xff] }
   0xa   :  { %371 = vmatpush1.msra.mxu0 %v162_v5  ;;  %2038 = vmatprep.subr.mxu1 %v4944_v0  ;;  %v98_v28 = vld [vmem:[%s4938_s0 + $0x258] sm:$0xff]  ;;  %v27_v29 = vld [vmem:[%s4938_s0 + $0x20] sm:$0xff]  ;;  %v97_v31 = vld [vmem:[%s4938_s0 + $0x250] sm:$0xff] }
   0xb   :  { %372 = vmatprep.subr.mxu0 %v4944_v0  ;;  %2056 = vmatpush1.msra.mxu1 %v162_v5  ;;  %v30_v30 = vld [vmem:[%s4938_s0 + $0x38] sm:$0xff]  ;;  %v100_v32 = vld [vmem:[%s4938_s0 + $0x268] sm:$0xff]  ;;  %v29_v33 = vld [vmem:[%s4938_s0 + $0x30] sm:$0xff] }
   0xc   :  { %373 = vmatpush1.msra.mxu0 %v161_v7  ;;  %2039 = vmatprep.subr.mxu1 %v4944_v0  ;;  %v32_v34 = vld [vmem:[%s4938_s0 + $0x48] sm:$0xff]  ;;  %v99_v35 = vld [vmem:[%s4938_s0 + $0x260] sm:$0xff]  ;;  %v102_v36 = vld [vmem:[%s4938_s0 + $0x278] sm:$0xff] }
   0xd   :  { %374 = vmatprep.subr.mxu0 %v4944_v0  ;;  %2057 = vmatpush1.msra.mxu1 %v161_v7  ;;  %v31_v37 = vld [vmem:[%s4938_s0 + $0x40] sm:$0xff]  ;;  %v34_v38 = vld [vmem:[%s4938_s0 + $0x58] sm:$0xff]  ;;  %v101_v39 = vld [vmem:[%s4938_s0 + $0x270] sm:$0xff] }
   0xe   :  { %375 = vmatpush1.msra.mxu0 %v160_v8  ;;  %2040 = vmatprep.subr.mxu1 %v4944_v0  ;;  %v104_v40 = vld [vmem:[%s4938_s0 + $0x288] sm:$0xff]  ;;  %v33_v41 = vld [vmem:[%s4938_s0 + $0x50] sm:$0xff]  ;;  %v103_v43 = vld [vmem:[%s4938_s0 + $0x280] sm:$0xff] }
   0xf   :  { %376 = vmatprep.subr.mxu0 %v4944_v0  ;;  %2058 = vmatpush1.msra.mxu1 %v160_v8  ;;  %v36_v42 = vld [vmem:[%s4938_s0 + $0x68] sm:$0xff]  ;;  %v106_v44 = vld [vmem:[%s4938_s0 + $0x298] sm:$0xff]  ;;  %v35_v45 = vld [vmem:[%s4938_s0 + $0x60] sm:$0xff] }
  0x10   :  { %377 = vmatpush1.msra.mxu0 %v159_v9  ;;  %2041 = vmatprep.subr.mxu1 %v4944_v0  ;;  %v38_v46 = vld [vmem:[%s4938_s0 + $0x78] sm:$0xff]  ;;  %v105_v47 = vld [vmem:[%s4938_s0 + $0x290] sm:$0xff]  ;;  %v108_v48 = vld [vmem:[%s4938_s0 + $0x2a8] sm:$0xff] }
  0x11   :  { %378 = vmatprep.subr.mxu0 %v4944_v0  ;;  %2059 = vmatpush1.msra.mxu1 %v159_v9  ;;  %v37_v49 = vld [vmem:[%s4938_s0 + $0x70] sm:$0xff]  ;;  %v40_v50 = vld [vmem:[%s4938_s0 + $0x88] sm:$0xff]  ;;  %v107_v51 = vld [vmem:[%s4938_s0 + $0x2a0] sm:$0xff] }
  0x12   :  { %379 = vmatpush1.msra.mxu0 %v158_v10  ;;  %2042 = vmatprep.subr.mxu1 %v4944_v0  ;;  %v110_v52 = vld [vmem:[%s4938_s0 + $0x2b8] sm:$0xff]  ;;  %v39_v53 = vld [vmem:[%s4938_s0 + $0x80] sm:$0xff]  ;;  %v109_v55 = vld [vmem:[%s4938_s0 + $0x2b0] sm:$0xff] }
  0x13   :  { %380 = vmatprep.subr.mxu0 %v4944_v0  ;;  %2060 = vmatpush1.msra.mxu1 %v158_v10  ;;  %v42_v54 = vld [vmem:[%s4938_s0 + $0x98] sm:$0xff]  ;;  %v112_v56 = vld [vmem:[%s4938_s0 + $0x2c8] sm:$0xff]  ;;  %v41_v57 = vld [vmem:[%s4938_s0 + $0x90] sm:$0xff] }
  0x14   :  { %381 = vmatpush1.msra.mxu0 %v157_v11  ;;  %2043 = vmatprep.subr.mxu1 %v4944_v0  ;;  %v44_v58 = vld [vmem:[%s4938_s0 + $0xa8] sm:$0xff]  ;;  %v111_v59 = vld [vmem:[%s4938_s0 + $0x2c0] sm:$0xff]  ;;  %v114_v60 = vld [vmem:[%s4938_s0 + $0x2d8] sm:$0xff] }
  0x15   :  { %382 = vmatprep.subr.mxu0 %v4944_v0  ;;  %2061 = vmatpush1.msra.mxu1 %v157_v11  ;;  %v43_v61 = vld [vmem:[%s4938_s0 + $0xa0] sm:$0xff]  ;;  %v46_v62 = vld [vmem:[%s4938_s0 + $0xb8] sm:$0xff]  ;;  %v113_v63 = vld [vmem:[%s4938_s0 + $0x2d0] sm:$0xff] }
  0x16   :  { %383 = vmatpush1.msra.mxu0 %v156_v12  ;;  %2044 = vmatprep.subr.mxu1 %v4944_v0  ;;  %v116_v1 = vld [vmem:[%s4938_s0 + $0x2e8] sm:$0xff]  ;;  %v45_v2 = vld [vmem:[%s4938_s0 + $0xb0] sm:$0xff]  ;;  %v115_v4 = vld [vmem:[%s4938_s0 + $0x2e0] sm:$0xff] }
  0x17   :  { %384 = vmatprep.subr.mxu0 %v4944_v0  ;;  %2062 = vmatpush1.msra.mxu1 %v156_v12  ;;  %v48_v3 = vld [vmem:[%s4938_s0 + $0xc8] sm:$0xff]  ;;  %v118_v5 = vld [vmem:[%s4938_s0 + $0x2f8] sm:$0xff]  ;;  %v47_v6 = vld [vmem:[%s4938_s0 + $0xc0] sm:$0xff] }
  0x18   :  { %385 = vmatpush1.msra.mxu0 %v155_v13  ;;  %2045 = vmatprep.subr.mxu1 %v4944_v0  ;;  %v50_v7 = vld [vmem:[%s4938_s0 + $0xd8] sm:$0xff]  ;;  %v117_v8 = vld [vmem:[%s4938_s0 + $0x2f0] sm:$0xff]  ;;  %v120_v9 = vld [vmem:[%s4938_s0 + $0x308] sm:$0xff] }
  0x19   :  { %386 = vmatprep.subr.mxu0 %v4944_v0  ;;  %2063 = vmatpush1.msra.mxu1 %v155_v13  ;;  %v49_v10 = vld [vmem:[%s4938_s0 + $0xd0] sm:$0xff]  ;;  %v52_v11 = vld [vmem:[%s4938_s0 + $0xe8] sm:$0xff]  ;;  %v119_v12 = vld [vmem:[%s4938_s0 + $0x300] sm:$0xff] }
  0x1a   :  { %387 = vmatpush1.msra.mxu0 %v154_v14  ;;  %2046 = vmatprep.subr.mxu1 %v4944_v0  ;;  %v122_v13 = vld [vmem:[%s4938_s0 + $0x318] sm:$0xff] }
  0x1b   :  { %388 = vmatprep.subr.mxu0 %v4944_v0  ;;  %2064 = vmatpush1.msra.mxu1 %v154_v14  ;;  %v51_v14 = vld [vmem:[%s4938_s0 + $0xe0] sm:$0xff] }
  0x1c   :  { %389 = vmatpush1.msra.mxu0 %v153_v15  ;;  %2047 = vmatprep.subr.mxu1 %v4944_v0 }
  0x1d   :  { %390 = vmatprep.subr.mxu0 %v4944_v0  ;;  %2065 = vmatpush1.msra.mxu1 %v153_v15  ;;  %v54_v15 = vld [vmem:[%s4938_s0 + $0xf8] sm:$0xff] }
  0x1e   :  { %391 = vmatpush1.msra.mxu0 %v152_v16  ;;  %2048 = vmatprep.subr.mxu1 %v4944_v0 }
  0x1f   :  { %392 = vmatprep.subr.mxu0 %v4944_v0  ;;  %2066 = vmatpush1.msra.mxu1 %v152_v16  ;;  %v121_v16 = vld [vmem:[%s4938_s0 + $0x310] sm:$0xff] }
  0x20   :  { %393 = vmatpush1.msra.mxu0 %v151_v17  ;;  %2049 = vmatprep.subr.mxu1 %v4944_v0 }
  0x21   :  { %422 = vmatprep.subr.mxu0 %v4944_v0  ;;  %2067 = vmatpush1.msra.mxu1 %v151_v17  ;;  %v124_v17 = vld [vmem:[%s4938_s0 + $0x328] sm:$0xff] }
  0x22   :  { %423 = vmatpush2.msra.mxu0 %v168_v18  ;;  %2050 = vmatprep.subr.mxu1 %v4944_v0 }
  0x23   :  { %424 = vmatprep.subr.mxu0 %v4944_v0  ;;  %2068 = vmatpush2.msra.mxu1 %v168_v18  ;;  %v53_v18 = vld [vmem:[%s4938_s0 + $0xf0] sm:$0xff] }
  0x24   :  { %425 = vmatpush2.msra.mxu0 %v167_v19  ;;  %2051 = vmatprep.subr.mxu1 %v4944_v0 }
  0x25   :  { %427 = vmatmul.mubr.f32.vlgmr.msra.gmra.mxu0 %v23_v20  ;;  %2069 = vmatpush2.msra.mxu1 %v167_v19  ;;  %v56_v19 = vld [vmem:[%s4938_s0 + $0x108] sm:$0xff]  ;;  %v123_v20 = vld [vmem:[%s4938_s0 + $0x320] sm:$0xff] }
  0x26   :  { %1919 = vmatprep.mubr.msk.f32.mxu0 %vm169_vm0, %v26_v21  ;;  %1953 = vmatprep.mubr.msk.f32.mxu1 %vm169_vm0, %v94_v22  ;;  %v126_v21 = vld [vmem:[%s4938_s0 + $0x338] sm:$0xff]  ;;  %v55_v22 = vld [vmem:[%s4938_s0 + $0x100] sm:$0xff] }
  0x27   :  { %602 = vmatmul.mubr.f32.vlgmr.msra.gmra.mxu1 %v93_v23  ;;  %2002 = vmatprep.subr.mxu1 %v4944_v0  ;;  %v58_v23 = vld [vmem:[%s4938_s0 + $0x118] sm:$0xff] }
  0x28   :  { %1954 = vmatprep.mubr.msk.f32.mxu1 %vm169_vm0, %v96_v24  ;;  %v125_v24 = vld [vmem:[%s4938_s0 + $0x330] sm:$0xff] }
  0x29   :  { %432 = vmatmul.mubr.f32.gmra.mxu0 %v25_v25  ;;  %v128_v25 = vld [vmem:[%s4938_s0 + $0x348] sm:$0xff] }
  0x2a   :  { %1920 = vmatprep.mubr.msk.f32.mxu0 %vm169_vm0, %v28_v26  ;;  %v57_v26 = vld [vmem:[%s4938_s0 + $0x110] sm:$0xff] }
  0x2b   :  { %607 = vmatmul.mubr.f32.gmra.mxu1 %v95_v27  ;;  %v60_v27 = vld [vmem:[%s4938_s0 + $0x128] sm:$0xff] }
  0x2c   :  { %1955 = vmatprep.mubr.msk.f32.mxu1 %vm169_vm0, %v98_v28  ;;  %v127_v28 = vld [vmem:[%s4938_s0 + $0x340] sm:$0xff] }
  0x2d   :  { %437 = vmatmul.mubr.f32.gmra.mxu0 %v27_v29  ;;  %v130_v29 = vld [vmem:[%s4938_s0 + $0x358] sm:$0xff] }
  0x2e   :  { %1921 = vmatprep.mubr.msk.f32.mxu0 %vm169_vm0, %v30_v30  ;;  %v59_v30 = vld [vmem:[%s4938_s0 + $0x120] sm:$0xff] }
  0x2f   :  { %612 = vmatmul.mubr.f32.gmra.mxu1 %v97_v31  ;;  %v62_v31 = vld [vmem:[%s4938_s0 + $0x138] sm:$0xff] }
  0x30   :  { %1956 = vmatprep.mubr.msk.f32.mxu1 %vm169_vm0, %v100_v32  ;;  %v129_v32 = vld [vmem:[%s4938_s0 + $0x350] sm:$0xff] }
  0x31   :  { %442 = vmatmul.mubr.f32.gmra.mxu0 %v29_v33  ;;  %v132_v33 = vld [vmem:[%s4938_s0 + $0x368] sm:$0xff] }
  0x32   :  { %1922 = vmatprep.mubr.msk.f32.mxu0 %vm169_vm0, %v32_v34  ;;  %v61_v34 = vld [vmem:[%s4938_s0 + $0x130] sm:$0xff] }
  0x33   :  { %617 = vmatmul.mubr.f32.gmra.mxu1 %v99_v35  ;;  %v64_v35 = vld [vmem:[%s4938_s0 + $0x148] sm:$0xff] }
  0x34   :  { %1957 = vmatprep.mubr.msk.f32.mxu1 %vm169_vm0, %v102_v36  ;;  %v131_v36 = vld [vmem:[%s4938_s0 + $0x360] sm:$0xff] }
  0x35   :  { %447 = vmatmul.mubr.f32.gmra.mxu0 %v31_v37  ;;  %v134_v37 = vld [vmem:[%s4938_s0 + $0x378] sm:$0xff] }
  0x36   :  { %1923 = vmatprep.mubr.msk.f32.mxu0 %vm169_vm0, %v34_v38  ;;  %v63_v38 = vld [vmem:[%s4938_s0 + $0x140] sm:$0xff] }
  0x37   :  { %622 = vmatmul.mubr.f32.gmra.mxu1 %v101_v39  ;;  %v66_v39 = vld [vmem:[%s4938_s0 + $0x158] sm:$0xff] }
  0x38   :  { %1958 = vmatprep.mubr.msk.f32.mxu1 %vm169_vm0, %v104_v40  ;;  %v133_v40 = vld [vmem:[%s4938_s0 + $0x370] sm:$0xff] }
  0x39   :  { %452 = vmatmul.mubr.f32.gmra.mxu0 %v33_v41  ;;  %v136_v41 = vld [vmem:[%s4938_s0 + $0x388] sm:$0xff] }
  0x3a   :  { %1924 = vmatprep.mubr.msk.f32.mxu0 %vm169_vm0, %v36_v42  ;;  %v65_v42 = vld [vmem:[%s4938_s0 + $0x150] sm:$0xff] }
  0x3b   :  { %627 = vmatmul.mubr.f32.gmra.mxu1 %v103_v43  ;;  %v68_v43 = vld [vmem:[%s4938_s0 + $0x168] sm:$0xff] }
  0x3c   :  { %1959 = vmatprep.mubr.msk.f32.mxu1 %vm169_vm0, %v106_v44  ;;  %v135_v44 = vld [vmem:[%s4938_s0 + $0x380] sm:$0xff] }
  0x3d   :  { %457 = vmatmul.mubr.f32.gmra.mxu0 %v35_v45  ;;  %v138_v45 = vld [vmem:[%s4938_s0 + $0x398] sm:$0xff] }
  0x3e   :  { %1925 = vmatprep.mubr.msk.f32.mxu0 %vm169_vm0, %v38_v46  ;;  %v67_v46 = vld [vmem:[%s4938_s0 + $0x160] sm:$0xff] }
  0x3f   :  { %632 = vmatmul.mubr.f32.gmra.mxu1 %v105_v47  ;;  %v70_v47 = vld [vmem:[%s4938_s0 + $0x178] sm:$0xff] }
  0x40   :  { %1960 = vmatprep.mubr.msk.f32.mxu1 %vm169_vm0, %v108_v48  ;;  %v137_v48 = vld [vmem:[%s4938_s0 + $0x390] sm:$0xff] }
  0x41   :  { %462 = vmatmul.mubr.f32.gmra.mxu0 %v37_v49  ;;  %v140_v49 = vld [vmem:[%s4938_s0 + $0x3a8] sm:$0xff] }
  0x42   :  { %1926 = vmatprep.mubr.msk.f32.mxu0 %vm169_vm0, %v40_v50  ;;  %v69_v50 = vld [vmem:[%s4938_s0 + $0x170] sm:$0xff] }
  0x43   :  { %637 = vmatmul.mubr.f32.gmra.mxu1 %v107_v51  ;;  %v72_v51 = vld [vmem:[%s4938_s0 + $0x188] sm:$0xff] }
  0x44   :  { %1961 = vmatprep.mubr.msk.f32.mxu1 %vm169_vm0, %v110_v52  ;;  %v139_v52 = vld [vmem:[%s4938_s0 + $0x3a0] sm:$0xff] }
  0x45   :  { %467 = vmatmul.mubr.f32.gmra.mxu0 %v39_v53  ;;  %v142_v53 = vld [vmem:[%s4938_s0 + $0x3b8] sm:$0xff] }
  0x46   :  { %1927 = vmatprep.mubr.msk.f32.mxu0 %vm169_vm0, %v42_v54  ;;  %v71_v54 = vld [vmem:[%s4938_s0 + $0x180] sm:$0xff] }
  0x47   :  { %642 = vmatmul.mubr.f32.gmra.mxu1 %v109_v55  ;;  %v74_v55 = vld [vmem:[%s4938_s0 + $0x198] sm:$0xff] }
  0x48   :  { %1962 = vmatprep.mubr.msk.f32.mxu1 %vm169_vm0, %v112_v56  ;;  %v141_v56 = vld [vmem:[%s4938_s0 + $0x3b0] sm:$0xff] }
  0x49   :  { %472 = vmatmul.mubr.f32.gmra.mxu0 %v41_v57  ;;  %v144_v57 = vld [vmem:[%s4938_s0 + $0x3c8] sm:$0xff] }
  0x4a   :  { %1928 = vmatprep.mubr.msk.f32.mxu0 %vm169_vm0, %v44_v58  ;;  %v73_v58 = vld [vmem:[%s4938_s0 + $0x190] sm:$0xff] }
  0x4b   :  { %647 = vmatmul.mubr.f32.gmra.mxu1 %v111_v59  ;;  %v76_v59 = vld [vmem:[%s4938_s0 + $0x1a8] sm:$0xff] }
  0x4c   :  { %1963 = vmatprep.mubr.msk.f32.mxu1 %vm169_vm0, %v114_v60  ;;  %v143_v60 = vld [vmem:[%s4938_s0 + $0x3c0] sm:$0xff] }
  0x4d   :  { %477 = vmatmul.mubr.f32.gmra.mxu0 %v43_v61  ;;  %v146_v61 = vld [vmem:[%s4938_s0 + $0x3d8] sm:$0xff] }
  0x4e   :  { %1929 = vmatprep.mubr.msk.f32.mxu0 %vm169_vm0, %v46_v62  ;;  %v75_v62 = vld [vmem:[%s4938_s0 + $0x1a0] sm:$0xff] }
  0x4f   :  { %652 = vmatmul.mubr.f32.gmra.mxu1 %v113_v63  ;;  %v78_v63 = vld [vmem:[%s4938_s0 + $0x1b8] sm:$0xff] }
  0x50   :  { %1964 = vmatprep.mubr.msk.f32.mxu1 %vm169_vm0, %v116_v1  ;;  %v145_v1 = vld [vmem:[%s4938_s0 + $0x3d0] sm:$0xff] }
  0x51   :  { %482 = vmatmul.mubr.f32.gmra.mxu0 %v45_v2  ;;  %v148_v2 = vld [vmem:[%s4938_s0 + $0x3e8] sm:$0xff] }
  0x52   :  { %1930 = vmatprep.mubr.msk.f32.mxu0 %vm169_vm0, %v48_v3  ;;  %v77_v3 = vld [vmem:[%s4938_s0 + $0x1b0] sm:$0xff] }
  0x53   :  { %657 = vmatmul.mubr.f32.gmra.mxu1 %v115_v4  ;;  %v80_v4 = vld [vmem:[%s4938_s0 + $0x1c8] sm:$0xff] }
  0x54   :  { %1965 = vmatprep.mubr.msk.f32.mxu1 %vm169_vm0, %v118_v5  ;;  %v147_v5 = vld [vmem:[%s4938_s0 + $0x3e0] sm:$0xff] }
  0x55   :  { %487 = vmatmul.mubr.f32.gmra.mxu0 %v47_v6  ;;  %v150_v6 = vld [vmem:[%s4938_s0 + $0x3f8] sm:$0xff] }
  0x56   :  { %1931 = vmatprep.mubr.msk.f32.mxu0 %vm169_vm0, %v50_v7  ;;  %v79_v7 = vld [vmem:[%s4938_s0 + $0x1c0] sm:$0xff] }
  0x57   :  { %662 = vmatmul.mubr.f32.gmra.mxu1 %v117_v8  ;;  %v82_v8 = vld [vmem:[%s4938_s0 + $0x1d8] sm:$0xff] }
  0x58   :  { %1966 = vmatprep.mubr.msk.f32.mxu1 %vm169_vm0, %v120_v9  ;;  %v149_v9 = vld [vmem:[%s4938_s0 + $0x3f0] sm:$0xff] }
  0x59   :  { %492 = vmatmul.mubr.f32.gmra.mxu0 %v49_v10  ;;  %v81_v10 = vld [vmem:[%s4938_s0 + $0x1d0] sm:$0xff] }
  0x5a   :  { %1932 = vmatprep.mubr.msk.f32.mxu0 %vm169_vm0, %v52_v11  ;;  %v84_v11 = vld [vmem:[%s4938_s0 + $0x1e8] sm:$0xff] }
  0x5b   :  { %667 = vmatmul.mubr.f32.gmra.mxu1 %v119_v12  ;;  %v83_v12 = vld [vmem:[%s4938_s0 + $0x1e0] sm:$0xff] }
  0x5c   :  { %1967 = vmatprep.mubr.msk.f32.mxu1 %vm169_vm0, %v122_v13  ;;  %v86_v13 = vld [vmem:[%s4938_s0 + $0x1f8] sm:$0xff] }
  0x5d   :  { %497 = vmatmul.mubr.f32.gmra.mxu0 %v51_v14  ;;  %v85_v14 = vld [vmem:[%s4938_s0 + $0x1f0] sm:$0xff] }
  0x5e   :  { %1933 = vmatprep.mubr.msk.f32.mxu0 %vm169_vm0, %v54_v15  ;;  %v88_v15 = vld [vmem:[%s4938_s0 + $0x208] sm:$0xff] }
  0x5f   :  { %672 = vmatmul.mubr.f32.gmra.mxu1 %v121_v16  ;;  %v87_v16 = vld [vmem:[%s4938_s0 + $0x200] sm:$0xff] }
  0x60   :  { %1968 = vmatprep.mubr.msk.f32.mxu1 %vm169_vm0, %v124_v17  ;;  %v90_v17 = vld [vmem:[%s4938_s0 + $0x218] sm:$0xff] }
  0x61   :  { %502 = vmatmul.mubr.f32.gmra.mxu0 %v53_v18  ;;  %v89_v18 = vld [vmem:[%s4938_s0 + $0x210] sm:$0xff] }
  0x62   :  { %1934 = vmatprep.mubr.msk.f32.mxu0 %vm169_vm0, %v56_v19  ;;  %v92_v19 = vld [vmem:[%s4938_s0 + $0x228] sm:$0xff] }
  0x63   :  { %677 = vmatmul.mubr.f32.gmra.mxu1 %v123_v20  ;;  %v91_v20 = vld [vmem:[%s4938_s0 + $0x220] sm:$0xff] }
  0x64   :  { %1969 = vmatprep.mubr.msk.f32.mxu1 %vm169_vm0, %v126_v21  ;;  %v2653_v21 = vld [vmem:[%s4939_s2 + $0x18] sm:$0xff] }
  0x65   :  { %507 = vmatmul.mubr.f32.gmra.mxu0 %v55_v22  ;;  %2003 = vmatpush3.msra.mxu1 %v2653_v21  ;;  %v2660_v22 = vld [vmem:[%s4939_s2 + $0x10] sm:$0xff] }
  0x66   :  { %1935 = vmatprep.mubr.msk.f32.mxu0 %vm169_vm0, %v58_v23  ;;  %2004 = vmatprep.subr.mxu1 %v4944_v0 }
  0x67   :  { %682 = vmatmul.mubr.f32.gmra.mxu1 %v125_v24 }
  0x68   :  { %1970 = vmatprep.mubr.msk.f32.mxu1 %vm169_vm0, %v128_v25  ;;  %2005 = vmatpush3.msra.mxu1 %v2660_v22 }
  0x69   :  { %512 = vmatmul.mubr.f32.gmra.mxu0 %v57_v26  ;;  %2006 = vmatprep.subr.mxu1 %v4944_v0 }
  0x6a   :  { %1936 = vmatprep.mubr.msk.f32.mxu0 %vm169_vm0, %v60_v27 }
  0x6b   :  { %687 = vmatmul.mubr.f32.gmra.mxu1 %v127_v28 }
  0x6c   :  { %1971 = vmatprep.mubr.msk.f32.mxu1 %vm169_vm0, %v130_v29 }
  0x6d   :  { %517 = vmatmul.mubr.f32.gmra.mxu0 %v59_v30 }
  0x6e   :  { %1937 = vmatprep.mubr.msk.f32.mxu0 %vm169_vm0, %v62_v31 }
  0x6f   :  { %692 = vmatmul.mubr.f32.gmra.mxu1 %v129_v32 }
  0x70   :  { %1972 = vmatprep.mubr.msk.f32.mxu1 %vm169_vm0, %v132_v33 }
  0x71   :  { %522 = vmatmul.mubr.f32.gmra.mxu0 %v61_v34 }
  0x72   :  { %1938 = vmatprep.mubr.msk.f32.mxu0 %vm169_vm0, %v64_v35 }
  0x73   :  { %697 = vmatmul.mubr.f32.gmra.mxu1 %v131_v36 }
  0x74   :  { %1973 = vmatprep.mubr.msk.f32.mxu1 %vm169_vm0, %v134_v37 }
  0x75   :  { %527 = vmatmul.mubr.f32.gmra.mxu0 %v63_v38 }
  0x76   :  { %1939 = vmatprep.mubr.msk.f32.mxu0 %vm169_vm0, %v66_v39 }
  0x77   :  { %702 = vmatmul.mubr.f32.gmra.mxu1 %v133_v40 }
  0x78   :  { %1974 = vmatprep.mubr.msk.f32.mxu1 %vm169_vm0, %v136_v41 }
  0x79   :  { %532 = vmatmul.mubr.f32.gmra.mxu0 %v65_v42 }
  0x7a   :  { %1940 = vmatprep.mubr.msk.f32.mxu0 %vm169_vm0, %v68_v43 }
  0x7b   :  { %707 = vmatmul.mubr.f32.gmra.mxu1 %v135_v44 }
  0x7c   :  { %1975 = vmatprep.mubr.msk.f32.mxu1 %vm169_vm0, %v138_v45 }
  0x7d   :  { %537 = vmatmul.mubr.f32.gmra.mxu0 %v67_v46 }
  0x7e   :  { %1941 = vmatprep.mubr.msk.f32.mxu0 %vm169_vm0, %v70_v47 }
  0x7f   :  { %712 = vmatmul.mubr.f32.gmra.mxu1 %v137_v48 }
  0x80   :  { %1976 = vmatprep.mubr.msk.f32.mxu1 %vm169_vm0, %v140_v49 }
  0x81   :  { %542 = vmatmul.mubr.f32.gmra.mxu0 %v69_v50 }
  0x82   :  { %1942 = vmatprep.mubr.msk.f32.mxu0 %vm169_vm0, %v72_v51 }
  0x83   :  { %717 = vmatmul.mubr.f32.gmra.mxu1 %v139_v52 }
  0x84   :  { %1977 = vmatprep.mubr.msk.f32.mxu1 %vm169_vm0, %v142_v53 }
  0x85   :  { %547 = vmatmul.mubr.f32.gmra.mxu0 %v71_v54 }
  0x86   :  { %1943 = vmatprep.mubr.msk.f32.mxu0 %vm169_vm0, %v74_v55 }
  0x87   :  { %722 = vmatmul.mubr.f32.gmra.mxu1 %v141_v56 }
  0x88   :  { %1978 = vmatprep.mubr.msk.f32.mxu1 %vm169_vm0, %v144_v57 }
  0x89   :  { %552 = vmatmul.mubr.f32.gmra.mxu0 %v73_v58 }
  0x8a   :  { %1944 = vmatprep.mubr.msk.f32.mxu0 %vm169_vm0, %v76_v59 }
  0x8b   :  { %727 = vmatmul.mubr.f32.gmra.mxu1 %v143_v60 }
  0x8c   :  { %1979 = vmatprep.mubr.msk.f32.mxu1 %vm169_vm0, %v146_v61 }
  0x8d   :  { %557 = vmatmul.mubr.f32.gmra.mxu0 %v75_v62 }
  0x8e   :  { %1945 = vmatprep.mubr.msk.f32.mxu0 %vm169_vm0, %v78_v63 }
  0x8f   :  { %732 = vmatmul.mubr.f32.gmra.mxu1 %v145_v1 }
  0x90   :  { %1980 = vmatprep.mubr.msk.f32.mxu1 %vm169_vm0, %v148_v2 }
  0x91   :  { %562 = vmatmul.mubr.f32.gmra.mxu0 %v77_v3 }
  0x92   :  { %1946 = vmatprep.mubr.msk.f32.mxu0 %vm169_vm0, %v80_v4 }
  0x93   :  { %737 = vmatmul.mubr.f32.gmra.mxu1 %v147_v5 }
  0x94   :  { %1981 = vmatprep.mubr.msk.f32.mxu1 %vm169_vm0, %v150_v6 }
  0x95   :  { %567 = vmatmul.mubr.f32.gmra.mxu0 %v79_v7 }
  0x96   :  { %1947 = vmatprep.mubr.msk.f32.mxu0 %vm169_vm0, %v82_v8 }
  0x97   :  { %742 = vmatmul.mubr.f32.gmra.mxu1 %v149_v9  ;;  %v2717_v9 = vld [vmem:[%s4939_s2 + $0x8] sm:$0xff] }
  0x98   :  { %2007 = vmatpush3.msra.mxu1 %v2717_v9  ;;  %2010 = vmatprep.mubr.msk.f32.mxu1 %vm2075_vm2, %v4944_v0 }
  0x99   :  { %572 = vmatmul.mubr.f32.gmra.mxu0 %v81_v10  ;;  %2008 = vmatprep.subr.mxu1 %v4944_v0 }
  0x9a   :  { %1948 = vmatprep.mubr.msk.f32.mxu0 %vm169_vm0, %v84_v11 }
  0x9d   :  { %577 = vmatmul.mubr.f32.gmra.mxu0 %v83_v12 }
  0x9e   :  { %1949 = vmatprep.mubr.msk.f32.mxu0 %vm169_vm0, %v86_v13 }
  0xa1   :  { %582 = vmatmul.mubr.f32.gmra.mxu0 %v85_v14 }
  0xa2   :  { %1950 = vmatprep.mubr.msk.f32.mxu0 %vm169_vm0, %v88_v15 }
  0xa5   :  { %587 = vmatmul.mubr.f32.gmra.mxu0 %v87_v16 }
  0xa6   :  { %1951 = vmatprep.mubr.msk.f32.mxu0 %vm169_vm0, %v90_v17 }
  0xa9   :  { %592 = vmatmul.mubr.f32.gmra.mxu0 %v89_v18 }
  0xaa   :  { %1952 = vmatprep.mubr.msk.f32.mxu0 %vm169_vm0, %v92_v19 }
  0xad   :  { %597 = vmatmul.mubr.f32.gmra.mxu0 %v91_v20 }
  0xe5   :  { %v2664_v23 = vpop.f32.mrf.mxu0 }
  0xe7   :  { %v430_v24 = vpop.f32.mrf.mxu0  ;;  %v2666_v25 = vpop.f32.mrf.mxu1 }
  0xe9   :  { %v2668_v26 = vpop.f32.mrf.mxu0  ;;  %v605_v27 = vpop.f32.mrf.mxu1 }
  0xeb   :  { %v435_v28 = vpop.f32.mrf.mxu0  ;;  %v2670_v29 = vpop.f32.mrf.mxu1 }
  0xed   :  { %v2672_v30 = vpop.f32.mrf.mxu0  ;;  %v610_v31 = vpop.f32.mrf.mxu1 }
  0xee   :  { %v2738_v31 = vld [vmem:[%s4939_s2] sm:$0xff] }
  0xef   :  { %v440_v32 = vpop.f32.mrf.mxu0  ;;  %v2674_v33 = vpop.f32.mrf.mxu1  ;;  %2009 = vmatpush3.msra.mxu1 %v2738_v31 }
  0xf0   :  { %2013 = vmatprep.subr.mxu1 %v4944_v0 }
  0xf1   :  { %v2676_v34 = vpop.f32.mrf.mxu0  ;;  %v615_v35 = vpop.f32.mrf.mxu1 }
  0xf3   :  { %v445_v36 = vpop.f32.mrf.mxu0  ;;  %v2678_v37 = vpop.f32.mrf.mxu1 }
  0xf5   :  { %v2680_v38 = vpop.f32.mrf.mxu0  ;;  %v620_v39 = vpop.f32.mrf.mxu1 }
  0xf7   :  { %v450_v40 = vpop.f32.mrf.mxu0  ;;  %v2682_v41 = vpop.f32.mrf.mxu1 }
  0xf9   :  { %v2684_v42 = vpop.f32.mrf.mxu0  ;;  %v625_v43 = vpop.f32.mrf.mxu1 }
  0xfb   :  { %v455_v44 = vpop.f32.mrf.mxu0  ;;  %v2686_v45 = vpop.f32.mrf.mxu1 }
  0xfc   :  { %v749_v44 = vsel %vm747_vm1, %v2668_v26, 0.0 }
  0xfd   :  { %v2688_v46 = vpop.f32.mrf.mxu0  ;;  %v630_v47 = vpop.f32.mrf.mxu1 }
  0xff   :  { %v460_v48 = vpop.f32.mrf.mxu0  ;;  %v2690_v49 = vpop.f32.mrf.mxu1 }
 0x101   :  { %v2692_v50 = vpop.f32.mrf.mxu0  ;;  %v635_v51 = vpop.f32.mrf.mxu1 }
 0x102   :  { %v748_v51 = vsel %vm747_vm1, %v2664_v23, 0.0 }
 0x103   :  { %v465_v52 = vpop.f32.mrf.mxu0  ;;  %v2694_v53 = vpop.f32.mrf.mxu1 }
 0x104   :  { %v751_v52 = vsel %vm747_vm1, %v2672_v30, 0.0 }
 0x105   :  { %v2696_v54 = vpop.f32.mrf.mxu0  ;;  %v640_v55 = vpop.f32.mrf.mxu1 }
 0x106   :  { %v750_v55 = vadd.f32 %v749_v44, %v748_v51  ;;  %v761_v44 = vsel %vm747_vm1, %v2692_v50, 0.0 }
 0x107   :  { %v470_v56 = vpop.f32.mrf.mxu0  ;;  %v2698_v57 = vpop.f32.mrf.mxu1 }
 0x109   :  { %v2700_v58 = vpop.f32.mrf.mxu0  ;;  %v645_v59 = vpop.f32.mrf.mxu1 }
 0x10b   :  { %v475_v60 = vpop.f32.mrf.mxu0  ;;  %v2702_v61 = vpop.f32.mrf.mxu1 }
 0x10c   :  { %v753_v60 = vsel %vm747_vm1, %v2676_v34, 0.0 }
 0x10d   :  { %v2704_v62 = vpop.f32.mrf.mxu0  ;;  %v650_v63 = vpop.f32.mrf.mxu1 }
 0x10e   :  { %v752_v63 = vadd.f32 %v751_v52, %v750_v55  ;;  %v763_v55 = vsel %vm747_vm1, %v2696_v54, 0.0 }
 0x10f   :  { %v480_v1 = vpop.f32.mrf.mxu0  ;;  %v2706_v2 = vpop.f32.mrf.mxu1 }
 0x111   :  { %v2708_v3 = vpop.f32.mrf.mxu0  ;;  %v655_v4 = vpop.f32.mrf.mxu1 }
 0x113   :  { %v485_v5 = vpop.f32.mrf.mxu0  ;;  %v2710_v6 = vpop.f32.mrf.mxu1 }
 0x114   :  { %v755_v5 = vsel %vm747_vm1, %v2680_v38, 0.0 }
 0x115   :  { %v2712_v7 = vpop.f32.mrf.mxu0  ;;  %v660_v8 = vpop.f32.mrf.mxu1 }
 0x116   :  { %5011 = vst [vmem:[#allocation2_spill] sm:$0xff] %v2712_v7  ;;  %v754_v8 = vadd.f32 %v753_v60, %v752_v63 }
 0x117   :  { %v490_v10 = vpop.f32.mrf.mxu0  ;;  %v2720_v11 = vpop.f32.mrf.mxu1 }
 0x119   :  { %v2723_v12 = vpop.f32.mrf.mxu0  ;;  %v665_v13 = vpop.f32.mrf.mxu1 }
 0x11a   :  { %5012 = vst [vmem:[#allocation3_spill] sm:$0xff] %v2723_v12 }
 0x11b   :  { %v495_v14 = vpop.f32.mrf.mxu0  ;;  %v2725_v15 = vpop.f32.mrf.mxu1 }
 0x11c   :  { %v757_v14 = vsel %vm747_vm1, %v2684_v42, 0.0 }
 0x11d   :  { %v2727_v16 = vpop.f32.mrf.mxu0  ;;  %v670_v17 = vpop.f32.mrf.mxu1 }
 0x11e   :  { %5013 = vst [vmem:[#allocation4_spill] sm:$0xff] %v2727_v16  ;;  %v756_v17 = vadd.f32 %v755_v5, %v754_v8 }
 0x11f   :  { %v500_v18 = vpop.f32.mrf.mxu0  ;;  %v2729_v19 = vpop.f32.mrf.mxu1 }
 0x121   :  { %v2731_v20 = vpop.f32.mrf.mxu0  ;;  %v675_v24 = vpop.f32.mrf.mxu1 }
 0x122   :  { %5014 = vst [vmem:[#allocation5_spill] sm:$0xff] %v2731_v20 }
 0x123   :  { %v505_v27 = vpop.f32.mrf.mxu0  ;;  %v2733_v28 = vpop.f32.mrf.mxu1 }
 0x124   :  { %v759_v27 = vsel %vm747_vm1, %v2688_v46, 0.0 }
 0x125   :  { %v2741_v32 = vpop.f32.mrf.mxu0  ;;  %v680_v35 = vpop.f32.mrf.mxu1 }
 0x126   :  { %5015 = vst [vmem:[#allocation6_spill] sm:$0xff] %v2741_v32  ;;  %v758_v35 = vadd.f32 %v757_v14, %v756_v17  ;;  %v767_v14 = vsel %vm747_vm1, %v2704_v62, 0.0 }
 0x127   :  { %v510_v36 = vpop.f32.mrf.mxu0  ;;  %v2744_v39 = vpop.f32.mrf.mxu1 }
 0x129   :  { %v2746_v40 = vpop.f32.mrf.mxu0  ;;  %v685_v43 = vpop.f32.mrf.mxu1 }
 0x12a   :  { %5016 = vst [vmem:[#allocation7_spill] sm:$0xff] %v2746_v40 }
 0x12b   :  { %v515_v47 = vpop.f32.mrf.mxu0  ;;  %v2750_v48 = vpop.f32.mrf.mxu1 }
 0x12c   :  { %v760_v47 = vadd.f32 %v759_v27, %v758_v35  ;;  %v769_v35 = vsel %vm747_vm1, %v2708_v3, 0.0 }
 0x12d   :  { %v2756_v56 = vpop.f32.mrf.mxu0  ;;  %v690_v59 = vpop.f32.mrf.mxu1 }
 0x12e   :  { %5017 = vst [vmem:[#allocation8_spill] sm:$0xff] %v2756_v56  ;;  %v762_v59 = vadd.f32 %v761_v44, %v760_v47 }
 0x12f   :  { %v520_v1 = vpop.f32.mrf.mxu0  ;;  %v2760_v4 = vpop.f32.mrf.mxu1 }
 0x130   :  { %v765_v1 = vsel %vm747_vm1, %v2700_v58, 0.0  ;;  %v764_v5 = vadd.f32 %v763_v55, %v762_v59 }
 0x131   :  { %v2764_v10 = vpop.f32.mrf.mxu0  ;;  %v695_v13 = vpop.f32.mrf.mxu1 }
 0x132   :  { %5018 = vst [vmem:[#allocation9_spill] sm:$0xff] %v2764_v10  ;;  %v766_v17 = vadd.f32 %v765_v1, %v764_v5  ;;  %v773_v1 = vsel %vm747_vm1, %v2723_v12, 0.0 }
 0x133   :  { %v525_v18 = vpop.f32.mrf.mxu0  ;;  %v2768_v24 = vpop.f32.mrf.mxu1 }
 0x135   :  { %v2772_v36 = vpop.f32.mrf.mxu0  ;;  %v700_v43 = vpop.f32.mrf.mxu1 }
 0x136   :  { %5019 = vst [vmem:[#allocation10_spill] sm:$0xff] %v2772_v36  ;;  %v768_v43 = vadd.f32 %v767_v14, %v766_v17  ;;  %v775_v14 = vsel %vm747_vm1, %v2727_v16, 0.0 }
 0x137   :  { %v530_v51 = vpop.f32.mrf.mxu0  ;;  %v2778_v52 = vpop.f32.mrf.mxu1 }
 0x138   :  { %v771_v51 = vsel %vm747_vm1, %v2712_v7, 0.0  ;;  %v770_v55 = vadd.f32 %v769_v35, %v768_v43  ;;  %v777_v35 = vsel %vm747_vm1, %v2731_v20, 0.0 }
 0x139   :  { %v2782_v60 = vpop.f32.mrf.mxu0  ;;  %v705_v63 = vpop.f32.mrf.mxu1 }
 0x13a   :  { %5020 = vst [vmem:[#allocation11_spill] sm:$0xff] %v2782_v60  ;;  %v772_v5 = vadd.f32 %v771_v51, %v770_v55  ;;  %v779_v51 = vsel %vm747_vm1, %v2741_v32, 0.0 }
 0x13b   :  { %v535_v8 = vpop.f32.mrf.mxu0  ;;  %v2786_v13 = vpop.f32.mrf.mxu1 }
 0x13c   :  { %v774_v17 = vadd.f32 %v773_v1, %v772_v5  ;;  %v781_v1 = vsel %vm747_vm1, %v2746_v40, 0.0 }
 0x13d   :  { %v2790_v18 = vpop.f32.mrf.mxu0  ;;  %v710_v27 = vpop.f32.mrf.mxu1 }
 0x13e   :  { %5021 = vst [vmem:[#allocation12_spill] sm:$0xff] %v2790_v18  ;;  %v776_v43 = vadd.f32 %v775_v14, %v774_v17  ;;  %v783_v14 = vsel %vm747_vm1, %v2756_v56, 0.0 }
 0x13f   :  { %v540_v44 = vpop.f32.mrf.mxu0  ;;  %v2794_v47 = vpop.f32.mrf.mxu1 }
 0x140   :  { %v778_v55 = vadd.f32 %v777_v35, %v776_v43  ;;  %v785_v35 = vsel %vm747_vm1, %v2764_v10, 0.0 }
 0x141   :  { %v2798_v59 = vpop.f32.mrf.mxu0  ;;  %v715_v63 = vpop.f32.mrf.mxu1 }
 0x142   :  { %5022 = vst [vmem:[#allocation13_spill] sm:$0xff] %v2798_v59  ;;  %v780_v5 = vadd.f32 %v779_v51, %v778_v55  ;;  %v787_v51 = vsel %vm747_vm1, %v2772_v36, 0.0 }
 0x143   :  { %v545_v8 = vpop.f32.mrf.mxu0  ;;  %v2802_v27 = vpop.f32.mrf.mxu1 }
 0x144   :  { %5023 = vst [vmem:[#allocation14_spill] sm:$0xff] %v2802_v27 }
 0x145   :  { %v2806_v44 = vpop.f32.mrf.mxu0  ;;  %v720_v0 = vpop.f32.mrf.mxu1 }
 0x146   :  { %5024 = vst [vmem:[#allocation15_spill] sm:$0xff] %v2806_v44 }
 0x147   :  { %v550_v7 = vpop.f32.mrf.mxu0  ;;  %v2810_v63 = vpop.f32.mrf.mxu1 }
 0x148   :  { %5025 = vst [vmem:[#allocation16_spill] sm:$0xff] %v2810_v63  ;;  %v782_v7 = vadd.f32 %v781_v1, %v780_v5  ;;  %v789_v1 = vsel %vm747_vm1, %v2782_v60, 0.0 }
 0x149   :  { %v2814_v8 = vpop.f32.mrf.mxu0  ;;  %v725_v12 = vpop.f32.mrf.mxu1 }
 0x14a   :  { %v784_v43 = vadd.f32 %v783_v14, %v782_v7  ;;  %v791_v14 = vsel %vm747_vm1, %v2790_v18, 0.0 }
 0x14b   :  { %v555_v16 = vpop.f32.mrf.mxu0  ;;  %v2818_v0 = vpop.f32.mrf.mxu1 }
 0x14c   :  { %v786_v16 = vadd.f32 %v785_v35, %v784_v43  ;;  %v793_v35 = vsel %vm747_vm1, %v2798_v59, 0.0 }
 0x14d   :  { %v2822_v17 = vpop.f32.mrf.mxu0  ;;  %v730_v20 = vpop.f32.mrf.mxu1 }
 0x14e   :  { %5026 = vst [vmem:[#allocation17_spill] sm:$0xff] %v2822_v17  ;;  %v788_v5 = vadd.f32 %v787_v51, %v786_v16  ;;  %v795_v51 = vsel %vm747_vm1, %v2806_v44, 0.0 }
 0x14f   :  { %v560_v32 = vpop.f32.mrf.mxu0  ;;  %v2826_v12 = vpop.f32.mrf.mxu1 }
 0x150   :  { %v790_v32 = vadd.f32 %v789_v1, %v788_v5  ;;  %v797_v1 = vsel %vm747_vm1, %v2814_v8, 0.0 }
 0x151   :  { %v2830_v55 = vpop.f32.mrf.mxu0  ;;  %v735_v40 = vpop.f32.mrf.mxu1 }
 0x152   :  { %v792_v43 = vadd.f32 %v791_v14, %v790_v32 }
 0x153   :  { %v565_v56 = vpop.f32.mrf.mxu0  ;;  %v2834_v20 = vpop.f32.mrf.mxu1 }
 0x154   :  { %v794_v56 = vadd.f32 %v793_v35, %v792_v43 }
 0x155   :  { %v2838_v7 = vpop.f32.mrf.mxu0  ;;  %v740_v10 = vpop.f32.mrf.mxu1 }
 0x156   :  { %5027 = vst [vmem:[#allocation18_spill] sm:$0xff] %v2838_v7  ;;  %v796_v5 = vadd.f32 %v795_v51, %v794_v56  ;;  %v799_v10 = vsel %vm747_vm1, %v2822_v17, 0.0  ;;  %v803_v35 = vsel %vm747_vm1, %v2838_v7, 0.0 }
 0x157   :  { %v570_v36 = vpop.f32.mrf.mxu0  ;;  %v2842_v40 = vpop.f32.mrf.mxu1 }
 0x158   :  { %v798_v59 = vadd.f32 %v797_v1, %v796_v5  ;;  %v801_v36 = vsel %vm747_vm1, %v2830_v55, 0.0 }
 0x159   :  { %v2846_v16 = vpop.f32.mrf.mxu0  ;;  %v745_v60 = vpop.f32.mrf.mxu1 }
 0x15a   :  { %v800_v32 = vadd.f32 %v799_v10, %v798_v59 }
 0x15b   :  { %v575_v18 = vpop.f32.mrf.mxu0 }
 0x15c   :  { %v802_v60 = vadd.f32 %v801_v36, %v800_v32  ;;  %v805_v18 = vsel %vm747_vm1, %v2846_v16, 0.0 }
 0x15d   :  { %v2852_v14 = vpop.f32.mrf.mxu0 }
 0x15e   :  { %5028 = vst [vmem:[#allocation19_spill] sm:$0xff] %v2852_v14  ;;  %v804_v51 = vadd.f32 %v803_v35, %v802_v60  ;;  %v807_v1 = vsel %vm747_vm1, %v2852_v14, 0.0 }
 0x15f   :  { %v580_v44 = vpop.f32.mrf.mxu0 }
 0x160   :  { %v806_v5 = vadd.f32 %v805_v18, %v804_v51 }
 0x161   :  { %v2858_v43 = vpop.f32.mrf.mxu0 }
 0x162   :  { %5029 = vst [vmem:[#allocation20_spill] sm:$0xff] %v2858_v43  ;;  %v809_v59 = vsel %vm747_vm1, %v2858_v43, 0.0  ;;  %v808_v44 = vadd.f32 %v807_v1, %v806_v5  ;;  %v817_v5 = vsel %vm747_vm1, %v2666_v25, 0.0 }
 0x163   :  { %v585_v56 = vpop.f32.mrf.mxu0 }
 0x164   :  { %v810_v32 = vadd.f32 %v809_v59, %v808_v44  ;;  %v819_v59 = vsel %vm747_vm1, %v2670_v29, 0.0 }
 0x165   :  { %v2864_v17 = vpop.f32.mrf.mxu0 }
 0x166   :  { %v811_v36 = vsel %vm747_vm1, %v2864_v17, 0.0 }
 0x167   :  { %v590_v10 = vpop.f32.mrf.mxu0  ;;  %v812_v60 = vadd.f32 %v811_v36, %v810_v32  ;;  %v821_v36 = vsel %vm747_vm1, %v2674_v33, 0.0 }
 0x169   :  { %v2870_v7 = vpop.f32.mrf.mxu0 }
 0x16a   :  { %v813_v35 = vsel %vm747_vm1, %v2870_v7, 0.0 }
 0x16b   :  { %v595_v56 = vpop.f32.mrf.mxu0  ;;  %v814_v14 = vadd.f32 %v813_v35, %v812_v60  ;;  %v823_v35 = vsel %vm747_vm1, %v2678_v37, 0.0 }
 0x16d   :  { %v2874_v18 = vpop.f32.mrf.mxu0 }
 0x16e   :  { %v815_v51 = vsel %vm747_vm1, %v2874_v18, 0.0 }
 0x16f   :  { %v816_v43 = vadd.f32 %v815_v51, %v814_v14  ;;  %v600_v1 = vpop.f32.mrf.mxu0  ;;  %v825_v14 = vsel %vm747_vm1, %v2682_v41, 0.0  ;;  %v827_v51 = vsel %vm747_vm1, %v2686_v45, 0.0 }
 0x170   :  { %v829_v1 = vsel %vm747_vm1, %v2690_v49, 0.0 }
 0x171   :  { %v818_v10 = vadd.f32 %v817_v5, %v816_v43 }
 0x173   :  { %v820_v44 = vadd.f32 %v819_v59, %v818_v10  ;;  %v831_v10 = vsel %vm747_vm1, %v2694_v53, 0.0 }
 0x175   :  { %v822_v32 = vadd.f32 %v821_v36, %v820_v44  ;;  %v833_v44 = vsel %vm747_vm1, %v2698_v57, 0.0 }
 0x177   :  { %v824_v60 = vadd.f32 %v823_v35, %v822_v32  ;;  %v835_v32 = vsel %vm747_vm1, %v2702_v61, 0.0 }
 0x179   :  { %v826_v56 = vadd.f32 %v825_v14, %v824_v60  ;;  %v837_v60 = vsel %vm747_vm1, %v2706_v2, 0.0 }
 0x17b   :  { %v828_v43 = vadd.f32 %v827_v51, %v826_v56  ;;  %v839_v56 = vsel %vm747_vm1, %v2710_v6, 0.0 }
 0x17d   :  { %v830_v5 = vadd.f32 %v829_v1, %v828_v43  ;;  %v841_v43 = vsel %vm747_vm1, %v2720_v11, 0.0 }
 0x17f   :  { %v832_v59 = vadd.f32 %v831_v10, %v830_v5  ;;  %v843_v5 = vsel %vm747_vm1, %v2725_v15, 0.0 }
 0x181   :  { %v834_v36 = vadd.f32 %v833_v44, %v832_v59  ;;  %v845_v59 = vsel %vm747_vm1, %v2729_v19, 0.0 }
 0x183   :  { %v836_v35 = vadd.f32 %v835_v32, %v834_v36  ;;  %v847_v36 = vsel %vm747_vm1, %v2733_v28, 0.0 }
 0x185   :  { %v838_v14 = vadd.f32 %v837_v60, %v836_v35  ;;  %v849_v35 = vsel %vm747_vm1, %v2744_v39, 0.0 }
 0x187   :  { %v840_v51 = vadd.f32 %v839_v56, %v838_v14  ;;  %v851_v14 = vsel %vm747_vm1, %v2750_v48, 0.0 }
 0x189   :  { %v842_v1 = vadd.f32 %v841_v43, %v840_v51  ;;  %v853_v51 = vsel %vm747_vm1, %v2760_v4, 0.0 }
 0x18b   :  { %v844_v10 = vadd.f32 %v843_v5, %v842_v1  ;;  %v855_v1 = vsel %vm747_vm1, %v2768_v24, 0.0 }
 0x18d   :  { %v846_v44 = vadd.f32 %v845_v59, %v844_v10  ;;  %v857_v10 = vsel %vm747_vm1, %v2778_v52, 0.0 }
 0x18f   :  { %v848_v32 = vadd.f32 %v847_v36, %v846_v44  ;;  %v859_v44 = vsel %vm747_vm1, %v2786_v13, 0.0 }
 0x191   :  { %v850_v60 = vadd.f32 %v849_v35, %v848_v32  ;;  %v861_v32 = vsel %vm747_vm1, %v2794_v47, 0.0 }
 0x193   :  { %v852_v56 = vadd.f32 %v851_v14, %v850_v60  ;;  %v863_v60 = vsel %vm747_vm1, %v2802_v27, 0.0 }
 0x195   :  { %v854_v43 = vadd.f32 %v853_v51, %v852_v56  ;;  %v865_v56 = vsel %vm747_vm1, %v2810_v63, 0.0 }
 0x197   :  { %v856_v5 = vadd.f32 %v855_v1, %v854_v43  ;;  %v867_v43 = vsel %vm747_vm1, %v2818_v0, 0.0 }
 0x199   :  { %v858_v59 = vadd.f32 %v857_v10, %v856_v5  ;;  %v869_v5 = vsel %vm747_vm1, %v2826_v12, 0.0 }
 0x19b   :  { %v860_v36 = vadd.f32 %v859_v44, %v858_v59  ;;  %v871_v59 = vsel %vm747_vm1, %v2834_v20, 0.0  ;;  %v873_v44 = vsel %vm747_vm1, %v2842_v40, 0.0 }
 0x19d   :  { %v862_v35 = vadd.f32 %v861_v32, %v860_v36 }
 0x19f   :  { %v864_v14 = vadd.f32 %v863_v60, %v862_v35 }
 0x1a1   :  { %v866_v51 = vadd.f32 %v865_v56, %v864_v14 }
 0x1a3   :  { %v868_v1 = vadd.f32 %v867_v43, %v866_v51  ;;  %v2939_v51 = vld [vmem:[%s4940_s3] sm:$0xff]  ;;  %v5030_v43 = vmov 0.0  }
 0x1a5   :  { %v870_v10 = vadd.f32 %v869_v5, %v868_v1 }
 0x1a7   :  { %v872_v36 = vadd.f32 %v871_v59, %v870_v10 }
 0x1a9   :  { %v874_v32 = vadd.f32 %v873_v44, %v872_v36 }
 0x1ab   :  { %v875_v35 = vrot.slane %v874_v32, 4 }
 0x1ad   :  { %v876_v60 = vadd.f32 %v875_v35, %v874_v32 }
 0x1af   :  { %v877_v63 = vrot.slane %v876_v60, 2 }
 0x1b1   :  { %v878_v14 = vadd.f32 %v877_v63, %v876_v60 }
 0x1b3   :  { %v879_v56 = vrot.slane %v878_v14, 1 }
 0x1b5   :  { %v880_v27 = vadd.f32 %v879_v56, %v878_v14 }
 0x1b7   :  { %2011 = vmatmul.mubr.msk.f32.vlgmr.msra.gmra.mxu1 %vm747_vm1, %v880_v27 }
 0x1b8   :  { %2014 = vmatpush3.msra.mxu1 %v2939_v51  ;;  %2015 = vmatprep.mubr.msk.f32.mxu1 %vm2075_vm2, %v5030_v43 }
 0x1b9   :  { %2018 = vmatprep.subr.mxu1 %v5030_v43 }
 0x277   :  { %v954_v1 = vpop.f32.mrf.mxu1 }
 0x278   :  { %2016 = vmatmul.mubr.msk.f32.vlgmr.msra.gmra.mxu1 %vm959_vm3, %v954_v1 }
 0x279   :  { %v2012_v63 = vpop.f32.mrf.mxu1  ;;  %2019 = vmatpush3.msra.mxu1 %v2653_v21  ;;  %2026 = vmatprep.mubr.msk.f32.mxu1 %vm2075_vm2, %v5030_v43  ;;  %v1034_v21 = vlaneseq }
 0x27a   :  { %2020 = vmatprep.subr.mxu1 %v5030_v43 }
 0x27b   :  { %2021 = vmatpush3.msra.mxu1 %v2660_v22  ;;  %v2957_v10 = vshrl.u32 %v1034_v21, 7 }
 0x27c   :  { %2022 = vmatprep.subr.mxu1 %v5030_v43 }
 0x27d   :  { %2023 = vmatpush3.msra.mxu1 %v2717_v9  ;;  %v4965_v44 = vsub.s32 0, %v2957_v10 }
 0x27e   :  { %2024 = vmatprep.subr.mxu1 %v5030_v43 }
 0x27f   :  { %2025 = vmatpush3.msra.mxu1 %v2738_v31 }
 0x280   :  { %2029 = vmatprep.subr.mxu1 %v5030_v43 }
 0x338   :  { %v1029_v27 = vpop.f32.mrf.mxu1 }
 0x339   :  { %v1033_v59 = vmul.f32 0.00048828125, %v1029_v27 }
 0x33a   :  { %v2017_v5 = vpop.f32.mrf.mxu1 }
 0x33b   :  { %v2962_v22 = vrot.slane %v1033_v59, %v4965_v44 }
 0x33d   :  { %v2966_v9 = vsub.f32 %v2664_v23, %v2962_v22  ;;  %v2970_v31 = vsub.f32 %v2668_v26, %v2962_v22  ;;  %v2974_v36 = vsub.f32 %v2672_v30, %v2962_v22  ;;  %v2978_v32 = vsub.f32 %v2676_v34, %v2962_v22 }
 0x33e   :  { %v2986_v23 = vsub.f32 %v2680_v38, %v2962_v22  ;;  %v2992_v30 = vsub.f32 %v2684_v42, %v2962_v22  ;;  %v3000_v63 = vsub.f32 %v2688_v46, %v2962_v22  ;;  %v3007_v42 = vsub.f32 %v2692_v50, %v2962_v22 }
 0x33f   :  { %v1102_v35 = vmul.f32 %v2966_v9, %v2966_v9  ;;  %v1103_v60 = vmul.f32 %v2970_v31, %v2970_v31  ;;  %v1104_v26 = vmul.f32 %v2974_v36, %v2974_v36  ;;  %v1105_v34 = vmul.f32 %v2978_v32, %v2978_v32 }
 0x340   :  { %v1106_v38 = vmul.f32 %v2986_v23, %v2986_v23  ;;  %v1107_v21 = vmul.f32 %v2992_v30, %v2992_v30  ;;  %v3014_v46 = vsub.f32 %v2696_v54, %v2962_v22  ;;  %v3021_v50 = vsub.f32 %v2700_v58, %v2962_v22 }
 0x341   :  { %v1166_v14 = vsel %vm747_vm1, %v1102_v35, 0.0  ;;  %v1167_v56 = vsel %vm747_vm1, %v1103_v60, 0.0  ;;  %v1169_v27 = vsel %vm747_vm1, %v1104_v26, 0.0  ;;  %v1171_v59 = vsel %vm747_vm1, %v1105_v34, 0.0 }
 0x342   :  { %v1168_v1 = vadd.f32 %v1167_v56, %v1166_v14  ;;  %v1108_v60 = vmul.f32 %v3000_v63, %v3000_v63  ;;  %v1173_v26 = vsel %vm747_vm1, %v1106_v38, 0.0  ;;  %v1109_v56 = vmul.f32 %v3007_v42, %v3007_v42 }
 0x343   :  { %v1175_v34 = vsel %vm747_vm1, %v1107_v21, 0.0  ;;  %v3028_v54 = vsub.f32 %v2704_v62, %v2962_v22  ;;  %v3035_v58 = vsub.f32 %v2708_v3, %v2962_v22 }
 0x344   :  { %v1170_v5 = vadd.f32 %v1169_v27, %v1168_v1  ;;  %v1110_v27 = vmul.f32 %v3014_v46, %v3014_v46  ;;  %v1177_v38 = vsel %vm747_vm1, %v1108_v60, 0.0  ;;  %v1179_v21 = vsel %vm747_vm1, %v1109_v56, 0.0 }
 0x345   :  { %5031 = vst [vmem:[#allocation21_spill] sm:$0xff] %v3035_v58 }
 0x346   :  { %v1172_v35 = vadd.f32 %v1171_v59, %v1170_v5  ;;  %v1111_v59 = vmul.f32 %v3021_v50, %v3021_v50  ;;  %v1181_v60 = vsel %vm747_vm1, %v1110_v27, 0.0 }
 0x348   :  { %v1174_v14 = vadd.f32 %v1173_v26, %v1172_v35  ;;  %v5032_v26 = vld [vmem:[#allocation2_spill] sm:$0xff]  ;;  %v1183_v56 = vsel %vm747_vm1, %v1111_v59, 0.0 }
 0x349   :  { %v3042_v62 = vsub.f32 %v5032_v26, %v2962_v22 }
 0x34a   :  { %v1176_v1 = vadd.f32 %v1175_v34, %v1174_v14  ;;  %v1112_v14 = vmul.f32 %v3028_v54, %v3028_v54 }
 0x34b   :  { %5033 = vst [vmem:[#allocation2_spill] sm:$0xff] %v3042_v62  ;;  %v1114_v44 = vmul.f32 %v3042_v62, %v3042_v62 }
 0x34c   :  { %v1178_v5 = vadd.f32 %v1177_v38, %v1176_v1  ;;  %v5034_v1 = vld [vmem:[#allocation3_spill] sm:$0xff]  ;;  %v1113_v38 = vmul.f32 %v3035_v58, %v3035_v58  ;;  %v1185_v27 = vsel %vm747_vm1, %v1112_v14, 0.0 }
 0x34d   :  { %v3049_v3 = vsub.f32 %v5034_v1, %v2962_v22  ;;  %v1189_v14 = vsel %vm747_vm1, %v1114_v44, 0.0 }
 0x34e   :  { %v1180_v35 = vadd.f32 %v1179_v21, %v1178_v5  ;;  %v5036_v21 = vld [vmem:[#allocation4_spill] sm:$0xff]  ;;  %v1187_v59 = vsel %vm747_vm1, %v1113_v38, 0.0 }
 0x34f   :  { %5035 = vst [vmem:[#allocation3_spill] sm:$0xff] %v3049_v3  ;;  %v3056_v26 = vsub.f32 %v5036_v21, %v2962_v22  ;;  %v1115_v58 = vmul.f32 %v3049_v3, %v3049_v3 }
 0x350   :  { %v1182_v34 = vadd.f32 %v1181_v60, %v1180_v35  ;;  %v5038_v60 = vld [vmem:[#allocation5_spill] sm:$0xff] }
 0x351   :  { %5037 = vst [vmem:[#allocation4_spill] sm:$0xff] %v3056_v26  ;;  %v3063_v1 = vsub.f32 %v5038_v60, %v2962_v22  ;;  %v1116_v62 = vmul.f32 %v3056_v26, %v3056_v26  ;;  %v1191_v38 = vsel %vm747_vm1, %v1115_v58, 0.0 }
 0x352   :  { %v1184_v5 = vadd.f32 %v1183_v56, %v1182_v34  ;;  %v5040_v56 = vld [vmem:[#allocation6_spill] sm:$0xff] }
 0x353   :  { %5039 = vst [vmem:[#allocation5_spill] sm:$0xff] %v3063_v1  ;;  %v3070_v21 = vsub.f32 %v5040_v56, %v2962_v22  ;;  %v1117_v3 = vmul.f32 %v3063_v1, %v3063_v1  ;;  %v1193_v44 = vsel %vm747_vm1, %v1116_v62, 0.0 }
 0x354   :  { %v1186_v35 = vadd.f32 %v1185_v27, %v1184_v5  ;;  %v5042_v27 = vld [vmem:[#allocation7_spill] sm:$0xff] }
 0x355   :  { %5041 = vst [vmem:[#allocation6_spill] sm:$0xff] %v3070_v21  ;;  %v3077_v60 = vsub.f32 %v5042_v27, %v2962_v22  ;;  %v1118_v26 = vmul.f32 %v3070_v21, %v3070_v21  ;;  %v1195_v58 = vsel %vm747_vm1, %v1117_v3, 0.0 }
 0x356   :  { %v1188_v34 = vadd.f32 %v1187_v59, %v1186_v35  ;;  %v5044_v59 = vld [vmem:[#allocation8_spill] sm:$0xff] }
 0x357   :  { %5043 = vst [vmem:[#allocation7_spill] sm:$0xff] %v3077_v60  ;;  %v3084_v56 = vsub.f32 %v5044_v59, %v2962_v22  ;;  %v1119_v1 = vmul.f32 %v3077_v60, %v3077_v60  ;;  %v1197_v62 = vsel %vm747_vm1, %v1118_v26, 0.0 }
 0x358   :  { %v1190_v5 = vadd.f32 %v1189_v14, %v1188_v34  ;;  %v5046_v14 = vld [vmem:[#allocation9_spill] sm:$0xff] }
 0x359   :  { %5045 = vst [vmem:[#allocation8_spill] sm:$0xff] %v3084_v56  ;;  %v3091_v27 = vsub.f32 %v5046_v14, %v2962_v22  ;;  %v1120_v21 = vmul.f32 %v3084_v56, %v3084_v56  ;;  %v1199_v3 = vsel %vm747_vm1, %v1119_v1, 0.0 }
 0x35a   :  { %v1192_v35 = vadd.f32 %v1191_v38, %v1190_v5  ;;  %v5048_v38 = vld [vmem:[#allocation10_spill] sm:$0xff] }
 0x35b   :  { %5047 = vst [vmem:[#allocation9_spill] sm:$0xff] %v3091_v27  ;;  %v3098_v59 = vsub.f32 %v5048_v38, %v2962_v22  ;;  %v1121_v60 = vmul.f32 %v3091_v27, %v3091_v27  ;;  %v1201_v26 = vsel %vm747_vm1, %v1120_v21, 0.0 }
 0x35c   :  { %v1194_v34 = vadd.f32 %v1193_v44, %v1192_v35  ;;  %v5050_v44 = vld [vmem:[#allocation11_spill] sm:$0xff] }
 0x35d   :  { %5049 = vst [vmem:[#allocation10_spill] sm:$0xff] %v3098_v59  ;;  %v3105_v14 = vsub.f32 %v5050_v44, %v2962_v22  ;;  %v1122_v56 = vmul.f32 %v3098_v59, %v3098_v59  ;;  %v1203_v1 = vsel %vm747_vm1, %v1121_v60, 0.0 }
 0x35e   :  { %v1196_v5 = vadd.f32 %v1195_v58, %v1194_v34  ;;  %v5051_v58 = vld [vmem:[#allocation12_spill] sm:$0xff] }
 0x35f   :  { %v3112_v38 = vsub.f32 %v5051_v58, %v2962_v22  ;;  %v1123_v27 = vmul.f32 %v3105_v14, %v3105_v14  ;;  %v1205_v21 = vsel %vm747_vm1, %v1122_v56, 0.0 }
 0x360   :  { %v1198_v35 = vadd.f32 %v1197_v62, %v1196_v5  ;;  %v5053_v62 = vld [vmem:[#allocation13_spill] sm:$0xff] }
 0x361   :  { %5052 = vst [vmem:[#allocation11_spill] sm:$0xff] %v3112_v38  ;;  %v3119_v44 = vsub.f32 %v5053_v62, %v2962_v22  ;;  %v1124_v59 = vmul.f32 %v3112_v38, %v3112_v38  ;;  %v1207_v60 = vsel %vm747_vm1, %v1123_v27, 0.0 }
 0x362   :  { %v1200_v34 = vadd.f32 %v1199_v3, %v1198_v35  ;;  %v5054_v3 = vld [vmem:[#allocation15_spill] sm:$0xff] }
 0x363   :  { %v3126_v58 = vsub.f32 %v5054_v3, %v2962_v22  ;;  %v1125_v62 = vmul.f32 %v3119_v44, %v3119_v44  ;;  %v1209_v56 = vsel %vm747_vm1, %v1124_v59, 0.0 }
 0x364   :  { %v1202_v5 = vadd.f32 %v1201_v26, %v1200_v34  ;;  %v3133_v26 = vsub.f32 %v2814_v8, %v2962_v22  ;;  %v3147_v8 = vsub.f32 %v2830_v55, %v2962_v22  ;;  %v3161_v55 = vsub.f32 %v2846_v16, %v2962_v22 }
 0x365   :  { %5055 = vst [vmem:[#allocation12_spill] sm:$0xff] %v3126_v58  ;;  %v1126_v38 = vmul.f32 %v3126_v58, %v3126_v58  ;;  %v1211_v27 = vsel %vm747_vm1, %v1125_v62, 0.0 }
 0x366   :  { %v1204_v35 = vadd.f32 %v1203_v1, %v1202_v5  ;;  %v5056_v1 = vld [vmem:[#allocation17_spill] sm:$0xff]  ;;  %5058 = vst [vmem:[#allocation15_spill] sm:$0xff] %v3147_v8 }
 0x367   :  { %v3140_v3 = vsub.f32 %v5056_v1, %v2962_v22  ;;  %v1213_v59 = vsel %vm747_vm1, %v1126_v38, 0.0 }
 0x368   :  { %v1206_v34 = vadd.f32 %v1205_v21, %v1204_v35  ;;  %v1127_v21 = vmul.f32 %v3133_v26, %v3133_v26 }
 0x369   :  { %5057 = vst [vmem:[#allocation13_spill] sm:$0xff] %v3140_v3  ;;  %v1128_v58 = vmul.f32 %v3140_v3, %v3140_v3 }
 0x36a   :  { %v1208_v5 = vadd.f32 %v1207_v60, %v1206_v34  ;;  %v5059_v60 = vld [vmem:[#allocation18_spill] sm:$0xff]  ;;  %v1215_v62 = vsel %vm747_vm1, %v1127_v21, 0.0 }
 0x36b   :  { %v3154_v1 = vsub.f32 %v5059_v60, %v2962_v22  ;;  %v1217_v38 = vsel %vm747_vm1, %v1128_v58, 0.0 }
 0x36c   :  { %v1210_v35 = vadd.f32 %v1209_v56, %v1208_v5  ;;  %v1129_v56 = vmul.f32 %v3147_v8, %v3147_v8  ;;  %v1131_v8 = vmul.f32 %v3161_v55, %v3161_v55 }
 0x36d   :  { %v1130_v3 = vmul.f32 %v3154_v1, %v3154_v1 }
 0x36e   :  { %v1212_v34 = vadd.f32 %v1211_v27, %v1210_v35  ;;  %v5060_v27 = vld [vmem:[#allocation19_spill] sm:$0xff]  ;;  %v1219_v21 = vsel %vm747_vm1, %v1129_v56, 0.0  ;;  %v1223_v56 = vsel %vm747_vm1, %v1131_v8, 0.0 }
 0x36f   :  { %v3168_v60 = vsub.f32 %v5060_v27, %v2962_v22  ;;  %v1221_v58 = vsel %vm747_vm1, %v1130_v3, 0.0 }
 0x370   :  { %v1214_v5 = vadd.f32 %v1213_v59, %v1212_v34  ;;  %v5061_v59 = vld [vmem:[#allocation20_spill] sm:$0xff] }
 0x371   :  { %v3175_v16 = vsub.f32 %v5061_v59, %v2962_v22  ;;  %v1132_v27 = vmul.f32 %v3168_v60, %v3168_v60 }
 0x372   :  { %v1216_v35 = vadd.f32 %v1215_v62, %v1214_v5  ;;  %v3182_v62 = vsub.f32 %v2864_v17, %v2962_v22  ;;  %v3196_v17 = vsub.f32 %v2874_v18, %v2962_v22  ;;  %v3210_v18 = vsub.f32 %v2670_v29, %v2962_v22 }
 0x373   :  { %v1133_v59 = vmul.f32 %v3175_v16, %v3175_v16  ;;  %v1225_v3 = vsel %vm747_vm1, %v1132_v27, 0.0  ;;  %v3224_v29 = vsub.f32 %v2678_v37, %v2962_v22  ;;  %v3238_v37 = vsub.f32 %v2686_v45, %v2962_v22 }
 0x374   :  { %v1218_v34 = vadd.f32 %v1217_v38, %v1216_v35  ;;  %v3189_v38 = vsub.f32 %v2870_v7, %v2962_v22  ;;  %v3203_v7 = vsub.f32 %v2666_v25, %v2962_v22  ;;  %v3217_v25 = vsub.f32 %v2674_v33, %v2962_v22 }
 0x375   :  { %v1227_v8 = vsel %vm747_vm1, %v1133_v59, 0.0  ;;  %v3231_v33 = vsub.f32 %v2682_v41, %v2962_v22  ;;  %v3245_v41 = vsub.f32 %v2690_v49, %v2962_v22  ;;  %v3252_v45 = vsub.f32 %v2694_v53, %v2962_v22 }
 0x376   :  { %v1220_v5 = vadd.f32 %v1219_v21, %v1218_v34  ;;  %v1134_v21 = vmul.f32 %v3182_v62, %v3182_v62  ;;  %v3259_v49 = vsub.f32 %v2698_v57, %v2962_v22  ;;  %v3266_v53 = vsub.f32 %v2702_v61, %v2962_v22 }
 0x377   :  { %v3273_v57 = vsub.f32 %v2706_v2, %v2962_v22  ;;  %v3280_v61 = vsub.f32 %v2710_v6, %v2962_v22  ;;  %v3287_v2 = vsub.f32 %v2720_v11, %v2962_v22  ;;  %v3294_v6 = vsub.f32 %v2725_v15, %v2962_v22 }
 0x378   :  { %v1222_v35 = vadd.f32 %v1221_v58, %v1220_v5  ;;  %v1135_v58 = vmul.f32 %v3189_v38, %v3189_v38  ;;  %v1229_v27 = vsel %vm747_vm1, %v1134_v21, 0.0  ;;  %v3301_v11 = vsub.f32 %v2729_v19, %v2962_v22 }
 0x379   :  { %v3308_v15 = vsub.f32 %v2733_v28, %v2962_v22  ;;  %v3315_v19 = vsub.f32 %v2744_v39, %v2962_v22  ;;  %v3322_v28 = vsub.f32 %v2750_v48, %v2962_v22  ;;  %v3329_v39 = vsub.f32 %v2760_v4, %v2962_v22 }
 0x37a   :  { %v1224_v34 = vadd.f32 %v1223_v56, %v1222_v35  ;;  %v1136_v56 = vmul.f32 %v3196_v17, %v3196_v17  ;;  %v1231_v59 = vsel %vm747_vm1, %v1135_v58, 0.0  ;;  %v3336_v48 = vsub.f32 %v2768_v24, %v2962_v22 }
 0x37b   :  { %v3343_v4 = vsub.f32 %v2778_v52, %v2962_v22  ;;  %v3350_v24 = vsub.f32 %v2786_v13, %v2962_v22  ;;  %v3357_v52 = vsub.f32 %v2794_v47, %v2962_v22 }
 0x37c   :  { %v1226_v5 = vadd.f32 %v1225_v3, %v1224_v34  ;;  %v1137_v3 = vmul.f32 %v3203_v7, %v3203_v7  ;;  %v1233_v21 = vsel %vm747_vm1, %v1136_v56, 0.0  ;;  %5062 = vst [vmem:[#allocation17_spill] sm:$0xff] %v3336_v48 }
 0x37d   :  { %5063 = vst [vmem:[#allocation18_spill] sm:$0xff] %v3343_v4  ;;  %5064 = vst [vmem:[#allocation19_spill] sm:$0xff] %v3357_v52 }
 0x37e   :  { %v1228_v35 = vadd.f32 %v1227_v8, %v1226_v5  ;;  %v1138_v8 = vmul.f32 %v3210_v18, %v3210_v18  ;;  %v1235_v58 = vsel %vm747_vm1, %v1137_v3, 0.0 }
 0x380   :  { %v1230_v34 = vadd.f32 %v1229_v27, %v1228_v35  ;;  %v1139_v27 = vmul.f32 %v3217_v25, %v3217_v25  ;;  %v1237_v56 = vsel %vm747_vm1, %v1138_v8, 0.0 }
 0x382   :  { %v1232_v5 = vadd.f32 %v1231_v59, %v1230_v34  ;;  %v1140_v59 = vmul.f32 %v3224_v29, %v3224_v29  ;;  %v1239_v3 = vsel %vm747_vm1, %v1139_v27, 0.0 }
 0x384   :  { %v1234_v35 = vadd.f32 %v1233_v21, %v1232_v5  ;;  %v1141_v21 = vmul.f32 %v3231_v33, %v3231_v33  ;;  %v1241_v8 = vsel %vm747_vm1, %v1140_v59, 0.0 }
 0x386   :  { %v1236_v34 = vadd.f32 %v1235_v58, %v1234_v35  ;;  %v1142_v58 = vmul.f32 %v3238_v37, %v3238_v37  ;;  %v1243_v27 = vsel %vm747_vm1, %v1141_v21, 0.0 }
 0x388   :  { %v1238_v5 = vadd.f32 %v1237_v56, %v1236_v34  ;;  %v1143_v56 = vmul.f32 %v3245_v41, %v3245_v41  ;;  %v1245_v59 = vsel %vm747_vm1, %v1142_v58, 0.0 }
 0x38a   :  { %v1240_v35 = vadd.f32 %v1239_v3, %v1238_v5  ;;  %v1144_v3 = vmul.f32 %v3252_v45, %v3252_v45  ;;  %v1247_v21 = vsel %vm747_vm1, %v1143_v56, 0.0 }
 0x38c   :  { %v1242_v34 = vadd.f32 %v1241_v8, %v1240_v35  ;;  %v1145_v8 = vmul.f32 %v3259_v49, %v3259_v49  ;;  %v1249_v58 = vsel %vm747_vm1, %v1144_v3, 0.0 }
 0x38e   :  { %v1244_v5 = vadd.f32 %v1243_v27, %v1242_v34  ;;  %v1146_v27 = vmul.f32 %v3266_v53, %v3266_v53  ;;  %v1251_v56 = vsel %vm747_vm1, %v1145_v8, 0.0 }
 0x390   :  { %v1246_v35 = vadd.f32 %v1245_v59, %v1244_v5  ;;  %v1147_v59 = vmul.f32 %v3273_v57, %v3273_v57  ;;  %v1253_v3 = vsel %vm747_vm1, %v1146_v27, 0.0 }
 0x392   :  { %v1248_v34 = vadd.f32 %v1247_v21, %v1246_v35  ;;  %v1148_v21 = vmul.f32 %v3280_v61, %v3280_v61  ;;  %v1255_v8 = vsel %vm747_vm1, %v1147_v59, 0.0 }
 0x394   :  { %v1250_v5 = vadd.f32 %v1249_v58, %v1248_v34  ;;  %v1149_v58 = vmul.f32 %v3287_v2, %v3287_v2  ;;  %v1257_v27 = vsel %vm747_vm1, %v1148_v21, 0.0 }
 0x396   :  { %v1252_v35 = vadd.f32 %v1251_v56, %v1250_v5  ;;  %v1150_v56 = vmul.f32 %v3294_v6, %v3294_v6  ;;  %v1259_v59 = vsel %vm747_vm1, %v1149_v58, 0.0 }
 0x398   :  { %v1254_v34 = vadd.f32 %v1253_v3, %v1252_v35  ;;  %v1151_v3 = vmul.f32 %v3301_v11, %v3301_v11  ;;  %v1261_v21 = vsel %vm747_vm1, %v1150_v56, 0.0 }
 0x39a   :  { %v1256_v5 = vadd.f32 %v1255_v8, %v1254_v34  ;;  %v1152_v8 = vmul.f32 %v3308_v15, %v3308_v15  ;;  %v1263_v58 = vsel %vm747_vm1, %v1151_v3, 0.0 }
 0x39c   :  { %v1258_v35 = vadd.f32 %v1257_v27, %v1256_v5  ;;  %v1153_v27 = vmul.f32 %v3315_v19, %v3315_v19  ;;  %v1265_v56 = vsel %vm747_vm1, %v1152_v8, 0.0 }
 0x39e   :  { %v1260_v34 = vadd.f32 %v1259_v59, %v1258_v35  ;;  %v1154_v59 = vmul.f32 %v3322_v28, %v3322_v28  ;;  %v1267_v3 = vsel %vm747_vm1, %v1153_v27, 0.0 }
 0x3a0   :  { %v1262_v5 = vadd.f32 %v1261_v21, %v1260_v34  ;;  %v1155_v21 = vmul.f32 %v3329_v39, %v3329_v39  ;;  %v1269_v8 = vsel %vm747_vm1, %v1154_v59, 0.0 }
 0x3a2   :  { %v1264_v35 = vadd.f32 %v1263_v58, %v1262_v5  ;;  %v1156_v58 = vmul.f32 %v3336_v48, %v3336_v48  ;;  %v1271_v27 = vsel %vm747_vm1, %v1155_v21, 0.0  ;;  %v1158_v48 = vmul.f32 %v3350_v24, %v3350_v24 }
 0x3a4   :  { %v1266_v34 = vadd.f32 %v1265_v56, %v1264_v35  ;;  %v1157_v56 = vmul.f32 %v3343_v4, %v3343_v4  ;;  %v1273_v59 = vsel %vm747_vm1, %v1156_v58, 0.0  ;;  %v1159_v4 = vmul.f32 %v3357_v52, %v3357_v52 }
 0x3a5   :  { %v1277_v58 = vsel %vm747_vm1, %v1158_v48, 0.0 }
 0x3a6   :  { %v1268_v5 = vadd.f32 %v1267_v3, %v1266_v34  ;;  %v5065_v3 = vld [vmem:[#allocation14_spill] sm:$0xff]  ;;  %v1275_v21 = vsel %vm747_vm1, %v1157_v56, 0.0  ;;  %v1279_v56 = vsel %vm747_vm1, %v1159_v4, 0.0 }
 0x3a7   :  { %v3364_v13 = vsub.f32 %v5065_v3, %v2962_v22 }
 0x3a8   :  { %v1270_v35 = vadd.f32 %v1269_v8, %v1268_v5  ;;  %v5067_v8 = vld [vmem:[#allocation16_spill] sm:$0xff] }
 0x3a9   :  { %5066 = vst [vmem:[#allocation20_spill] sm:$0xff] %v3364_v13  ;;  %v3371_v47 = vsub.f32 %v5067_v8, %v2962_v22  ;;  %v1160_v3 = vmul.f32 %v3364_v13, %v3364_v13 }
 0x3aa   :  { %v1272_v34 = vadd.f32 %v1271_v27, %v1270_v35  ;;  %v3378_v27 = vsub.f32 %v2818_v0, %v2962_v22  ;;  %v3392_v0 = vsub.f32 %v2834_v20, %v2962_v22 }
 0x3ab   :  { %5068 = vst [vmem:[#allocation14_spill] sm:$0xff] %v3371_v47  ;;  %v1161_v8 = vmul.f32 %v3371_v47, %v3371_v47  ;;  %v1281_v48 = vsel %vm747_vm1, %v1160_v3, 0.0 }
 0x3ac   :  { %v1274_v5 = vadd.f32 %v1273_v59, %v1272_v34  ;;  %5069 = vst [vmem:[#allocation16_spill] sm:$0xff] %v3378_v27  ;;  %v3385_v59 = vsub.f32 %v2826_v12, %v2962_v22  ;;  %5071 = vst [vmem:[#allocation23_spill] sm:$0xff] %v3392_v0  ;;  %v3399_v12 = vsub.f32 %v2842_v40, %v2962_v22 }
 0x3ad   :  { %v1283_v4 = vsel %vm747_vm1, %v1161_v8, 0.0  ;;  %v1164_v20 = vmul.f32 %v3392_v0, %v3392_v0 }
 0x3ae   :  { %v1276_v35 = vadd.f32 %v1275_v21, %v1274_v5  ;;  %5070 = vst [vmem:[#allocation22_spill] sm:$0xff] %v3385_v59  ;;  %v1162_v21 = vmul.f32 %v3378_v27, %v3378_v27  ;;  %v1165_v3 = vmul.f32 %v3399_v12, %v3399_v12 }
 0x3af   :  { %v1289_v40 = vsel %vm747_vm1, %v1164_v20, 0.0 }
 0x3b0   :  { %v1278_v34 = vadd.f32 %v1277_v58, %v1276_v35  ;;  %v1163_v58 = vmul.f32 %v3385_v59, %v3385_v59  ;;  %v1291_v59 = vsel %vm747_vm1, %v1165_v3, 0.0  ;;  %v5073_v3 = vld [vmem:[#allocation21_spill] sm:$0xff] }
 0x3b2   :  { %v1280_v5 = vadd.f32 %v1279_v56, %v1278_v34  ;;  %v1285_v56 = vsel %vm747_vm1, %v1162_v21, 0.0 }
 0x3b4   :  { %v1282_v35 = vadd.f32 %v1281_v48, %v1280_v5  ;;  %v1287_v5 = vsel %vm747_vm1, %v1163_v58, 0.0 }
 0x3b6   :  { %v1284_v34 = vadd.f32 %v1283_v4, %v1282_v35 }
 0x3b8   :  { %v1286_v47 = vadd.f32 %v1285_v56, %v1284_v34  ;;  %v5072_v56 = vsub.s32 0, %v2957_v10 }
 0x3ba   :  { %v1288_v48 = vadd.f32 %v1287_v5, %v1286_v47  ;;  %v5074_v5 = vld [vmem:[#allocation2_spill] sm:$0xff] }
 0x3bc   :  { %v1290_v22 = vadd.f32 %v1289_v40, %v1288_v48  ;;  %v5075_v48 = vld [vmem:[#allocation3_spill] sm:$0xff]  ;;  %v5076_v40 = vld [vmem:[#allocation4_spill] sm:$0xff] }
 0x3be   :  { %v1292_v27 = vadd.f32 %v1291_v59, %v1290_v22  ;;  %v5077_v22 = vld [vmem:[#allocation5_spill] sm:$0xff] }
 0x3c0   :  { %v1293_v8 = vrot.slane %v1292_v27, 4 }
 0x3c2   :  { %v1294_v35 = vadd.f32 %v1293_v8, %v1292_v27  ;;  %v5078_v8 = vld [vmem:[#allocation6_spill] sm:$0xff] }
 0x3c4   :  { %v1295_v4 = vrot.slane %v1294_v35, 2 }
 0x3c6   :  { %v1296_v13 = vadd.f32 %v1295_v4, %v1294_v35  ;;  %v5079_v4 = vld [vmem:[#allocation7_spill] sm:$0xff] }
 0x3c8   :  { %v1297_v0 = vrot.slane %v1296_v13, 1 }
 0x3ca   :  { %v1298_v52 = vadd.f32 %v1297_v0, %v1296_v13 }
 0x3cc   :  { %2027 = vmatmul.mubr.msk.f32.vlgmr.msra.gmra.mxu1 %vm747_vm1, %v1298_v52 }
 0x3cd   :  { %2030 = vmatpush3.msra.mxu1 %v2939_v51  ;;  %2031 = vmatprep.mubr.msk.f32.mxu1 %vm2075_vm2, %v5030_v43 }
 0x48c   :  { %v1368_v47 = vpop.f32.mrf.mxu1 }
 0x48d   :  { %2032 = vmatmul.mubr.msk.f32.vlgmr.msra.gmra.mxu1 %vm959_vm3, %v1368_v47 }
 0x48e   :  { %v2028_v21 = vpop.f32.mrf.mxu1 }
 0x48f   :  { %v5080_v21 = vld [vmem:[#allocation8_spill] sm:$0xff] }
 0x54d   :  { %v1441_v58 = vpop.f32.mrf.mxu1 }
 0x54e   :  { %v1445_v59 = vmul.f32 0.00048828125, %v1441_v58 }
 0x54f   :  { %v2033_v34 = vpop.f32.mrf.mxu1 }
 0x550   :  { %v1446_v20 = vadd.f32 1e-05, %v1445_v59  ;;  %v5081_v34 = vld [vmem:[#allocation9_spill] sm:$0xff] }
 0x552   :  { %2072 = vrsqrt.f32 %v1446_v20  ;;  %v5082_v20 = vld [vmem:[#allocation10_spill] sm:$0xff] }
 0x55f   :  { %v2073_v27 = vpop.eup %2072 }
 0x560   :  { %v3419_v13 = vrot.slane %v2073_v27, %v5072_v56 }
 0x562   :  { %v3423_v51 = vmul.f32 %v3419_v13, %v2966_v9  ;;  %v3427_v43 = vmul.f32 %v3419_v13, %v2970_v31  ;;  %v3431_v52 = vmul.f32 %v3419_v13, %v2974_v36  ;;  %v3435_v0 = vmul.f32 %v3419_v13, %v2978_v32 }
 0x563   :  { %v3439_v10 = vmul.f32 %v3419_v13, %v2986_v23  ;;  %v3443_v9 = vmul.f32 %v3419_v13, %v2992_v30  ;;  %v3447_v31 = vmul.f32 %v3419_v13, %v3000_v63  ;;  %v3451_v36 = vmul.f32 %v3419_v13, %v3007_v42 }
 0x564   :  { %v3455_v32 = vmul.f32 %v3419_v13, %v3014_v46  ;;  %v3459_v23 = vmul.f32 %v3419_v13, %v3021_v50  ;;  %v3463_v30 = vmul.f32 %v3419_v13, %v3028_v54  ;;  %v3467_v63 = vmul.f32 %v3419_v13, %v5073_v3  ;;  %v5083_v3 = vld [vmem:[#allocation11_spill] sm:$0xff] }
 0x565   :  { %v3471_v42 = vmul.f32 %v3419_v13, %v5074_v5  ;;  %v3475_v46 = vmul.f32 %v3419_v13, %v5075_v48  ;;  %v3479_v50 = vmul.f32 %v3419_v13, %v5076_v40  ;;  %v3483_v54 = vmul.f32 %v3419_v13, %v5077_v22  ;;  %v5084_v40 = vld [vmem:[#allocation12_spill] sm:$0xff] }
 0x566   :  { %v3487_v35 = vmul.f32 %v3419_v13, %v5078_v8  ;;  %v3491_v47 = vmul.f32 %v3419_v13, %v5079_v4  ;;  %v3495_v58 = vmul.f32 %v3419_v13, %v5080_v21  ;;  %v3499_v59 = vmul.f32 %v3419_v13, %v5081_v34  ;;  %v5085_v4 = vld [vmem:[#allocation13_spill] sm:$0xff]  ;;  %v5086_v21 = vld [vmem:[#allocation15_spill] sm:$0xff] }
 0x567   :  { %v3503_v27 = vmul.f32 %v3419_v13, %v5082_v20  ;;  %v3507_v56 = vmul.f32 %v3419_v13, %v3105_v14  ;;  %v3511_v5 = vmul.f32 %v3419_v13, %v5083_v3  ;;  %v3515_v48 = vmul.f32 %v3419_v13, %v3119_v44 }
 0x568   :  { %v3519_v22 = vmul.f32 %v3419_v13, %v5084_v40  ;;  %v3523_v8 = vmul.f32 %v3419_v13, %v3133_v26  ;;  %v3527_v14 = vmul.f32 %v3419_v13, %v5085_v4  ;;  %v3531_v34 = vmul.f32 %v3419_v13, %v5086_v21  ;;  %v5091_v4 = vld [vmem:[#allocation17_spill] sm:$0xff]  ;;  %v5093_v21 = vld [vmem:[#allocation18_spill] sm:$0xff] }
 0x569   :  { %v3535_v44 = vmul.f32 %v3419_v13, %v3154_v1  ;;  %v3539_v20 = vmul.f32 %v3419_v13, %v3161_v55  ;;  %v3543_v26 = vmul.f32 %v3419_v13, %v3168_v60  ;;  %v3547_v3 = vmul.f32 %v3419_v13, %v3175_v16 }
 0x56a   :  { %v3551_v40 = vmul.f32 %v3419_v13, %v3182_v62  ;;  %v3555_v1 = vmul.f32 %v3419_v13, %v3189_v38  ;;  %v3559_v55 = vmul.f32 %v3419_v13, %v3196_v17  ;;  %v3563_v60 = vmul.f32 %v3419_v13, %v3203_v7 }
 0x56b   :  { %v3567_v16 = vmul.f32 %v3419_v13, %v3210_v18  ;;  %v3571_v62 = vmul.f32 %v3419_v13, %v3217_v25  ;;  %v3575_v38 = vmul.f32 %v3419_v13, %v3224_v29  ;;  %v3579_v17 = vmul.f32 %v3419_v13, %v3231_v33 }
 0x56c   :  { %v3583_v7 = vmul.f32 %v3419_v13, %v3238_v37  ;;  %v3587_v18 = vmul.f32 %v3419_v13, %v3245_v41  ;;  %v3591_v25 = vmul.f32 %v3419_v13, %v3252_v45  ;;  %v3595_v29 = vmul.f32 %v3419_v13, %v3259_v49 }
 0x56d   :  { %v3599_v33 = vmul.f32 %v3419_v13, %v3266_v53  ;;  %v3603_v37 = vmul.f32 %v3419_v13, %v3273_v57  ;;  %v3607_v41 = vmul.f32 %v3419_v13, %v3280_v61  ;;  %v3611_v45 = vmul.f32 %v3419_v13, %v3287_v2 }
 0x56e   :  { %v3615_v49 = vmul.f32 %v3419_v13, %v3294_v6  ;;  %v3619_v53 = vmul.f32 %v3419_v13, %v3301_v11  ;;  %v3623_v57 = vmul.f32 %v3419_v13, %v3308_v15  ;;  %v3627_v61 = vmul.f32 %v3419_v13, %v3315_v19  ;;  %v3644_v15 = vld [vmem:[%s4941_s4] ss:$0 sm:$0xff] }
 0x56f   :  { %v3631_v2 = vmul.f32 %v3419_v13, %v3322_v28  ;;  %v3635_v6 = vmul.f32 %v3419_v13, %v3329_v39  ;;  %v3639_v11 = vmul.f32 %v3419_v13, %v5091_v4  ;;  %v3648_v19 = vmul.f32 %v3419_v13, %v5093_v21 }
 0x570   :  { %5087 = vst [vmem:[#allocation21_spill] sm:$0xff] %v3623_v57  ;;  %5088 = vst [vmem:[#allocation2_spill] sm:$0xff] %v3627_v61  ;;  %v3652_v28 = vmul.f32 %v3419_v13, %v3350_v24  ;;  %v5099_v57 = vld [vmem:[#allocation16_spill] sm:$0xff] }
 0x571   :  { %5089 = vst [vmem:[#allocation3_spill] sm:$0xff] %v3631_v2  ;;  %5090 = vst [vmem:[#allocation4_spill] sm:$0xff] %v3635_v6  ;;  %v5096_v2 = vld [vmem:[#allocation19_spill] sm:$0xff]  ;;  %v5097_v6 = vld [vmem:[#allocation20_spill] sm:$0xff]  ;;  %v3668_v21 = vmul.f32 %v3419_v13, %v5099_v57  ;;  %v3688_v57 = vmul.f32 %v3644_v15, %v3427_v43  ;;  %v3712_v43 = vmul.f32 %v3644_v15, %v3451_v36 }
 0x572   :  { %5092 = vst [vmem:[#allocation5_spill] sm:$0xff] %v3639_v11  ;;  %5094 = vst [vmem:[#allocation6_spill] sm:$0xff] %v3648_v19  ;;  %v3656_v39 = vmul.f32 %v3419_v13, %v5096_v2  ;;  %v3660_v4 = vmul.f32 %v3419_v13, %v5097_v6  ;;  %v5098_v11 = vld [vmem:[#allocation14_spill] sm:$0xff]  ;;  %v3680_v6 = vmul.f32 %v3419_v13, %v3399_v12 }
 0x573   :  { %5095 = vst [vmem:[#allocation7_spill] sm:$0xff] %v3652_v28  ;;  %v3664_v61 = vmul.f32 %v3419_v13, %v5098_v11  ;;  %v5100_v19 = vld [vmem:[#allocation22_spill] sm:$0xff]  ;;  %v5101_v28 = vld [vmem:[#allocation23_spill] sm:$0xff]  ;;  %v3684_v11 = vmul.f32 %v3644_v15, %v3423_v51  ;;  %v3700_v12 = vmul.f32 %v3644_v15, %v3439_v10  ;;  %v3708_v51 = vmul.f32 %v3644_v15, %v3447_v31 }
 0x574   :  { %v3672_v24 = vmul.f32 %v3419_v13, %v5100_v19  ;;  %v3676_v2 = vmul.f32 %v3419_v13, %v5101_v28  ;;  %v3692_v19 = vmul.f32 %v3644_v15, %v3431_v52  ;;  %v3696_v28 = vmul.f32 %v3644_v15, %v3435_v0 }
 0x575   :  { %v3704_v13 = vmul.f32 %v3644_v15, %v3443_v9  ;;  %v3716_v52 = vmul.f32 %v3644_v15, %v3455_v32  ;;  %v3720_v0 = vmul.f32 %v3644_v15, %v3459_v23  ;;  %v3724_v10 = vmul.f32 %v3644_v15, %v3463_v30 }
 0x576   :  { %v3728_v9 = vmul.f32 %v3644_v15, %v3467_v63  ;;  %v3732_v31 = vmul.f32 %v3644_v15, %v3471_v42  ;;  %v3736_v36 = vmul.f32 %v3644_v15, %v3475_v46  ;;  %v3740_v32 = vmul.f32 %v3644_v15, %v3479_v50 }
 0x577   :  { %v3744_v23 = vmul.f32 %v3644_v15, %v3483_v54  ;;  %v3748_v30 = vmul.f32 %v3644_v15, %v3487_v35  ;;  %v3752_v63 = vmul.f32 %v3644_v15, %v3491_v47  ;;  %v3756_v42 = vmul.f32 %v3644_v15, %v3495_v58 }
 0x578   :  { %v3760_v46 = vmul.f32 %v3644_v15, %v3499_v59  ;;  %v3764_v50 = vmul.f32 %v3644_v15, %v3503_v27  ;;  %v3768_v54 = vmul.f32 %v3644_v15, %v3507_v56  ;;  %v3772_v35 = vmul.f32 %v3644_v15, %v3511_v5 }
 0x579   :  { %v3776_v47 = vmul.f32 %v3644_v15, %v3515_v48  ;;  %v3780_v58 = vmul.f32 %v3644_v15, %v3519_v22  ;;  %v3784_v59 = vmul.f32 %v3644_v15, %v3523_v8  ;;  %v3788_v27 = vmul.f32 %v3644_v15, %v3527_v14 }
 0x57a   :  { %v3792_v56 = vmul.f32 %v3644_v15, %v3531_v34  ;;  %v3796_v5 = vmul.f32 %v3644_v15, %v3535_v44  ;;  %v3800_v48 = vmul.f32 %v3644_v15, %v3539_v20  ;;  %v3804_v22 = vmul.f32 %v3644_v15, %v3543_v26 }
 0x57b   :  { %v3808_v8 = vmul.f32 %v3644_v15, %v3547_v3  ;;  %v3812_v14 = vmul.f32 %v3644_v15, %v3551_v40  ;;  %v3816_v34 = vmul.f32 %v3644_v15, %v3555_v1  ;;  %v3820_v44 = vmul.f32 %v3644_v15, %v3559_v55 }
 0x57c   :  { %v3824_v20 = vmul.f32 %v3644_v15, %v3563_v60  ;;  %v3828_v26 = vmul.f32 %v3644_v15, %v3567_v16  ;;  %v3832_v3 = vmul.f32 %v3644_v15, %v3571_v62  ;;  %v3836_v40 = vmul.f32 %v3644_v15, %v3575_v38 }
 0x57d   :  { %v3840_v1 = vmul.f32 %v3644_v15, %v3579_v17  ;;  %v3844_v55 = vmul.f32 %v3644_v15, %v3583_v7  ;;  %v3848_v60 = vmul.f32 %v3644_v15, %v3587_v18  ;;  %v3852_v16 = vmul.f32 %v3644_v15, %v3591_v25 }
 0x57e   :  { %v3856_v62 = vmul.f32 %v3644_v15, %v3595_v29  ;;  %v3860_v38 = vmul.f32 %v3644_v15, %v3599_v33  ;;  %v3864_v17 = vmul.f32 %v3644_v15, %v3603_v37  ;;  %v3868_v7 = vmul.f32 %v3644_v15, %v3607_v41  ;;  %v5106_v33 = vld [vmem:[#allocation21_spill] sm:$0xff] }
 0x57f   :  { %v3872_v18 = vmul.f32 %v3644_v15, %v3611_v45  ;;  %v3876_v25 = vmul.f32 %v3644_v15, %v3615_v49  ;;  %v3880_v29 = vmul.f32 %v3644_v15, %v3619_v53  ;;  %v3884_v37 = vmul.f32 %v3644_v15, %v5106_v33  ;;  %v3905_v33 = vld [vmem:[%s4942_s5] ss:$0 sm:$0xff] }
 0x580   :  { %5102 = vst [vmem:[#allocation8_spill] sm:$0xff] %v3864_v17  ;;  %5103 = vst [vmem:[#allocation9_spill] sm:$0xff] %v3868_v7  ;;  %v5108_v17 = vld [vmem:[#allocation2_spill] sm:$0xff]  ;;  %v5110_v7 = vld [vmem:[#allocation3_spill] sm:$0xff] }
 0x581   :  { %5104 = vst [vmem:[#allocation10_spill] sm:$0xff] %v3872_v18  ;;  %5105 = vst [vmem:[#allocation11_spill] sm:$0xff] %v3876_v25  ;;  %v3888_v41 = vmul.f32 %v3644_v15, %v5108_v17  ;;  %v3892_v45 = vmul.f32 %v3644_v15, %v5110_v7  ;;  %v5111_v18 = vld [vmem:[#allocation4_spill] sm:$0xff]  ;;  %v5112_v25 = vld [vmem:[#allocation5_spill] sm:$0xff] }
 0x582   :  { %5107 = vst [vmem:[#allocation12_spill] sm:$0xff] %v3884_v37  ;;  %v3896_v49 = vmul.f32 %v3644_v15, %v5111_v18  ;;  %v3900_v53 = vmul.f32 %v3644_v15, %v5112_v25  ;;  %v5114_v37 = vld [vmem:[#allocation6_spill] sm:$0xff]  ;;  %v3917_v18 = vmul.f32 %v3644_v15, %v3656_v39  ;;  %v3921_v25 = vmul.f32 %v3644_v15, %v3660_v4 }
 0x583   :  { %5109 = vst [vmem:[#allocation13_spill] sm:$0xff] %v3888_v41  ;;  %v3909_v17 = vmul.f32 %v3644_v15, %v5114_v37  ;;  %v5115_v41 = vld [vmem:[#allocation7_spill] sm:$0xff]  ;;  %v3929_v37 = vmul.f32 %v3644_v15, %v3668_v21  ;;  %v3937_v39 = vmul.f32 %v3644_v15, %v3676_v2  ;;  %v3941_v4 = vmul.f32 %v3644_v15, %v3680_v6 }
 0x584   :  { %5113 = vst [vmem:[#allocation15_spill] sm:$0xff] %v3900_v53  ;;  %v3913_v7 = vmul.f32 %v3644_v15, %v5115_v41  ;;  %v3925_v53 = vmul.f32 %v3644_v15, %v3664_v61  ;;  %v3933_v41 = vmul.f32 %v3644_v15, %v3672_v24  ;;  %v3945_v61 = vadd.f32 %v3905_v33, %v3684_v11 }
 0x585   :  { %v3949_v21 = vadd.f32 %v3905_v33, %v3688_v57  ;;  %v3953_v24 = vadd.f32 %v3905_v33, %v3692_v19  ;;  %v3957_v2 = vadd.f32 %v3905_v33, %v3696_v28  ;;  %v3961_v15 = vadd.f32 %v3905_v33, %v3700_v12 }
 0x586   :  { %v3965_v6 = vadd.f32 %v3905_v33, %v3704_v13  ;;  %v3969_v11 = vadd.f32 %v3905_v33, %v3708_v51  ;;  %v3973_v57 = vadd.f32 %v3905_v33, %v3712_v43  ;;  %v3977_v19 = vadd.f32 %v3905_v33, %v3716_v52 }
 0x587   :  { %v3981_v28 = vadd.f32 %v3905_v33, %v3720_v0  ;;  %v3985_v12 = vadd.f32 %v3905_v33, %v3724_v10  ;;  %v3989_v13 = vadd.f32 %v3905_v33, %v3728_v9  ;;  %v3993_v51 = vadd.f32 %v3905_v33, %v3732_v31 }
 0x588   :  { %v3997_v43 = vadd.f32 %v3905_v33, %v3736_v36  ;;  %v4001_v52 = vadd.f32 %v3905_v33, %v3740_v32  ;;  %v4005_v0 = vadd.f32 %v3905_v33, %v3744_v23  ;;  %v4009_v10 = vadd.f32 %v3905_v33, %v3748_v30 }
 0x589   :  { %v4013_v9 = vadd.f32 %v3905_v33, %v3752_v63  ;;  %v4017_v31 = vadd.f32 %v3905_v33, %v3756_v42  ;;  %v4021_v36 = vadd.f32 %v3905_v33, %v3760_v46  ;;  %v4025_v32 = vadd.f32 %v3905_v33, %v3764_v50 }
 0x58a   :  { %v4029_v23 = vadd.f32 %v3905_v33, %v3768_v54  ;;  %v4033_v30 = vadd.f32 %v3905_v33, %v3772_v35  ;;  %v4037_v63 = vadd.f32 %v3905_v33, %v3776_v47  ;;  %v4041_v42 = vadd.f32 %v3905_v33, %v3780_v58 }
 0x58b   :  { %v4045_v46 = vadd.f32 %v3905_v33, %v3784_v59  ;;  %v4049_v50 = vadd.f32 %v3905_v33, %v3788_v27  ;;  %v4053_v54 = vadd.f32 %v3905_v33, %v3792_v56  ;;  %v4057_v35 = vadd.f32 %v3905_v33, %v3796_v5 }
 0x58c   :  { %v4061_v47 = vadd.f32 %v3905_v33, %v3800_v48  ;;  %v4065_v58 = vadd.f32 %v3905_v33, %v3804_v22  ;;  %v4069_v59 = vadd.f32 %v3905_v33, %v3808_v8  ;;  %v4073_v27 = vadd.f32 %v3905_v33, %v3812_v14 }
 0x58d   :  { %v4077_v56 = vadd.f32 %v3905_v33, %v3816_v34  ;;  %v4081_v5 = vadd.f32 %v3905_v33, %v3820_v44  ;;  %v4085_v48 = vadd.f32 %v3905_v33, %v3824_v20  ;;  %v4089_v22 = vadd.f32 %v3905_v33, %v3828_v26 }
 0x58e   :  { %v4093_v8 = vadd.f32 %v3905_v33, %v3832_v3  ;;  %v4097_v14 = vadd.f32 %v3905_v33, %v3836_v40  ;;  %v4101_v34 = vadd.f32 %v3905_v33, %v3840_v1  ;;  %v4105_v44 = vadd.f32 %v3905_v33, %v3844_v55  ;;  %v5120_v1 = vld [vmem:[#allocation8_spill] sm:$0xff] }
 0x58f   :  { %v4109_v20 = vadd.f32 %v3905_v33, %v3848_v60  ;;  %v4113_v26 = vadd.f32 %v3905_v33, %v3852_v16  ;;  %v4117_v3 = vadd.f32 %v3905_v33, %v3856_v62  ;;  %v4121_v40 = vadd.f32 %v3905_v33, %v3860_v38 }
 0x590   :  { %5116 = vst [vmem:[#allocation17_spill] sm:$0xff] %v4105_v44  ;;  %v4125_v55 = vadd.f32 %v3905_v33, %v5120_v1  ;;  %v5122_v44 = vld [vmem:[#allocation9_spill] sm:$0xff]  ;;  %v4141_v38 = vadd.f32 %v3905_v33, %v3880_v29  ;;  %vm1658_vm4 = vcmp.gt.f32.partialorder %v3945_v61, 0.0  ;;  %vm1659_vm5 = vcmp.gt.f32.partialorder %v3949_v21, 0.0 }
 0x591   :  { %5117 = vst [vmem:[#allocation18_spill] sm:$0xff] %v4109_v20  ;;  %5118 = vst [vmem:[#allocation19_spill] sm:$0xff] %v4113_v26  ;;  %v4129_v60 = vadd.f32 %v3905_v33, %v5122_v44  ;;  %v5123_v20 = vld [vmem:[#allocation10_spill] sm:$0xff]  ;;  %v5124_v26 = vld [vmem:[#allocation11_spill] sm:$0xff]  ;;  %vm1660_vm6 = vcmp.gt.f32.partialorder %v3953_v24, 0.0  ;;  %vm1661_vm7 = vcmp.gt.f32.partialorder %v3957_v2, 0.0 }
 0x592   :  { %5119 = vst [vmem:[#allocation20_spill] sm:$0xff] %v4121_v40  ;;  %5121 = vst [vmem:[#allocation14_spill] sm:$0xff] %v4125_v55  ;;  %v4133_v16 = vadd.f32 %v3905_v33, %v5123_v20  ;;  %v4137_v62 = vadd.f32 %v3905_v33, %v5124_v26  ;;  %v5127_v40 = vld [vmem:[#allocation12_spill] sm:$0xff]  ;;  %v5128_v55 = vld [vmem:[#allocation13_spill] sm:$0xff]  ;;  %v4153_v20 = vadd.f32 %v3905_v33, %v3892_v45  ;;  %vm1662_vm8 = vcmp.gt.f32.partialorder %v3961_v15, 0.0 }
 0x593   :  { %5126 = vst [vmem:[#allocation22_spill] sm:$0xff] %v4141_v38  ;;  %v4145_v1 = vadd.f32 %v3905_v33, %v5127_v40  ;;  %v4149_v44 = vadd.f32 %v3905_v33, %v5128_v55  ;;  %v4157_v26 = vadd.f32 %v3905_v33, %v3896_v49  ;;  %v4165_v40 = vadd.f32 %v3905_v33, %v3909_v17 }
 0x594   :  { %5125 = vst [vmem:[#allocation16_spill] sm:$0xff] %v4137_v62  ;;  %v5130_v62 = vld [vmem:[#allocation15_spill] sm:$0xff]  ;;  %v4169_v55 = vadd.f32 %v3905_v33, %v3913_v7  ;;  %v4173_v45 = vadd.f32 %v3905_v33, %v3917_v18  ;;  %v4177_v49 = vadd.f32 %v3905_v33, %v3921_v25  ;;  %v4185_v17 = vadd.f32 %v3905_v33, %v3929_v37 }
 0x595   :  { %5129 = vst [vmem:[#allocation23_spill] sm:$0xff] %v4157_v26  ;;  %v4161_v29 = vadd.f32 %v3905_v33, %v5130_v62  ;;  %5132 = vst [vmem:[#allocation2_spill] sm:$0xff] %v4165_v40  ;;  %v4181_v62 = vadd.f32 %v3905_v33, %v3925_v53  ;;  %v4189_v7 = vadd.f32 %v3905_v33, %v3933_v41  ;;  %vm1663_vm9 = vcmp.gt.f32.partialorder %v3965_v6, 0.0 }
 0x596   :  { %5133 = vst [vmem:[#allocation3_spill] sm:$0xff] %v4169_v55  ;;  %5134 = vst [vmem:[#allocation4_spill] sm:$0xff] %v4173_v45  ;;  %vm1664_vm10 = vcmp.gt.f32.partialorder %v3969_v11, 0.0  ;;  %vm1665_vm11 = vcmp.gt.f32.partialorder %v3973_v57, 0.0  ;;  %vm1666_vm12 = vcmp.gt.f32.partialorder %v3977_v19, 0.0  ;;  %v4202_v53 = vadd.f32 %v3905_v33, %v3937_v39 }
 0x597   :  { %5131 = vst [vmem:[#allocation21_spill] sm:$0xff] %v4161_v29  ;;  %5135 = vst [vmem:[#allocation5_spill] sm:$0xff] %v4177_v49  ;;  %vm1667_vm13 = vcmp.gt.f32.partialorder %v3981_v28, 0.0  ;;  %v1722_v18 = vmul.f32 0.2, %v3945_v61  ;;  %v4210_v41 = vadd.f32 %v3905_v33, %v3941_v4  ;;  %vm1668_vm14 = vcmp.gt.f32.partialorder %v3985_v12, 0.0 }
 0x598   :  { %5136 = vst [vmem:[#allocation6_spill] sm:$0xff] %v4181_v62  ;;  %5137 = vst [vmem:[#allocation7_spill] sm:$0xff] %v4185_v17  ;;  %v1723_v25 = vmul.f32 0.2, %v3949_v21  ;;  %v1724_v37 = vmul.f32 0.2, %v3953_v24 }
 0x599   :  { %5138 = vst [vmem:[#allocation8_spill] sm:$0xff] %v4189_v7  ;;  %5139 = vst [vmem:[#allocation9_spill] sm:$0xff] %v4202_v53  ;;  %v1725_v7 = vmul.f32 0.2, %v3957_v2  ;;  %v1726_v17 = vmul.f32 0.2, %v3961_v15  ;;  %v1786_v33 = vsel %vm1658_vm4, %v3945_v61, %v1722_v18 }
 0x59a   :  { %5140 = vst [vmem:[#allocation10_spill] sm:$0xff] %v4210_v41  ;;  %v1727_v39 = vmul.f32 0.2, %v3965_v6  ;;  %vm1669_vm15 = vcmp.gt.f32.partialorder %v3989_v13, 0.0  ;;  %v1728_v53 = vmul.f32 0.2, %v3969_v11  ;;  %v1787_v55 = vsel %vm1659_vm5, %v3949_v21, %v1723_v25 }
 0x59b   :  { %v1729_v62 = vmul.f32 0.2, %v3973_v57  ;;  %v1730_v49 = vmul.f32 0.2, %v3977_v19  ;;  %vm1670_vm0 = vcmp.gt.f32.partialorder %v3993_v51, 0.0  ;;  %1850 = vst.msk [vmem:[%s4943_s6] sm:$0xff] %vm747_vm1, %v1786_v33  ;;  %v1788_v21 = vsel %vm1660_vm6, %v3953_v24, %v1724_v37 }
 0x59c   :  { %v1731_v4 = vmul.f32 0.2, %v3981_v28  ;;  %v4226_v41 = vmul.f32 0.2, %v3985_v12  ;;  %v4229_v45 = vmul.f32 0.2, %v3989_v13  ;;  %v1789_v24 = vsel %vm1661_vm7, %v3957_v2, %v1725_v7 }
 0x59d   :  { %vm1671_vm2 = vcmp.gt.f32.partialorder %v3997_v43, 0.0  ;;  %v4240_v61 = vmul.f32 0.2, %v3993_v51  ;;  %v4243_v18 = vmul.f32 0.2, %v3997_v43  ;;  %1851 = vst.msk [vmem:[%s4943_s6 + $0x8] sm:$0xff] %vm747_vm1, %v1787_v55  ;;  %v1790_v2 = vsel %vm1662_vm8, %v3961_v15, %v1726_v17 }
 0x59e   :  { %v4246_v40 = vmul.f32 0.2, %v4001_v52  ;;  %vm1672_vm3 = vcmp.gt.f32.partialorder %v4001_v52, 0.0  ;;  %v4257_v25 = vmul.f32 0.2, %v4005_v0  ;;  %1852 = vst.msk [vmem:[%s4943_s6 + $0x10] sm:$0xff] %vm747_vm1, %v1788_v21  ;;  %v1791_v15 = vsel %vm1663_vm9, %v3965_v6, %v1727_v39 }
 0x59f   :  { %v4260_v33 = vmul.f32 0.2, %v4009_v10  ;;  %v4263_v29 = vmul.f32 0.2, %v4013_v9  ;;  %vm1673_vm4 = vcmp.gt.f32.partialorder %v4005_v0, 0.0  ;;  %1853 = vst.msk [vmem:[%s4943_s6 + $0x18] sm:$0xff] %vm747_vm1, %v1789_v24  ;;  %v1792_v6 = vsel %vm1664_vm10, %v3969_v11, %v1728_v53 }
 0x5a0   :  { %v4274_v55 = vmul.f32 0.2, %v4017_v31  ;;  %v4277_v37 = vmul.f32 0.2, %v4021_v36  ;;  %vm1674_vm5 = vcmp.gt.f32.partialorder %v4009_v10, 0.0  ;;  %1854 = vst.msk [vmem:[%s4943_s6 + $0x20] sm:$0xff] %vm747_vm1, %v1790_v2  ;;  %v1793_v11 = vsel %vm1665_vm11, %v3973_v57, %v1729_v62 }
 0x5a1   :  { %5141 = vst [vmem:[#allocation11_spill] sm:$0xff] %v4260_v33  ;;  %v4280_v33 = vmul.f32 0.2, %v4025_v32  ;;  %v4291_v7 = vmul.f32 0.2, %v4029_v23  ;;  %vm1675_vm6 = vcmp.gt.f32.partialorder %v4013_v9, 0.0  ;;  %v1794_v57 = vsel %vm1666_vm12, %v3977_v19, %v1730_v49 }
 0x5a2   :  { %5142 = vst [vmem:[#allocation12_spill] sm:$0xff] %v4277_v37  ;;  %v4294_v21 = vmul.f32 0.2, %v4033_v30  ;;  %v4297_v37 = vmul.f32 0.2, %v4037_v63  ;;  %1855 = vst.msk [vmem:[%s4943_s6 + $0x28] sm:$0xff] %vm747_vm1, %v1791_v15  ;;  %v1795_v49 = vsel %vm1667_vm13, %v3981_v28, %v1731_v4  ;;  %v1796_v4 = vsel %vm1668_vm14, %v3985_v12, %v4226_v41 }
 0x5a3   :  { %v4308_v17 = vmul.f32 0.2, %v4041_v42  ;;  %v4311_v24 = vmul.f32 0.2, %v4045_v46  ;;  %vm1676_vm7 = vcmp.gt.f32.partialorder %v4017_v31, 0.0  ;;  %1856 = vst.msk [vmem:[%s4943_s6 + $0x30] sm:$0xff] %vm747_vm1, %v1792_v6 }
 0x5a4   :  { %5143 = vst [vmem:[#allocation13_spill] sm:$0xff] %v4294_v21  ;;  %v4314_v21 = vmul.f32 0.2, %v4049_v50  ;;  %v4325_v39 = vmul.f32 0.2, %v4053_v54  ;;  %1857 = vst.msk [vmem:[%s4943_s6 + $0x38] sm:$0xff] %vm747_vm1, %v1793_v11 }
 0x5a5   :  { %5144 = vst [vmem:[#allocation15_spill] sm:$0xff] %v4311_v24  ;;  %v4328_v2 = vmul.f32 0.2, %v4057_v35  ;;  %v4331_v24 = vmul.f32 0.2, %v4061_v47  ;;  %vm1680_vm11 = vcmp.gt.f32.partialorder %v4033_v30, 0.0 }
 0x5a6   :  { %v4344_v53 = vmul.f32 0.2, %v4065_v58  ;;  %v4347_v15 = vmul.f32 0.2, %v4069_v59  ;;  %v4364_v62 = vmul.f32 0.2, %v4077_v56 }
 0x5a7   :  { %5145 = vst [vmem:[#allocation24_spill] sm:$0xff] %v4331_v24  ;;  %v4350_v24 = vmul.f32 0.2, %v4073_v27  ;;  %v4367_v6 = vmul.f32 0.2, %v4081_v5  ;;  %1858 = vst.msk [vmem:[%s4943_s6 + $0x40] sm:$0xff] %vm747_vm1, %v1794_v57 }
 0x5a8   :  { %v4370_v19 = vmul.f32 0.2, %v4085_v48  ;;  %vm1684_vm12 = vcmp.gt.f32.partialorder %v4049_v50, 0.0  ;;  %v4384_v11 = vmul.f32 0.2, %v4089_v22  ;;  %1859 = vst.msk [vmem:[%s4943_s6 + $0x48] sm:$0xff] %vm747_vm1, %v1795_v49  ;;  %v1797_v49 = vsel %vm1669_vm15, %v3989_v13, %v4229_v45 }
 0x5a9   :  { %v4390_v28 = vmul.f32 0.2, %v4097_v14  ;;  %vm1688_vm13 = vcmp.gt.f32.partialorder %v4065_v58, 0.0  ;;  %v4405_v57 = vmul.f32 0.2, %v4101_v34  ;;  %v5152_v12 = vld [vmem:[#allocation18_spill] sm:$0xff] }
 0x5aa   :  { %5146 = vst [vmem:[#allocation25_spill] sm:$0xff] %v4370_v19  ;;  %v4387_v19 = vmul.f32 0.2, %v4093_v8  ;;  %v4411_v41 = vmul.f32 0.2, %v5152_v12  ;;  %1860 = vst.msk [vmem:[%s4943_s6 + $0x50] sm:$0xff] %vm747_vm1, %v1796_v4  ;;  %v1798_v4 = vsel %vm1670_vm0, %v3993_v51, %v4240_v61  ;;  %v1799_v61 = vsel %vm1671_vm2, %v3997_v43, %v4243_v18 }
 0x5ab   :  { %5148 = vst [vmem:[#allocation27_spill] sm:$0xff] %v4390_v28  ;;  %5149 = vst [vmem:[#allocation28_spill] sm:$0xff] %v4405_v57  ;;  %v5150_v28 = vld [vmem:[#allocation17_spill] sm:$0xff]  ;;  %vm1692_vm14 = vcmp.gt.f32.partialorder %v4081_v5, 0.0  ;;  %v4429_v57 = vmul.f32 0.2, %v4117_v3  ;;  %v1800_v18 = vsel %vm1672_vm3, %v4001_v52, %v4246_v40  ;;  %v1801_v40 = vsel %vm1673_vm4, %v4005_v0, %v4257_v25 }
 0x5ac   :  { %5147 = vst [vmem:[#allocation26_spill] sm:$0xff] %v4387_v19  ;;  %v4408_v19 = vmul.f32 0.2, %v5150_v28  ;;  %5153 = vst [vmem:[#allocation18_spill] sm:$0xff] %v4411_v41  ;;  %v5157_v13 = vld [vmem:[#allocation20_spill] sm:$0xff]  ;;  %vm1696_vm15 = vcmp.gt.f32.partialorder %v4097_v14, 0.0 }
 0x5ad   :  { %5156 = vst [vmem:[#allocation29_spill] sm:$0xff] %v4429_v57  ;;  %v4432_v45 = vmul.f32 0.2, %v5157_v13  ;;  %1861 = vst.msk [vmem:[%s4943_s6 + $0x58] sm:$0xff] %vm747_vm1, %v1797_v49  ;;  %v5159_v57 = vld [vmem:[#allocation14_spill] sm:$0xff]  ;;  %v5162_v49 = vld [vmem:[#allocation16_spill] sm:$0xff] }
 0x5ae   :  { %5151 = vst [vmem:[#allocation17_spill] sm:$0xff] %v4408_v19  ;;  %v5154_v19 = vld [vmem:[#allocation19_spill] sm:$0xff]  ;;  %v4453_v51 = vmul.f32 0.2, %v4133_v16  ;;  %1862 = vst.msk [vmem:[%s4943_s6 + $0x60] sm:$0xff] %vm747_vm1, %v1798_v4  ;;  %vm1704_vm2 = vcmp.gt.f32.partialorder %v4129_v60, 0.0 }
 0x5af   :  { %v4426_v41 = vmul.f32 0.2, %v5154_v19  ;;  %5158 = vst [vmem:[#allocation20_spill] sm:$0xff] %v4432_v45  ;;  %v4447_v45 = vmul.f32 0.2, %v5159_v57  ;;  %vm1700_vm0 = vcmp.gt.f32.partialorder %v5154_v19, 0.0 }
 0x5b0   :  { %5161 = vst [vmem:[#allocation30_spill] sm:$0xff] %v4453_v51  ;;  %v4468_v51 = vmul.f32 0.2, %v5162_v49  ;;  %v4474_v43 = vmul.f32 0.2, %v4145_v1  ;;  %1863 = vst.msk [vmem:[%s4943_s6 + $0x68] sm:$0xff] %vm747_vm1, %v1799_v61 }
 0x5b1   :  { %5155 = vst [vmem:[#allocation19_spill] sm:$0xff] %v4426_v41  ;;  %v4450_v41 = vmul.f32 0.2, %v4129_v60  ;;  %v4489_v4 = vmul.f32 0.2, %v4149_v44  ;;  %1864 = vst.msk [vmem:[%s4943_s6 + $0x70] sm:$0xff] %vm747_vm1, %v1800_v18 }
 0x5b2   :  { %5163 = vst [vmem:[#allocation16_spill] sm:$0xff] %v4474_v43  ;;  %v4492_v43 = vmul.f32 0.2, %v4153_v20  ;;  %v4495_v52 = vmul.f32 0.2, %v4157_v26  ;;  %vm1708_vm3 = vcmp.gt.f32.partialorder %v4145_v1, 0.0 }
 0x5b3   :  { %5160 = vst [vmem:[#allocation14_spill] sm:$0xff] %v4450_v41  ;;  %v4471_v41 = vmul.f32 0.2, %v4141_v38  ;;  %5164 = vst [vmem:[#allocation31_spill] sm:$0xff] %v4489_v4  ;;  %v5167_v61 = vld [vmem:[#allocation21_spill] sm:$0xff]  ;;  %v5171_v0 = vld [vmem:[#allocation3_spill] sm:$0xff] }
 0x5b4   :  { %5165 = vst [vmem:[#allocation32_spill] sm:$0xff] %v4492_v43  ;;  %5166 = vst [vmem:[#allocation33_spill] sm:$0xff] %v4495_v52  ;;  %v4510_v52 = vmul.f32 0.2, %v5167_v61  ;;  %v5169_v43 = vld [vmem:[#allocation2_spill] sm:$0xff]  ;;  %v5173_v38 = vld [vmem:[#allocation11_spill] sm:$0xff] }
 0x5b5   :  { %v4513_v4 = vmul.f32 0.2, %v5169_v43  ;;  %v4516_v25 = vmul.f32 0.2, %v5171_v0  ;;  %v1802_v18 = vsel %vm1674_vm5, %v4009_v10, %v5173_v38  ;;  %1865 = vst.msk [vmem:[%s4943_s6 + $0x78] sm:$0xff] %vm747_vm1, %v1801_v40  ;;  %vm1712_vm4 = vcmp.gt.f32.partialorder %v5167_v61, 0.0 }
 0x5b6   :  { %5168 = vst [vmem:[#allocation21_spill] sm:$0xff] %v4510_v52  ;;  %v5176_v52 = vld [vmem:[#allocation5_spill] sm:$0xff]  ;;  %v5178_v10 = vld [vmem:[#allocation6_spill] sm:$0xff]  ;;  %v1803_v40 = vsel %vm1675_vm6, %v4013_v9, %v4263_v29  ;;  %1866 = vst.msk [vmem:[%s4943_s6 + $0x80] sm:$0xff] %vm747_vm1, %v1802_v18  ;;  %v1804_v18 = vsel %vm1676_vm7, %v4017_v31, %v4274_v55  ;;  %vm5187_vm9 = vcmp.gt.f32.partialorder %v4021_v36, 0.0  ;;  %vm5188_vm7 = vcmp.gt.f32.partialorder %v4025_v32, 0.0 }
 0x5b7   :  { %5170 = vst [vmem:[#allocation2_spill] sm:$0xff] %v4513_v4  ;;  %5172 = vst [vmem:[#allocation3_spill] sm:$0xff] %v4516_v25  ;;  %v5174_v4 = vld [vmem:[#allocation4_spill] sm:$0xff]  ;;  %v4534_v26 = vmul.f32 0.2, %v5176_v52  ;;  %vm1716_vm5 = vcmp.gt.f32.partialorder %v5176_v52, 0.0  ;;  %v1806_v31 = vsel %vm5188_vm7, %v4025_v32, %v4280_v33 }
 0x5b8   :  { %v4531_v25 = vmul.f32 0.2, %v5174_v4  ;;  %v4537_v38 = vmul.f32 0.2, %v5178_v10  ;;  %v5180_v4 = vld [vmem:[#allocation7_spill] sm:$0xff]  ;;  %v5183_v9 = vld [vmem:[#allocation9_spill] sm:$0xff] }
 0x5b9   :  { %5177 = vst [vmem:[#allocation5_spill] sm:$0xff] %v4534_v26  ;;  %v5181_v26 = vld [vmem:[#allocation8_spill] sm:$0xff]  ;;  %v4558_v29 = vmul.f32 0.2, %v5183_v9  ;;  %1867 = vst.msk [vmem:[%s4943_s6 + $0x88] sm:$0xff] %vm747_vm1, %v1803_v40  ;;  %vm1720_vm6 = vcmp.gt.f32.partialorder %v5183_v9, 0.0 }
 0x5ba   :  { %5175 = vst [vmem:[#allocation11_spill] sm:$0xff] %v4531_v25  ;;  %5179 = vst [vmem:[#allocation6_spill] sm:$0xff] %v4537_v38  ;;  %v4552_v38 = vmul.f32 0.2, %v5180_v4  ;;  %v4555_v25 = vmul.f32 0.2, %v5181_v26 }
 0x5bb   :  { %5184 = vst [vmem:[#allocation9_spill] sm:$0xff] %v4558_v29  ;;  %v5185_v4 = vld [vmem:[#allocation10_spill] sm:$0xff]  ;;  %vm5189_vm8 = vcmp.gt.f32.partialorder %v4029_v23, 0.0  ;;  %1868 = vst.msk [vmem:[%s4943_s6 + $0x90] sm:$0xff] %vm747_vm1, %v1804_v18  ;;  %v5190_v40 = vld [vmem:[#allocation13_spill] sm:$0xff]  ;;  %vm5192_vm7 = vcmp.gt.f32.partialorder %v4041_v42, 0.0 }
 0x5bc   :  { %5182 = vst [vmem:[#allocation34_spill] sm:$0xff] %v4555_v25  ;;  %vm1721_vm10 = vcmp.gt.f32.partialorder %v5185_v4, 0.0  ;;  %v4571_v26 = vmul.f32 0.2, %v5185_v4  ;;  %v5186_v25 = vld [vmem:[#allocation12_spill] sm:$0xff]  ;;  %v1807_v55 = vsel %vm5189_vm8, %v4029_v23, %v4291_v7  ;;  %v1810_v23 = vsel %vm5192_vm7, %v4041_v42, %v4308_v17  ;;  %v5193_v33 = vld [vmem:[#allocation15_spill] sm:$0xff] }
 0x5bd   :  { %v1805_v29 = vsel %vm5187_vm9, %v4021_v36, %v5186_v25  ;;  %v1808_v36 = vsel %vm1680_vm11, %v4033_v30, %v5190_v40  ;;  %vm5191_vm9 = vcmp.gt.f32.partialorder %v4037_v63, 0.0  ;;  %vm5194_vm8 = vcmp.gt.f32.partialorder %v4045_v46, 0.0  ;;  %1870 = vst.msk [vmem:[%s4943_s6 + $0xa0] sm:$0xff] %vm747_vm1, %v1806_v31  ;;  %1871 = vst.msk [vmem:[%s4943_s6 + $0xa8] sm:$0xff] %vm747_vm1, %v1807_v55  ;;  %v5231_v18 = vld [vmem:[#allocation33_spill] sm:$0xff]  ;;  %v5232_v31 = vld [vmem:[#allocation23_spill] sm:$0xff] }
 0x5be   :  { %v1809_v32 = vsel %vm5191_vm9, %v4037_v63, %v4297_v37  ;;  %v1811_v7 = vsel %vm5194_vm8, %v4045_v46, %v5193_v33  ;;  %1869 = vst.msk [vmem:[%s4943_s6 + $0x98] sm:$0xff] %vm747_vm1, %v1805_v29  ;;  %v1812_v30 = vsel %vm1684_vm12, %v4049_v50, %v4314_v21  ;;  %vm5195_vm11 = vcmp.gt.f32.partialorder %v4053_v54, 0.0  ;;  %v5197_v46 = vld [vmem:[#allocation24_spill] sm:$0xff]  ;;  %1872 = vst.msk [vmem:[%s4943_s6 + $0xb0] sm:$0xff] %vm747_vm1, %v1808_v36  ;;  %v5205_v21 = vld [vmem:[#allocation26_spill] sm:$0xff] }
 0x5bf   :  { %v1813_v63 = vsel %vm5195_vm11, %v4053_v54, %v4325_v39  ;;  %vm5196_vm9 = vcmp.gt.f32.partialorder %v4057_v35, 0.0  ;;  %vm5198_vm7 = vcmp.gt.f32.partialorder %v4061_v47, 0.0  ;;  %1873 = vst.msk [vmem:[%s4943_s6 + $0xb8] sm:$0xff] %vm747_vm1, %v1809_v32  ;;  %1874 = vst.msk [vmem:[%s4943_s6 + $0xc0] sm:$0xff] %vm747_vm1, %v1810_v23  ;;  %v1816_v50 = vsel %vm1688_vm13, %v4065_v58, %v4344_v53  ;;  %v5237_v36 = vld [vmem:[#allocation3_spill] sm:$0xff]  ;;  %v5240_v33 = vld [vmem:[#allocation4_spill] sm:$0xff] }
 0x5c0   :  { %v1814_v42 = vsel %vm5196_vm9, %v4057_v35, %v4328_v2  ;;  %v1815_v37 = vsel %vm5198_vm7, %v4061_v47, %v5197_v46  ;;  %1875 = vst.msk [vmem:[%s4943_s6 + $0xc8] sm:$0xff] %vm747_vm1, %v1811_v7  ;;  %vm5199_vm12 = vcmp.gt.f32.partialorder %v4069_v59, 0.0  ;;  %vm5200_vm8 = vcmp.gt.f32.partialorder %v4073_v27, 0.0  ;;  %1876 = vst.msk [vmem:[%s4943_s6 + $0xd0] sm:$0xff] %vm747_vm1, %v1812_v30  ;;  %v5212_v2 = vld [vmem:[#allocation18_spill] sm:$0xff] }
 0x5c1   :  { %v1817_v54 = vsel %vm5199_vm12, %v4069_v59, %v4347_v15  ;;  %v1818_v35 = vsel %vm5200_vm8, %v4073_v27, %v4350_v24  ;;  %vm5201_vm11 = vcmp.gt.f32.partialorder %v4077_v56, 0.0  ;;  %1877 = vst.msk [vmem:[%s4943_s6 + $0xd8] sm:$0xff] %vm747_vm1, %v1813_v63  ;;  %1878 = vst.msk [vmem:[%s4943_s6 + $0xe0] sm:$0xff] %vm747_vm1, %v1814_v42  ;;  %v1820_v58 = vsel %vm1692_vm14, %v4081_v5, %v4367_v6  ;;  %v5202_v59 = vld [vmem:[#allocation25_spill] sm:$0xff]  ;;  %v5207_v5 = vld [vmem:[#allocation27_spill] sm:$0xff] }
 0x5c2   :  { %v1819_v47 = vsel %vm5201_vm11, %v4077_v56, %v4364_v62  ;;  %1879 = vst.msk [vmem:[%s4943_s6 + $0xe8] sm:$0xff] %vm747_vm1, %v1815_v37  ;;  %vm5203_vm13 = vcmp.gt.f32.partialorder %v4085_v48, 0.0  ;;  %vm5204_vm9 = vcmp.gt.f32.partialorder %v4089_v22, 0.0  ;;  %vm5206_vm7 = vcmp.gt.f32.partialorder %v4093_v8, 0.0  ;;  %1880 = vst.msk [vmem:[%s4943_s6 + $0xf0] sm:$0xff] %vm747_vm1, %v1816_v50  ;;  %v5210_v24 = vld [vmem:[#allocation17_spill] sm:$0xff] }
 0x5c3   :  { %v1821_v27 = vsel %vm5203_vm13, %v4085_v48, %v5202_v59  ;;  %v1822_v56 = vsel %vm5204_vm9, %v4089_v22, %v4384_v11  ;;  %v1823_v17 = vsel %vm5206_vm7, %v4093_v8, %v5205_v21  ;;  %1881 = vst.msk [vmem:[%s4943_s6 + $0xf8] sm:$0xff] %vm747_vm1, %v1817_v54  ;;  %1882 = vst.msk [vmem:[%s4943_s6 + $0x100] sm:$0xff] %vm747_vm1, %v1818_v35  ;;  %v5208_v22 = vld [vmem:[#allocation28_spill] sm:$0xff]  ;;  %vm5209_vm14 = vcmp.gt.f32.partialorder %v4101_v34, 0.0  ;;  %v5215_v15 = vld [vmem:[#allocation29_spill] sm:$0xff] }
 0x5c4   :  { %1883 = vst.msk [vmem:[%s4943_s6 + $0x108] sm:$0xff] %vm747_vm1, %v1819_v47  ;;  %v1824_v48 = vsel %vm1696_vm15, %v4097_v14, %v5207_v5  ;;  %v1825_v8 = vsel %vm5209_vm14, %v4101_v34, %v5208_v22  ;;  %vm5211_vm12 = vcmp.gt.f32.partialorder %v5150_v28, 0.0  ;;  %vm5213_vm8 = vcmp.gt.f32.partialorder %v5152_v12, 0.0  ;;  %1884 = vst.msk [vmem:[%s4943_s6 + $0x110] sm:$0xff] %vm747_vm1, %v1820_v58  ;;  %v5214_v14 = vld [vmem:[#allocation19_spill] sm:$0xff]  ;;  %v5217_v6 = vld [vmem:[#allocation20_spill] sm:$0xff] }
 0x5c5   :  { %v1826_v39 = vsel %vm5211_vm12, %v5150_v28, %v5210_v24  ;;  %v1827_v53 = vsel %vm5213_vm8, %v5152_v12, %v5212_v2  ;;  %1885 = vst.msk [vmem:[%s4943_s6 + $0x118] sm:$0xff] %vm747_vm1, %v1821_v27  ;;  %1886 = vst.msk [vmem:[%s4943_s6 + $0x120] sm:$0xff] %vm747_vm1, %v1822_v56  ;;  %v1828_v34 = vsel %vm1700_vm0, %v5154_v19, %v5214_v14  ;;  %vm5216_vm15 = vcmp.gt.f32.partialorder %v4117_v3, 0.0  ;;  %v5239_v23 = vld [vmem:[#allocation11_spill] sm:$0xff]  ;;  %v5247_v46 = vld [vmem:[#allocation34_spill] sm:$0xff] }
 0x5c6   :  { %1887 = vst.msk [vmem:[%s4943_s6 + $0x128] sm:$0xff] %vm747_vm1, %v1823_v17  ;;  %v1829_v62 = vsel %vm5216_vm15, %v4117_v3, %v5215_v15  ;;  %vm5218_vm11 = vcmp.gt.f32.partialorder %v5157_v13, 0.0  ;;  %vm5219_vm13 = vcmp.gt.f32.partialorder %v5159_v57, 0.0  ;;  %1888 = vst.msk [vmem:[%s4943_s6 + $0x130] sm:$0xff] %vm747_vm1, %v1824_v48  ;;  %v5220_v3 = vld [vmem:[#allocation14_spill] sm:$0xff]  ;;  %vm5222_vm0 = vcmp.gt.f32.partialorder %v4133_v16, 0.0 }
 0x5c7   :  { %v1830_v11 = vsel %vm5218_vm11, %v5157_v13, %v5217_v6  ;;  %v1831_v28 = vsel %vm5219_vm13, %v5159_v57, %v4447_v45  ;;  %1889 = vst.msk [vmem:[%s4943_s6 + $0x138] sm:$0xff] %vm747_vm1, %v1825_v8  ;;  %1890 = vst.msk [vmem:[%s4943_s6 + $0x140] sm:$0xff] %vm747_vm1, %v1826_v39  ;;  %v1832_v19 = vsel %vm1704_vm2, %v4129_v60, %v5220_v3  ;;  %v5221_v57 = vld [vmem:[#allocation30_spill] sm:$0xff]  ;;  %vm5223_vm9 = vcmp.gt.f32.partialorder %v5162_v49, 0.0  ;;  %v5226_v60 = vld [vmem:[#allocation16_spill] sm:$0xff] }
 0x5c8   :  { %1891 = vst.msk [vmem:[%s4943_s6 + $0x148] sm:$0xff] %vm747_vm1, %v1827_v53  ;;  %v1833_v12 = vsel %vm5222_vm0, %v4133_v16, %v5221_v57  ;;  %v1834_v13 = vsel %vm5223_vm9, %v5162_v49, %v4468_v51  ;;  %v5224_v45 = vld [vmem:[#allocation22_spill] sm:$0xff]  ;;  %1892 = vst.msk [vmem:[%s4943_s6 + $0x150] sm:$0xff] %vm747_vm1, %v1828_v34  ;;  %v1836_v16 = vsel %vm1708_vm3, %v4145_v1, %v5226_v60  ;;  %vm5228_vm2 = vcmp.gt.f32.partialorder %v4149_v44, 0.0  ;;  %v5229_v49 = vld [vmem:[#allocation32_spill] sm:$0xff] }
 0x5c9   :  { %vm5225_vm7 = vcmp.gt.f32.partialorder %v5224_v45, 0.0  ;;  %1893 = vst.msk [vmem:[%s4943_s6 + $0x158] sm:$0xff] %vm747_vm1, %v1829_v62  ;;  %1894 = vst.msk [vmem:[%s4943_s6 + $0x160] sm:$0xff] %vm747_vm1, %v1830_v11  ;;  %vm5230_vm14 = vcmp.gt.f32.partialorder %v4153_v20, 0.0  ;;  %vm5233_vm12 = vcmp.gt.f32.partialorder %v5232_v31, 0.0  ;;  %v5234_v1 = vld [vmem:[#allocation21_spill] sm:$0xff] }
 0x5ca   :  { %v1835_v25 = vsel %vm5225_vm7, %v5224_v45, %v4471_v41  ;;  %1895 = vst.msk [vmem:[%s4943_s6 + $0x168] sm:$0xff] %vm747_vm1, %v1831_v28  ;;  %v5227_v41 = vld [vmem:[#allocation31_spill] sm:$0xff]  ;;  %v1838_v29 = vsel %vm5230_vm14, %v4153_v20, %v5229_v49  ;;  %v1839_v55 = vsel %vm5233_vm12, %v5232_v31, %v5231_v18  ;;  %1896 = vst.msk [vmem:[%s4943_s6 + $0x170] sm:$0xff] %vm747_vm1, %v1832_v19  ;;  %v5235_v20 = vld [vmem:[#allocation2_spill] sm:$0xff]  ;;  %vm5236_vm3 = vcmp.gt.f32.partialorder %v5169_v43, 0.0 }
 0x5cb   :  { %v1837_v51 = vsel %vm5228_vm2, %v4149_v44, %v5227_v41  ;;  %1897 = vst.msk [vmem:[%s4943_s6 + $0x178] sm:$0xff] %vm747_vm1, %v1833_v12  ;;  %1898 = vst.msk [vmem:[%s4943_s6 + $0x180] sm:$0xff] %vm747_vm1, %v1834_v13  ;;  %v1840_v44 = vsel %vm1712_vm4, %v5167_v61, %v5234_v1  ;;  %v1841_v40 = vsel %vm5236_vm3, %v5169_v43, %v5235_v20  ;;  %vm5238_vm8 = vcmp.gt.f32.partialorder %v5171_v0, 0.0  ;;  %v5242_v43 = vld [vmem:[#allocation5_spill] sm:$0xff]  ;;  %v5245_v63 = vld [vmem:[#allocation7_spill] sm:$0xff] }
 0x5cc   :  { %1899 = vst.msk [vmem:[%s4943_s6 + $0x188] sm:$0xff] %vm747_vm1, %v1835_v25  ;;  %v1842_v32 = vsel %vm5238_vm8, %v5171_v0, %v5237_v36  ;;  %vm5241_vm15 = vcmp.gt.f32.partialorder %v5240_v33, 0.0  ;;  %1900 = vst.msk [vmem:[%s4943_s6 + $0x190] sm:$0xff] %vm747_vm1, %v1836_v16  ;;  %v1844_v61 = vsel %vm1716_vm5, %v5176_v52, %v5242_v43  ;;  %v5243_v0 = vld [vmem:[#allocation6_spill] sm:$0xff]  ;;  %vm5244_vm4 = vcmp.gt.f32.partialorder %v5178_v10, 0.0  ;;  %v5248_v37 = vld [vmem:[#allocation8_spill] sm:$0xff] }
 0x5cd   :  { %v1843_v7 = vsel %vm5241_vm15, %v5240_v33, %v5239_v23  ;;  %1901 = vst.msk [vmem:[%s4943_s6 + $0x198] sm:$0xff] %vm747_vm1, %v1837_v51  ;;  %1902 = vst.msk [vmem:[%s4943_s6 + $0x1a0] sm:$0xff] %vm747_vm1, %v1838_v29  ;;  %v1845_v30 = vsel %vm5244_vm4, %v5178_v10, %v5243_v0  ;;  %vm5246_vm11 = vcmp.gt.f32.partialorder %v5245_v63, 0.0  ;;  %vm5249_vm13 = vcmp.gt.f32.partialorder %v5248_v37, 0.0  ;;  %v5250_v52 = vld [vmem:[#allocation9_spill] sm:$0xff] }
 0x5ce   :  { %1903 = vst.msk [vmem:[%s4943_s6 + $0x1a8] sm:$0xff] %vm747_vm1, %v1839_v55  ;;  %v1846_v42 = vsel %vm5246_vm11, %v5245_v63, %v4552_v38  ;;  %v1847_v50 = vsel %vm5249_vm13, %v5248_v37, %v5247_v46  ;;  %1904 = vst.msk [vmem:[%s4943_s6 + $0x1b0] sm:$0xff] %vm747_vm1, %v1840_v44  ;;  %v1848_v10 = vsel %vm1720_vm6, %v5183_v9, %v5250_v52 }
 0x5cf   :  { %1905 = vst.msk [vmem:[%s4943_s6 + $0x1b8] sm:$0xff] %vm747_vm1, %v1841_v40  ;;  %1906 = vst.msk [vmem:[%s4943_s6 + $0x1c0] sm:$0xff] %vm747_vm1, %v1842_v32  ;;  %v1849_v38 = vsel %vm1721_vm10, %v5185_v4, %v4571_v26 }
 0x5d0   :  { %1907 = vst.msk [vmem:[%s4943_s6 + $0x1c8] sm:$0xff] %vm747_vm1, %v1843_v7  ;;  %1908 = vst.msk [vmem:[%s4943_s6 + $0x1d0] sm:$0xff] %vm747_vm1, %v1844_v61 }
 0x5d1   :  { %1909 = vst.msk [vmem:[%s4943_s6 + $0x1d8] sm:$0xff] %vm747_vm1, %v1845_v30  ;;  %1910 = vst.msk [vmem:[%s4943_s6 + $0x1e0] sm:$0xff] %vm747_vm1, %v1846_v42 }
 0x5d2   :  { %1911 = vst.msk [vmem:[%s4943_s6 + $0x1e8] sm:$0xff] %vm747_vm1, %v1847_v50  ;;  %1912 = vst.msk [vmem:[%s4943_s6 + $0x1f0] sm:$0xff] %vm747_vm1, %v1848_v10 }
 0x5d3   :  { %1913 = vst.msk [vmem:[%s4943_s6 + $0x1f8] sm:$0xff] %vm747_vm1, %v1849_v38 }

// kernel: dcgan_g_forward.9
= control target key start
LH: loop header
LB: loop body
LE: loop exit
PB: predicated region body
PF: predicated region fallthrough
CT: control target
= control target key end

     0   :  { %s858_s9 = smov 0   ;;  %s860_s10 = smov 0   ;;  %s1149_s0 = inlined_call_operand.vmem [shape: f32[4,72], index: 0, kind: input, shape index: {}]   ;;  %s1150_s1 = inlined_call_operand.vmem [shape: f32[72,2048], index: 1, kind: input, shape index: {}]   ;;  %s1151_s2 = inlined_call_operand.vmem [shape: f32[4,2048], index: 2, kind: output, shape index: {}]  }
   0x1   :  { %s862_s11 = smov 0  }
   0x2 LB: > { %s759_s12 = sadd.s32 4294967295, %s840_s11   ;;  %s875_s13 = sadd.s32 1, %s840_s11   ;;  %s840_s11 = sphi %s862_s11, %s1154_s11   ;;  %s836_s10 = sphi %s860_s10, %s1153_s10   ;;  %s832_s9 = sphi %s858_s9, %s1152_s9  }
   0x3   : > { %s37_s14 = ssub.s32 %s840_s11, %s875_s13  ;;  %s40_s15 = sadd.s32 1, %s836_s10 }
   0x4   : > { %p38_p0 = scmp.eq.s32.totalorder %s37_s14, 0  ;;  %p47_p1 = scmp.ne.s32.totalorder %s836_s10, %s832_s9 }
   0x5   : > { %p48_p2 = scmp.eq.s32.totalorder %s840_s11, 0  ;;  %p762_p4 = scmp.ge.s32.totalorder %s840_s11, 2 }
   0x6   : > { %s884_s16 = scalar_select %p38_p0, %s836_s10, %s40_s15  }
   0x7   : > { %p49_p3 = por %p48_p2, %p47_p1  ;;  %102 = sbr.rel (%p762_p4) target bundleno = 53 (0x35), region = 20 }
   0xc   : > { %105 = sbr.rel (!%p49_p3) target bundleno = 53 (0x35), region = 24  ;;  %s107_s17 = sand.u32 (%p49_p3), 1, %s836_s10  }
   0xd   : > { %s774_s18 = sshll.u32 (%p49_p3), %s840_s11, 6  ;;  %s775_s19 = smul.u32 (%p49_p3), 576, %s107_s17 }
   0xe   : > { %s892_s22 = scalar_lea.vmem (%p49_p3), %s1150_s1, %s774_s18 }
   0xf   : > { %v125_v0 = vld [vmem:[%s892_s22] sm:$0xff] (%p49_p3)  ;;  %v127_v1 = vld [vmem:[%s892_s22 + $0x8] sm:$0xff] (%p49_p3)  ;;  %v129_v2 = vld [vmem:[%s892_s22 + $0x10] sm:$0xff] (%p49_p3)  ;;  %s900_s23 = scalar_lea.vmem (%p49_p3), [#allocation2], %s775_s19 }
  0x10   : > { %v131_v3 = vld [vmem:[%s892_s22 + $0x18] sm:$0xff] (%p49_p3)  ;;  %v133_v4 = vld [vmem:[%s892_s22 + $0x20] sm:$0xff] (%p49_p3)  ;;  %v135_v5 = vld [vmem:[%s892_s22 + $0x28] sm:$0xff] (%p49_p3)  ;;  %126 = vst [vmem:[%s900_s23] sm:$0xff] (%p49_p3), %v125_v0 }
  0x11   : > { %128 = vst [vmem:[%s900_s23 + $0x8] sm:$0xff] %v127_v1  ;;  %130 = vst [vmem:[%s900_s23 + $0x10] sm:$0xff] %v129_v2  ;;  %v137_v6 = vld [vmem:[%s892_s22 + $0x30] sm:$0xff]  ;;  %v139_v7 = vld [vmem:[%s892_s22 + $0x38] sm:$0xff] }
  0x12   : > { %132 = vst [vmem:[%s900_s23 + $0x18] sm:$0xff] %v131_v3  ;;  %134 = vst [vmem:[%s900_s23 + $0x20] sm:$0xff] %v133_v4  ;;  %v141_v8 = vld [vmem:[%s892_s22 + $0x80] sm:$0xff]  ;;  %v143_v9 = vld [vmem:[%s892_s22 + $0x88] sm:$0xff] }
  0x13   : > { %136 = vst [vmem:[%s900_s23 + $0x28] sm:$0xff] %v135_v5  ;;  %138 = vst [vmem:[%s900_s23 + $0x30] sm:$0xff] %v137_v6  ;;  %v145_v10 = vld [vmem:[%s892_s22 + $0x90] sm:$0xff]  ;;  %v147_v11 = vld [vmem:[%s892_s22 + $0x98] sm:$0xff] }
  0x14   : > { %140 = vst [vmem:[%s900_s23 + $0x38] sm:$0xff] %v139_v7  ;;  %142 = vst [vmem:[%s900_s23 + $0x40] sm:$0xff] %v141_v8  ;;  %v149_v12 = vld [vmem:[%s892_s22 + $0xa0] sm:$0xff]  ;;  %v151_v13 = vld [vmem:[%s892_s22 + $0xa8] sm:$0xff] }
  0x15   : > { %144 = vst [vmem:[%s900_s23 + $0x48] sm:$0xff] %v143_v9  ;;  %146 = vst [vmem:[%s900_s23 + $0x50] sm:$0xff] %v145_v10  ;;  %v153_v14 = vld [vmem:[%s892_s22 + $0xb0] sm:$0xff]  ;;  %v155_v15 = vld [vmem:[%s892_s22 + $0xb8] sm:$0xff] }
  0x16   : > { %148 = vst [vmem:[%s900_s23 + $0x58] sm:$0xff] %v147_v11  ;;  %150 = vst [vmem:[%s900_s23 + $0x60] sm:$0xff] %v149_v12  ;;  %v157_v16 = vld [vmem:[%s892_s22 + $0x100] sm:$0xff]  ;;  %v159_v17 = vld [vmem:[%s892_s22 + $0x108] sm:$0xff] }
  0x17   : > { %152 = vst [vmem:[%s900_s23 + $0x68] sm:$0xff] %v151_v13  ;;  %154 = vst [vmem:[%s900_s23 + $0x70] sm:$0xff] %v153_v14  ;;  %v161_v18 = vld [vmem:[%s892_s22 + $0x110] sm:$0xff]  ;;  %v163_v19 = vld [vmem:[%s892_s22 + $0x118] sm:$0xff] }
  0x18   : > { %156 = vst [vmem:[%s900_s23 + $0x78] sm:$0xff] %v155_v15  ;;  %158 = vst [vmem:[%s900_s23 + $0x80] sm:$0xff] %v157_v16  ;;  %v165_v20 = vld [vmem:[%s892_s22 + $0x120] sm:$0xff]  ;;  %v167_v21 = vld [vmem:[%s892_s22 + $0x128] sm:$0xff] }
  0x19   : > { %160 = vst [vmem:[%s900_s23 + $0x88] sm:$0xff] %v159_v17  ;;  %162 = vst [vmem:[%s900_s23 + $0x90] sm:$0xff] %v161_v18  ;;  %v169_v22 = vld [vmem:[%s892_s22 + $0x130] sm:$0xff]  ;;  %v171_v23 = vld [vmem:[%s892_s22 + $0x138] sm:$0xff] }
  0x1a   : > { %164 = vst [vmem:[%s900_s23 + $0x98] sm:$0xff] %v163_v19  ;;  %166 = vst [vmem:[%s900_s23 + $0xa0] sm:$0xff] %v165_v20  ;;  %v173_v24 = vld [vmem:[%s892_s22 + $0x180] sm:$0xff]  ;;  %v175_v25 = vld [vmem:[%s892_s22 + $0x188] sm:$0xff] }
  0x1b   : > { %168 = vst [vmem:[%s900_s23 + $0xa8] sm:$0xff] %v167_v21  ;;  %170 = vst [vmem:[%s900_s23 + $0xb0] sm:$0xff] %v169_v22  ;;  %v177_v26 = vld [vmem:[%s892_s22 + $0x190] sm:$0xff]  ;;  %v179_v27 = vld [vmem:[%s892_s22 + $0x198] sm:$0xff] }
  0x1c   : > { %172 = vst [vmem:[%s900_s23 + $0xb8] sm:$0xff] %v171_v23  ;;  %174 = vst [vmem:[%s900_s23 + $0xc0] sm:$0xff] %v173_v24  ;;  %v181_v28 = vld [vmem:[%s892_s22 + $0x1a0] sm:$0xff]  ;;  %v183_v29 = vld [vmem:[%s892_s22 + $0x1a8] sm:$0xff] }
  0x1d   : > { %176 = vst [vmem:[%s900_s23 + $0xc8] sm:$0xff] %v175_v25  ;;  %178 = vst [vmem:[%s900_s23 + $0xd0] sm:$0xff] %v177_v26  ;;  %v185_v30 = vld [vmem:[%s892_s22 + $0x1b0] sm:$0xff]  ;;  %v187_v31 = vld [vmem:[%s892_s22 + $0x1b8] sm:$0xff] }
  0x1e   : > { %180 = vst [vmem:[%s900_s23 + $0xd8] sm:$0xff] %v179_v27  ;;  %182 = vst [vmem:[%s900_s23 + $0xe0] sm:$0xff] %v181_v28  ;;  %v189_v32 = vld [vmem:[%s892_s22 + $0x200] sm:$0xff]  ;;  %v191_v33 = vld [vmem:[%s892_s22 + $0x208] sm:$0xff] }
  0x1f   : > { %184 = vst [vmem:[%s900_s23 + $0xe8] sm:$0xff] %v183_v29  ;;  %186 = vst [vmem:[%s900_s23 + $0xf0] sm:$0xff] %v185_v30  ;;  %v193_v34 = vld [vmem:[%s892_s22 + $0x210] sm:$0xff]  ;;  %v195_v35 = vld [vmem:[%s892_s22 + $0x218] sm:$0xff] }
  0x20   : > { %188 = vst [vmem:[%s900_s23 + $0xf8] sm:$0xff] %v187_v31  ;;  %190 = vst [vmem:[%s900_s23 + $0x100] sm:$0xff] %v189_v32  ;;  %v197_v36 = vld [vmem:[%s892_s22 + $0x220] sm:$0xff]  ;;  %v199_v37 = vld [vmem:[%s892_s22 + $0x228] sm:$0xff] }
  0x21   : > { %192 = vst [vmem:[%s900_s23 + $0x108] sm:$0xff] %v191_v33  ;;  %194 = vst [vmem:[%s900_s23 + $0x110] sm:$0xff] %v193_v34  ;;  %v201_v38 = vld [vmem:[%s892_s22 + $0x230] sm:$0xff]  ;;  %v203_v39 = vld [vmem:[%s892_s22 + $0x238] sm:$0xff] }
  0x22   : > { %196 = vst [vmem:[%s900_s23 + $0x118] sm:$0xff] %v195_v35  ;;  %198 = vst [vmem:[%s900_s23 + $0x120] sm:$0xff] %v197_v36  ;;  %v205_v40 = vld [vmem:[%s892_s22 + $0x280] sm:$0xff]  ;;  %v207_v41 = vld [vmem:[%s892_s22 + $0x288] sm:$0xff] }
  0x23   : > { %200 = vst [vmem:[%s900_s23 + $0x128] sm:$0xff] %v199_v37  ;;  %202 = vst [vmem:[%s900_s23 + $0x130] sm:$0xff] %v201_v38  ;;  %v209_v42 = vld [vmem:[%s892_s22 + $0x290] sm:$0xff]  ;;  %v211_v43 = vld [vmem:[%s892_s22 + $0x298] sm:$0xff] }
  0x24   : > { %204 = vst [vmem:[%s900_s23 + $0x138] sm:$0xff] %v203_v39  ;;  %206 = vst [vmem:[%s900_s23 + $0x140] sm:$0xff] %v205_v40  ;;  %v213_v44 = vld [vmem:[%s892_s22 + $0x2a0] sm:$0xff]  ;;  %v215_v45 = vld [vmem:[%s892_s22 + $0x2a8] sm:$0xff] }
  0x25   : > { %208 = vst [vmem:[%s900_s23 + $0x148] sm:$0xff] %v207_v41  ;;  %210 = vst [vmem:[%s900_s23 + $0x150] sm:$0xff] %v209_v42  ;;  %v217_v46 = vld [vmem:[%s892_s22 + $0x2b0] sm:$0xff]  ;;  %v219_v47 = vld [vmem:[%s892_s22 + $0x2b8] sm:$0xff] }
  0x26   : > { %212 = vst [vmem:[%s900_s23 + $0x158] sm:$0xff] %v211_v43  ;;  %214 = vst [vmem:[%s900_s23 + $0x160] sm:$0xff] %v213_v44  ;;  %v221_v48 = vld [vmem:[%s892_s22 + $0x300] sm:$0xff]  ;;  %v223_v49 = vld [vmem:[%s892_s22 + $0x308] sm:$0xff] }
  0x27   : > { %216 = vst [vmem:[%s900_s23 + $0x168] sm:$0xff] %v215_v45  ;;  %218 = vst [vmem:[%s900_s23 + $0x170] sm:$0xff] %v217_v46  ;;  %v225_v50 = vld [vmem:[%s892_s22 + $0x310] sm:$0xff]  ;;  %v227_v51 = vld [vmem:[%s892_s22 + $0x318] sm:$0xff] }
  0x28   : > { %220 = vst [vmem:[%s900_s23 + $0x178] sm:$0xff] %v219_v47  ;;  %222 = vst [vmem:[%s900_s23 + $0x180] sm:$0xff] %v221_v48  ;;  %v229_v52 = vld [vmem:[%s892_s22 + $0x320] sm:$0xff]  ;;  %v231_v53 = vld [vmem:[%s892_s22 + $0x328] sm:$0xff] }
  0x29   : > { %224 = vst [vmem:[%s900_s23 + $0x188] sm:$0xff] %v223_v49  ;;  %226 = vst [vmem:[%s900_s23 + $0x190] sm:$0xff] %v225_v50  ;;  %v233_v54 = vld [vmem:[%s892_s22 + $0x330] sm:$0xff]  ;;  %v235_v55 = vld [vmem:[%s892_s22 + $0x338] sm:$0xff] }
  0x2a   : > { %228 = vst [vmem:[%s900_s23 + $0x198] sm:$0xff] %v227_v51  ;;  %230 = vst [vmem:[%s900_s23 + $0x1a0] sm:$0xff] %v229_v52  ;;  %v237_v56 = vld [vmem:[%s892_s22 + $0x380] sm:$0xff]  ;;  %v239_v57 = vld [vmem:[%s892_s22 + $0x388] sm:$0xff] }
  0x2b   : > { %232 = vst [vmem:[%s900_s23 + $0x1a8] sm:$0xff] %v231_v53  ;;  %234 = vst [vmem:[%s900_s23 + $0x1b0] sm:$0xff] %v233_v54  ;;  %v241_v58 = vld [vmem:[%s892_s22 + $0x390] sm:$0xff]  ;;  %v243_v59 = vld [vmem:[%s892_s22 + $0x398] sm:$0xff] }
  0x2c   : > { %236 = vst [vmem:[%s900_s23 + $0x1b8] sm:$0xff] %v235_v55  ;;  %238 = vst [vmem:[%s900_s23 + $0x1c0] sm:$0xff] %v237_v56  ;;  %v245_v60 = vld [vmem:[%s892_s22 + $0x3a0] sm:$0xff]  ;;  %v247_v61 = vld [vmem:[%s892_s22 + $0x3a8] sm:$0xff] }
  0x2d   : > { %240 = vst [vmem:[%s900_s23 + $0x1c8] sm:$0xff] %v239_v57  ;;  %242 = vst [vmem:[%s900_s23 + $0x1d0] sm:$0xff] %v241_v58  ;;  %v249_v62 = vld [vmem:[%s892_s22 + $0x3b0] sm:$0xff]  ;;  %v251_v63 = vld [vmem:[%s892_s22 + $0x3b8] sm:$0xff] }
  0x2e   : > { %244 = vst [vmem:[%s900_s23 + $0x1d8] sm:$0xff] %v243_v59  ;;  %246 = vst [vmem:[%s900_s23 + $0x1e0] sm:$0xff] %v245_v60  ;;  %v253_v0 = vld [vmem:[%s892_s22 + $0x400] sm:$0xff]  ;;  %v255_v1 = vld [vmem:[%s892_s22 + $0x408] sm:$0xff] }
  0x2f   : > { %248 = vst [vmem:[%s900_s23 + $0x1e8] sm:$0xff] %v247_v61  ;;  %250 = vst [vmem:[%s900_s23 + $0x1f0] sm:$0xff] %v249_v62  ;;  %v257_v2 = vld [vmem:[%s892_s22 + $0x410] sm:$0xff]  ;;  %v259_v3 = vld [vmem:[%s892_s22 + $0x418] sm:$0xff] }
  0x30   : > { %252 = vst [vmem:[%s900_s23 + $0x1f8] sm:$0xff] %v251_v63  ;;  %254 = vst [vmem:[%s900_s23 + $0x200] sm:$0xff] %v253_v0  ;;  %v261_v4 = vld [vmem:[%s892_s22 + $0x420] sm:$0xff]  ;;  %v263_v5 = vld [vmem:[%s892_s22 + $0x428] sm:$0xff] }
  0x31   : > { %256 = vst [vmem:[%s900_s23 + $0x208] sm:$0xff] %v255_v1  ;;  %258 = vst [vmem:[%s900_s23 + $0x210] sm:$0xff] %v257_v2  ;;  %v265_v6 = vld [vmem:[%s892_s22 + $0x430] sm:$0xff]  ;;  %v267_v7 = vld [vmem:[%s892_s22 + $0x438] sm:$0xff] }
  0x32   : > { %260 = vst [vmem:[%s900_s23 + $0x218] sm:$0xff] %v259_v3  ;;  %262 = vst [vmem:[%s900_s23 + $0x220] sm:$0xff] %v261_v4 }
  0x33   : > { %264 = vst [vmem:[%s900_s23 + $0x228] sm:$0xff] %v263_v5  ;;  %266 = vst [vmem:[%s900_s23 + $0x230] sm:$0xff] %v265_v6 }
  0x34   : > { %268 = vst [vmem:[%s900_s23 + $0x238] sm:$0xff] %v267_v7 }
  0x35 PF: > { %p765_p5 = scmp.ge.s32.totalorder %s840_s11, 1  ;;  %p273_p6 = scmp.lt.s32.totalorder %s840_s11, 3 }
  0x37   : > { %p274_p7 = pnand %p765_p5, %p273_p6 }
  0x38   : > { %s280_s24 = sand.u32 (!%p274_p7), 1, %s832_s9   ;;  %s766_s29 = sshll.u32 (!%p274_p7), %s759_s12, 3 }
  0x39   : > { %277 = sbr.rel (%p274_p7) target bundleno = 315 (0x13b), region = 47  ;;  %p303_p8 = scmp.lt.s32.totalorder (!%p274_p7), %s766_s29, 15 }
  0x3a   : > { %s776_s25 = smul.u32 (!%p274_p7), 576, %s280_s24 }
  0x3c   : > { %s1045_s26 = scalar_lea.vmem (!%p274_p7), [#allocation2], %s776_s25 }
  0x3e   : > { %v842_v8 = vmov 0.0   ;;  %v374_v9 = vld [vmem:[%s1045_s26 + $0x208] sm:$0xff]  ;;  %v376_v10 = vld [vmem:[%s1045_s26 + $0x218] sm:$0xff]  ;;  %v373_v11 = vld [vmem:[%s1045_s26 + $0x200] sm:$0xff]  ;;  %vm381_vm0 = vcmask 588800   ;;  %s1156_s29 = smov (!%p303_p8, %s766_s29), 15 }
  0x3f   : > { %449 = vmatprep.mubr.f32.mxu0 %v842_v8  ;;  %520 = vmatprep.mubr.f32.mxu1 %v842_v8  ;;  %v375_v12 = vld [vmem:[%s1045_s26 + $0x210] sm:$0xff]  ;;  %v366_v13 = vld [vmem:[%s1045_s26 + $0x1c8] sm:$0xff]  ;;  %v368_v14 = vld [vmem:[%s1045_s26 + $0x1d8] sm:$0xff]  ;;  %s767_s30 = sshll.u32 %s1156_s29, 2 }
  0x40   : > { %399 = vmatprep.subr.mxu0 %v374_v9  ;;  %470 = vmatprep.subr.mxu1 %v376_v10  ;;  %v365_v15 = vld [vmem:[%s1045_s26 + $0x1c0] sm:$0xff]  ;;  %v367_v16 = vld [vmem:[%s1045_s26 + $0x1d0] sm:$0xff]  ;;  %v358_v17 = vld [vmem:[%s1045_s26 + $0x188] sm:$0xff]  ;;  %s306_s5 = scalar_lea.vmem %s1151_s2, %s767_s30 }
  0x41   : > { %400 = vmatpush1.msra.mxu0 %v373_v11  ;;  %471 = vmatpush1.msra.mxu1 %v375_v12  ;;  %v360_v18 = vld [vmem:[%s1045_s26 + $0x198] sm:$0xff]  ;;  %v357_v19 = vld [vmem:[%s1045_s26 + $0x180] sm:$0xff]  ;;  %v359_v20 = vld [vmem:[%s1045_s26 + $0x190] sm:$0xff] }
  0x42   : > { %401 = vmatprep.subr.mxu0 %v366_v13  ;;  %472 = vmatprep.subr.mxu1 %v368_v14  ;;  %v350_v21 = vld [vmem:[%s1045_s26 + $0x148] sm:$0xff]  ;;  %v352_v22 = vld [vmem:[%s1045_s26 + $0x158] sm:$0xff]  ;;  %v349_v23 = vld [vmem:[%s1045_s26 + $0x140] sm:$0xff] }
  0x43   : > { %402 = vmatpush1.msra.mxu0 %v365_v15  ;;  %473 = vmatpush1.msra.mxu1 %v367_v16  ;;  %v351_v24 = vld [vmem:[%s1045_s26 + $0x150] sm:$0xff]  ;;  %v342_v25 = vld [vmem:[%s1045_s26 + $0x108] sm:$0xff]  ;;  %v344_v26 = vld [vmem:[%s1045_s26 + $0x118] sm:$0xff] }
  0x44   : > { %403 = vmatprep.subr.mxu0 %v358_v17  ;;  %474 = vmatprep.subr.mxu1 %v360_v18  ;;  %v341_v27 = vld [vmem:[%s1045_s26 + $0x100] sm:$0xff]  ;;  %v343_v28 = vld [vmem:[%s1045_s26 + $0x110] sm:$0xff]  ;;  %v334_v29 = vld [vmem:[%s1045_s26 + $0xc8] sm:$0xff] }
  0x45   : > { %404 = vmatpush1.msra.mxu0 %v357_v19  ;;  %475 = vmatpush1.msra.mxu1 %v359_v20  ;;  %v336_v30 = vld [vmem:[%s1045_s26 + $0xd8] sm:$0xff]  ;;  %v333_v31 = vld [vmem:[%s1045_s26 + $0xc0] sm:$0xff]  ;;  %v335_v32 = vld [vmem:[%s1045_s26 + $0xd0] sm:$0xff] }
  0x46   : > { %405 = vmatprep.subr.mxu0 %v350_v21  ;;  %476 = vmatprep.subr.mxu1 %v352_v22  ;;  %v326_v33 = vld [vmem:[%s1045_s26 + $0x88] sm:$0xff]  ;;  %v328_v34 = vld [vmem:[%s1045_s26 + $0x98] sm:$0xff]  ;;  %v325_v35 = vld [vmem:[%s1045_s26 + $0x80] sm:$0xff] }
  0x47   : > { %406 = vmatpush1.msra.mxu0 %v349_v23  ;;  %477 = vmatpush1.msra.mxu1 %v351_v24  ;;  %v327_v36 = vld [vmem:[%s1045_s26 + $0x90] sm:$0xff]  ;;  %v318_v37 = vld [vmem:[%s1045_s26 + $0x48] sm:$0xff]  ;;  %v320_v38 = vld [vmem:[%s1045_s26 + $0x58] sm:$0xff] }
  0x48   : > { %407 = vmatprep.subr.mxu0 %v342_v25  ;;  %478 = vmatprep.subr.mxu1 %v344_v26  ;;  %v317_v39 = vld [vmem:[%s1045_s26 + $0x40] sm:$0xff]  ;;  %v319_v40 = vld [vmem:[%s1045_s26 + $0x50] sm:$0xff]  ;;  %v310_v41 = vld [vmem:[%s1045_s26 + $0x8] sm:$0xff] }
  0x49   : > { %408 = vmatpush1.msra.mxu0 %v341_v27  ;;  %479 = vmatpush1.msra.mxu1 %v343_v28  ;;  %v312_v42 = vld [vmem:[%s1045_s26 + $0x18] sm:$0xff]  ;;  %v309_v43 = vld [vmem:[%s1045_s26] sm:$0xff]  ;;  %v311_v44 = vld [vmem:[%s1045_s26 + $0x10] sm:$0xff] }
  0x4a   : > { %409 = vmatprep.subr.mxu0 %v334_v29  ;;  %480 = vmatprep.subr.mxu1 %v336_v30  ;;  %v1086_v45 = vld [vmem:[%s1149_s0] sm:$0xf]  ;;  %v378_v46 = vld [vmem:[%s1045_s26 + $0x228] sm:$0xff]  ;;  %v380_v47 = vld [vmem:[%s1045_s26 + $0x238] sm:$0xff] }
  0x4b   : > { %410 = vmatpush1.msra.mxu0 %v333_v31  ;;  %481 = vmatpush1.msra.mxu1 %v335_v32  ;;  %v377_v48 = vld [vmem:[%s1045_s26 + $0x220] sm:$0xff]  ;;  %v379_v49 = vld [vmem:[%s1045_s26 + $0x230] sm:$0xff]  ;;  %v370_v50 = vld [vmem:[%s1045_s26 + $0x1e8] sm:$0xff] }
  0x4c   : > { %411 = vmatprep.subr.mxu0 %v326_v33  ;;  %482 = vmatprep.subr.mxu1 %v328_v34  ;;  %v372_v51 = vld [vmem:[%s1045_s26 + $0x1f8] sm:$0xff]  ;;  %v369_v52 = vld [vmem:[%s1045_s26 + $0x1e0] sm:$0xff]  ;;  %v371_v53 = vld [vmem:[%s1045_s26 + $0x1f0] sm:$0xff] }
  0x4d   : > { %412 = vmatpush1.msra.mxu0 %v325_v35  ;;  %483 = vmatpush1.msra.mxu1 %v327_v36  ;;  %v362_v54 = vld [vmem:[%s1045_s26 + $0x1a8] sm:$0xff]  ;;  %v364_v55 = vld [vmem:[%s1045_s26 + $0x1b8] sm:$0xff]  ;;  %v361_v56 = vld [vmem:[%s1045_s26 + $0x1a0] sm:$0xff] }
  0x4e   : > { %413 = vmatprep.subr.mxu0 %v318_v37  ;;  %484 = vmatprep.subr.mxu1 %v320_v38  ;;  %v363_v57 = vld [vmem:[%s1045_s26 + $0x1b0] sm:$0xff]  ;;  %v354_v58 = vld [vmem:[%s1045_s26 + $0x168] sm:$0xff]  ;;  %v356_v59 = vld [vmem:[%s1045_s26 + $0x178] sm:$0xff] }
  0x4f   : > { %414 = vmatpush1.msra.mxu0 %v317_v39  ;;  %485 = vmatpush1.msra.mxu1 %v319_v40  ;;  %v353_v60 = vld [vmem:[%s1045_s26 + $0x160] sm:$0xff]  ;;  %v355_v61 = vld [vmem:[%s1045_s26 + $0x170] sm:$0xff]  ;;  %v346_v62 = vld [vmem:[%s1045_s26 + $0x128] sm:$0xff] }
  0x50   : > { %415 = vmatprep.subr.mxu0 %v310_v41  ;;  %486 = vmatprep.subr.mxu1 %v312_v42  ;;  %v348_v63 = vld [vmem:[%s1045_s26 + $0x138] sm:$0xff]  ;;  %v345_v0 = vld [vmem:[%s1045_s26 + $0x120] sm:$0xff]  ;;  %v347_v1 = vld [vmem:[%s1045_s26 + $0x130] sm:$0xff] }
  0x51   : > { %416 = vmatpush1.msra.mxu0 %v309_v43  ;;  %487 = vmatpush1.msra.mxu1 %v311_v44  ;;  %v338_v2 = vld [vmem:[%s1045_s26 + $0xe8] sm:$0xff]  ;;  %v340_v3 = vld [vmem:[%s1045_s26 + $0xf8] sm:$0xff]  ;;  %v337_v4 = vld [vmem:[%s1045_s26 + $0xe0] sm:$0xff] }
  0x52   : > { %768 = vmatmul.mubr.msk.f32.vlgmr.msra.gmra.mxu0 %vm381_vm0, %v1086_v45  ;;  %769 = vmatmul.mubr.msk.f32.vlgmr.msra.gmra.mxu1 %vm381_vm0, %v1086_v45  ;;  %v339_v5 = vld [vmem:[%s1045_s26 + $0xf0] sm:$0xff]  ;;  %v330_v6 = vld [vmem:[%s1045_s26 + $0xa8] sm:$0xff]  ;;  %v332_v7 = vld [vmem:[%s1045_s26 + $0xb8] sm:$0xff] }
  0x53   : > { %541 = vmatprep.subr.mxu0 %v378_v46  ;;  %612 = vmatprep.subr.mxu1 %v380_v47  ;;  %v329_v9 = vld [vmem:[%s1045_s26 + $0xa0] sm:$0xff]  ;;  %v331_v10 = vld [vmem:[%s1045_s26 + $0xb0] sm:$0xff]  ;;  %v322_v11 = vld [vmem:[%s1045_s26 + $0x68] sm:$0xff] }
  0x54   : > { %542 = vmatpush1.msra.mxu0 %v377_v48  ;;  %613 = vmatpush1.msra.mxu1 %v379_v49  ;;  %v324_v12 = vld [vmem:[%s1045_s26 + $0x78] sm:$0xff]  ;;  %v321_v13 = vld [vmem:[%s1045_s26 + $0x60] sm:$0xff]  ;;  %v323_v14 = vld [vmem:[%s1045_s26 + $0x70] sm:$0xff] }
  0x55   : > { %543 = vmatprep.subr.mxu0 %v370_v50  ;;  %614 = vmatprep.subr.mxu1 %v372_v51  ;;  %v314_v15 = vld [vmem:[%s1045_s26 + $0x28] sm:$0xff]  ;;  %v316_v16 = vld [vmem:[%s1045_s26 + $0x38] sm:$0xff]  ;;  %v313_v17 = vld [vmem:[%s1045_s26 + $0x20] sm:$0xff] }
  0x56   : > { %544 = vmatpush1.msra.mxu0 %v369_v52  ;;  %615 = vmatpush1.msra.mxu1 %v371_v53  ;;  %v315_v18 = vld [vmem:[%s1045_s26 + $0x30] sm:$0xff] }
  0x57   : > { %545 = vmatprep.subr.mxu0 %v362_v54  ;;  %616 = vmatprep.subr.mxu1 %v364_v55 }
  0x58   : > { %546 = vmatpush1.msra.mxu0 %v361_v56  ;;  %617 = vmatpush1.msra.mxu1 %v363_v57 }
  0x59   : > { %547 = vmatprep.subr.mxu0 %v354_v58  ;;  %618 = vmatprep.subr.mxu1 %v356_v59 }
  0x5a   : > { %548 = vmatpush1.msra.mxu0 %v353_v60  ;;  %619 = vmatpush1.msra.mxu1 %v355_v61 }
  0x5b   : > { %549 = vmatprep.subr.mxu0 %v346_v62  ;;  %620 = vmatprep.subr.mxu1 %v348_v63 }
  0x5c   : > { %550 = vmatpush1.msra.mxu0 %v345_v0  ;;  %621 = vmatpush1.msra.mxu1 %v347_v1 }
  0x5d   : > { %551 = vmatprep.subr.mxu0 %v338_v2  ;;  %622 = vmatprep.subr.mxu1 %v340_v3 }
  0x5e   : > { %552 = vmatpush1.msra.mxu0 %v337_v4  ;;  %623 = vmatpush1.msra.mxu1 %v339_v5 }
  0x5f   : > { %553 = vmatprep.subr.mxu0 %v330_v6  ;;  %624 = vmatprep.subr.mxu1 %v332_v7 }
  0x60   : > { %554 = vmatpush1.msra.mxu0 %v329_v9  ;;  %625 = vmatpush1.msra.mxu1 %v331_v10 }
  0x61   : > { %555 = vmatprep.subr.mxu0 %v322_v11  ;;  %626 = vmatprep.subr.mxu1 %v324_v12 }
  0x62   : > { %556 = vmatpush1.msra.mxu0 %v321_v13  ;;  %627 = vmatpush1.msra.mxu1 %v323_v14 }
  0x63   : > { %557 = vmatprep.subr.mxu0 %v314_v15  ;;  %628 = vmatprep.subr.mxu1 %v316_v16 }
  0x64   : > { %558 = vmatpush1.msra.mxu0 %v313_v17  ;;  %591 = vmatprep.mubr.f32.mxu0 %v842_v8 }
  0x65   : > { %629 = vmatpush1.msra.mxu1 %v315_v18  ;;  %662 = vmatprep.mubr.f32.mxu1 %v842_v8 }
  0x66   : > { %770 = vmatmul.mubr.msk.f32.vlgmr.msra.gmra.mxu0 %vm381_vm0, %v1086_v45  ;;  %771 = vmatmul.mubr.msk.f32.vlgmr.msra.gmra.mxu1 %vm381_vm0, %v1086_v45 }
 0x112   : > { %v451_v19 = vpop.f32.mrf.mxu0  ;;  %v522_v20 = vpop.f32.mrf.mxu1 }
 0x113   : > { %802 = vtanh.f32 %v451_v19 }
 0x114   : > { %804 = vtanh.f32 %v522_v20  ;;  %v453_v21 = vpop.f32.mrf.mxu0  ;;  %v524_v22 = vpop.f32.mrf.mxu1 }
 0x115   : > { %806 = vtanh.f32 %v453_v21 }
 0x116   : > { %808 = vtanh.f32 %v524_v22 }
 0x120   : > { %v803_v8 = vpop.eup %802 }
 0x121   : > { %v805_v23 = vpop.eup %804 }
 0x122   : > { %v807_v24 = vpop.eup %806 }
 0x123   : > { %v809_v25 = vpop.eup %808  ;;  %v685_v26 = vcombine.low %v803_v8, %v807_v24 }
 0x124   : > { %v686_v27 = vcombine.low %v805_v23, %v809_v25 }
 0x125   : > { %693 = vst [vmem:[%s306_s5] sm:$0xff] %v685_v26 }
 0x126   : > { %694 = vst [vmem:[%s306_s5 + $0x8] sm:$0xff] %v686_v27  ;;  %v593_v28 = vpop.f32.mrf.mxu0  ;;  %v664_v29 = vpop.f32.mrf.mxu1 }
 0x127   : > { %810 = vtanh.f32 %v593_v28 }
 0x128   : > { %812 = vtanh.f32 %v664_v29  ;;  %v595_v30 = vpop.f32.mrf.mxu0  ;;  %v666_v31 = vpop.f32.mrf.mxu1 }
 0x129   : > { %814 = vtanh.f32 %v595_v30 }
 0x12a   : > { %816 = vtanh.f32 %v666_v31 }
 0x134   : > { %v811_v32 = vpop.eup %810 }
 0x135   : > { %v813_v33 = vpop.eup %812 }
 0x136   : > { %v815_v34 = vpop.eup %814 }
 0x137   : > { %v817_v35 = vpop.eup %816  ;;  %v687_v36 = vcombine.low %v811_v32, %v815_v34 }
 0x138   : > { %v688_v37 = vcombine.low %v813_v33, %v817_v35 }
 0x139   : > { %695 = vst [vmem:[%s306_s5 + $0x10] sm:$0xff] %v687_v36 }
 0x13a   : > { %696 = vst [vmem:[%s306_s5 + $0x18] sm:$0xff] %v688_v37 }
 0x13b PF: > { %p9_p9 = scmp.ge.s32.totalorder %s875_s13, 4   ;;  %s1152_s9 = smov %s836_s10 }
 0x13c   : > { %s1153_s10 = smov %s884_s16  ;;  %s1154_s11 = smov %s875_s13 }
 0x13d   :  { %11 = sbr.rel (!%p9_p9) target bundleno = 2 (0x2), region = 86 }

</bundles_post_ra>
